<compile_context>
chip_gen: v6e
topology: v6e:2x2x1
jax: 0.10.0
libtpu: 0.0.40
codegen_flags: <defaults>
</compile_context>

<pallas_src>
import jax
import jax.numpy as jnp
from jax.experimental import pallas as pl
from jax.experimental.pallas import tpu as pltpu


# --------------------------------------------------------------------------------------
# helpers
# --------------------------------------------------------------------------------------

def _ceil_div(a, b):
    return (a + b - 1) // b


def _pick_vmem_limit():
    """Per-generation VMEM budget, leaving headroom below physical capacity."""
    try:
        cap = pltpu.get_tpu_info().vmem_capacity_bytes
        return int(min(100 * 1024 * 1024, cap * 3 // 4))
    except Exception:
        return 48 * 1024 * 1024  # safe on v5e/v6e (128 MiB) and v7x (64 MiB)


# --------------------------------------------------------------------------------------
# generic MXU matmul + bias kernel (fc head, encoder_att precompute, emb LSTM projection)
# --------------------------------------------------------------------------------------

def _matmul_bias_kernel(x_ref, w_ref, b_ref, o_ref):
    o_ref[...] = (jnp.dot(x_ref[...], w_ref[...], preferred_element_type=jnp.float32)
                  + b_ref[...]).astype(o_ref.dtype)


def _matmul_bias(x, w, b, out_dtype, vmem_limit):
    """out = x @ w + b, tiled over (M, N) with full K resident. x bf16, w bf16, b f32."""
    M, K = x.shape
    N = w.shape[-1]

    TM = 256 if M >= 256 else _ceil_div(M, 8) * 8
    Mp = _ceil_div(M, TM) * TM
    if Mp != M:
        x = jnp.pad(x, ((0, Mp - M), (0, 0)))

    if N % 512 == 0:
        TN = 512
    elif N % 256 == 0:
        TN = 256
    elif N % 128 == 0:
        TN = 128
    else:
        TN = N

    out = pl.pallas_call(
        _matmul_bias_kernel,
        out_shape=jax.ShapeDtypeStruct((Mp, N), out_dtype),
        grid_spec=pltpu.PrefetchScalarGridSpec(
            num_scalar_prefetch=0,
            grid=(Mp // TM, N // TN),
            in_specs=[
                pl.BlockSpec((TM, K), lambda i, j: (i, 0)),
                pl.BlockSpec((K, TN), lambda i, j: (0, j)),
                pl.BlockSpec((1, TN), lambda i, j: (0, j)),
            ],
            out_specs=pl.BlockSpec((TM, TN), lambda i, j: (i, j)),
        ),
        compiler_params=pltpu.CompilerParams(
            dimension_semantics=("parallel", "parallel"),
            vmem_limit_bytes=vmem_limit,
        ),
    )(x, w, b)
    return out[:M]


# --------------------------------------------------------------------------------------
# recurrent decoder kernel: attention + gate + LSTMCell, U timesteps per grid step
# --------------------------------------------------------------------------------------

def decoder_step_kernel(
    enc_ref, att1_ref, xproj_ref,
    Wd_ref, bd_ref, wf_ref, bf_ref,
    Wfb_ref, bfb_ref,
    Wiha_ref, Whh_ref,
    Wih0_ref, bih0_ref, Wic0_ref, bic0_ref,
    h_seq_ref, alpha_ref,
    h_ref, c_ref,
):
    t = pl.program_id(1)
    Bc, P, E = enc_ref.shape
    U = xproj_ref.shape[0]
    D = h_ref.shape[-1]

    @pl.when(t == 0)
    def _init():
        # init_hidden_state: mean over pixels (sublane reduction), then init_h / init_c.
        enc0 = enc_ref[...]
        mean_enc = (jnp.sum(enc0.astype(jnp.float32), axis=1) * (1.0 / P)).astype(jnp.bfloat16)
        h_ref[...] = (jnp.dot(mean_enc, Wih0_ref[...],
                              preferred_element_type=jnp.float32) + bih0_ref[...])
        c_ref[...] = (jnp.dot(mean_enc, Wic0_ref[...],
                              preferred_element_type=jnp.float32) + bic0_ref[...])

    h = h_ref[...]                     # (Bc, D) f32
    c = c_ref[...]                     # (Bc, D) f32
    enc = enc_ref[...]                 # (Bc, P, E) bf16 (resident for the whole grid step)
    att1 = att1_ref[...]               # (Bc, P, A) bf16 (precomputed encoder_att(enc))
    wf = wf_ref[...]                   # (1, A) f32
    bf = bf_ref[...]                   # (1, 1) f32

    # U timesteps per grid step (static unroll) to amortize pipeline overhead.
    for u in range(U):
        h_bf = h.astype(jnp.bfloat16)

        # ---- attention ----
        att2 = (jnp.dot(h_bf, Wd_ref[...], preferred_element_type=jnp.float32)
                + bd_ref[...])                                        # (Bc, A) f32
        pre = jnp.maximum(att1 + att2[:, None, :], 0.0)               # (Bc, P, A) f32
        scores = jnp.sum(pre * wf, axis=-1) + bf                      # (Bc, P)  lane reduce
        scores = scores - jnp.max(scores, axis=-1, keepdims=True)
        ex = jnp.exp(scores)
        alpha = ex * pl.reciprocal(jnp.sum(ex, axis=-1, keepdims=True), approx=True)  # (Bc, P)
        awe = jnp.sum(alpha[:, :, None] * enc, axis=1)                # (Bc, E) f32 (sublane red.)

        # ---- gate = sigmoid(f_beta(h)) ----
        gate = jax.nn.sigmoid(jnp.dot(h_bf, Wfb_ref[...],
                                      preferred_element_type=jnp.float32) + bfb_ref[...])
        awe = gate * awe

        # ---- LSTMCell([emb, awe], (h, c)); emb part + biases precomputed in xproj ----
        gates = (xproj_ref[u]
                 + jnp.dot(awe.astype(jnp.bfloat16), Wiha_ref[...],
                           preferred_element_type=jnp.float32)
                 + jnp.dot(h_bf, Whh_ref[...], preferred_element_type=jnp.float32))
        i_g = jax.nn.sigmoid(gates[:, 0 * D:1 * D])
        f_g = jax.nn.sigmoid(gates[:, 1 * D:2 * D])
        g_g = jnp.tanh(gates[:, 2 * D:3 * D])
        o_g = jax.nn.sigmoid(gates[:, 3 * D:4 * D])
        c = f_g * c + i_g * g_g
        h = o_g * jnp.tanh(c)

        # TODO(synk): nn.Dropout(p=0.5) is treated as identity (eval / inference mode).
        h_seq_ref[u] = h.astype(h_seq_ref.dtype)   # fc vocab head applied after the recurrence
        alpha_ref[u] = alpha

    h_ref[...] = h
    c_ref[...] = c


# --------------------------------------------------------------------------------------
# parameters (shapes from DecoderWithAttention.__init__), stored f32, cast in the wrapper
# --------------------------------------------------------------------------------------

def make_params(key, attention_dim, embed_dim, decoder_dim, vocab_size, encoder_dim):
    ks = jax.random.split(key, 20)

    def u(k, shape, scale=0.1):
        return jax.random.uniform(k, shape, jnp.float32, -scale, scale)

    D4 = 4 * decoder_dim
    return dict(
        emb_table=u(ks[0], (vocab_size, embed_dim)),             # nn.Embedding
        W_enc_att=u(ks[1], (encoder_dim, attention_dim)),        # encoder_att (transposed)
        b_enc_att=u(ks[2], (1, attention_dim)),
        W_dec_att=u(ks[3], (decoder_dim, attention_dim)),        # decoder_att (transposed)
        b_dec_att=u(ks[4], (1, attention_dim)),
        w_full=u(ks[5], (1, attention_dim)),                     # full_att weight (1, A)
        b_full=u(ks[6], (1, 1)),
        W_fbeta=u(ks[7], (decoder_dim, encoder_dim)),            # f_beta (transposed)
        b_fbeta=u(ks[8], (1, encoder_dim)),
        W_ih_x=u(ks[9], (embed_dim, D4)),                        # LSTM W_ih, embedding part
        W_ih_a=u(ks[10], (encoder_dim, D4)),                     # LSTM W_ih, awe part
        W_hh=u(ks[11], (decoder_dim, D4)),                       # LSTM W_hh (transposed)
        b_lstm=u(ks[12], (1, D4)),                               # b_ih + b_hh combined
        W_init_h=u(ks[13], (encoder_dim, decoder_dim)),          # init_h (transposed)
        b_init_h=u(ks[14], (1, decoder_dim)),
        W_init_c=u(ks[15], (encoder_dim, decoder_dim)),          # init_c (transposed)
        b_init_c=u(ks[16], (1, decoder_dim)),
        W_fc=u(ks[17], (decoder_dim, vocab_size)),               # fc (transposed)
        b_fc=jnp.zeros((1, vocab_size), jnp.float32),            # fc.bias.fill_(0)
    )


# --------------------------------------------------------------------------------------
# wrapper
# --------------------------------------------------------------------------------------

def decoder_with_attention_forward(params, encoder_out, encoded_captions, caption_lengths,
                                   max_decode_length, teacher_forcing_ratio=1.0, time_block=4):
    """
    encoder_out:       (B, enc_image_size, enc_image_size, encoder_dim)  float32
    encoded_captions:  (B, max_caption_length)                           int32
    caption_lengths:   (B, 1)                                            int32
    max_decode_length: static python int == max(caption_lengths) - 1 (computed on host once,
                       so there is no device->host sync inside the jitted forward).
    Only teacher_forcing_ratio == 1.0 is implemented (always teacher forcing).
    # TODO(synk): teacher_forcing_ratio < 1.0 (argmax feedback path) not implemented.
    """
    del teacher_forcing_ratio
    bf16, f32 = jnp.bfloat16, jnp.float32

    B = encoder_out.shape[0]
    E = encoder_out.shape[-1]
    enc = encoder_out.reshape(B, -1, E)
    P = enc.shape[1]

    # sort by caption length, descending (glue, plain JAX).
    # NOTE: tie-breaking order may differ from torch.sort(descending=True) on equal lengths.
    lengths = caption_lengths[:, 0]
    sort_ind = jnp.argsort(-lengths)
    lengths_sorted = lengths[sort_ind]
    enc = enc[sort_ind]
    caps = encoded_captions[sort_ind]
    decode_lengths = (lengths_sorted - 1).astype(jnp.int32)

    T_dec = int(max_decode_length)
    U = max(1, int(time_block))
    T_blocks = _ceil_div(T_dec, U)
    T_pad = T_blocks * U

    D = params["W_hh"].shape[0]
    A = params["W_enc_att"].shape[-1]
    V = params["W_fc"].shape[-1]
    G4 = 4 * D
    Eemb = params["emb_table"].shape[-1]

    vmem_limit = _pick_vmem_limit()
    enc_bf = enc.astype(bf16)

    # ---- pre-pass 1: encoder_att(encoder_out), reused every timestep ----
    att1_all = _matmul_bias(enc_bf.reshape(B * P, E),
                            params["W_enc_att"].astype(bf16),
                            params["b_enc_att"].astype(f32),
                            bf16, vmem_limit).reshape(B, P, A)

    # ---- pre-pass 2: embedding lookup + embedding half of the LSTM input projection ----
    embeddings = params["emb_table"][caps][:, :T_dec, :]               # (B, T_dec, emb)
    emb_t = jnp.transpose(embeddings, (1, 0, 2)).astype(bf16)          # (T_dec, B, emb)
    emb_t = jnp.pad(emb_t, ((0, T_pad - T_dec), (0, 0), (0, 0)))
    xproj_t = _matmul_bias(emb_t.reshape(T_pad * B, Eemb),
                           params["W_ih_x"].astype(bf16),
                           params["b_lstm"].astype(f32),
                           f32, vmem_limit).reshape(T_pad, B, G4)

    # batch split: 2 chunks (feeds the 2nd TensorCore on v7x) when chunks stay sublane-aligned.
    nb = 2 if (B % 16 == 0) else 1
    Bc = B // nb

    weights = [
        params["W_dec_att"].astype(bf16), params["b_dec_att"].astype(f32),
        params["w_full"].astype(f32), params["b_full"].astype(f32),
        params["W_fbeta"].astype(bf16), params["b_fbeta"].astype(f32),
        params["W_ih_a"].astype(bf16), params["W_hh"].astype(bf16),
        params["W_init_h"].astype(bf16), params["b_init_h"].astype(f32),
        params["W_init_c"].astype(bf16), params["b_init_c"].astype(f32),
    ]

    in_specs = [
        pl.BlockSpec((Bc, P, E), lambda b, t: (b, 0, 0)),       # encoder features (per chunk)
        pl.BlockSpec((Bc, P, A), lambda b, t: (b, 0, 0)),       # precomputed encoder_att
        pl.BlockSpec((U, Bc, G4), lambda b, t: (t, b, 0)),      # precomputed emb LSTM proj
    ] + [pl.BlockSpec(w.shape, lambda b, t: (0, 0)) for w in weights]

    out_specs = [
        pl.BlockSpec((U, Bc, D), lambda b, t: (t, b, 0)),       # per-step hidden states (bf16)
        pl.BlockSpec((U, Bc, P), lambda b, t: (t, b, 0)),       # per-step attention weights
    ]

    grid_spec = pltpu.PrefetchScalarGridSpec(
        num_scalar_prefetch=0,
        grid=(nb, T_blocks),
        in_specs=in_specs,
        out_specs=out_specs,
        scratch_shapes=[
            pltpu.VMEM((Bc, D), jnp.float32),        # h
            pltpu.VMEM((Bc, D), jnp.float32),        # c
        ],
    )

    h_seq, alpha_t = pl.pallas_call(
        decoder_step_kernel,
        out_shape=(
            jax.ShapeDtypeStruct((T_pad, B, D), bf16),
            jax.ShapeDtypeStruct((T_pad, B, P), f32),
        ),
        grid_spec=grid_spec,
        compiler_params=pltpu.CompilerParams(
            dimension_semantics=("parallel", "arbitrary"),
            vmem_limit_bytes=vmem_limit,
        ),
    )(enc_bf, att1_all, xproj_t, *weights)

    # ---- fc head hoisted out of the recurrence: one (T*B, D) x (D, V) MXU matmul ----
    preds_flat = _matmul_bias(h_seq.reshape(T_pad * B, D),
                              params["W_fc"].astype(bf16), params["b_fc"].astype(f32),
                              f32, vmem_limit)
    preds_t = preds_flat.reshape(T_pad, B, V)[:T_dec]
    alpha_t = alpha_t[:T_dec]

    predictions = jnp.transpose(preds_t, (1, 0, 2))   # (B, T_dec, vocab)
    alphas = jnp.transpose(alpha_t, (1, 0, 2))        # (B, T_dec, num_pixels)

    # batch_size_t masking done post-hoc in XLA (rows with decode_length <= t stay 0).
    # TODO(synk): internal h/c keep advancing for inactive rows (outputs are masked anyway).
    active = jnp.arange(T_dec, dtype=jnp.int32)[None, :] < decode_lengths[:, None]
    predictions = jnp.where(active[:, :, None], predictions, 0.0)
    alphas = jnp.where(active[:, :, None], alphas, 0.0)

    return predictions, caps, decode_lengths, alphas, sort_ind


# --------------------------------------------------------------------------------------
# demo
# --------------------------------------------------------------------------------------

if __name__ == "__main__":
    # small, (8,128)-aligned shapes consistent with the module's forward
    B = 16                 # batch (multiple of 16 -> 2 parallel batch chunks of 8)
    enc_size = 4           # enc_image_size -> num_pixels = 16
    encoder_dim = 128
    embed_dim = 128
    decoder_dim = 128
    attention_dim = 128
    vocab_size = 256
    max_cap_len = 10

    key = jax.random.PRNGKey(0)
    k_p, k_enc, k_cap, k_len = jax.random.split(key, 4)

    params = make_params(k_p, attention_dim, embed_dim, decoder_dim, vocab_size, encoder_dim)

    encoder_out = jax.random.normal(k_enc, (B, enc_size, enc_size, encoder_dim), jnp.float32)
    encoded_captions = jax.random.randint(k_cap, (B, max_cap_len), 0, vocab_size, jnp.int32)
    caption_lengths = jax.random.randint(k_len, (B, 1), 3, max_cap_len + 1, jnp.int32)
    caption_lengths = caption_lengths.at[0, 0].set(max_cap_len)  # ensure max length is hit

    # static max decode length -> no device->host sync inside the jitted forward
    t_dec = max_cap_len - 1

    forward = jax.jit(
        decoder_with_attention_forward,
        static_argnames=("max_decode_length", "teacher_forcing_ratio", "time_block"),
    )
    preds, caps_sorted, dec_lens, alphas, sort_ind = forward(
        params, encoder_out, encoded_captions, caption_lengths,
        max_decode_length=t_dec, teacher_forcing_ratio=1.0, time_block=4)

    jax.block_until_ready((preds, caps_sorted, dec_lens, alphas, sort_ind))
    assert preds.shape == (B, t_dec, vocab_size)
    assert alphas.shape == (B, t_dec, enc_size * enc_size)
    print("KERNEL_OK")
</pallas_src>

<mosaic_0001>
module attributes {stable_mosaic.version = 11 : i64} {
  func.func @_matmul_bias_kernel(%arg0: i32, %arg1: i32, %arg2: memref<192x128xbf16, #tpu.memory_space<vmem>>, %arg3: memref<128x512xbf16, #tpu.memory_space<vmem>>, %arg4: memref<1x512xf32, #tpu.memory_space<vmem>>, %arg5: memref<192x512xf32, #tpu.memory_space<vmem>>) attributes {dimension_semantics = [#tpu.dimension_semantics<parallel>, #tpu.dimension_semantics<parallel>], iteration_bounds = array<i64: 1, 1>, scalar_prefetch = 0 : i64, scratch_operands = 0 : i64, tpu.core_type = #tpu.core_type<tc>, window_params = [{transform_indices = @transform_0, window_bounds = array<i64: 192, 128>}, {transform_indices = @transform_1, window_bounds = array<i64: 128, 512>}, {transform_indices = @transform_2, window_bounds = array<i64: 1, 512>}, {transform_indices = @transform_3, window_bounds = array<i64: 192, 512>}]} {
    %c0 = arith.constant 0 : index
    %c0_0 = arith.constant 0 : index
    %0 = vector.load %arg2[%c0, %c0_0] : memref<192x128xbf16, #tpu.memory_space<vmem>>, vector<192x128xbf16>
    %c0_1 = arith.constant 0 : index
    %c0_2 = arith.constant 0 : index
    %1 = vector.load %arg3[%c0_1, %c0_2] : memref<128x512xbf16, #tpu.memory_space<vmem>>, vector<128x512xbf16>
    %cst = arith.constant dense<0.000000e+00> : vector<192x512xf32>
    %2 = tpu.matmul %0, %1, %cst {dimension_numbers = #tpu.dot_dimension_numbers<[1], [0], [0], [1], [0, 0, 1, 1], [], []>} : vector<192x128xbf16>, vector<128x512xbf16>, vector<192x512xf32> -> vector<192x512xf32>
    %c0_3 = arith.constant 0 : index
    %c0_4 = arith.constant 0 : index
    %3 = vector.load %arg4[%c0_3, %c0_4] : memref<1x512xf32, #tpu.memory_space<vmem>>, vector<1x512xf32>
    %4 = vector.broadcast %3 : vector<1x512xf32> to vector<192x512xf32>
    %5 = arith.addf %2, %4 : vector<192x512xf32>
    %c0_5 = arith.constant 0 : index
    %c0_6 = arith.constant 0 : index
    %6 = vector.load %arg5[%c0_5, %c0_6] : memref<192x512xf32, #tpu.memory_space<vmem>>, vector<192x512xf32>
    tpu.vector_store %arg5[%c0_5, %c0_6], %5 {strides = array<i32>} : memref<192x512xf32, #tpu.memory_space<vmem>>, vector<192x512xf32>,
    return
  }
  func.func @transform_0(%arg0: i32, %arg1: i32) -> (i32, i32) {
    %c0_i32 = arith.constant 0 : i32
    %c0_i32_0 = arith.constant 0 : i32
    return %arg0, %c0_i32 : i32, i32
  }
  func.func @transform_1(%arg0: i32, %arg1: i32) -> (i32, i32) {
    %c0_i32 = arith.constant 0 : i32
    %c0_i32_0 = arith.constant 0 : i32
    return %c0_i32, %arg1 : i32, i32
  }
  func.func @transform_2(%arg0: i32, %arg1: i32) -> (i32, i32) {
    %c0_i32 = arith.constant 0 : i32
    %c0_i32_0 = arith.constant 0 : i32
    return %c0_i32, %arg1 : i32, i32
  }
  func.func @transform_3(%arg0: i32, %arg1: i32) -> (i32, i32) {
    %c0_i32 = arith.constant 0 : i32
    return %arg0, %arg1 : i32, i32
  }
}

module attributes {stable_mosaic.version = 11 : i64} {
  func.func @_matmul_bias_kernel(%arg0: i32, %arg1: i32, %arg2: memref<256x128xbf16, #tpu.memory_space<vmem>>, %arg3: memref<128x128xbf16, #tpu.memory_space<vmem>>, %arg4: memref<1x128xf32, #tpu.memory_space<vmem>>, %arg5: memref<256x128xbf16, #tpu.memory_space<vmem>>) attributes {dimension_semantics = [#tpu.dimension_semantics<parallel>, #tpu.dimension_semantics<parallel>], iteration_bounds = array<i64: 1, 1>, scalar_prefetch = 0 : i64, scratch_operands = 0 : i64, tpu.core_type = #tpu.core_type<tc>, window_params = [{transform_indices = @transform_0, window_bounds = array<i64: 256, 128>}, {transform_indices = @transform_1, window_bounds = array<i64: 128, 128>}, {transform_indices = @transform_2, window_bounds = array<i64: 1, 128>}, {transform_indices = @transform_3, window_bounds = array<i64: 256, 128>}]} {
    %c0 = arith.constant 0 : index
    %c0_0 = arith.constant 0 : index
    %0 = vector.load %arg2[%c0, %c0_0] : memref<256x128xbf16, #tpu.memory_space<vmem>>, vector<256x128xbf16>
    %c0_1 = arith.constant 0 : index
    %c0_2 = arith.constant 0 : index
    %1 = vector.load %arg3[%c0_1, %c0_2] : memref<128x128xbf16, #tpu.memory_space<vmem>>, vector<128x128xbf16>
    %cst = arith.constant dense<0.000000e+00> : vector<256x128xf32>
    %2 = tpu.matmul %0, %1, %cst {dimension_numbers = #tpu.dot_dimension_numbers<[1], [0], [0], [1], [0, 0, 1, 1], [], []>} : vector<256x128xbf16>, vector<128x128xbf16>, vector<256x128xf32> -> vector<256x128xf32>
    %c0_3 = arith.constant 0 : index
    %c0_4 = arith.constant 0 : index
    %3 = vector.load %arg4[%c0_3, %c0_4] : memref<1x128xf32, #tpu.memory_space<vmem>>, vector<1x128xf32>
    %4 = vector.broadcast %3 : vector<1x128xf32> to vector<256x128xf32>
    %5 = arith.addf %2, %4 : vector<256x128xf32>
    %6 = arith.truncf %5 : vector<256x128xf32> to vector<256x128xbf16>
    %c0_5 = arith.constant 0 : index
    %c0_6 = arith.constant 0 : index
    %7 = vector.load %arg5[%c0_5, %c0_6] : memref<256x128xbf16, #tpu.memory_space<vmem>>, vector<256x128xbf16>
    tpu.vector_store %arg5[%c0_5, %c0_6], %6 {strides = array<i32>} : memref<256x128xbf16, #tpu.memory_space<vmem>>, vector<256x128xbf16>,
    return
  }
  func.func @transform_0(%arg0: i32, %arg1: i32) -> (i32, i32) {
    %c0_i32 = arith.constant 0 : i32
    %c0_i32_0 = arith.constant 0 : i32
    return %arg0, %c0_i32 : i32, i32
  }
  func.func @transform_1(%arg0: i32, %arg1: i32) -> (i32, i32) {
    %c0_i32 = arith.constant 0 : i32
    %c0_i32_0 = arith.constant 0 : i32
    return %c0_i32, %arg1 : i32, i32
  }
  func.func @transform_2(%arg0: i32, %arg1: i32) -> (i32, i32) {
    %c0_i32 = arith.constant 0 : i32
    %c0_i32_0 = arith.constant 0 : i32
    return %c0_i32, %arg1 : i32, i32
  }
  func.func @transform_3(%arg0: i32, %arg1: i32) -> (i32, i32) {
    %c0_i32 = arith.constant 0 : i32
    return %arg0, %arg1 : i32, i32
  }
}

module attributes {stable_mosaic.version = 11 : i64} {
  func.func @_matmul_bias_kernel(%arg0: i32, %arg1: i32, %arg2: memref<192x128xbf16, #tpu.memory_space<vmem>>, %arg3: memref<128x256xbf16, #tpu.memory_space<vmem>>, %arg4: memref<1x256xf32, #tpu.memory_space<vmem>>, %arg5: memref<192x256xf32, #tpu.memory_space<vmem>>) attributes {dimension_semantics = [#tpu.dimension_semantics<parallel>, #tpu.dimension_semantics<parallel>], iteration_bounds = array<i64: 1, 1>, scalar_prefetch = 0 : i64, scratch_operands = 0 : i64, tpu.core_type = #tpu.core_type<tc>, window_params = [{transform_indices = @transform_0, window_bounds = array<i64: 192, 128>}, {transform_indices = @transform_1, window_bounds = array<i64: 128, 256>}, {transform_indices = @transform_2, window_bounds = array<i64: 1, 256>}, {transform_indices = @transform_3, window_bounds = array<i64: 192, 256>}]} {
    %c0 = arith.constant 0 : index
    %c0_0 = arith.constant 0 : index
    %0 = vector.load %arg2[%c0, %c0_0] : memref<192x128xbf16, #tpu.memory_space<vmem>>, vector<192x128xbf16>
    %c0_1 = arith.constant 0 : index
    %c0_2 = arith.constant 0 : index
    %1 = vector.load %arg3[%c0_1, %c0_2] : memref<128x256xbf16, #tpu.memory_space<vmem>>, vector<128x256xbf16>
    %cst = arith.constant dense<0.000000e+00> : vector<192x256xf32>
    %2 = tpu.matmul %0, %1, %cst {dimension_numbers = #tpu.dot_dimension_numbers<[1], [0], [0], [1], [0, 0, 1, 1], [], []>} : vector<192x128xbf16>, vector<128x256xbf16>, vector<192x256xf32> -> vector<192x256xf32>
    %c0_3 = arith.constant 0 : index
    %c0_4 = arith.constant 0 : index
    %3 = vector.load %arg4[%c0_3, %c0_4] : memref<1x256xf32, #tpu.memory_space<vmem>>, vector<1x256xf32>
    %4 = vector.broadcast %3 : vector<1x256xf32> to vector<192x256xf32>
    %5 = arith.addf %2, %4 : vector<192x256xf32>
    %c0_5 = arith.constant 0 : index
    %c0_6 = arith.constant 0 : index
    %6 = vector.load %arg5[%c0_5, %c0_6] : memref<192x256xf32, #tpu.memory_space<vmem>>, vector<192x256xf32>
    tpu.vector_store %arg5[%c0_5, %c0_6], %5 {strides = array<i32>} : memref<192x256xf32, #tpu.memory_space<vmem>>, vector<192x256xf32>,
    return
  }
  func.func @transform_0(%arg0: i32, %arg1: i32) -> (i32, i32) {
    %c0_i32 = arith.constant 0 : i32
    %c0_i32_0 = arith.constant 0 : i32
    return %arg0, %c0_i32 : i32, i32
  }
  func.func @transform_1(%arg0: i32, %arg1: i32) -> (i32, i32) {
    %c0_i32 = arith.constant 0 : i32
    %c0_i32_0 = arith.constant 0 : i32
    return %c0_i32, %arg1 : i32, i32
  }
  func.func @transform_2(%arg0: i32, %arg1: i32) -> (i32, i32) {
    %c0_i32 = arith.constant 0 : i32
    %c0_i32_0 = arith.constant 0 : i32
    return %c0_i32, %arg1 : i32, i32
  }
  func.func @transform_3(%arg0: i32, %arg1: i32) -> (i32, i32) {
    %c0_i32 = arith.constant 0 : i32
    return %arg0, %arg1 : i32, i32
  }
}

module attributes {stable_mosaic.version = 11 : i64} {
  func.func @decoder_step_kernel(%arg0: i32, %arg1: i32, %arg2: memref<8x16x128xbf16, #tpu.memory_space<vmem>>, %arg3: memref<8x16x128xbf16, #tpu.memory_space<vmem>>, %arg4: memref<4x8x512xf32, #tpu.memory_space<vmem>>, %arg5: memref<128x128xbf16, #tpu.memory_space<vmem>>, %arg6: memref<1x128xf32, #tpu.memory_space<vmem>>, %arg7: memref<1x128xf32, #tpu.memory_space<vmem>>, %arg8: memref<1x1xf32, #tpu.memory_space<vmem>>, %arg9: memref<128x128xbf16, #tpu.memory_space<vmem>>, %arg10: memref<1x128xf32, #tpu.memory_space<vmem>>, %arg11: memref<128x512xbf16, #tpu.memory_space<vmem>>, %arg12: memref<128x512xbf16, #tpu.memory_space<vmem>>, %arg13: memref<128x128xbf16, #tpu.memory_space<vmem>>, %arg14: memref<1x128xf32, #tpu.memory_space<vmem>>, %arg15: memref<128x128xbf16, #tpu.memory_space<vmem>>, %arg16: memref<1x128xf32, #tpu.memory_space<vmem>>, %arg17: memref<4x8x128xbf16, #tpu.memory_space<vmem>>, %arg18: memref<4x8x16xf32, #tpu.memory_space<vmem>>, %arg19: memref<8x128xf32, #tpu.memory_space<vmem>>, %arg20: memref<8x128xf32, #tpu.memory_space<vmem>>) attributes {dimension_semantics = [#tpu.dimension_semantics<parallel>, #tpu.dimension_semantics<arbitrary>], iteration_bounds = array<i64: 2, 3>, scalar_prefetch = 0 : i64, scratch_operands = 2 : i64, tpu.core_type = #tpu.core_type<tc>, window_params = [{transform_indices = @transform_0, window_bounds = array<i64: 8, 16, 128>}, {transform_indices = @transform_1, window_bounds = array<i64: 8, 16, 128>}, {transform_indices = @transform_2, window_bounds = array<i64: 4, 8, 512>}, {pipeline_mode = #tpu.pipeline_mode<synchronous>, transform_indices = @transform_3, window_bounds = array<i64: 128, 128>}, {pipeline_mode = #tpu.pipeline_mode<synchronous>, transform_indices = @transform_4, window_bounds = array<i64: 1, 128>}, {pipeline_mode = #tpu.pipeline_mode<synchronous>, transform_indices = @transform_5, window_bounds = array<i64: 1, 128>}, {pipeline_mode = #tpu.pipeline_mode<synchronous>, transform_indices = @transform_6, window_bounds = array<i64: 1, 1>}, {pipeline_mode = #tpu.pipeline_mode<synchronous>, transform_indices = @transform_7, window_bounds = array<i64: 128, 128>}, {pipeline_mode = #tpu.pipeline_mode<synchronous>, transform_indices = @transform_8, window_bounds = array<i64: 1, 128>}, {pipeline_mode = #tpu.pipeline_mode<synchronous>, transform_indices = @transform_9, window_bounds = array<i64: 128, 512>}, {pipeline_mode = #tpu.pipeline_mode<synchronous>, transform_indices = @transform_10, window_bounds = array<i64: 128, 512>}, {pipeline_mode = #tpu.pipeline_mode<synchronous>, transform_indices = @transform_11, window_bounds = array<i64: 128, 128>}, {pipeline_mode = #tpu.pipeline_mode<synchronous>, transform_indices = @transform_12, window_bounds = array<i64: 1, 128>}, {pipeline_mode = #tpu.pipeline_mode<synchronous>, transform_indices = @transform_13, window_bounds = array<i64: 128, 128>}, {pipeline_mode = #tpu.pipeline_mode<synchronous>, transform_indices = @transform_14, window_bounds = array<i64: 1, 128>}, {transform_indices = @transform_15, window_bounds = array<i64: 4, 8, 128>}, {transform_indices = @transform_16, window_bounds = array<i64: 4, 8, 16>}]} {
    %c0_i32 = arith.constant 0 : i32
    %0 = arith.cmpi eq, %arg1, %c0_i32 : i32
    %1 = arith.extui %0 : i1 to i32
    %c0_i32_0 = arith.constant 0 : i32
    %2 = arith.cmpi ne, %1, %c0_i32_0 : i32
    scf.if %2 {
      %c0_150 = arith.constant 0 : index
      %c0_151 = arith.constant 0 : index
      %c0_152 = arith.constant 0 : index
      %351 = vector.load %arg2[%c0_150, %c0_151, %c0_152] : memref<8x16x128xbf16, #tpu.memory_space<vmem>>, vector<8x16x128xbf16>
      %352 = arith.extf %351 : vector<8x16x128xbf16> to vector<8x16x128xf32>
      %cst_153 = arith.constant dense<0.000000e+00> : vector<8x128xf32>
      %353 = vector.multi_reduction <add>, %352, %cst_153 [1] : vector<8x16x128xf32> to vector<8x128xf32>
      %cst_154 = arith.constant 6.250000e-02 : f32
      %354 = vector.broadcast %cst_154 : f32 to vector<8x128xf32>
      %355 = arith.mulf %353, %354 : vector<8x128xf32>
      %356 = arith.truncf %355 : vector<8x128xf32> to vector<8x128xbf16>
      %c0_155 = arith.constant 0 : index
      %c0_156 = arith.constant 0 : index
      %357 = vector.load %arg13[%c0_155, %c0_156] : memref<128x128xbf16, #tpu.memory_space<vmem>>, vector<128x128xbf16>
      %cst_157 = arith.constant dense<0.000000e+00> : vector<8x128xf32>
      %358 = tpu.matmul %356, %357, %cst_157 {dimension_numbers = #tpu.dot_dimension_numbers<[1], [0], [0], [1], [0, 0, 1, 1], [], []>} : vector<8x128xbf16>, vector<128x128xbf16>, vector<8x128xf32> -> vector<8x128xf32>
      %c0_158 = arith.constant 0 : index
      %c0_159 = arith.constant 0 : index
      %359 = vector.load %arg14[%c0_158, %c0_159] : memref<1x128xf32, #tpu.memory_space<vmem>>, vector<1x128xf32>
      %360 = vector.broadcast %359 : vector<1x128xf32> to vector<8x128xf32>
      %361 = arith.addf %358, %360 : vector<8x128xf32>
      %c0_160 = arith.constant 0 : index
      %c0_161 = arith.constant 0 : index
      %362 = vector.load %arg19[%c0_160, %c0_161] : memref<8x128xf32, #tpu.memory_space<vmem>>, vector<8x128xf32>
      tpu.vector_store %arg19[%c0_160, %c0_161], %361 {strides = array<i32>} : memref<8x128xf32, #tpu.memory_space<vmem>>, vector<8x128xf32>,
      %c0_162 = arith.constant 0 : index
      %c0_163 = arith.constant 0 : index
      %363 = vector.load %arg15[%c0_162, %c0_163] : memref<128x128xbf16, #tpu.memory_space<vmem>>, vector<128x128xbf16>
      %cst_164 = arith.constant dense<0.000000e+00> : vector<8x128xf32>
      %364 = tpu.matmul %356, %363, %cst_164 {dimension_numbers = #tpu.dot_dimension_numbers<[1], [0], [0], [1], [0, 0, 1, 1], [], []>} : vector<8x128xbf16>, vector<128x128xbf16>, vector<8x128xf32> -> vector<8x128xf32>
      %c0_165 = arith.constant 0 : index
      %c0_166 = arith.constant 0 : index
      %365 = vector.load %arg16[%c0_165, %c0_166] : memref<1x128xf32, #tpu.memory_space<vmem>>, vector<1x128xf32>
      %366 = vector.broadcast %365 : vector<1x128xf32> to vector<8x128xf32>
      %367 = arith.addf %364, %366 : vector<8x128xf32>
      %c0_167 = arith.constant 0 : index
      %c0_168 = arith.constant 0 : index
      %368 = vector.load %arg20[%c0_167, %c0_168] : memref<8x128xf32, #tpu.memory_space<vmem>>, vector<8x128xf32>
      tpu.vector_store %arg20[%c0_167, %c0_168], %367 {strides = array<i32>} : memref<8x128xf32, #tpu.memory_space<vmem>>, vector<8x128xf32>,
    } else {
    }
    %c0 = arith.constant 0 : index
    %c0_1 = arith.constant 0 : index
    %3 = vector.load %arg19[%c0, %c0_1] : memref<8x128xf32, #tpu.memory_space<vmem>>, vector<8x128xf32>
    %c0_2 = arith.constant 0 : index
    %c0_3 = arith.constant 0 : index
    %4 = vector.load %arg20[%c0_2, %c0_3] : memref<8x128xf32, #tpu.memory_space<vmem>>, vector<8x128xf32>
    %c0_4 = arith.constant 0 : index
    %c0_5 = arith.constant 0 : index
    %c0_6 = arith.constant 0 : index
    %5 = vector.load %arg2[%c0_4, %c0_5, %c0_6] : memref<8x16x128xbf16, #tpu.memory_space<vmem>>, vector<8x16x128xbf16>
    %c0_7 = arith.constant 0 : index
    %c0_8 = arith.constant 0 : index
    %c0_9 = arith.constant 0 : index
    %6 = vector.load %arg3[%c0_7, %c0_8, %c0_9] : memref<8x16x128xbf16, #tpu.memory_space<vmem>>, vector<8x16x128xbf16>
    %c0_10 = arith.constant 0 : index
    %c0_11 = arith.constant 0 : index
    %7 = vector.load %arg7[%c0_10, %c0_11] : memref<1x128xf32, #tpu.memory_space<vmem>>, vector<1x128xf32>
    %c0_12 = arith.constant 0 : index
    %c0_13 = arith.constant 0 : index
    %8 = vector.load %arg8[%c0_12, %c0_13] : memref<1x1xf32, #tpu.memory_space<vmem>>, vector<1x1xf32>
    %9 = arith.truncf %3 : vector<8x128xf32> to vector<8x128xbf16>
    %c0_14 = arith.constant 0 : index
    %c0_15 = arith.constant 0 : index
    %10 = vector.load %arg5[%c0_14, %c0_15] : memref<128x128xbf16, #tpu.memory_space<vmem>>, vector<128x128xbf16>
    %cst = arith.constant dense<0.000000e+00> : vector<8x128xf32>
    %11 = tpu.matmul %9, %10, %cst {dimension_numbers = #tpu.dot_dimension_numbers<[1], [0], [0], [1], [0, 0, 1, 1], [], []>} : vector<8x128xbf16>, vector<128x128xbf16>, vector<8x128xf32> -> vector<8x128xf32>
    %c0_16 = arith.constant 0 : index
    %c0_17 = arith.constant 0 : index
    %12 = vector.load %arg6[%c0_16, %c0_17] : memref<1x128xf32, #tpu.memory_space<vmem>>, vector<1x128xf32>
    %13 = vector.broadcast %12 : vector<1x128xf32> to vector<8x128xf32>
    %14 = arith.addf %11, %13 : vector<8x128xf32>
    %15 = vector.shape_cast %14 : vector<8x128xf32> to vector<8x1x128xf32>
    %16 = arith.extf %6 : vector<8x16x128xbf16> to vector<8x16x128xf32>
    %17 = vector.broadcast %15 : vector<8x1x128xf32> to vector<8x16x128xf32>
    %18 = arith.addf %16, %17 : vector<8x16x128xf32>
    %cst_18 = arith.constant 0.000000e+00 : f32
    %19 = vector.broadcast %cst_18 : f32 to vector<8x16x128xf32>
    %20 = arith.maximumf %18, %19 : vector<8x16x128xf32>
    %21 = vector.shape_cast %7 : vector<1x128xf32> to vector<1x1x128xf32>
    %22 = vector.broadcast %21 : vector<1x1x128xf32> to vector<8x16x128xf32>
    %23 = arith.mulf %20, %22 : vector<8x16x128xf32>
    %cst_19 = arith.constant dense<0.000000e+00> : vector<8x16xf32>
    %24 = vector.multi_reduction <add>, %23, %cst_19 [2] : vector<8x16x128xf32> to vector<8x16xf32>
    %25 = vector.broadcast %8 : vector<1x1xf32> to vector<8x16xf32>
    %26 = arith.addf %24, %25 : vector<8x16xf32>
    %cst_20 = arith.constant dense<0xFF800000> : vector<8xf32>
    %27 = vector.multi_reduction <maximumf>, %26, %cst_20 [1] : vector<8x16xf32> to vector<8xf32>
    %28 = vector.shape_cast %27 : vector<8xf32> to vector<8x1xf32>
    %29 = vector.broadcast %28 : vector<8x1xf32> to vector<8x16xf32>
    %30 = arith.subf %26, %29 : vector<8x16xf32>
    %31 = math.exp %30 : vector<8x16xf32>
    %cst_21 = arith.constant dense<0.000000e+00> : vector<8xf32>
    %32 = vector.multi_reduction <add>, %31, %cst_21 [1] : vector<8x16xf32> to vector<8xf32>
    %33 = vector.shape_cast %32 : vector<8xf32> to vector<8x1xf32>
    %34 = tpu.reciprocal %33 {approx = true} : vector<8x1xf32> -> vector<8x1xf32>
    %35 = vector.broadcast %34 : vector<8x1xf32> to vector<8x16xf32>
    %36 = arith.mulf %31, %35 : vector<8x16xf32>
    %37 = vector.shape_cast %36 : vector<8x16xf32> to vector<8x16x1xf32>
    %38 = arith.extf %5 : vector<8x16x128xbf16> to vector<8x16x128xf32>
    %39 = vector.broadcast %37 : vector<8x16x1xf32> to vector<8x16x128xf32>
    %40 = arith.mulf %39, %38 : vector<8x16x128xf32>
    %cst_22 = arith.constant dense<0.000000e+00> : vector<8x128xf32>
    %41 = vector.multi_reduction <add>, %40, %cst_22 [1] : vector<8x16x128xf32> to vector<8x128xf32>
    %c0_23 = arith.constant 0 : index
    %c0_24 = arith.constant 0 : index
    %42 = vector.load %arg9[%c0_23, %c0_24] : memref<128x128xbf16, #tpu.memory_space<vmem>>, vector<128x128xbf16>
    %cst_25 = arith.constant dense<0.000000e+00> : vector<8x128xf32>
    %43 = tpu.matmul %9, %42, %cst_25 {dimension_numbers = #tpu.dot_dimension_numbers<[1], [0], [0], [1], [0, 0, 1, 1], [], []>} : vector<8x128xbf16>, vector<128x128xbf16>, vector<8x128xf32> -> vector<8x128xf32>
    %c0_26 = arith.constant 0 : index
    %c0_27 = arith.constant 0 : index
    %44 = vector.load %arg10[%c0_26, %c0_27] : memref<1x128xf32, #tpu.memory_space<vmem>>, vector<1x128xf32>
    %45 = vector.broadcast %44 : vector<1x128xf32> to vector<8x128xf32>
    %46 = arith.addf %43, %45 : vector<8x128xf32>
    %47 = arith.negf %46 : vector<8x128xf32>
    %48 = math.exp %47 : vector<8x128xf32>
    %cst_28 = arith.constant 1.000000e+00 : f32
    %49 = vector.broadcast %cst_28 : f32 to vector<8x128xf32>
    %50 = arith.addf %49, %48 : vector<8x128xf32>
    %51 = arith.divf %49, %50 : vector<8x128xf32>
    %52 = arith.mulf %51, %41 : vector<8x128xf32>
    %c0_29 = arith.constant 0 : index
    %c0_30 = arith.constant 0 : index
    %c0_31 = arith.constant 0 : index
    %53 = vector.load %arg4[%c0_29, %c0_30, %c0_31] : memref<4x8x512xf32, #tpu.memory_space<vmem>>, vector<1x8x512xf32>
    %54 = vector.shape_cast %53 : vector<1x8x512xf32> to vector<8x512xf32>
    %55 = arith.truncf %52 : vector<8x128xf32> to vector<8x128xbf16>
    %c0_32 = arith.constant 0 : index
    %c0_33 = arith.constant 0 : index
    %56 = vector.load %arg11[%c0_32, %c0_33] : memref<128x512xbf16, #tpu.memory_space<vmem>>, vector<128x512xbf16>
    %cst_34 = arith.constant dense<0.000000e+00> : vector<8x512xf32>
    %57 = tpu.matmul %55, %56, %cst_34 {dimension_numbers = #tpu.dot_dimension_numbers<[1], [0], [0], [1], [0, 0, 1, 1], [], []>} : vector<8x128xbf16>, vector<128x512xbf16>, vector<8x512xf32> -> vector<8x512xf32>
    %58 = arith.addf %54, %57 : vector<8x512xf32>
    %c0_35 = arith.constant 0 : index
    %c0_36 = arith.constant 0 : index
    %59 = vector.load %arg12[%c0_35, %c0_36] : memref<128x512xbf16, #tpu.memory_space<vmem>>, vector<128x512xbf16>
    %cst_37 = arith.constant dense<0.000000e+00> : vector<8x512xf32>
    %60 = tpu.matmul %9, %59, %cst_37 {dimension_numbers = #tpu.dot_dimension_numbers<[1], [0], [0], [1], [0, 0, 1, 1], [], []>} : vector<8x128xbf16>, vector<128x512xbf16>, vector<8x512xf32> -> vector<8x512xf32>
    %61 = arith.addf %58, %60 : vector<8x512xf32>
    %62 = vector.extract_strided_slice %61 {offsets = [0, 0], sizes = [8, 128], strides = [1, 1]} : vector<8x512xf32> to vector<8x128xf32>
    %63 = arith.negf %62 : vector<8x128xf32>
    %64 = math.exp %63 : vector<8x128xf32>
    %cst_38 = arith.constant 1.000000e+00 : f32
    %65 = vector.broadcast %cst_38 : f32 to vector<8x128xf32>
    %66 = arith.addf %65, %64 : vector<8x128xf32>
    %67 = arith.divf %65, %66 : vector<8x128xf32>
    %68 = vector.extract_strided_slice %61 {offsets = [0, 128], sizes = [8, 128], strides = [1, 1]} : vector<8x512xf32> to vector<8x128xf32>
    %69 = arith.negf %68 : vector<8x128xf32>
    %70 = math.exp %69 : vector<8x128xf32>
    %cst_39 = arith.constant 1.000000e+00 : f32
    %71 = vector.broadcast %cst_39 : f32 to vector<8x128xf32>
    %72 = arith.addf %71, %70 : vector<8x128xf32>
    %73 = arith.divf %71, %72 : vector<8x128xf32>
    %74 = vector.extract_strided_slice %61 {offsets = [0, 256], sizes = [8, 128], strides = [1, 1]} : vector<8x512xf32> to vector<8x128xf32>
    %75 = math.tanh %74 : vector<8x128xf32>
    %76 = vector.extract_strided_slice %61 {offsets = [0, 384], sizes = [8, 128], strides = [1, 1]} : vector<8x512xf32> to vector<8x128xf32>
    %77 = arith.negf %76 : vector<8x128xf32>
    %78 = math.exp %77 : vector<8x128xf32>
    %cst_40 = arith.constant 1.000000e+00 : f32
    %79 = vector.broadcast %cst_40 : f32 to vector<8x128xf32>
    %80 = arith.addf %79, %78 : vector<8x128xf32>
    %81 = arith.divf %79, %80 : vector<8x128xf32>
    %82 = arith.mulf %73, %4 : vector<8x128xf32>
    %83 = arith.mulf %67, %75 : vector<8x128xf32>
    %84 = arith.addf %82, %83 : vector<8x128xf32>
    %85 = math.tanh %84 : vector<8x128xf32>
    %86 = arith.mulf %81, %85 : vector<8x128xf32>
    %87 = arith.truncf %86 : vector<8x128xf32> to vector<8x128xbf16>
    %c0_41 = arith.constant 0 : index
    %c0_42 = arith.constant 0 : index
    %c0_43 = arith.constant 0 : index
    %88 = vector.load %arg17[%c0_41, %c0_42, %c0_43] : memref<4x8x128xbf16, #tpu.memory_space<vmem>>, vector<1x8x128xbf16>
    %89 = vector.shape_cast %88 : vector<1x8x128xbf16> to vector<8x128xbf16>
    %90 = vector.shape_cast %87 : vector<8x128xbf16> to vector<1x8x128xbf16>
    tpu.vector_store %arg17[%c0_41, %c0_42, %c0_43], %90 {strides = array<i32>} : memref<4x8x128xbf16, #tpu.memory_space<vmem>>, vector<1x8x128xbf16>,
    %c0_44 = arith.constant 0 : index
    %c0_45 = arith.constant 0 : index
    %c0_46 = arith.constant 0 : index
    %91 = vector.load %arg18[%c0_44, %c0_45, %c0_46] : memref<4x8x16xf32, #tpu.memory_space<vmem>>, vector<1x8x16xf32>
    %92 = vector.shape_cast %91 : vector<1x8x16xf32> to vector<8x16xf32>
    %93 = vector.shape_cast %36 : vector<8x16xf32> to vector<1x8x16xf32>
    tpu.vector_store %arg18[%c0_44, %c0_45, %c0_46], %93 {strides = array<i32>} : memref<4x8x16xf32, #tpu.memory_space<vmem>>, vector<1x8x16xf32>,
    %94 = arith.truncf %86 : vector<8x128xf32> to vector<8x128xbf16>
    %c0_47 = arith.constant 0 : index
    %c0_48 = arith.constant 0 : index
    %95 = vector.load %arg5[%c0_47, %c0_48] : memref<128x128xbf16, #tpu.memory_space<vmem>>, vector<128x128xbf16>
    %cst_49 = arith.constant dense<0.000000e+00> : vector<8x128xf32>
    %96 = tpu.matmul %94, %95, %cst_49 {dimension_numbers = #tpu.dot_dimension_numbers<[1], [0], [0], [1], [0, 0, 1, 1], [], []>} : vector<8x128xbf16>, vector<128x128xbf16>, vector<8x128xf32> -> vector<8x128xf32>
    %c0_50 = arith.constant 0 : index
    %c0_51 = arith.constant 0 : index
    %97 = vector.load %arg6[%c0_50, %c0_51] : memref<1x128xf32, #tpu.memory_space<vmem>>, vector<1x128xf32>
    %98 = vector.broadcast %97 : vector<1x128xf32> to vector<8x128xf32>
    %99 = arith.addf %96, %98 : vector<8x128xf32>
    %100 = vector.shape_cast %99 : vector<8x128xf32> to vector<8x1x128xf32>
    %101 = arith.extf %6 : vector<8x16x128xbf16> to vector<8x16x128xf32>
    %102 = vector.broadcast %100 : vector<8x1x128xf32> to vector<8x16x128xf32>
    %103 = arith.addf %101, %102 : vector<8x16x128xf32>
    %cst_52 = arith.constant 0.000000e+00 : f32
    %104 = vector.broadcast %cst_52 : f32 to vector<8x16x128xf32>
    %105 = arith.maximumf %103, %104 : vector<8x16x128xf32>
    %106 = vector.shape_cast %7 : vector<1x128xf32> to vector<1x1x128xf32>
    %107 = vector.broadcast %106 : vector<1x1x128xf32> to vector<8x16x128xf32>
    %108 = arith.mulf %105, %107 : vector<8x16x128xf32>
    %cst_53 = arith.constant dense<0.000000e+00> : vector<8x16xf32>
    %109 = vector.multi_reduction <add>, %108, %cst_53 [2] : vector<8x16x128xf32> to vector<8x16xf32>
    %110 = vector.broadcast %8 : vector<1x1xf32> to vector<8x16xf32>
    %111 = arith.addf %109, %110 : vector<8x16xf32>
    %cst_54 = arith.constant dense<0xFF800000> : vector<8xf32>
    %112 = vector.multi_reduction <maximumf>, %111, %cst_54 [1] : vector<8x16xf32> to vector<8xf32>
    %113 = vector.shape_cast %112 : vector<8xf32> to vector<8x1xf32>
    %114 = vector.broadcast %113 : vector<8x1xf32> to vector<8x16xf32>
    %115 = arith.subf %111, %114 : vector<8x16xf32>
    %116 = math.exp %115 : vector<8x16xf32>
    %cst_55 = arith.constant dense<0.000000e+00> : vector<8xf32>
    %117 = vector.multi_reduction <add>, %116, %cst_55 [1] : vector<8x16xf32> to vector<8xf32>
    %118 = vector.shape_cast %117 : vector<8xf32> to vector<8x1xf32>
    %119 = tpu.reciprocal %118 {approx = true} : vector<8x1xf32> -> vector<8x1xf32>
    %120 = vector.broadcast %119 : vector<8x1xf32> to vector<8x16xf32>
    %121 = arith.mulf %116, %120 : vector<8x16xf32>
    %122 = vector.shape_cast %121 : vector<8x16xf32> to vector<8x16x1xf32>
    %123 = arith.extf %5 : vector<8x16x128xbf16> to vector<8x16x128xf32>
    %124 = vector.broadcast %122 : vector<8x16x1xf32> to vector<8x16x128xf32>
    %125 = arith.mulf %124, %123 : vector<8x16x128xf32>
    %cst_56 = arith.constant dense<0.000000e+00> : vector<8x128xf32>
    %126 = vector.multi_reduction <add>, %125, %cst_56 [1] : vector<8x16x128xf32> to vector<8x128xf32>
    %c0_57 = arith.constant 0 : index
    %c0_58 = arith.constant 0 : index
    %127 = vector.load %arg9[%c0_57, %c0_58] : memref<128x128xbf16, #tpu.memory_space<vmem>>, vector<128x128xbf16>
    %cst_59 = arith.constant dense<0.000000e+00> : vector<8x128xf32>
    %128 = tpu.matmul %94, %127, %cst_59 {dimension_numbers = #tpu.dot_dimension_numbers<[1], [0], [0], [1], [0, 0, 1, 1], [], []>} : vector<8x128xbf16>, vector<128x128xbf16>, vector<8x128xf32> -> vector<8x128xf32>
    %c0_60 = arith.constant 0 : index
    %c0_61 = arith.constant 0 : index
    %129 = vector.load %arg10[%c0_60, %c0_61] : memref<1x128xf32, #tpu.memory_space<vmem>>, vector<1x128xf32>
    %130 = vector.broadcast %129 : vector<1x128xf32> to vector<8x128xf32>
    %131 = arith.addf %128, %130 : vector<8x128xf32>
    %132 = arith.negf %131 : vector<8x128xf32>
    %133 = math.exp %132 : vector<8x128xf32>
    %cst_62 = arith.constant 1.000000e+00 : f32
    %134 = vector.broadcast %cst_62 : f32 to vector<8x128xf32>
    %135 = arith.addf %134, %133 : vector<8x128xf32>
    %136 = arith.divf %134, %135 : vector<8x128xf32>
    %137 = arith.mulf %136, %126 : vector<8x128xf32>
    %c1 = arith.constant 1 : index
    %c0_63 = arith.constant 0 : index
    %c0_64 = arith.constant 0 : index
    %138 = vector.load %arg4[%c1, %c0_63, %c0_64] : memref<4x8x512xf32, #tpu.memory_space<vmem>>, vector<1x8x512xf32>
    %139 = vector.shape_cast %138 : vector<1x8x512xf32> to vector<8x512xf32>
    %140 = arith.truncf %137 : vector<8x128xf32> to vector<8x128xbf16>
    %c0_65 = arith.constant 0 : index
    %c0_66 = arith.constant 0 : index
    %141 = vector.load %arg11[%c0_65, %c0_66] : memref<128x512xbf16, #tpu.memory_space<vmem>>, vector<128x512xbf16>
    %cst_67 = arith.constant dense<0.000000e+00> : vector<8x512xf32>
    %142 = tpu.matmul %140, %141, %cst_67 {dimension_numbers = #tpu.dot_dimension_numbers<[1], [0], [0], [1], [0, 0, 1, 1], [], []>} : vector<8x128xbf16>, vector<128x512xbf16>, vector<8x512xf32> -> vector<8x512xf32>
    %143 = arith.addf %139, %142 : vector<8x512xf32>
    %c0_68 = arith.constant 0 : index
    %c0_69 = arith.constant 0 : index
    %144 = vector.load %arg12[%c0_68, %c0_69] : memref<128x512xbf16, #tpu.memory_space<vmem>>, vector<128x512xbf16>
    %cst_70 = arith.constant dense<0.000000e+00> : vector<8x512xf32>
    %145 = tpu.matmul %94, %144, %cst_70 {dimension_numbers = #tpu.dot_dimension_numbers<[1], [0], [0], [1], [0, 0, 1, 1], [], []>} : vector<8x128xbf16>, vector<128x512xbf16>, vector<8x512xf32> -> vector<8x512xf32>
    %146 = arith.addf %143, %145 : vector<8x512xf32>
    %147 = vector.extract_strided_slice %146 {offsets = [0, 0], sizes = [8, 128], strides = [1, 1]} : vector<8x512xf32> to vector<8x128xf32>
    %148 = arith.negf %147 : vector<8x128xf32>
    %149 = math.exp %148 : vector<8x128xf32>
    %cst_71 = arith.constant 1.000000e+00 : f32
    %150 = vector.broadcast %cst_71 : f32 to vector<8x128xf32>
    %151 = arith.addf %150, %149 : vector<8x128xf32>
    %152 = arith.divf %150, %151 : vector<8x128xf32>
    %153 = vector.extract_strided_slice %146 {offsets = [0, 128], sizes = [8, 128], strides = [1, 1]} : vector<8x512xf32> to vector<8x128xf32>
    %154 = arith.negf %153 : vector<8x128xf32>
    %155 = math.exp %154 : vector<8x128xf32>
    %cst_72 = arith.constant 1.000000e+00 : f32
    %156 = vector.broadcast %cst_72 : f32 to vector<8x128xf32>
    %157 = arith.addf %156, %155 : vector<8x128xf32>
    %158 = arith.divf %156, %157 : vector<8x128xf32>
    %159 = vector.extract_strided_slice %146 {offsets = [0, 256], sizes = [8, 128], strides = [1, 1]} : vector<8x512xf32> to vector<8x128xf32>
    %160 = math.tanh %159 : vector<8x128xf32>
    %161 = vector.extract_strided_slice %146 {offsets = [0, 384], sizes = [8, 128], strides = [1, 1]} : vector<8x512xf32> to vector<8x128xf32>
    %162 = arith.negf %161 : vector<8x128xf32>
    %163 = math.exp %162 : vector<8x128xf32>
    %cst_73 = arith.constant 1.000000e+00 : f32
    %164 = vector.broadcast %cst_73 : f32 to vector<8x128xf32>
    %165 = arith.addf %164, %163 : vector<8x128xf32>
    %166 = arith.divf %164, %165 : vector<8x128xf32>
    %167 = arith.mulf %158, %84 : vector<8x128xf32>
    %168 = arith.mulf %152, %160 : vector<8x128xf32>
    %169 = arith.addf %167, %168 : vector<8x128xf32>
    %170 = math.tanh %169 : vector<8x128xf32>
    %171 = arith.mulf %166, %170 : vector<8x128xf32>
    %172 = arith.truncf %171 : vector<8x128xf32> to vector<8x128xbf16>
    %c1_74 = arith.constant 1 : index
    %c0_75 = arith.constant 0 : index
    %c0_76 = arith.constant 0 : index
    %173 = vector.load %arg17[%c1_74, %c0_75, %c0_76] : memref<4x8x128xbf16, #tpu.memory_space<vmem>>, vector<1x8x128xbf16>
    %174 = vector.shape_cast %173 : vector<1x8x128xbf16> to vector<8x128xbf16>
    %175 = vector.shape_cast %172 : vector<8x128xbf16> to vector<1x8x128xbf16>
    tpu.vector_store %arg17[%c1_74, %c0_75, %c0_76], %175 {strides = array<i32>} : memref<4x8x128xbf16, #tpu.memory_space<vmem>>, vector<1x8x128xbf16>,
    %c1_77 = arith.constant 1 : index
    %c0_78 = arith.constant 0 : index
    %c0_79 = arith.constant 0 : index
    %176 = vector.load %arg18[%c1_77, %c0_78, %c0_79] : memref<4x8x16xf32, #tpu.memory_space<vmem>>, vector<1x8x16xf32>
    %177 = vector.shape_cast %176 : vector<1x8x16xf32> to vector<8x16xf32>
    %178 = vector.shape_cast %121 : vector<8x16xf32> to vector<1x8x16xf32>
    tpu.vector_store %arg18[%c1_77, %c0_78, %c0_79], %178 {strides = array<i32>} : memref<4x8x16xf32, #tpu.memory_space<vmem>>, vector<1x8x16xf32>,
    %179 = arith.truncf %171 : vector<8x128xf32> to vector<8x128xbf16>
    %c0_80 = arith.constant 0 : index
    %c0_81 = arith.constant 0 : index
    %180 = vector.load %arg5[%c0_80, %c0_81] : memref<128x128xbf16, #tpu.memory_space<vmem>>, vector<128x128xbf16>
    %cst_82 = arith.constant dense<0.000000e+00> : vector<8x128xf32>
    %181 = tpu.matmul %179, %180, %cst_82 {dimension_numbers = #tpu.dot_dimension_numbers<[1], [0], [0], [1], [0, 0, 1, 1], [], []>} : vector<8x128xbf16>, vector<128x128xbf16>, vector<8x128xf32> -> vector<8x128xf32>
    %c0_83 = arith.constant 0 : index
    %c0_84 = arith.constant 0 : index
    %182 = vector.load %arg6[%c0_83, %c0_84] : memref<1x128xf32, #tpu.memory_space<vmem>>, vector<1x128xf32>
    %183 = vector.broadcast %182 : vector<1x128xf32> to vector<8x128xf32>
    %184 = arith.addf %181, %183 : vector<8x128xf32>
    %185 = vector.shape_cast %184 : vector<8x128xf32> to vector<8x1x128xf32>
    %186 = arith.extf %6 : vector<8x16x128xbf16> to vector<8x16x128xf32>
    %187 = vector.broadcast %185 : vector<8x1x128xf32> to vector<8x16x128xf32>
    %188 = arith.addf %186, %187 : vector<8x16x128xf32>
    %cst_85 = arith.constant 0.000000e+00 : f32
    %189 = vector.broadcast %cst_85 : f32 to vector<8x16x128xf32>
    %190 = arith.maximumf %188, %189 : vector<8x16x128xf32>
    %191 = vector.shape_cast %7 : vector<1x128xf32> to vector<1x1x128xf32>
    %192 = vector.broadcast %191 : vector<1x1x128xf32> to vector<8x16x128xf32>
    %193 = arith.mulf %190, %192 : vector<8x16x128xf32>
    %cst_86 = arith.constant dense<0.000000e+00> : vector<8x16xf32>
    %194 = vector.multi_reduction <add>, %193, %cst_86 [2] : vector<8x16x128xf32> to vector<8x16xf32>
    %195 = vector.broadcast %8 : vector<1x1xf32> to vector<8x16xf32>
    %196 = arith.addf %194, %195 : vector<8x16xf32>
    %cst_87 = arith.constant dense<0xFF800000> : vector<8xf32>
    %197 = vector.multi_reduction <maximumf>, %196, %cst_87 [1] : vector<8x16xf32> to vector<8xf32>
    %198 = vector.shape_cast %197 : vector<8xf32> to vector<8x1xf32>
    %199 = vector.broadcast %198 : vector<8x1xf32> to vector<8x16xf32>
    %200 = arith.subf %196, %199 : vector<8x16xf32>
    %201 = math.exp %200 : vector<8x16xf32>
    %cst_88 = arith.constant dense<0.000000e+00> : vector<8xf32>
    %202 = vector.multi_reduction <add>, %201, %cst_88 [1] : vector<8x16xf32> to vector<8xf32>
    %203 = vector.shape_cast %202 : vector<8xf32> to vector<8x1xf32>
    %204 = tpu.reciprocal %203 {approx = true} : vector<8x1xf32> -> vector<8x1xf32>
    %205 = vector.broadcast %204 : vector<8x1xf32> to vector<8x16xf32>
    %206 = arith.mulf %201, %205 : vector<8x16xf32>
    %207 = vector.shape_cast %206 : vector<8x16xf32> to vector<8x16x1xf32>
    %208 = arith.extf %5 : vector<8x16x128xbf16> to vector<8x16x128xf32>
    %209 = vector.broadcast %207 : vector<8x16x1xf32> to vector<8x16x128xf32>
    %210 = arith.mulf %209, %208 : vector<8x16x128xf32>
    %cst_89 = arith.constant dense<0.000000e+00> : vector<8x128xf32>
    %211 = vector.multi_reduction <add>, %210, %cst_89 [1] : vector<8x16x128xf32> to vector<8x128xf32>
    %c0_90 = arith.constant 0 : index
    %c0_91 = arith.constant 0 : index
    %212 = vector.load %arg9[%c0_90, %c0_91] : memref<128x128xbf16, #tpu.memory_space<vmem>>, vector<128x128xbf16>
    %cst_92 = arith.constant dense<0.000000e+00> : vector<8x128xf32>
    %213 = tpu.matmul %179, %212, %cst_92 {dimension_numbers = #tpu.dot_dimension_numbers<[1], [0], [0], [1], [0, 0, 1, 1], [], []>} : vector<8x128xbf16>, vector<128x128xbf16>, vector<8x128xf32> -> vector<8x128xf32>
    %c0_93 = arith.constant 0 : index
    %c0_94 = arith.constant 0 : index
    %214 = vector.load %arg10[%c0_93, %c0_94] : memref<1x128xf32, #tpu.memory_space<vmem>>, vector<1x128xf32>
    %215 = vector.broadcast %214 : vector<1x128xf32> to vector<8x128xf32>
    %216 = arith.addf %213, %215 : vector<8x128xf32>
    %217 = arith.negf %216 : vector<8x128xf32>
    %218 = math.exp %217 : vector<8x128xf32>
    %cst_95 = arith.constant 1.000000e+00 : f32
    %219 = vector.broadcast %cst_95 : f32 to vector<8x128xf32>
    %220 = arith.addf %219, %218 : vector<8x128xf32>
    %221 = arith.divf %219, %220 : vector<8x128xf32>
    %222 = arith.mulf %221, %211 : vector<8x128xf32>
    %c2 = arith.constant 2 : index
    %c0_96 = arith.constant 0 : index
    %c0_97 = arith.constant 0 : index
    %223 = vector.load %arg4[%c2, %c0_96, %c0_97] : memref<4x8x512xf32, #tpu.memory_space<vmem>>, vector<1x8x512xf32>
    %224 = vector.shape_cast %223 : vector<1x8x512xf32> to vector<8x512xf32>
    %225 = arith.truncf %222 : vector<8x128xf32> to vector<8x128xbf16>
    %c0_98 = arith.constant 0 : index
    %c0_99 = arith.constant 0 : index
    %226 = vector.load %arg11[%c0_98, %c0_99] : memref<128x512xbf16, #tpu.memory_space<vmem>>, vector<128x512xbf16>
    %cst_100 = arith.constant dense<0.000000e+00> : vector<8x512xf32>
    %227 = tpu.matmul %225, %226, %cst_100 {dimension_numbers = #tpu.dot_dimension_numbers<[1], [0], [0], [1], [0, 0, 1, 1], [], []>} : vector<8x128xbf16>, vector<128x512xbf16>, vector<8x512xf32> -> vector<8x512xf32>
    %228 = arith.addf %224, %227 : vector<8x512xf32>
    %c0_101 = arith.constant 0 : index
    %c0_102 = arith.constant 0 : index
    %229 = vector.load %arg12[%c0_101, %c0_102] : memref<128x512xbf16, #tpu.memory_space<vmem>>, vector<128x512xbf16>
    %cst_103 = arith.constant dense<0.000000e+00> : vector<8x512xf32>
    %230 = tpu.matmul %179, %229, %cst_103 {dimension_numbers = #tpu.dot_dimension_numbers<[1], [0], [0], [1], [0, 0, 1, 1], [], []>} : vector<8x128xbf16>, vector<128x512xbf16>, vector<8x512xf32> -> vector<8x512xf32>
    %231 = arith.addf %228, %230 : vector<8x512xf32>
    %232 = vector.extract_strided_slice %231 {offsets = [0, 0], sizes = [8, 128], strides = [1, 1]} : vector<8x512xf32> to vector<8x128xf32>
    %233 = arith.negf %232 : vector<8x128xf32>
    %234 = math.exp %233 : vector<8x128xf32>
    %cst_104 = arith.constant 1.000000e+00 : f32
    %235 = vector.broadcast %cst_104 : f32 to vector<8x128xf32>
    %236 = arith.addf %235, %234 : vector<8x128xf32>
    %237 = arith.divf %235, %236 : vector<8x128xf32>
    %238 = vector.extract_strided_slice %231 {offsets = [0, 128], sizes = [8, 128], strides = [1, 1]} : vector<8x512xf32> to vector<8x128xf32>
    %239 = arith.negf %238 : vector<8x128xf32>
    %240 = math.exp %239 : vector<8x128xf32>
    %cst_105 = arith.constant 1.000000e+00 : f32
    %241 = vector.broadcast %cst_105 : f32 to vector<8x128xf32>
    %242 = arith.addf %241, %240 : vector<8x128xf32>
    %243 = arith.divf %241, %242 : vector<8x128xf32>
    %244 = vector.extract_strided_slice %231 {offsets = [0, 256], sizes = [8, 128], strides = [1, 1]} : vector<8x512xf32> to vector<8x128xf32>
    %245 = math.tanh %244 : vector<8x128xf32>
    %246 = vector.extract_strided_slice %231 {offsets = [0, 384], sizes = [8, 128], strides = [1, 1]} : vector<8x512xf32> to vector<8x128xf32>
    %247 = arith.negf %246 : vector<8x128xf32>
    %248 = math.exp %247 : vector<8x128xf32>
    %cst_106 = arith.constant 1.000000e+00 : f32
    %249 = vector.broadcast %cst_106 : f32 to vector<8x128xf32>
    %250 = arith.addf %249, %248 : vector<8x128xf32>
    %251 = arith.divf %249, %250 : vector<8x128xf32>
    %252 = arith.mulf %243, %169 : vector<8x128xf32>
    %253 = arith.mulf %237, %245 : vector<8x128xf32>
    %254 = arith.addf %252, %253 : vector<8x128xf32>
    %255 = math.tanh %254 : vector<8x128xf32>
    %256 = arith.mulf %251, %255 : vector<8x128xf32>
    %257 = arith.truncf %256 : vector<8x128xf32> to vector<8x128xbf16>
    %c2_107 = arith.constant 2 : index
    %c0_108 = arith.constant 0 : index
    %c0_109 = arith.constant 0 : index
    %258 = vector.load %arg17[%c2_107, %c0_108, %c0_109] : memref<4x8x128xbf16, #tpu.memory_space<vmem>>, vector<1x8x128xbf16>
    %259 = vector.shape_cast %258 : vector<1x8x128xbf16> to vector<8x128xbf16>
    %260 = vector.shape_cast %257 : vector<8x128xbf16> to vector<1x8x128xbf16>
    tpu.vector_store %arg17[%c2_107, %c0_108, %c0_109], %260 {strides = array<i32>} : memref<4x8x128xbf16, #tpu.memory_space<vmem>>, vector<1x8x128xbf16>,
    %c2_110 = arith.constant 2 : index
    %c0_111 = arith.constant 0 : index
    %c0_112 = arith.constant 0 : index
    %261 = vector.load %arg18[%c2_110, %c0_111, %c0_112] : memref<4x8x16xf32, #tpu.memory_space<vmem>>, vector<1x8x16xf32>
    %262 = vector.shape_cast %261 : vector<1x8x16xf32> to vector<8x16xf32>
    %263 = vector.shape_cast %206 : vector<8x16xf32> to vector<1x8x16xf32>
    tpu.vector_store %arg18[%c2_110, %c0_111, %c0_112], %263 {strides = array<i32>} : memref<4x8x16xf32, #tpu.memory_space<vmem>>, vector<1x8x16xf32>,
    %264 = arith.truncf %256 : vector<8x128xf32> to vector<8x128xbf16>
    %c0_113 = arith.constant 0 : index
    %c0_114 = arith.constant 0 : index
    %265 = vector.load %arg5[%c0_113, %c0_114] : memref<128x128xbf16, #tpu.memory_space<vmem>>, vector<128x128xbf16>
    %cst_115 = arith.constant dense<0.000000e+00> : vector<8x128xf32>
    %266 = tpu.matmul %264, %265, %cst_115 {dimension_numbers = #tpu.dot_dimension_numbers<[1], [0], [0], [1], [0, 0, 1, 1], [], []>} : vector<8x128xbf16>, vector<128x128xbf16>, vector<8x128xf32> -> vector<8x128xf32>
    %c0_116 = arith.constant 0 : index
    %c0_117 = arith.constant 0 : index
    %267 = vector.load %arg6[%c0_116, %c0_117] : memref<1x128xf32, #tpu.memory_space<vmem>>, vector<1x128xf32>
    %268 = vector.broadcast %267 : vector<1x128xf32> to vector<8x128xf32>
    %269 = arith.addf %266, %268 : vector<8x128xf32>
    %270 = vector.shape_cast %269 : vector<8x128xf32> to vector<8x1x128xf32>
    %271 = arith.extf %6 : vector<8x16x128xbf16> to vector<8x16x128xf32>
    %272 = vector.broadcast %270 : vector<8x1x128xf32> to vector<8x16x128xf32>
    %273 = arith.addf %271, %272 : vector<8x16x128xf32>
    %cst_118 = arith.constant 0.000000e+00 : f32
    %274 = vector.broadcast %cst_118 : f32 to vector<8x16x128xf32>
    %275 = arith.maximumf %273, %274 : vector<8x16x128xf32>
    %276 = vector.shape_cast %7 : vector<1x128xf32> to vector<1x1x128xf32>
    %277 = vector.broadcast %276 : vector<1x1x128xf32> to vector<8x16x128xf32>
    %278 = arith.mulf %275, %277 : vector<8x16x128xf32>
    %cst_119 = arith.constant dense<0.000000e+00> : vector<8x16xf32>
    %279 = vector.multi_reduction <add>, %278, %cst_119 [2] : vector<8x16x128xf32> to vector<8x16xf32>
    %280 = vector.broadcast %8 : vector<1x1xf32> to vector<8x16xf32>
    %281 = arith.addf %279, %280 : vector<8x16xf32>
    %cst_120 = arith.constant dense<0xFF800000> : vector<8xf32>
    %282 = vector.multi_reduction <maximumf>, %281, %cst_120 [1] : vector<8x16xf32> to vector<8xf32>
    %283 = vector.shape_cast %282 : vector<8xf32> to vector<8x1xf32>
    %284 = vector.broadcast %283 : vector<8x1xf32> to vector<8x16xf32>
    %285 = arith.subf %281, %284 : vector<8x16xf32>
    %286 = math.exp %285 : vector<8x16xf32>
    %cst_121 = arith.constant dense<0.000000e+00> : vector<8xf32>
    %287 = vector.multi_reduction <add>, %286, %cst_121 [1] : vector<8x16xf32> to vector<8xf32>
    %288 = vector.shape_cast %287 : vector<8xf32> to vector<8x1xf32>
    %289 = tpu.reciprocal %288 {approx = true} : vector<8x1xf32> -> vector<8x1xf32>
    %290 = vector.broadcast %289 : vector<8x1xf32> to vector<8x16xf32>
    %291 = arith.mulf %286, %290 : vector<8x16xf32>
    %292 = vector.shape_cast %291 : vector<8x16xf32> to vector<8x16x1xf32>
    %293 = arith.extf %5 : vector<8x16x128xbf16> to vector<8x16x128xf32>
    %294 = vector.broadcast %292 : vector<8x16x1xf32> to vector<8x16x128xf32>
    %295 = arith.mulf %294, %293 : vector<8x16x128xf32>
    %cst_122 = arith.constant dense<0.000000e+00> : vector<8x128xf32>
    %296 = vector.multi_reduction <add>, %295, %cst_122 [1] : vector<8x16x128xf32> to vector<8x128xf32>
    %c0_123 = arith.constant 0 : index
    %c0_124 = arith.constant 0 : index
    %297 = vector.load %arg9[%c0_123, %c0_124] : memref<128x128xbf16, #tpu.memory_space<vmem>>, vector<128x128xbf16>
    %cst_125 = arith.constant dense<0.000000e+00> : vector<8x128xf32>
    %298 = tpu.matmul %264, %297, %cst_125 {dimension_numbers = #tpu.dot_dimension_numbers<[1], [0], [0], [1], [0, 0, 1, 1], [], []>} : vector<8x128xbf16>, vector<128x128xbf16>, vector<8x128xf32> -> vector<8x128xf32>
    %c0_126 = arith.constant 0 : index
    %c0_127 = arith.constant 0 : index
    %299 = vector.load %arg10[%c0_126, %c0_127] : memref<1x128xf32, #tpu.memory_space<vmem>>, vector<1x128xf32>
    %300 = vector.broadcast %299 : vector<1x128xf32> to vector<8x128xf32>
    %301 = arith.addf %298, %300 : vector<8x128xf32>
    %302 = arith.negf %301 : vector<8x128xf32>
    %303 = math.exp %302 : vector<8x128xf32>
    %cst_128 = arith.constant 1.000000e+00 : f32
    %304 = vector.broadcast %cst_128 : f32 to vector<8x128xf32>
    %305 = arith.addf %304, %303 : vector<8x128xf32>
    %306 = arith.divf %304, %305 : vector<8x128xf32>
    %307 = arith.mulf %306, %296 : vector<8x128xf32>
    %c3 = arith.constant 3 : index
    %c0_129 = arith.constant 0 : index
    %c0_130 = arith.constant 0 : index
    %308 = vector.load %arg4[%c3, %c0_129, %c0_130] : memref<4x8x512xf32, #tpu.memory_space<vmem>>, vector<1x8x512xf32>
    %309 = vector.shape_cast %308 : vector<1x8x512xf32> to vector<8x512xf32>
    %310 = arith.truncf %307 : vector<8x128xf32> to vector<8x128xbf16>
    %c0_131 = arith.constant 0 : index
    %c0_132 = arith.constant 0 : index
    %311 = vector.load %arg11[%c0_131, %c0_132] : memref<128x512xbf16, #tpu.memory_space<vmem>>, vector<128x512xbf16>
    %cst_133 = arith.constant dense<0.000000e+00> : vector<8x512xf32>
    %312 = tpu.matmul %310, %311, %cst_133 {dimension_numbers = #tpu.dot_dimension_numbers<[1], [0], [0], [1], [0, 0, 1, 1], [], []>} : vector<8x128xbf16>, vector<128x512xbf16>, vector<8x512xf32> -> vector<8x512xf32>
    %313 = arith.addf %309, %312 : vector<8x512xf32>
    %c0_134 = arith.constant 0 : index
    %c0_135 = arith.constant 0 : index
    %314 = vector.load %arg12[%c0_134, %c0_135] : memref<128x512xbf16, #tpu.memory_space<vmem>>, vector<128x512xbf16>
    %cst_136 = arith.constant dense<0.000000e+00> : vector<8x512xf32>
    %315 = tpu.matmul %264, %314, %cst_136 {dimension_numbers = #tpu.dot_dimension_numbers<[1], [0], [0], [1], [0, 0, 1, 1], [], []>} : vector<8x128xbf16>, vector<128x512xbf16>, vector<8x512xf32> -> vector<8x512xf32>
    %316 = arith.addf %313, %315 : vector<8x512xf32>
    %317 = vector.extract_strided_slice %316 {offsets = [0, 0], sizes = [8, 128], strides = [1, 1]} : vector<8x512xf32> to vector<8x128xf32>
    %318 = arith.negf %317 : vector<8x128xf32>
    %319 = math.exp %318 : vector<8x128xf32>
    %cst_137 = arith.constant 1.000000e+00 : f32
    %320 = vector.broadcast %cst_137 : f32 to vector<8x128xf32>
    %321 = arith.addf %320, %319 : vector<8x128xf32>
    %322 = arith.divf %320, %321 : vector<8x128xf32>
    %323 = vector.extract_strided_slice %316 {offsets = [0, 128], sizes = [8, 128], strides = [1, 1]} : vector<8x512xf32> to vector<8x128xf32>
    %324 = arith.negf %323 : vector<8x128xf32>
    %325 = math.exp %324 : vector<8x128xf32>
    %cst_138 = arith.constant 1.000000e+00 : f32
    %326 = vector.broadcast %cst_138 : f32 to vector<8x128xf32>
    %327 = arith.addf %326, %325 : vector<8x128xf32>
    %328 = arith.divf %326, %327 : vector<8x128xf32>
    %329 = vector.extract_strided_slice %316 {offsets = [0, 256], sizes = [8, 128], strides = [1, 1]} : vector<8x512xf32> to vector<8x128xf32>
    %330 = math.tanh %329 : vector<8x128xf32>
    %331 = vector.extract_strided_slice %316 {offsets = [0, 384], sizes = [8, 128], strides = [1, 1]} : vector<8x512xf32> to vector<8x128xf32>
    %332 = arith.negf %331 : vector<8x128xf32>
    %333 = math.exp %332 : vector<8x128xf32>
    %cst_139 = arith.constant 1.000000e+00 : f32
    %334 = vector.broadcast %cst_139 : f32 to vector<8x128xf32>
    %335 = arith.addf %334, %333 : vector<8x128xf32>
    %336 = arith.divf %334, %335 : vector<8x128xf32>
    %337 = arith.mulf %328, %254 : vector<8x128xf32>
    %338 = arith.mulf %322, %330 : vector<8x128xf32>
    %339 = arith.addf %337, %338 : vector<8x128xf32>
    %340 = math.tanh %339 : vector<8x128xf32>
    %341 = arith.mulf %336, %340 : vector<8x128xf32>
    %342 = arith.truncf %341 : vector<8x128xf32> to vector<8x128xbf16>
    %c3_140 = arith.constant 3 : index
    %c0_141 = arith.constant 0 : index
    %c0_142 = arith.constant 0 : index
    %343 = vector.load %arg17[%c3_140, %c0_141, %c0_142] : memref<4x8x128xbf16, #tpu.memory_space<vmem>>, vector<1x8x128xbf16>
    %344 = vector.shape_cast %343 : vector<1x8x128xbf16> to vector<8x128xbf16>
    %345 = vector.shape_cast %342 : vector<8x128xbf16> to vector<1x8x128xbf16>
    tpu.vector_store %arg17[%c3_140, %c0_141, %c0_142], %345 {strides = array<i32>} : memref<4x8x128xbf16, #tpu.memory_space<vmem>>, vector<1x8x128xbf16>,
    %c3_143 = arith.constant 3 : index
    %c0_144 = arith.constant 0 : index
    %c0_145 = arith.constant 0 : index
    %346 = vector.load %arg18[%c3_143, %c0_144, %c0_145] : memref<4x8x16xf32, #tpu.memory_space<vmem>>, vector<1x8x16xf32>
    %347 = vector.shape_cast %346 : vector<1x8x16xf32> to vector<8x16xf32>
    %348 = vector.shape_cast %291 : vector<8x16xf32> to vector<1x8x16xf32>
    tpu.vector_store %arg18[%c3_143, %c0_144, %c0_145], %348 {strides = array<i32>} : memref<4x8x16xf32, #tpu.memory_space<vmem>>, vector<1x8x16xf32>,
    %c0_146 = arith.constant 0 : index
    %c0_147 = arith.constant 0 : index
    %349 = vector.load %arg19[%c0_146, %c0_147] : memref<8x128xf32, #tpu.memory_space<vmem>>, vector<8x128xf32>
    tpu.vector_store %arg19[%c0_146, %c0_147], %341 {strides = array<i32>} : memref<8x128xf32, #tpu.memory_space<vmem>>, vector<8x128xf32>,
    %c0_148 = arith.constant 0 : index
    %c0_149 = arith.constant 0 : index
    %350 = vector.load %arg20[%c0_148, %c0_149] : memref<8x128xf32, #tpu.memory_space<vmem>>, vector<8x128xf32>
    tpu.vector_store %arg20[%c0_148, %c0_149], %339 {strides = array<i32>} : memref<8x128xf32, #tpu.memory_space<vmem>>, vector<8x128xf32>,
    return
  }
  func.func @transform_0(%arg0: i32, %arg1: i32) -> (i32, i32, i32) {
    %c0_i32 = arith.constant 0 : i32
    %c0_i32_0 = arith.constant 0 : i32
    %c0_i32_1 = arith.constant 0 : i32
    return %arg0, %c0_i32, %c0_i32_0 : i32, i32, i32
  }
  func.func @transform_1(%arg0: i32, %arg1: i32) -> (i32, i32, i32) {
    %c0_i32 = arith.constant 0 : i32
    %c0_i32_0 = arith.constant 0 : i32
    %c0_i32_1 = arith.constant 0 : i32
    return %arg0, %c0_i32, %c0_i32_0 : i32, i32, i32
  }
  func.func @transform_2(%arg0: i32, %arg1: i32) -> (i32, i32, i32) {
    %c0_i32 = arith.constant 0 : i32
    %c0_i32_0 = arith.constant 0 : i32
    return %arg1, %arg0, %c0_i32 : i32, i32, i32
  }
  func.func @transform_3(%arg0: i32, %arg1: i32) -> (i32, i32) {
    %c0_i32 = arith.constant 0 : i32
    %c0_i32_0 = arith.constant 0 : i32
    %c0_i32_1 = arith.constant 0 : i32
    return %c0_i32, %c0_i32_0 : i32, i32
  }
  func.func @transform_4(%arg0: i32, %arg1: i32) -> (i32, i32) {
    %c0_i32 = arith.constant 0 : i32
    %c0_i32_0 = arith.constant 0 : i32
    %c0_i32_1 = arith.constant 0 : i32
    return %c0_i32, %c0_i32_0 : i32, i32
  }
  func.func @transform_5(%arg0: i32, %arg1: i32) -> (i32, i32) {
    %c0_i32 = arith.constant 0 : i32
    %c0_i32_0 = arith.constant 0 : i32
    %c0_i32_1 = arith.constant 0 : i32
    return %c0_i32, %c0_i32_0 : i32, i32
  }
  func.func @transform_6(%arg0: i32, %arg1: i32) -> (i32, i32) {
    %c0_i32 = arith.constant 0 : i32
    %c0_i32_0 = arith.constant 0 : i32
    %c0_i32_1 = arith.constant 0 : i32
    return %c0_i32, %c0_i32_0 : i32, i32
  }
  func.func @transform_7(%arg0: i32, %arg1: i32) -> (i32, i32) {
    %c0_i32 = arith.constant 0 : i32
    %c0_i32_0 = arith.constant 0 : i32
    %c0_i32_1 = arith.constant 0 : i32
    return %c0_i32, %c0_i32_0 : i32, i32
  }
  func.func @transform_8(%arg0: i32, %arg1: i32) -> (i32, i32) {
    %c0_i32 = arith.constant 0 : i32
    %c0_i32_0 = arith.constant 0 : i32
    %c0_i32_1 = arith.constant 0 : i32
    return %c0_i32, %c0_i32_0 : i32, i32
  }
  func.func @transform_9(%arg0: i32, %arg1: i32) -> (i32, i32) {
    %c0_i32 = arith.constant 0 : i32
    %c0_i32_0 = arith.constant 0 : i32
    %c0_i32_1 = arith.constant 0 : i32
    return %c0_i32, %c0_i32_0 : i32, i32
  }
  func.func @transform_10(%arg0: i32, %arg1: i32) -> (i32, i32) {
    %c0_i32 = arith.constant 0 : i32
    %c0_i32_0 = arith.constant 0 : i32
    %c0_i32_1 = arith.constant 0 : i32
    return %c0_i32, %c0_i32_0 : i32, i32
  }
  func.func @transform_11(%arg0: i32, %arg1: i32) -> (i32, i32) {
    %c0_i32 = arith.constant 0 : i32
    %c0_i32_0 = arith.constant 0 : i32
    %c0_i32_1 = arith.constant 0 : i32
    return %c0_i32, %c0_i32_0 : i32, i32
  }
  func.func @transform_12(%arg0: i32, %arg1: i32) -> (i32, i32) {
    %c0_i32 = arith.constant 0 : i32
    %c0_i32_0 = arith.constant 0 : i32
    %c0_i32_1 = arith.constant 0 : i32
    return %c0_i32, %c0_i32_0 : i32, i32
  }
  func.func @transform_13(%arg0: i32, %arg1: i32) -> (i32, i32) {
    %c0_i32 = arith.constant 0 : i32
    %c0_i32_0 = arith.constant 0 : i32
    %c0_i32_1 = arith.constant 0 : i32
    return %c0_i32, %c0_i32_0 : i32, i32
  }
  func.func @transform_14(%arg0: i32, %arg1: i32) -> (i32, i32) {
    %c0_i32 = arith.constant 0 : i32
    %c0_i32_0 = arith.constant 0 : i32
    %c0_i32_1 = arith.constant 0 : i32
    return %c0_i32, %c0_i32_0 : i32, i32
  }
  func.func @transform_15(%arg0: i32, %arg1: i32) -> (i32, i32, i32) {
    %c0_i32 = arith.constant 0 : i32
    %c0_i32_0 = arith.constant 0 : i32
    return %arg1, %arg0, %c0_i32 : i32, i32, i32
  }
  func.func @transform_16(%arg0: i32, %arg1: i32) -> (i32, i32, i32) {
    %c0_i32 = arith.constant 0 : i32
    %c0_i32_0 = arith.constant 0 : i32
    return %arg1, %arg0, %c0_i32 : i32, i32, i32
  }
}

</mosaic_0001>

<bundles_post_ra>
// kernel: decoder_with_attention_forward.7
= control target key start
LH: loop header
LB: loop body
LE: loop exit
PB: predicated region body
PF: predicated region fallthrough
CT: control target
= control target key end

     0   :  { %v505_v1 = vmov 0   ;;  %v57_v29 = vlaneseq  ;;  %s821_s1 = inlined_call_operand.vmem [shape: bf16[128,256], index: 1, kind: input, shape index: {}]   ;;  %s822_s0 = inlined_call_operand.vmem [shape: bf16[192,128], index: 0, kind: input, shape index: {}]   ;;  %s823_s2 = inlined_call_operand.vmem [shape: f32[1,256], index: 2, kind: input, shape index: {}]   ;;  %s824_s3 = inlined_call_operand.vmem [shape: f32[192,256], index: 3, kind: output, shape index: {}]  }
   0x1   :  { %v469_v0 = vld [vmem:[%s821_s1 + $0x74] ss:$8 sps:$4 sm:$0xff]   ;;  %251 = vmatprep.mubr.bf16.mxu0 %v505_v1  ;;  %311 = vmatprep.mubr.bf16.mxu1 %v505_v1  ;;  %v471_v2 = vld [vmem:[%s821_s1 + $0x70] ss:$8 sps:$4 sm:$0xff]   ;;  %v472_v3 = vld [vmem:[%s821_s1 + $0x64] ss:$8 sps:$4 sm:$0xff]  }
   0x2   :  { %219 = vmatprep.subr.bf16.mxu0 %v469_v0  ;;  %452 = vmatprep.subr.bf16.mxu1 %v469_v0  ;;  %v474_v4 = vld [vmem:[%s821_s1 + $0x60] ss:$8 sps:$4 sm:$0xff]   ;;  %v475_v5 = vld [vmem:[%s821_s1 + $0x54] ss:$8 sps:$4 sm:$0xff]   ;;  %v477_v6 = vld [vmem:[%s821_s1 + $0x50] ss:$8 sps:$4 sm:$0xff]  }
   0x3   :  { %220 = vmatpush1.bf16.msra.mxu0 %v471_v2  ;;  %460 = vmatpush1.bf16.msra.mxu1 %v471_v2  ;;  %v478_v7 = vld [vmem:[%s821_s1 + $0x44] ss:$8 sps:$4 sm:$0xff]   ;;  %v480_v8 = vld [vmem:[%s821_s1 + $0x40] ss:$8 sps:$4 sm:$0xff]   ;;  %v481_v9 = vld [vmem:[%s821_s1 + $0x34] ss:$8 sps:$4 sm:$0xff]  }
   0x4   :  { %221 = vmatprep.subr.bf16.mxu0 %v472_v3  ;;  %453 = vmatprep.subr.bf16.mxu1 %v472_v3  ;;  %v483_v10 = vld [vmem:[%s821_s1 + $0x30] ss:$8 sps:$4 sm:$0xff]   ;;  %v484_v11 = vld [vmem:[%s821_s1 + $0x24] ss:$8 sps:$4 sm:$0xff]   ;;  %v486_v12 = vld [vmem:[%s821_s1 + $0x20] ss:$8 sps:$4 sm:$0xff]  }
   0x5   :  { %v487_v13 = vld [vmem:[%s821_s1 + $0x14] ss:$8 sps:$4 sm:$0xff]   ;;  %v489_v14 = vld [vmem:[%s821_s1 + $0x10] ss:$8 sps:$4 sm:$0xff]   ;;  %v490_v15 = vld [vmem:[%s821_s1 + $0x4] ss:$8 sps:$4 sm:$0xff]  }
   0x6   :  { %v492_v16 = vld [vmem:[%s821_s1] ss:$8 sps:$4 sm:$0xff]   ;;  %v494_v18 = vld [vmem:[%s822_s0 + $0x30] sm:$0xff]   ;;  %v496_v20 = vld [vmem:[%s822_s0 + $0x38] sm:$0xff]   ;;  %v58_v30 = vshrl.u32 %v57_v29, 7 }
   0x7   :  { %222 = vmatpush1.bf16.msra.mxu0 %v474_v4  ;;  %461 = vmatpush1.bf16.msra.mxu1 %v474_v4  ;;  %v493_v17 = vld [vmem:[%s822_s0] sm:$0xff]   ;;  %v495_v19 = vld [vmem:[%s822_s0 + $0x8] sm:$0xff]   ;;  %v497_v21 = vld [vmem:[%s822_s0 + $0x10] sm:$0xff]  }
   0x8   :  { %223 = vmatprep.subr.bf16.mxu0 %v475_v5  ;;  %454 = vmatprep.subr.bf16.mxu1 %v475_v5  ;;  %v498_v22 = vld [vmem:[%s822_s0 + $0x40] sm:$0xff]   ;;  %v499_v23 = vld [vmem:[%s822_s0 + $0x18] sm:$0xff]   ;;  %v500_v24 = vld [vmem:[%s822_s0 + $0x48] sm:$0xff]   ;;  %v59_v31 = vsub.s32 0, %v58_v30  ;;  %v63_v33 = vsub.s32 1, %v58_v30 }
   0x9   :  { %v501_v25 = vld [vmem:[%s822_s0 + $0x20] sm:$0xff]   ;;  %v502_v26 = vld [vmem:[%s822_s0 + $0x50] sm:$0xff]   ;;  %v503_v27 = vld [vmem:[%s822_s0 + $0x28] sm:$0xff]  }
   0xa   :  { %v504_v28 = vld [vmem:[%s822_s0 + $0x58] sm:$0xff]   ;;  %v55_v32 = vld [vmem:[%s823_s2] sm:$0x3] }
   0xb   :  { %224 = vmatpush1.bf16.msra.mxu0 %v477_v6  ;;  %462 = vmatpush1.bf16.msra.mxu1 %v477_v6  ;;  %v625_v34 = vrot.slane %v55_v32, %v59_v31  ;;  %v627_v35 = vrot.slane %v55_v32, %v63_v33 }
   0xc   :  { %225 = vmatprep.subr.bf16.mxu0 %v478_v7  ;;  %455 = vmatprep.subr.bf16.mxu1 %v478_v7 }
   0xf   :  { %226 = vmatpush1.bf16.msra.mxu0 %v480_v8  ;;  %463 = vmatpush1.bf16.msra.mxu1 %v480_v8 }
  0x10   :  { %227 = vmatprep.subr.bf16.mxu0 %v481_v9  ;;  %456 = vmatprep.subr.bf16.mxu1 %v481_v9 }
  0x13   :  { %228 = vmatpush1.bf16.msra.mxu0 %v483_v10  ;;  %464 = vmatpush1.bf16.msra.mxu1 %v483_v10 }
  0x14   :  { %229 = vmatprep.subr.bf16.mxu0 %v484_v11  ;;  %457 = vmatprep.subr.bf16.mxu1 %v484_v11 }
  0x17   :  { %230 = vmatpush1.bf16.msra.mxu0 %v486_v12  ;;  %465 = vmatpush1.bf16.msra.mxu1 %v486_v12 }
  0x18   :  { %231 = vmatprep.subr.bf16.mxu0 %v487_v13  ;;  %458 = vmatprep.subr.bf16.mxu1 %v487_v13 }
  0x1b   :  { %232 = vmatpush1.bf16.msra.mxu0 %v489_v14  ;;  %466 = vmatpush1.bf16.msra.mxu1 %v489_v14 }
  0x1c   :  { %233 = vmatprep.subr.bf16.mxu0 %v490_v15  ;;  %459 = vmatprep.subr.bf16.mxu1 %v490_v15 }
  0x1f   :  { %234 = vmatpush1.bf16.msra.mxu0 %v492_v16  ;;  %467 = vmatpush1.bf16.msra.mxu1 %v492_v16 }
  0x22   :  { %252 = vmatmul.mubr.bf16.vlgmr.msra.gmra.mxu0 %v493_v17  ;;  %312 = vmatmul.mubr.bf16.vlgmr.msra.gmra.mxu1 %v494_v18 }
  0x23   :  { %261 = vmatprep.mubr.bf16.mxu0 %v505_v1  ;;  %321 = vmatprep.mubr.bf16.mxu1 %v505_v1 }
  0x2a   :  { %262 = vmatmul.mubr.bf16.gmra.mxu0 %v495_v19  ;;  %322 = vmatmul.mubr.bf16.gmra.mxu1 %v496_v20 }
  0x2b   :  { %271 = vmatprep.mubr.bf16.mxu0 %v505_v1  ;;  %331 = vmatprep.mubr.bf16.mxu1 %v505_v1 }
  0x32   :  { %272 = vmatmul.mubr.bf16.gmra.mxu0 %v497_v21  ;;  %332 = vmatmul.mubr.bf16.gmra.mxu1 %v498_v22 }
  0x33   :  { %281 = vmatprep.mubr.bf16.mxu0 %v505_v1  ;;  %341 = vmatprep.mubr.bf16.mxu1 %v505_v1 }
  0x3a   :  { %282 = vmatmul.mubr.bf16.gmra.mxu0 %v499_v23  ;;  %342 = vmatmul.mubr.bf16.gmra.mxu1 %v500_v24 }
  0x3b   :  { %291 = vmatprep.mubr.bf16.mxu0 %v505_v1  ;;  %351 = vmatprep.mubr.bf16.mxu1 %v505_v1 }
  0x42   :  { %292 = vmatmul.mubr.bf16.gmra.mxu0 %v501_v25  ;;  %352 = vmatmul.mubr.bf16.gmra.mxu1 %v502_v26 }
  0x43   :  { %301 = vmatprep.mubr.bf16.mxu0 %v505_v1  ;;  %361 = vmatprep.mubr.bf16.mxu1 %v505_v1 }
  0x4a   :  { %302 = vmatmul.mubr.bf16.gmra.mxu0 %v503_v27  ;;  %362 = vmatmul.mubr.bf16.gmra.mxu1 %v504_v28 }
  0xe2   :  { %v253_v36 = vpop.f32.mrf.mxu0  ;;  %v313_v37 = vpop.f32.mrf.mxu1 }
  0xe3   :  { %v254_v38 = vadd.f32 %v253_v36, %v625_v34  ;;  %v314_v39 = vadd.f32 %v313_v37, %v625_v34 }
  0xe4   :  { %v255_v40 = vpop.f32.mrf.mxu0  ;;  %v315_v41 = vpop.f32.mrf.mxu1 }
  0xe5   :  { %372 = vst [vmem:[%s824_s3] sm:$0xff] %v254_v38  ;;  %396 = vst [vmem:[%s824_s3 + $0xc0] sm:$0xff] %v314_v39  ;;  %v256_v42 = vadd.f32 %v255_v40, %v627_v35  ;;  %v316_v43 = vadd.f32 %v315_v41, %v627_v35 }
  0xe6   :  { %v257_v44 = vpop.f32.mrf.mxu0  ;;  %v317_v45 = vpop.f32.mrf.mxu1 }
  0xe7   :  { %373 = vst [vmem:[%s824_s3 + $0x8] sm:$0xff] %v256_v42  ;;  %397 = vst [vmem:[%s824_s3 + $0xc8] sm:$0xff] %v316_v43  ;;  %v258_v46 = vadd.f32 %v257_v44, %v625_v34  ;;  %v318_v47 = vadd.f32 %v317_v45, %v625_v34 }
  0xe8   :  { %v259_v48 = vpop.f32.mrf.mxu0  ;;  %v319_v49 = vpop.f32.mrf.mxu1 }
  0xe9   :  { %374 = vst [vmem:[%s824_s3 + $0x10] sm:$0xff] %v258_v46  ;;  %398 = vst [vmem:[%s824_s3 + $0xd0] sm:$0xff] %v318_v47  ;;  %v260_v50 = vadd.f32 %v259_v48, %v627_v35  ;;  %v320_v51 = vadd.f32 %v319_v49, %v627_v35 }
  0xea   :  { %v263_v52 = vpop.f32.mrf.mxu0  ;;  %v323_v53 = vpop.f32.mrf.mxu1 }
  0xeb   :  { %375 = vst [vmem:[%s824_s3 + $0x18] sm:$0xff] %v260_v50  ;;  %399 = vst [vmem:[%s824_s3 + $0xd8] sm:$0xff] %v320_v51  ;;  %v264_v54 = vadd.f32 %v263_v52, %v625_v34  ;;  %v324_v55 = vadd.f32 %v323_v53, %v625_v34 }
  0xec   :  { %v265_v56 = vpop.f32.mrf.mxu0  ;;  %v325_v57 = vpop.f32.mrf.mxu1 }
  0xed   :  { %376 = vst [vmem:[%s824_s3 + $0x20] sm:$0xff] %v264_v54  ;;  %400 = vst [vmem:[%s824_s3 + $0xe0] sm:$0xff] %v324_v55  ;;  %v266_v58 = vadd.f32 %v265_v56, %v627_v35  ;;  %v326_v59 = vadd.f32 %v325_v57, %v627_v35 }
  0xee   :  { %v267_v60 = vpop.f32.mrf.mxu0  ;;  %v327_v61 = vpop.f32.mrf.mxu1 }
  0xef   :  { %377 = vst [vmem:[%s824_s3 + $0x28] sm:$0xff] %v266_v58  ;;  %401 = vst [vmem:[%s824_s3 + $0xe8] sm:$0xff] %v326_v59  ;;  %v268_v62 = vadd.f32 %v267_v60, %v625_v34  ;;  %v328_v63 = vadd.f32 %v327_v61, %v625_v34 }
  0xf0   :  { %v269_v0 = vpop.f32.mrf.mxu0  ;;  %v329_v1 = vpop.f32.mrf.mxu1 }
  0xf1   :  { %378 = vst [vmem:[%s824_s3 + $0x30] sm:$0xff] %v268_v62  ;;  %402 = vst [vmem:[%s824_s3 + $0xf0] sm:$0xff] %v328_v63  ;;  %v270_v2 = vadd.f32 %v269_v0, %v627_v35  ;;  %v330_v3 = vadd.f32 %v329_v1, %v627_v35 }
  0xf2   :  { %v273_v4 = vpop.f32.mrf.mxu0  ;;  %v333_v5 = vpop.f32.mrf.mxu1 }
  0xf3   :  { %379 = vst [vmem:[%s824_s3 + $0x38] sm:$0xff] %v270_v2  ;;  %403 = vst [vmem:[%s824_s3 + $0xf8] sm:$0xff] %v330_v3  ;;  %v274_v6 = vadd.f32 %v273_v4, %v625_v34  ;;  %v334_v7 = vadd.f32 %v333_v5, %v625_v34 }
  0xf4   :  { %v275_v8 = vpop.f32.mrf.mxu0  ;;  %v335_v9 = vpop.f32.mrf.mxu1 }
  0xf5   :  { %380 = vst [vmem:[%s824_s3 + $0x40] sm:$0xff] %v274_v6  ;;  %404 = vst [vmem:[%s824_s3 + $0x100] sm:$0xff] %v334_v7  ;;  %v276_v10 = vadd.f32 %v275_v8, %v627_v35  ;;  %v336_v11 = vadd.f32 %v335_v9, %v627_v35 }
  0xf6   :  { %v277_v12 = vpop.f32.mrf.mxu0  ;;  %v337_v13 = vpop.f32.mrf.mxu1 }
  0xf7   :  { %381 = vst [vmem:[%s824_s3 + $0x48] sm:$0xff] %v276_v10  ;;  %405 = vst [vmem:[%s824_s3 + $0x108] sm:$0xff] %v336_v11  ;;  %v278_v14 = vadd.f32 %v277_v12, %v625_v34  ;;  %v338_v15 = vadd.f32 %v337_v13, %v625_v34 }
  0xf8   :  { %v279_v16 = vpop.f32.mrf.mxu0  ;;  %v339_v17 = vpop.f32.mrf.mxu1 }
  0xf9   :  { %382 = vst [vmem:[%s824_s3 + $0x50] sm:$0xff] %v278_v14  ;;  %406 = vst [vmem:[%s824_s3 + $0x110] sm:$0xff] %v338_v15  ;;  %v280_v18 = vadd.f32 %v279_v16, %v627_v35  ;;  %v340_v19 = vadd.f32 %v339_v17, %v627_v35 }
  0xfa   :  { %v283_v20 = vpop.f32.mrf.mxu0  ;;  %v343_v21 = vpop.f32.mrf.mxu1 }
  0xfb   :  { %383 = vst [vmem:[%s824_s3 + $0x58] sm:$0xff] %v280_v18  ;;  %407 = vst [vmem:[%s824_s3 + $0x118] sm:$0xff] %v340_v19  ;;  %v284_v22 = vadd.f32 %v283_v20, %v625_v34  ;;  %v344_v23 = vadd.f32 %v343_v21, %v625_v34 }
  0xfc   :  { %v285_v24 = vpop.f32.mrf.mxu0  ;;  %v345_v25 = vpop.f32.mrf.mxu1 }
  0xfd   :  { %384 = vst [vmem:[%s824_s3 + $0x60] sm:$0xff] %v284_v22  ;;  %408 = vst [vmem:[%s824_s3 + $0x120] sm:$0xff] %v344_v23  ;;  %v286_v26 = vadd.f32 %v285_v24, %v627_v35  ;;  %v346_v27 = vadd.f32 %v345_v25, %v627_v35 }
  0xfe   :  { %v287_v28 = vpop.f32.mrf.mxu0  ;;  %v347_v29 = vpop.f32.mrf.mxu1 }
  0xff   :  { %385 = vst [vmem:[%s824_s3 + $0x68] sm:$0xff] %v286_v26  ;;  %409 = vst [vmem:[%s824_s3 + $0x128] sm:$0xff] %v346_v27  ;;  %v288_v30 = vadd.f32 %v287_v28, %v625_v34  ;;  %v348_v31 = vadd.f32 %v347_v29, %v625_v34 }
 0x100   :  { %v289_v32 = vpop.f32.mrf.mxu0  ;;  %v349_v33 = vpop.f32.mrf.mxu1 }
 0x101   :  { %386 = vst [vmem:[%s824_s3 + $0x70] sm:$0xff] %v288_v30  ;;  %410 = vst [vmem:[%s824_s3 + $0x130] sm:$0xff] %v348_v31  ;;  %v290_v36 = vadd.f32 %v289_v32, %v627_v35  ;;  %v350_v37 = vadd.f32 %v349_v33, %v627_v35 }
 0x102   :  { %v293_v38 = vpop.f32.mrf.mxu0  ;;  %v353_v39 = vpop.f32.mrf.mxu1 }
 0x103   :  { %387 = vst [vmem:[%s824_s3 + $0x78] sm:$0xff] %v290_v36  ;;  %411 = vst [vmem:[%s824_s3 + $0x138] sm:$0xff] %v350_v37  ;;  %v294_v40 = vadd.f32 %v293_v38, %v625_v34  ;;  %v354_v41 = vadd.f32 %v353_v39, %v625_v34 }
 0x104   :  { %v295_v42 = vpop.f32.mrf.mxu0  ;;  %v355_v43 = vpop.f32.mrf.mxu1 }
 0x105   :  { %388 = vst [vmem:[%s824_s3 + $0x80] sm:$0xff] %v294_v40  ;;  %412 = vst [vmem:[%s824_s3 + $0x140] sm:$0xff] %v354_v41  ;;  %v296_v44 = vadd.f32 %v295_v42, %v627_v35  ;;  %v356_v45 = vadd.f32 %v355_v43, %v627_v35 }
 0x106   :  { %v297_v46 = vpop.f32.mrf.mxu0  ;;  %v357_v47 = vpop.f32.mrf.mxu1 }
 0x107   :  { %389 = vst [vmem:[%s824_s3 + $0x88] sm:$0xff] %v296_v44  ;;  %413 = vst [vmem:[%s824_s3 + $0x148] sm:$0xff] %v356_v45  ;;  %v298_v48 = vadd.f32 %v297_v46, %v625_v34  ;;  %v358_v49 = vadd.f32 %v357_v47, %v625_v34 }
 0x108   :  { %v299_v50 = vpop.f32.mrf.mxu0  ;;  %v359_v51 = vpop.f32.mrf.mxu1 }
 0x109   :  { %390 = vst [vmem:[%s824_s3 + $0x90] sm:$0xff] %v298_v48  ;;  %414 = vst [vmem:[%s824_s3 + $0x150] sm:$0xff] %v358_v49  ;;  %v300_v52 = vadd.f32 %v299_v50, %v627_v35  ;;  %v360_v53 = vadd.f32 %v359_v51, %v627_v35 }
 0x10a   :  { %v303_v54 = vpop.f32.mrf.mxu0  ;;  %v363_v55 = vpop.f32.mrf.mxu1 }
 0x10b   :  { %391 = vst [vmem:[%s824_s3 + $0x98] sm:$0xff] %v300_v52  ;;  %415 = vst [vmem:[%s824_s3 + $0x158] sm:$0xff] %v360_v53  ;;  %v304_v56 = vadd.f32 %v303_v54, %v625_v34  ;;  %v364_v57 = vadd.f32 %v363_v55, %v625_v34 }
 0x10c   :  { %v305_v58 = vpop.f32.mrf.mxu0  ;;  %v365_v59 = vpop.f32.mrf.mxu1 }
 0x10d   :  { %392 = vst [vmem:[%s824_s3 + $0xa0] sm:$0xff] %v304_v56  ;;  %416 = vst [vmem:[%s824_s3 + $0x160] sm:$0xff] %v364_v57  ;;  %v306_v60 = vadd.f32 %v305_v58, %v627_v35  ;;  %v366_v61 = vadd.f32 %v365_v59, %v627_v35 }
 0x10e   :  { %v307_v62 = vpop.f32.mrf.mxu0  ;;  %v367_v63 = vpop.f32.mrf.mxu1 }
 0x10f   :  { %393 = vst [vmem:[%s824_s3 + $0xa8] sm:$0xff] %v306_v60  ;;  %417 = vst [vmem:[%s824_s3 + $0x168] sm:$0xff] %v366_v61  ;;  %v308_v0 = vadd.f32 %v307_v62, %v625_v34  ;;  %v368_v1 = vadd.f32 %v367_v63, %v625_v34 }
 0x110   :  { %v309_v2 = vpop.f32.mrf.mxu0  ;;  %v369_v3 = vpop.f32.mrf.mxu1 }
 0x111   :  { %394 = vst [vmem:[%s824_s3 + $0xb0] sm:$0xff] %v308_v0  ;;  %418 = vst [vmem:[%s824_s3 + $0x170] sm:$0xff] %v368_v1  ;;  %v310_v4 = vadd.f32 %v309_v2, %v627_v35  ;;  %v370_v5 = vadd.f32 %v369_v3, %v627_v35 }
 0x113   :  { %395 = vst [vmem:[%s824_s3 + $0xb8] sm:$0xff] %v310_v4  ;;  %419 = vst [vmem:[%s824_s3 + $0x178] sm:$0xff] %v370_v5 }

// kernel: decoder_with_attention_forward.4
= control target key start
LH: loop header
LB: loop body
LE: loop exit
PB: predicated region body
PF: predicated region fallthrough
CT: control target
= control target key end

     0   :  { %s1012_s1 = inlined_call_operand.vmem [shape: bf16[128,128], index: 1, kind: input, shape index: {}]   ;;  %s1013_s0 = inlined_call_operand.vmem [shape: bf16[256,128], index: 0, kind: input, shape index: {}]   ;;  %s1014_s2 = inlined_call_operand.vmem [shape: f32[1,128], index: 2, kind: input, shape index: {}]   ;;  %s1015_s3 = inlined_call_operand.vmem [shape: bf16[256,128], index: 3, kind: output, shape index: {}]  }
   0x1   :  { %v811_v0 = vld [vmem:[%s1012_s1 + $0x38] sm:$0xff]   ;;  %v812_v1 = vld [vmem:[%s1012_s1 + $0x30] sm:$0xff]   ;;  %v813_v2 = vld [vmem:[%s1012_s1 + $0x28] sm:$0xff]  }
   0x2   :  { %747 = vmatprep.subr.bf16.mxu0 %v811_v0  ;;  %795 = vmatprep.subr.bf16.mxu1 %v811_v0  ;;  %v814_v3 = vld [vmem:[%s1012_s1 + $0x20] sm:$0xff]   ;;  %v815_v6 = vld [vmem:[%s1012_s1 + $0x18] sm:$0xff]   ;;  %v816_v7 = vld [vmem:[%s1012_s1 + $0x10] sm:$0xff]  }
   0x3   :  { %748 = vmatpush3.bf16.msra.mxu0 %v811_v0  ;;  %803 = vmatpush3.bf16.msra.mxu1 %v811_v0  ;;  %v819_v4 = vld [vmem:[%s1013_s0] sm:$0xff]   ;;  %v817_v8 = vld [vmem:[%s1012_s1 + $0x8] sm:$0xff]   ;;  %v823_v12 = vld [vmem:[%s1013_s0 + $0x10] sm:$0xff]  }
   0x4   :  { %749 = vmatprep.subr.bf16.mxu0 %v812_v1  ;;  %796 = vmatprep.subr.bf16.mxu1 %v812_v1  ;;  %v820_v5 = vld [vmem:[%s1013_s0 + $0x40] sm:$0xff]   ;;  %v821_v10 = vld [vmem:[%s1013_s0 + $0x8] sm:$0xff]   ;;  %v824_v13 = vld [vmem:[%s1013_s0 + $0x50] sm:$0xff]  }
   0x5   :  { %763 = vmatprep.mubr.bf16.mxu0 %v819_v4  ;;  %779 = vmatprep.mubr.bf16.mxu1 %v820_v5  ;;  %v818_v9 = vld [vmem:[%s1012_s1] sm:$0xff]   ;;  %v822_v11 = vld [vmem:[%s1013_s0 + $0x48] sm:$0xff]   ;;  %v825_v14 = vld [vmem:[%s1013_s0 + $0x18] sm:$0xff]  }
   0x6   :  { %v826_v15 = vld [vmem:[%s1013_s0 + $0x58] sm:$0xff]   ;;  %v827_v16 = vld [vmem:[%s1013_s0 + $0x20] sm:$0xff]   ;;  %v829_v18 = vld [vmem:[%s1013_s0 + $0x28] sm:$0xff]  }
   0x7   :  { %750 = vmatpush3.bf16.msra.mxu0 %v812_v1  ;;  %804 = vmatpush3.bf16.msra.mxu1 %v812_v1  ;;  %v828_v17 = vld [vmem:[%s1013_s0 + $0x60] sm:$0xff]   ;;  %v830_v19 = vld [vmem:[%s1013_s0 + $0x68] sm:$0xff]   ;;  %v831_v20 = vld [vmem:[%s1013_s0 + $0x30] sm:$0xff]  }
   0x8   :  { %751 = vmatprep.subr.bf16.mxu0 %v813_v2  ;;  %797 = vmatprep.subr.bf16.mxu1 %v813_v2  ;;  %v832_v21 = vld [vmem:[%s1013_s0 + $0x70] sm:$0xff]   ;;  %v833_v22 = vld [vmem:[%s1013_s0 + $0x38] sm:$0xff]   ;;  %v930_v26 = vld [vmem:[%s1014_s2] ss:$0 sm:$0xff] }
   0x9   :  { %v834_v23 = vld [vmem:[%s1013_s0 + $0x78] sm:$0xff]  }
   0xb   :  { %752 = vmatpush3.bf16.msra.mxu0 %v813_v2  ;;  %805 = vmatpush3.bf16.msra.mxu1 %v813_v2 }
   0xc   :  { %753 = vmatprep.subr.bf16.mxu0 %v814_v3  ;;  %798 = vmatprep.subr.bf16.mxu1 %v814_v3 }
   0xf   :  { %754 = vmatpush3.bf16.msra.mxu0 %v814_v3  ;;  %806 = vmatpush3.bf16.msra.mxu1 %v814_v3 }
  0x10   :  { %755 = vmatprep.subr.bf16.mxu0 %v815_v6  ;;  %799 = vmatprep.subr.bf16.mxu1 %v815_v6 }
  0x13   :  { %756 = vmatpush3.bf16.msra.mxu0 %v815_v6  ;;  %807 = vmatpush3.bf16.msra.mxu1 %v815_v6 }
  0x14   :  { %757 = vmatprep.subr.bf16.mxu0 %v816_v7  ;;  %800 = vmatprep.subr.bf16.mxu1 %v816_v7 }
  0x17   :  { %758 = vmatpush3.bf16.msra.mxu0 %v816_v7  ;;  %808 = vmatpush3.bf16.msra.mxu1 %v816_v7 }
  0x18   :  { %759 = vmatprep.subr.bf16.mxu0 %v817_v8  ;;  %801 = vmatprep.subr.bf16.mxu1 %v817_v8 }
  0x1b   :  { %760 = vmatpush3.bf16.msra.mxu0 %v817_v8  ;;  %809 = vmatpush3.bf16.msra.mxu1 %v817_v8 }
  0x1c   :  { %761 = vmatprep.subr.bf16.mxu0 %v818_v9  ;;  %802 = vmatprep.subr.bf16.mxu1 %v818_v9 }
  0x1f   :  { %762 = vmatpush3.bf16.msra.mxu0 %v818_v9  ;;  %810 = vmatpush3.bf16.msra.mxu1 %v818_v9 }
  0x22   :  { %764 = vmatmul.mubr.bf16.vlgmr.msra.gmra.mxu0 %v821_v10  ;;  %780 = vmatmul.mubr.bf16.vlgmr.msra.gmra.mxu1 %v822_v11 }
  0x23   :  { %767 = vmatprep.mubr.bf16.mxu0 %v823_v12  ;;  %783 = vmatprep.mubr.bf16.mxu1 %v824_v13 }
  0x2a   :  { %768 = vmatmul.mubr.bf16.gmra.mxu0 %v825_v14  ;;  %784 = vmatmul.mubr.bf16.gmra.mxu1 %v826_v15 }
  0x2b   :  { %771 = vmatprep.mubr.bf16.mxu0 %v827_v16  ;;  %787 = vmatprep.mubr.bf16.mxu1 %v828_v17 }
  0x32   :  { %772 = vmatmul.mubr.bf16.gmra.mxu0 %v829_v18  ;;  %788 = vmatmul.mubr.bf16.gmra.mxu1 %v830_v19 }
  0x33   :  { %775 = vmatprep.mubr.bf16.mxu0 %v831_v20  ;;  %791 = vmatprep.mubr.bf16.mxu1 %v832_v21 }
  0x3a   :  { %776 = vmatmul.mubr.bf16.gmra.mxu0 %v833_v22  ;;  %792 = vmatmul.mubr.bf16.gmra.mxu1 %v834_v23 }
  0xe2   :  { %v765_v24 = vpop.f32.mrf.mxu0  ;;  %v781_v25 = vpop.f32.mrf.mxu1 }
  0xe3   :  { %v257_v31 = vadd.f32 %v765_v24, %v930_v26  ;;  %v321_v32 = vadd.f32 %v781_v25, %v930_v26 }
  0xe4   :  { %v248_v27 = vpop.f32.mrf.mxu0  ;;  %v312_v28 = vpop.f32.mrf.mxu1 }
  0xe5   :  { %v249_v35 = vadd.f32 %v930_v26, %v248_v27  ;;  %v313_v36 = vadd.f32 %v930_v26, %v312_v28 }
  0xe6   :  { %v766_v29 = vpop.f32.mrf.mxu0  ;;  %v782_v30 = vpop.f32.mrf.mxu1 }
  0xe7   :  { %v260_v33 = vadd.f32 %v766_v29, %v930_v26  ;;  %v324_v34 = vadd.f32 %v782_v30, %v930_v26 }
  0xe8   :  { %v251_v37 = vpop.f32.mrf.mxu0  ;;  %v315_v38 = vpop.f32.mrf.mxu1 }
  0xe9   :  { %v636_v39 = vpack.c.bf16 %v260_v33, %v257_v31  ;;  %v676_v40 = vpack.c.bf16 %v324_v34, %v321_v32  ;;  %v252_v41 = vadd.f32 %v930_v26, %v251_v37  ;;  %v316_v42 = vadd.f32 %v930_v26, %v315_v38 }
  0xea   :  { %v769_v43 = vpop.f32.mrf.mxu0  ;;  %v785_v44 = vpop.f32.mrf.mxu1 }
  0xeb   :  { %708 = vst [vmem:[%s1015_s3 + $0x8] sm:$0xff] %v636_v39   ;;  %716 = vst [vmem:[%s1015_s3 + $0x48] sm:$0xff] %v676_v40   ;;  %v631_v45 = vpack.c.bf16 %v252_v41, %v249_v35  ;;  %v671_v46 = vpack.c.bf16 %v316_v42, %v313_v36  ;;  %v273_v51 = vadd.f32 %v769_v43, %v930_v26 }
  0xec   :  { %v264_v47 = vpop.f32.mrf.mxu0  ;;  %v328_v48 = vpop.f32.mrf.mxu1  ;;  %v337_v52 = vadd.f32 %v785_v44, %v930_v26 }
  0xed   :  { %632 = vst [vmem:[%s1015_s3] sm:$0xff] %v631_v45   ;;  %715 = vst [vmem:[%s1015_s3 + $0x40] sm:$0xff] %v671_v46   ;;  %v265_v55 = vadd.f32 %v930_v26, %v264_v47  ;;  %v329_v56 = vadd.f32 %v930_v26, %v328_v48 }
  0xee   :  { %v770_v49 = vpop.f32.mrf.mxu0  ;;  %v786_v50 = vpop.f32.mrf.mxu1 }
  0xef   :  { %v276_v53 = vadd.f32 %v770_v49, %v930_v26  ;;  %v340_v54 = vadd.f32 %v786_v50, %v930_v26 }
  0xf0   :  { %v267_v57 = vpop.f32.mrf.mxu0  ;;  %v331_v58 = vpop.f32.mrf.mxu1 }
  0xf1   :  { %v646_v59 = vpack.c.bf16 %v276_v53, %v273_v51  ;;  %v686_v60 = vpack.c.bf16 %v340_v54, %v337_v52  ;;  %v268_v61 = vadd.f32 %v930_v26, %v267_v57  ;;  %v332_v62 = vadd.f32 %v930_v26, %v331_v58 }
  0xf2   :  { %v773_v63 = vpop.f32.mrf.mxu0  ;;  %v789_v0 = vpop.f32.mrf.mxu1 }
  0xf3   :  { %710 = vst [vmem:[%s1015_s3 + $0x18] sm:$0xff] %v646_v59   ;;  %718 = vst [vmem:[%s1015_s3 + $0x58] sm:$0xff] %v686_v60   ;;  %v641_v1 = vpack.c.bf16 %v268_v61, %v265_v55  ;;  %v681_v2 = vpack.c.bf16 %v332_v62, %v329_v56  ;;  %v289_v7 = vadd.f32 %v773_v63, %v930_v26 }
  0xf4   :  { %v280_v3 = vpop.f32.mrf.mxu0  ;;  %v344_v4 = vpop.f32.mrf.mxu1  ;;  %v353_v8 = vadd.f32 %v789_v0, %v930_v26 }
  0xf5   :  { %709 = vst [vmem:[%s1015_s3 + $0x10] sm:$0xff] %v641_v1   ;;  %717 = vst [vmem:[%s1015_s3 + $0x50] sm:$0xff] %v681_v2   ;;  %v281_v11 = vadd.f32 %v930_v26, %v280_v3  ;;  %v345_v12 = vadd.f32 %v930_v26, %v344_v4 }
  0xf6   :  { %v774_v5 = vpop.f32.mrf.mxu0  ;;  %v790_v6 = vpop.f32.mrf.mxu1 }
  0xf7   :  { %v292_v9 = vadd.f32 %v774_v5, %v930_v26  ;;  %v356_v10 = vadd.f32 %v790_v6, %v930_v26 }
  0xf8   :  { %v283_v13 = vpop.f32.mrf.mxu0  ;;  %v347_v14 = vpop.f32.mrf.mxu1 }
  0xf9   :  { %v656_v15 = vpack.c.bf16 %v292_v9, %v289_v7  ;;  %v696_v16 = vpack.c.bf16 %v356_v10, %v353_v8  ;;  %v284_v17 = vadd.f32 %v930_v26, %v283_v13  ;;  %v348_v18 = vadd.f32 %v930_v26, %v347_v14 }
  0xfa   :  { %v777_v19 = vpop.f32.mrf.mxu0  ;;  %v793_v20 = vpop.f32.mrf.mxu1 }
  0xfb   :  { %712 = vst [vmem:[%s1015_s3 + $0x28] sm:$0xff] %v656_v15   ;;  %720 = vst [vmem:[%s1015_s3 + $0x68] sm:$0xff] %v696_v16   ;;  %v651_v21 = vpack.c.bf16 %v284_v17, %v281_v11  ;;  %v691_v22 = vpack.c.bf16 %v348_v18, %v345_v12  ;;  %v305_v28 = vadd.f32 %v777_v19, %v930_v26 }
  0xfc   :  { %v296_v23 = vpop.f32.mrf.mxu0  ;;  %v360_v24 = vpop.f32.mrf.mxu1  ;;  %v369_v29 = vadd.f32 %v793_v20, %v930_v26 }
  0xfd   :  { %711 = vst [vmem:[%s1015_s3 + $0x20] sm:$0xff] %v651_v21   ;;  %719 = vst [vmem:[%s1015_s3 + $0x60] sm:$0xff] %v691_v22   ;;  %v297_v32 = vadd.f32 %v930_v26, %v296_v23  ;;  %v361_v33 = vadd.f32 %v930_v26, %v360_v24 }
  0xfe   :  { %v778_v25 = vpop.f32.mrf.mxu0  ;;  %v794_v27 = vpop.f32.mrf.mxu1 }
  0xff   :  { %v308_v30 = vadd.f32 %v778_v25, %v930_v26  ;;  %v372_v31 = vadd.f32 %v794_v27, %v930_v26 }
 0x100   :  { %v299_v34 = vpop.f32.mrf.mxu0  ;;  %v363_v35 = vpop.f32.mrf.mxu1 }
 0x101   :  { %v666_v36 = vpack.c.bf16 %v308_v30, %v305_v28  ;;  %v706_v37 = vpack.c.bf16 %v372_v31, %v369_v29  ;;  %v300_v38 = vadd.f32 %v930_v26, %v299_v34  ;;  %v364_v39 = vadd.f32 %v930_v26, %v363_v35 }
 0x103   :  { %714 = vst [vmem:[%s1015_s3 + $0x38] sm:$0xff] %v666_v36   ;;  %722 = vst [vmem:[%s1015_s3 + $0x78] sm:$0xff] %v706_v37   ;;  %v661_v40 = vpack.c.bf16 %v300_v38, %v297_v32  ;;  %v701_v41 = vpack.c.bf16 %v364_v39, %v361_v33 }
 0x105   :  { %713 = vst [vmem:[%s1015_s3 + $0x30] sm:$0xff] %v661_v40   ;;  %721 = vst [vmem:[%s1015_s3 + $0x70] sm:$0xff] %v701_v41  }

// kernel: decoder_with_attention_forward.5
= control target key start
LH: loop header
LB: loop body
LE: loop exit
PB: predicated region body
PF: predicated region fallthrough
CT: control target
= control target key end

     0   :  { %v836_v1 = vmov 0   ;;  %v73_v45 = vlaneseq  ;;  %s1408_s1 = inlined_call_operand.vmem [shape: bf16[128,512], index: 1, kind: input, shape index: {}]   ;;  %s1409_s0 = inlined_call_operand.vmem [shape: bf16[192,128], index: 0, kind: input, shape index: {}]   ;;  %s1410_s2 = inlined_call_operand.vmem [shape: f32[1,512], index: 2, kind: input, shape index: {}]   ;;  %s1411_s3 = inlined_call_operand.vmem [shape: f32[192,512], index: 3, kind: output, shape index: {}]  }
   0x1   :  { %v776_v0 = vld [vmem:[%s1408_s1 + $0xe4] ss:$16 sps:$4 sm:$0xff]   ;;  %357 = vmatprep.mubr.bf16.mxu0 %v836_v1  ;;  %510 = vmatprep.mubr.bf16.mxu1 %v836_v1  ;;  %v778_v2 = vld [vmem:[%s1408_s1 + $0xec] ss:$16 sps:$4 sm:$0xff]   ;;  %v780_v3 = vld [vmem:[%s1408_s1 + $0xe0] ss:$16 sps:$4 sm:$0xff]  }
   0x2   :  { %325 = vmatprep.subr.bf16.mxu0 %v776_v0  ;;  %v781_v4 = vld [vmem:[%s1408_s1 + $0xe8] ss:$16 sps:$4 sm:$0xff]   ;;  %478 = vmatprep.subr.bf16.mxu1 %v778_v2  ;;  %v782_v5 = vld [vmem:[%s1408_s1 + $0xc4] ss:$16 sps:$4 sm:$0xff]   ;;  %v784_v6 = vld [vmem:[%s1408_s1 + $0xcc] ss:$16 sps:$4 sm:$0xff]  }
   0x3   :  { %326 = vmatpush1.bf16.msra.mxu0 %v780_v3  ;;  %479 = vmatpush1.bf16.msra.mxu1 %v781_v4  ;;  %v786_v7 = vld [vmem:[%s1408_s1 + $0xc0] ss:$16 sps:$4 sm:$0xff]   ;;  %v787_v8 = vld [vmem:[%s1408_s1 + $0xc8] ss:$16 sps:$4 sm:$0xff]   ;;  %v788_v9 = vld [vmem:[%s1408_s1 + $0xa4] ss:$16 sps:$4 sm:$0xff]  }
   0x4   :  { %327 = vmatprep.subr.bf16.mxu0 %v782_v5  ;;  %480 = vmatprep.subr.bf16.mxu1 %v784_v6  ;;  %v790_v10 = vld [vmem:[%s1408_s1 + $0xac] ss:$16 sps:$4 sm:$0xff]   ;;  %v792_v11 = vld [vmem:[%s1408_s1 + $0xa0] ss:$16 sps:$4 sm:$0xff]   ;;  %v793_v12 = vld [vmem:[%s1408_s1 + $0xa8] ss:$16 sps:$4 sm:$0xff]  }
   0x5   :  { %v794_v13 = vld [vmem:[%s1408_s1 + $0x84] ss:$16 sps:$4 sm:$0xff]   ;;  %v796_v14 = vld [vmem:[%s1408_s1 + $0x8c] ss:$16 sps:$4 sm:$0xff]   ;;  %v798_v15 = vld [vmem:[%s1408_s1 + $0x80] ss:$16 sps:$4 sm:$0xff]  }
   0x6   :  { %v799_v16 = vld [vmem:[%s1408_s1 + $0x88] ss:$16 sps:$4 sm:$0xff]   ;;  %v800_v17 = vld [vmem:[%s1408_s1 + $0x64] ss:$16 sps:$4 sm:$0xff]   ;;  %v802_v18 = vld [vmem:[%s1408_s1 + $0x6c] ss:$16 sps:$4 sm:$0xff]  }
   0x7   :  { %328 = vmatpush1.bf16.msra.mxu0 %v786_v7  ;;  %481 = vmatpush1.bf16.msra.mxu1 %v787_v8  ;;  %v804_v19 = vld [vmem:[%s1408_s1 + $0x60] ss:$16 sps:$4 sm:$0xff]   ;;  %v805_v20 = vld [vmem:[%s1408_s1 + $0x68] ss:$16 sps:$4 sm:$0xff]   ;;  %v806_v21 = vld [vmem:[%s1408_s1 + $0x44] ss:$16 sps:$4 sm:$0xff]  }
   0x8   :  { %329 = vmatprep.subr.bf16.mxu0 %v788_v9  ;;  %482 = vmatprep.subr.bf16.mxu1 %v790_v10  ;;  %v808_v22 = vld [vmem:[%s1408_s1 + $0x4c] ss:$16 sps:$4 sm:$0xff]   ;;  %v810_v23 = vld [vmem:[%s1408_s1 + $0x40] ss:$16 sps:$4 sm:$0xff]   ;;  %v811_v24 = vld [vmem:[%s1408_s1 + $0x48] ss:$16 sps:$4 sm:$0xff]  }
   0x9   :  { %v812_v25 = vld [vmem:[%s1408_s1 + $0x24] ss:$16 sps:$4 sm:$0xff]   ;;  %v814_v26 = vld [vmem:[%s1408_s1 + $0x2c] ss:$16 sps:$4 sm:$0xff]   ;;  %v816_v27 = vld [vmem:[%s1408_s1 + $0x20] ss:$16 sps:$4 sm:$0xff]  }
   0xa   :  { %v817_v28 = vld [vmem:[%s1408_s1 + $0x28] ss:$16 sps:$4 sm:$0xff]   ;;  %v818_v29 = vld [vmem:[%s1408_s1 + $0x4] ss:$16 sps:$4 sm:$0xff]   ;;  %v820_v30 = vld [vmem:[%s1408_s1 + $0xc] ss:$16 sps:$4 sm:$0xff]  }
   0xb   :  { %330 = vmatpush1.bf16.msra.mxu0 %v792_v11  ;;  %483 = vmatpush1.bf16.msra.mxu1 %v793_v12  ;;  %v822_v31 = vld [vmem:[%s1408_s1] ss:$16 sps:$4 sm:$0xff]   ;;  %v823_v32 = vld [vmem:[%s1408_s1 + $0x8] ss:$16 sps:$4 sm:$0xff]   ;;  %v74_v46 = vshrl.u32 %v73_v45, 7 }
   0xc   :  { %331 = vmatprep.subr.bf16.mxu0 %v794_v13  ;;  %484 = vmatprep.subr.bf16.mxu1 %v796_v14  ;;  %v824_v33 = vld [vmem:[%s1409_s0] sm:$0xff]   ;;  %v825_v34 = vld [vmem:[%s1409_s0 + $0x8] sm:$0xff]   ;;  %v826_v35 = vld [vmem:[%s1409_s0 + $0x10] sm:$0xff]  }
   0xd   :  { %v827_v36 = vld [vmem:[%s1409_s0 + $0x18] sm:$0xff]   ;;  %v828_v37 = vld [vmem:[%s1409_s0 + $0x20] sm:$0xff]   ;;  %v829_v38 = vld [vmem:[%s1409_s0 + $0x28] sm:$0xff]   ;;  %v75_v47 = vsub.s32 0, %v74_v46  ;;  %v83_v48 = vsub.s32 2, %v74_v46  ;;  %v79_v50 = vsub.s32 1, %v74_v46 }
   0xe   :  { %v830_v39 = vld [vmem:[%s1409_s0 + $0x30] sm:$0xff]   ;;  %v831_v40 = vld [vmem:[%s1409_s0 + $0x38] sm:$0xff]   ;;  %v832_v41 = vld [vmem:[%s1409_s0 + $0x40] sm:$0xff]   ;;  %v87_v51 = vsub.s32 3, %v74_v46 }
   0xf   :  { %332 = vmatpush1.bf16.msra.mxu0 %v798_v15  ;;  %485 = vmatpush1.bf16.msra.mxu1 %v799_v16  ;;  %v833_v42 = vld [vmem:[%s1409_s0 + $0x48] sm:$0xff]   ;;  %v834_v43 = vld [vmem:[%s1409_s0 + $0x50] sm:$0xff]   ;;  %v835_v44 = vld [vmem:[%s1409_s0 + $0x58] sm:$0xff]  }
  0x10   :  { %333 = vmatprep.subr.bf16.mxu0 %v800_v17  ;;  %486 = vmatprep.subr.bf16.mxu1 %v802_v18  ;;  %v71_v49 = vld [vmem:[%s1410_s2] sm:$0xf] }
  0x11   :  { %v1016_v52 = vrot.slane %v71_v49, %v75_v47  ;;  %v1018_v53 = vrot.slane %v71_v49, %v83_v48  ;;  %v1020_v54 = vrot.slane %v71_v49, %v79_v50  ;;  %v1022_v55 = vrot.slane %v71_v49, %v87_v51 }
  0x13   :  { %334 = vmatpush1.bf16.msra.mxu0 %v804_v19  ;;  %487 = vmatpush1.bf16.msra.mxu1 %v805_v20 }
  0x14   :  { %335 = vmatprep.subr.bf16.mxu0 %v806_v21  ;;  %488 = vmatprep.subr.bf16.mxu1 %v808_v22 }
  0x17   :  { %336 = vmatpush1.bf16.msra.mxu0 %v810_v23  ;;  %489 = vmatpush1.bf16.msra.mxu1 %v811_v24 }
  0x18   :  { %337 = vmatprep.subr.bf16.mxu0 %v812_v25  ;;  %490 = vmatprep.subr.bf16.mxu1 %v814_v26 }
  0x1b   :  { %338 = vmatpush1.bf16.msra.mxu0 %v816_v27  ;;  %491 = vmatpush1.bf16.msra.mxu1 %v817_v28 }
  0x1c   :  { %339 = vmatprep.subr.bf16.mxu0 %v818_v29  ;;  %492 = vmatprep.subr.bf16.mxu1 %v820_v30 }
  0x1f   :  { %340 = vmatpush1.bf16.msra.mxu0 %v822_v31  ;;  %493 = vmatpush1.bf16.msra.mxu1 %v823_v32 }
  0x22   :  { %358 = vmatmul.mubr.bf16.vlgmr.msra.gmra.mxu0 %v824_v33  ;;  %511 = vmatmul.mubr.bf16.vlgmr.msra.gmra.mxu1 %v824_v33 }
  0x23   :  { %367 = vmatprep.mubr.bf16.mxu0 %v836_v1  ;;  %520 = vmatprep.mubr.bf16.mxu1 %v836_v1 }
  0x2a   :  { %368 = vmatmul.mubr.bf16.gmra.mxu0 %v825_v34  ;;  %521 = vmatmul.mubr.bf16.gmra.mxu1 %v825_v34 }
  0x2b   :  { %377 = vmatprep.mubr.bf16.mxu0 %v836_v1  ;;  %530 = vmatprep.mubr.bf16.mxu1 %v836_v1 }
  0x32   :  { %378 = vmatmul.mubr.bf16.gmra.mxu0 %v826_v35  ;;  %531 = vmatmul.mubr.bf16.gmra.mxu1 %v826_v35 }
  0x33   :  { %387 = vmatprep.mubr.bf16.mxu0 %v836_v1  ;;  %540 = vmatprep.mubr.bf16.mxu1 %v836_v1 }
  0x3a   :  { %388 = vmatmul.mubr.bf16.gmra.mxu0 %v827_v36  ;;  %541 = vmatmul.mubr.bf16.gmra.mxu1 %v827_v36 }
  0x3b   :  { %397 = vmatprep.mubr.bf16.mxu0 %v836_v1  ;;  %550 = vmatprep.mubr.bf16.mxu1 %v836_v1 }
  0x42   :  { %398 = vmatmul.mubr.bf16.gmra.mxu0 %v828_v37  ;;  %551 = vmatmul.mubr.bf16.gmra.mxu1 %v828_v37 }
  0x43   :  { %407 = vmatprep.mubr.bf16.mxu0 %v836_v1  ;;  %560 = vmatprep.mubr.bf16.mxu1 %v836_v1 }
  0x4a   :  { %408 = vmatmul.mubr.bf16.gmra.mxu0 %v829_v38  ;;  %561 = vmatmul.mubr.bf16.gmra.mxu1 %v829_v38 }
  0x4b   :  { %417 = vmatprep.mubr.bf16.mxu0 %v836_v1  ;;  %570 = vmatprep.mubr.bf16.mxu1 %v836_v1 }
  0x52   :  { %418 = vmatmul.mubr.bf16.gmra.mxu0 %v830_v39  ;;  %571 = vmatmul.mubr.bf16.gmra.mxu1 %v830_v39 }
  0x53   :  { %427 = vmatprep.mubr.bf16.mxu0 %v836_v1  ;;  %580 = vmatprep.mubr.bf16.mxu1 %v836_v1 }
  0x5a   :  { %428 = vmatmul.mubr.bf16.gmra.mxu0 %v831_v40  ;;  %581 = vmatmul.mubr.bf16.gmra.mxu1 %v831_v40 }
  0x5b   :  { %437 = vmatprep.mubr.bf16.mxu0 %v836_v1  ;;  %590 = vmatprep.mubr.bf16.mxu1 %v836_v1 }
  0x62   :  { %438 = vmatmul.mubr.bf16.gmra.mxu0 %v832_v41  ;;  %591 = vmatmul.mubr.bf16.gmra.mxu1 %v832_v41 }
  0x63   :  { %447 = vmatprep.mubr.bf16.mxu0 %v836_v1  ;;  %600 = vmatprep.mubr.bf16.mxu1 %v836_v1 }
  0x6a   :  { %448 = vmatmul.mubr.bf16.gmra.mxu0 %v833_v42  ;;  %601 = vmatmul.mubr.bf16.gmra.mxu1 %v833_v42 }
  0x6b   :  { %457 = vmatprep.mubr.bf16.mxu0 %v836_v1  ;;  %610 = vmatprep.mubr.bf16.mxu1 %v836_v1 }
  0x72   :  { %458 = vmatmul.mubr.bf16.gmra.mxu0 %v834_v43  ;;  %611 = vmatmul.mubr.bf16.gmra.mxu1 %v834_v43 }
  0x73   :  { %467 = vmatprep.mubr.bf16.mxu0 %v836_v1  ;;  %620 = vmatprep.mubr.bf16.mxu1 %v836_v1 }
  0x7a   :  { %468 = vmatmul.mubr.bf16.gmra.mxu0 %v835_v44  ;;  %621 = vmatmul.mubr.bf16.gmra.mxu1 %v835_v44 }
  0xe2   :  { %v359_v56 = vpop.f32.mrf.mxu0  ;;  %v512_v57 = vpop.f32.mrf.mxu1 }
  0xe3   :  { %v360_v58 = vadd.f32 %v359_v56, %v1016_v52  ;;  %v513_v59 = vadd.f32 %v512_v57, %v1018_v53 }
  0xe4   :  { %v361_v60 = vpop.f32.mrf.mxu0  ;;  %v514_v61 = vpop.f32.mrf.mxu1 }
  0xe5   :  { %631 = vst [vmem:[%s1411_s3] sm:$0xff] %v360_v58  ;;  %633 = vst [vmem:[%s1411_s3 + $0x10] sm:$0xff] %v513_v59  ;;  %v362_v62 = vadd.f32 %v361_v60, %v1020_v54  ;;  %v515_v63 = vadd.f32 %v514_v61, %v1022_v55 }
  0xe6   :  { %v363_v0 = vpop.f32.mrf.mxu0  ;;  %v516_v1 = vpop.f32.mrf.mxu1 }
  0xe7   :  { %632 = vst [vmem:[%s1411_s3 + $0x8] sm:$0xff] %v362_v62  ;;  %634 = vst [vmem:[%s1411_s3 + $0x18] sm:$0xff] %v515_v63  ;;  %v364_v2 = vadd.f32 %v363_v0, %v1016_v52  ;;  %v517_v3 = vadd.f32 %v516_v1, %v1018_v53 }
  0xe8   :  { %v365_v4 = vpop.f32.mrf.mxu0  ;;  %v518_v5 = vpop.f32.mrf.mxu1 }
  0xe9   :  { %635 = vst [vmem:[%s1411_s3 + $0x20] sm:$0xff] %v364_v2  ;;  %637 = vst [vmem:[%s1411_s3 + $0x30] sm:$0xff] %v517_v3  ;;  %v366_v6 = vadd.f32 %v365_v4, %v1020_v54  ;;  %v519_v7 = vadd.f32 %v518_v5, %v1022_v55 }
  0xea   :  { %v369_v8 = vpop.f32.mrf.mxu0  ;;  %v522_v9 = vpop.f32.mrf.mxu1 }
  0xeb   :  { %636 = vst [vmem:[%s1411_s3 + $0x28] sm:$0xff] %v366_v6  ;;  %638 = vst [vmem:[%s1411_s3 + $0x38] sm:$0xff] %v519_v7  ;;  %v370_v10 = vadd.f32 %v369_v8, %v1016_v52  ;;  %v523_v11 = vadd.f32 %v522_v9, %v1018_v53 }
  0xec   :  { %v371_v12 = vpop.f32.mrf.mxu0  ;;  %v524_v13 = vpop.f32.mrf.mxu1 }
  0xed   :  { %639 = vst [vmem:[%s1411_s3 + $0x40] sm:$0xff] %v370_v10  ;;  %641 = vst [vmem:[%s1411_s3 + $0x50] sm:$0xff] %v523_v11  ;;  %v372_v14 = vadd.f32 %v371_v12, %v1020_v54  ;;  %v525_v15 = vadd.f32 %v524_v13, %v1022_v55 }
  0xee   :  { %v373_v16 = vpop.f32.mrf.mxu0  ;;  %v526_v17 = vpop.f32.mrf.mxu1 }
  0xef   :  { %640 = vst [vmem:[%s1411_s3 + $0x48] sm:$0xff] %v372_v14  ;;  %642 = vst [vmem:[%s1411_s3 + $0x58] sm:$0xff] %v525_v15  ;;  %v374_v18 = vadd.f32 %v373_v16, %v1016_v52  ;;  %v527_v19 = vadd.f32 %v526_v17, %v1018_v53 }
  0xf0   :  { %v375_v20 = vpop.f32.mrf.mxu0  ;;  %v528_v21 = vpop.f32.mrf.mxu1 }
  0xf1   :  { %643 = vst [vmem:[%s1411_s3 + $0x60] sm:$0xff] %v374_v18  ;;  %645 = vst [vmem:[%s1411_s3 + $0x70] sm:$0xff] %v527_v19  ;;  %v376_v22 = vadd.f32 %v375_v20, %v1020_v54  ;;  %v529_v23 = vadd.f32 %v528_v21, %v1022_v55 }
  0xf2   :  { %v379_v24 = vpop.f32.mrf.mxu0  ;;  %v532_v25 = vpop.f32.mrf.mxu1 }
  0xf3   :  { %644 = vst [vmem:[%s1411_s3 + $0x68] sm:$0xff] %v376_v22  ;;  %646 = vst [vmem:[%s1411_s3 + $0x78] sm:$0xff] %v529_v23  ;;  %v380_v26 = vadd.f32 %v379_v24, %v1016_v52  ;;  %v533_v27 = vadd.f32 %v532_v25, %v1018_v53 }
  0xf4   :  { %v381_v28 = vpop.f32.mrf.mxu0  ;;  %v534_v29 = vpop.f32.mrf.mxu1 }
  0xf5   :  { %647 = vst [vmem:[%s1411_s3 + $0x80] sm:$0xff] %v380_v26  ;;  %649 = vst [vmem:[%s1411_s3 + $0x90] sm:$0xff] %v533_v27  ;;  %v382_v30 = vadd.f32 %v381_v28, %v1020_v54  ;;  %v535_v31 = vadd.f32 %v534_v29, %v1022_v55 }
  0xf6   :  { %v383_v32 = vpop.f32.mrf.mxu0  ;;  %v536_v33 = vpop.f32.mrf.mxu1 }
  0xf7   :  { %648 = vst [vmem:[%s1411_s3 + $0x88] sm:$0xff] %v382_v30  ;;  %650 = vst [vmem:[%s1411_s3 + $0x98] sm:$0xff] %v535_v31  ;;  %v384_v34 = vadd.f32 %v383_v32, %v1016_v52  ;;  %v537_v35 = vadd.f32 %v536_v33, %v1018_v53 }
  0xf8   :  { %v385_v36 = vpop.f32.mrf.mxu0  ;;  %v538_v37 = vpop.f32.mrf.mxu1 }
  0xf9   :  { %651 = vst [vmem:[%s1411_s3 + $0xa0] sm:$0xff] %v384_v34  ;;  %653 = vst [vmem:[%s1411_s3 + $0xb0] sm:$0xff] %v537_v35  ;;  %v386_v38 = vadd.f32 %v385_v36, %v1020_v54  ;;  %v539_v39 = vadd.f32 %v538_v37, %v1022_v55 }
  0xfa   :  { %v389_v40 = vpop.f32.mrf.mxu0  ;;  %v542_v41 = vpop.f32.mrf.mxu1 }
  0xfb   :  { %652 = vst [vmem:[%s1411_s3 + $0xa8] sm:$0xff] %v386_v38  ;;  %654 = vst [vmem:[%s1411_s3 + $0xb8] sm:$0xff] %v539_v39  ;;  %v390_v42 = vadd.f32 %v389_v40, %v1016_v52  ;;  %v543_v43 = vadd.f32 %v542_v41, %v1018_v53 }
  0xfc   :  { %v391_v44 = vpop.f32.mrf.mxu0  ;;  %v544_v45 = vpop.f32.mrf.mxu1 }
  0xfd   :  { %655 = vst [vmem:[%s1411_s3 + $0xc0] sm:$0xff] %v390_v42  ;;  %657 = vst [vmem:[%s1411_s3 + $0xd0] sm:$0xff] %v543_v43  ;;  %v392_v46 = vadd.f32 %v391_v44, %v1020_v54  ;;  %v545_v47 = vadd.f32 %v544_v45, %v1022_v55 }
  0xfe   :  { %v393_v48 = vpop.f32.mrf.mxu0  ;;  %v546_v49 = vpop.f32.mrf.mxu1 }
  0xff   :  { %656 = vst [vmem:[%s1411_s3 + $0xc8] sm:$0xff] %v392_v46  ;;  %658 = vst [vmem:[%s1411_s3 + $0xd8] sm:$0xff] %v545_v47  ;;  %v394_v50 = vadd.f32 %v393_v48, %v1016_v52  ;;  %v547_v51 = vadd.f32 %v546_v49, %v1018_v53 }
 0x100   :  { %v395_v56 = vpop.f32.mrf.mxu0  ;;  %v548_v57 = vpop.f32.mrf.mxu1 }
 0x101   :  { %659 = vst [vmem:[%s1411_s3 + $0xe0] sm:$0xff] %v394_v50  ;;  %661 = vst [vmem:[%s1411_s3 + $0xf0] sm:$0xff] %v547_v51  ;;  %v396_v58 = vadd.f32 %v395_v56, %v1020_v54  ;;  %v549_v59 = vadd.f32 %v548_v57, %v1022_v55 }
 0x102   :  { %v399_v60 = vpop.f32.mrf.mxu0  ;;  %v552_v61 = vpop.f32.mrf.mxu1 }
 0x103   :  { %660 = vst [vmem:[%s1411_s3 + $0xe8] sm:$0xff] %v396_v58  ;;  %662 = vst [vmem:[%s1411_s3 + $0xf8] sm:$0xff] %v549_v59  ;;  %v400_v62 = vadd.f32 %v399_v60, %v1016_v52  ;;  %v553_v63 = vadd.f32 %v552_v61, %v1018_v53 }
 0x104   :  { %v401_v0 = vpop.f32.mrf.mxu0  ;;  %v554_v1 = vpop.f32.mrf.mxu1 }
 0x105   :  { %663 = vst [vmem:[%s1411_s3 + $0x100] sm:$0xff] %v400_v62  ;;  %665 = vst [vmem:[%s1411_s3 + $0x110] sm:$0xff] %v553_v63  ;;  %v402_v2 = vadd.f32 %v401_v0, %v1020_v54  ;;  %v555_v3 = vadd.f32 %v554_v1, %v1022_v55 }
 0x106   :  { %v403_v4 = vpop.f32.mrf.mxu0  ;;  %v556_v5 = vpop.f32.mrf.mxu1 }
 0x107   :  { %664 = vst [vmem:[%s1411_s3 + $0x108] sm:$0xff] %v402_v2  ;;  %666 = vst [vmem:[%s1411_s3 + $0x118] sm:$0xff] %v555_v3  ;;  %v404_v6 = vadd.f32 %v403_v4, %v1016_v52  ;;  %v557_v7 = vadd.f32 %v556_v5, %v1018_v53 }
 0x108   :  { %v405_v8 = vpop.f32.mrf.mxu0  ;;  %v558_v9 = vpop.f32.mrf.mxu1 }
 0x109   :  { %667 = vst [vmem:[%s1411_s3 + $0x120] sm:$0xff] %v404_v6  ;;  %669 = vst [vmem:[%s1411_s3 + $0x130] sm:$0xff] %v557_v7  ;;  %v406_v10 = vadd.f32 %v405_v8, %v1020_v54  ;;  %v559_v11 = vadd.f32 %v558_v9, %v1022_v55 }
 0x10a   :  { %v409_v12 = vpop.f32.mrf.mxu0  ;;  %v562_v13 = vpop.f32.mrf.mxu1 }
 0x10b   :  { %668 = vst [vmem:[%s1411_s3 + $0x128] sm:$0xff] %v406_v10  ;;  %670 = vst [vmem:[%s1411_s3 + $0x138] sm:$0xff] %v559_v11  ;;  %v410_v14 = vadd.f32 %v409_v12, %v1016_v52  ;;  %v563_v15 = vadd.f32 %v562_v13, %v1018_v53 }
 0x10c   :  { %v411_v16 = vpop.f32.mrf.mxu0  ;;  %v564_v17 = vpop.f32.mrf.mxu1 }
 0x10d   :  { %671 = vst [vmem:[%s1411_s3 + $0x140] sm:$0xff] %v410_v14  ;;  %673 = vst [vmem:[%s1411_s3 + $0x150] sm:$0xff] %v563_v15  ;;  %v412_v18 = vadd.f32 %v411_v16, %v1020_v54  ;;  %v565_v19 = vadd.f32 %v564_v17, %v1022_v55 }
 0x10e   :  { %v413_v20 = vpop.f32.mrf.mxu0  ;;  %v566_v21 = vpop.f32.mrf.mxu1 }
 0x10f   :  { %672 = vst [vmem:[%s1411_s3 + $0x148] sm:$0xff] %v412_v18  ;;  %674 = vst [vmem:[%s1411_s3 + $0x158] sm:$0xff] %v565_v19  ;;  %v414_v22 = vadd.f32 %v413_v20, %v1016_v52  ;;  %v567_v23 = vadd.f32 %v566_v21, %v1018_v53 }
 0x110   :  { %v415_v24 = vpop.f32.mrf.mxu0  ;;  %v568_v25 = vpop.f32.mrf.mxu1 }
 0x111   :  { %675 = vst [vmem:[%s1411_s3 + $0x160] sm:$0xff] %v414_v22  ;;  %677 = vst [vmem:[%s1411_s3 + $0x170] sm:$0xff] %v567_v23  ;;  %v416_v26 = vadd.f32 %v415_v24, %v1020_v54  ;;  %v569_v27 = vadd.f32 %v568_v25, %v1022_v55 }
 0x112   :  { %v419_v28 = vpop.f32.mrf.mxu0  ;;  %v572_v29 = vpop.f32.mrf.mxu1 }
 0x113   :  { %676 = vst [vmem:[%s1411_s3 + $0x168] sm:$0xff] %v416_v26  ;;  %678 = vst [vmem:[%s1411_s3 + $0x178] sm:$0xff] %v569_v27  ;;  %v420_v30 = vadd.f32 %v419_v28, %v1016_v52  ;;  %v573_v31 = vadd.f32 %v572_v29, %v1018_v53 }
 0x114   :  { %v421_v32 = vpop.f32.mrf.mxu0  ;;  %v574_v33 = vpop.f32.mrf.mxu1 }
 0x115   :  { %679 = vst [vmem:[%s1411_s3 + $0x180] sm:$0xff] %v420_v30  ;;  %681 = vst [vmem:[%s1411_s3 + $0x190] sm:$0xff] %v573_v31  ;;  %v422_v34 = vadd.f32 %v421_v32, %v1020_v54  ;;  %v575_v35 = vadd.f32 %v574_v33, %v1022_v55 }
 0x116   :  { %v423_v36 = vpop.f32.mrf.mxu0  ;;  %v576_v37 = vpop.f32.mrf.mxu1 }
 0x117   :  { %680 = vst [vmem:[%s1411_s3 + $0x188] sm:$0xff] %v422_v34  ;;  %682 = vst [vmem:[%s1411_s3 + $0x198] sm:$0xff] %v575_v35  ;;  %v424_v38 = vadd.f32 %v423_v36, %v1016_v52  ;;  %v577_v39 = vadd.f32 %v576_v37, %v1018_v53 }
 0x118   :  { %v425_v40 = vpop.f32.mrf.mxu0  ;;  %v578_v41 = vpop.f32.mrf.mxu1 }
 0x119   :  { %683 = vst [vmem:[%s1411_s3 + $0x1a0] sm:$0xff] %v424_v38  ;;  %685 = vst [vmem:[%s1411_s3 + $0x1b0] sm:$0xff] %v577_v39  ;;  %v426_v42 = vadd.f32 %v425_v40, %v1020_v54  ;;  %v579_v43 = vadd.f32 %v578_v41, %v1022_v55 }
 0x11a   :  { %v429_v44 = vpop.f32.mrf.mxu0  ;;  %v582_v45 = vpop.f32.mrf.mxu1 }
 0x11b   :  { %684 = vst [vmem:[%s1411_s3 + $0x1a8] sm:$0xff] %v426_v42  ;;  %686 = vst [vmem:[%s1411_s3 + $0x1b8] sm:$0xff] %v579_v43  ;;  %v430_v46 = vadd.f32 %v429_v44, %v1016_v52  ;;  %v583_v47 = vadd.f32 %v582_v45, %v1018_v53 }
 0x11c   :  { %v431_v48 = vpop.f32.mrf.mxu0  ;;  %v584_v49 = vpop.f32.mrf.mxu1 }
 0x11d   :  { %687 = vst [vmem:[%s1411_s3 + $0x1c0] sm:$0xff] %v430_v46  ;;  %689 = vst [vmem:[%s1411_s3 + $0x1d0] sm:$0xff] %v583_v47  ;;  %v432_v50 = vadd.f32 %v431_v48, %v1020_v54  ;;  %v585_v51 = vadd.f32 %v584_v49, %v1022_v55 }
 0x11e   :  { %v433_v56 = vpop.f32.mrf.mxu0  ;;  %v586_v57 = vpop.f32.mrf.mxu1 }
 0x11f   :  { %688 = vst [vmem:[%s1411_s3 + $0x1c8] sm:$0xff] %v432_v50  ;;  %690 = vst [vmem:[%s1411_s3 + $0x1d8] sm:$0xff] %v585_v51  ;;  %v434_v58 = vadd.f32 %v433_v56, %v1016_v52  ;;  %v587_v59 = vadd.f32 %v586_v57, %v1018_v53 }
 0x120   :  { %v435_v60 = vpop.f32.mrf.mxu0  ;;  %v588_v61 = vpop.f32.mrf.mxu1 }
 0x121   :  { %691 = vst [vmem:[%s1411_s3 + $0x1e0] sm:$0xff] %v434_v58  ;;  %693 = vst [vmem:[%s1411_s3 + $0x1f0] sm:$0xff] %v587_v59  ;;  %v436_v62 = vadd.f32 %v435_v60, %v1020_v54  ;;  %v589_v63 = vadd.f32 %v588_v61, %v1022_v55 }
 0x122   :  { %v439_v0 = vpop.f32.mrf.mxu0  ;;  %v592_v1 = vpop.f32.mrf.mxu1 }
 0x123   :  { %692 = vst [vmem:[%s1411_s3 + $0x1e8] sm:$0xff] %v436_v62  ;;  %694 = vst [vmem:[%s1411_s3 + $0x1f8] sm:$0xff] %v589_v63  ;;  %v440_v2 = vadd.f32 %v439_v0, %v1016_v52  ;;  %v593_v3 = vadd.f32 %v592_v1, %v1018_v53 }
 0x124   :  { %v441_v4 = vpop.f32.mrf.mxu0  ;;  %v594_v5 = vpop.f32.mrf.mxu1 }
 0x125   :  { %695 = vst [vmem:[%s1411_s3 + $0x200] sm:$0xff] %v440_v2  ;;  %697 = vst [vmem:[%s1411_s3 + $0x210] sm:$0xff] %v593_v3  ;;  %v442_v6 = vadd.f32 %v441_v4, %v1020_v54  ;;  %v595_v7 = vadd.f32 %v594_v5, %v1022_v55 }
 0x126   :  { %v443_v8 = vpop.f32.mrf.mxu0  ;;  %v596_v9 = vpop.f32.mrf.mxu1 }
 0x127   :  { %696 = vst [vmem:[%s1411_s3 + $0x208] sm:$0xff] %v442_v6  ;;  %698 = vst [vmem:[%s1411_s3 + $0x218] sm:$0xff] %v595_v7  ;;  %v444_v10 = vadd.f32 %v443_v8, %v1016_v52  ;;  %v597_v11 = vadd.f32 %v596_v9, %v1018_v53 }
 0x128   :  { %v445_v12 = vpop.f32.mrf.mxu0  ;;  %v598_v13 = vpop.f32.mrf.mxu1 }
 0x129   :  { %699 = vst [vmem:[%s1411_s3 + $0x220] sm:$0xff] %v444_v10  ;;  %701 = vst [vmem:[%s1411_s3 + $0x230] sm:$0xff] %v597_v11  ;;  %v446_v14 = vadd.f32 %v445_v12, %v1020_v54  ;;  %v599_v15 = vadd.f32 %v598_v13, %v1022_v55 }
 0x12a   :  { %v449_v16 = vpop.f32.mrf.mxu0  ;;  %v602_v17 = vpop.f32.mrf.mxu1 }
 0x12b   :  { %700 = vst [vmem:[%s1411_s3 + $0x228] sm:$0xff] %v446_v14  ;;  %702 = vst [vmem:[%s1411_s3 + $0x238] sm:$0xff] %v599_v15  ;;  %v450_v18 = vadd.f32 %v449_v16, %v1016_v52  ;;  %v603_v19 = vadd.f32 %v602_v17, %v1018_v53 }
 0x12c   :  { %v451_v20 = vpop.f32.mrf.mxu0  ;;  %v604_v21 = vpop.f32.mrf.mxu1 }
 0x12d   :  { %703 = vst [vmem:[%s1411_s3 + $0x240] sm:$0xff] %v450_v18  ;;  %705 = vst [vmem:[%s1411_s3 + $0x250] sm:$0xff] %v603_v19  ;;  %v452_v22 = vadd.f32 %v451_v20, %v1020_v54  ;;  %v605_v23 = vadd.f32 %v604_v21, %v1022_v55 }
 0x12e   :  { %v453_v24 = vpop.f32.mrf.mxu0  ;;  %v606_v25 = vpop.f32.mrf.mxu1 }
 0x12f   :  { %704 = vst [vmem:[%s1411_s3 + $0x248] sm:$0xff] %v452_v22  ;;  %706 = vst [vmem:[%s1411_s3 + $0x258] sm:$0xff] %v605_v23  ;;  %v454_v26 = vadd.f32 %v453_v24, %v1016_v52  ;;  %v607_v27 = vadd.f32 %v606_v25, %v1018_v53 }
 0x130   :  { %v455_v28 = vpop.f32.mrf.mxu0  ;;  %v608_v29 = vpop.f32.mrf.mxu1 }
 0x131   :  { %707 = vst [vmem:[%s1411_s3 + $0x260] sm:$0xff] %v454_v26  ;;  %709 = vst [vmem:[%s1411_s3 + $0x270] sm:$0xff] %v607_v27  ;;  %v456_v30 = vadd.f32 %v455_v28, %v1020_v54  ;;  %v609_v31 = vadd.f32 %v608_v29, %v1022_v55 }
 0x132   :  { %v459_v32 = vpop.f32.mrf.mxu0  ;;  %v612_v33 = vpop.f32.mrf.mxu1 }
 0x133   :  { %708 = vst [vmem:[%s1411_s3 + $0x268] sm:$0xff] %v456_v30  ;;  %710 = vst [vmem:[%s1411_s3 + $0x278] sm:$0xff] %v609_v31  ;;  %v460_v34 = vadd.f32 %v459_v32, %v1016_v52  ;;  %v613_v35 = vadd.f32 %v612_v33, %v1018_v53 }
 0x134   :  { %v461_v36 = vpop.f32.mrf.mxu0  ;;  %v614_v37 = vpop.f32.mrf.mxu1 }
 0x135   :  { %711 = vst [vmem:[%s1411_s3 + $0x280] sm:$0xff] %v460_v34  ;;  %713 = vst [vmem:[%s1411_s3 + $0x290] sm:$0xff] %v613_v35  ;;  %v462_v38 = vadd.f32 %v461_v36, %v1020_v54  ;;  %v615_v39 = vadd.f32 %v614_v37, %v1022_v55 }
 0x136   :  { %v463_v40 = vpop.f32.mrf.mxu0  ;;  %v616_v41 = vpop.f32.mrf.mxu1 }
 0x137   :  { %712 = vst [vmem:[%s1411_s3 + $0x288] sm:$0xff] %v462_v38  ;;  %714 = vst [vmem:[%s1411_s3 + $0x298] sm:$0xff] %v615_v39  ;;  %v464_v42 = vadd.f32 %v463_v40, %v1016_v52  ;;  %v617_v43 = vadd.f32 %v616_v41, %v1018_v53 }
 0x138   :  { %v465_v44 = vpop.f32.mrf.mxu0  ;;  %v618_v45 = vpop.f32.mrf.mxu1 }
 0x139   :  { %715 = vst [vmem:[%s1411_s3 + $0x2a0] sm:$0xff] %v464_v42  ;;  %717 = vst [vmem:[%s1411_s3 + $0x2b0] sm:$0xff] %v617_v43  ;;  %v466_v46 = vadd.f32 %v465_v44, %v1020_v54  ;;  %v619_v47 = vadd.f32 %v618_v45, %v1022_v55 }
 0x13a   :  { %v469_v48 = vpop.f32.mrf.mxu0  ;;  %v622_v49 = vpop.f32.mrf.mxu1 }
 0x13b   :  { %716 = vst [vmem:[%s1411_s3 + $0x2a8] sm:$0xff] %v466_v46  ;;  %718 = vst [vmem:[%s1411_s3 + $0x2b8] sm:$0xff] %v619_v47  ;;  %v470_v50 = vadd.f32 %v469_v48, %v1016_v52  ;;  %v623_v51 = vadd.f32 %v622_v49, %v1018_v53 }
 0x13c   :  { %v471_v56 = vpop.f32.mrf.mxu0  ;;  %v624_v57 = vpop.f32.mrf.mxu1 }
 0x13d   :  { %719 = vst [vmem:[%s1411_s3 + $0x2c0] sm:$0xff] %v470_v50  ;;  %721 = vst [vmem:[%s1411_s3 + $0x2d0] sm:$0xff] %v623_v51  ;;  %v472_v58 = vadd.f32 %v471_v56, %v1020_v54  ;;  %v625_v59 = vadd.f32 %v624_v57, %v1022_v55 }
 0x13e   :  { %v473_v60 = vpop.f32.mrf.mxu0  ;;  %v626_v61 = vpop.f32.mrf.mxu1 }
 0x13f   :  { %720 = vst [vmem:[%s1411_s3 + $0x2c8] sm:$0xff] %v472_v58  ;;  %722 = vst [vmem:[%s1411_s3 + $0x2d8] sm:$0xff] %v625_v59  ;;  %v474_v62 = vadd.f32 %v473_v60, %v1016_v52  ;;  %v627_v63 = vadd.f32 %v626_v61, %v1018_v53 }
 0x140   :  { %v475_v0 = vpop.f32.mrf.mxu0  ;;  %v628_v1 = vpop.f32.mrf.mxu1 }
 0x141   :  { %723 = vst [vmem:[%s1411_s3 + $0x2e0] sm:$0xff] %v474_v62  ;;  %725 = vst [vmem:[%s1411_s3 + $0x2f0] sm:$0xff] %v627_v63  ;;  %v476_v2 = vadd.f32 %v475_v0, %v1020_v54  ;;  %v629_v3 = vadd.f32 %v628_v1, %v1022_v55 }
 0x143   :  { %724 = vst [vmem:[%s1411_s3 + $0x2e8] sm:$0xff] %v476_v2  ;;  %726 = vst [vmem:[%s1411_s3 + $0x2f8] sm:$0xff] %v629_v3 }

// kernel: decoder_with_attention_forward.6
= control target key start
LH: loop header
LB: loop body
LE: loop exit
PB: predicated region body
PF: predicated region fallthrough
CT: control target
= control target key end

     0   :  { %s12496_s0 = inlined_call_operand.vmem [shape: bf16[16,16,128], index: 0, kind: input, shape index: {}]   ;;  %s12497_s1 = inlined_call_operand.vmem [shape: bf16[16,16,128], index: 1, kind: input, shape index: {}]   ;;  %s12498_s2 = inlined_call_operand.vmem [shape: f32[12,16,512], index: 2, kind: input, shape index: {}]   ;;  %s12499_s3 = inlined_call_operand.vmem [shape: bf16[128,128], index: 3, kind: input, shape index: {}]   ;;  %s12500_s4 = inlined_call_operand.vmem [shape: f32[1,128], index: 4, kind: input, shape index: {}]   ;;  %s12501_s5 = inlined_call_operand.vmem [shape: f32[1,128], index: 5, kind: input, shape index: {}]   ;;  %s12502_s6 = inlined_call_operand.<no memory space> [shape: f32[1,1], index: 6, kind: input, shape index: {}]   ;;  %s12503_s7 = inlined_call_operand.vmem [shape: bf16[128,128], index: 7, kind: input, shape index: {}]   ;;  %s12504_s8 = inlined_call_operand.vmem [shape: f32[1,128], index: 8, kind: input, shape index: {}]   ;;  %s12505_s9 = inlined_call_operand.vmem [shape: bf16[128,512], index: 9, kind: input, shape index: {}]   ;;  %s12506_s10 = inlined_call_operand.vmem [shape: bf16[128,512], index: 10, kind: input, shape index: {}]   ;;  %s12507_s11 = inlined_call_operand.vmem [shape: bf16[128,128], index: 11, kind: input, shape index: {}]   ;;  %s12508_s12 = inlined_call_operand.vmem [shape: f32[1,128], index: 12, kind: input, shape index: {}]   ;;  %s12509_s13 = inlined_call_operand.vmem [shape: bf16[128,128], index: 13, kind: input, shape index: {}]   ;;  %s12510_s14 = inlined_call_operand.vmem [shape: f32[1,128], index: 14, kind: input, shape index: {}]   ;;  %s12511_s15 = inlined_call_operand.vmem [shape: bf16[12,16,128], index: 15, kind: output, shape index: {0}]   ;;  %s12512_s16 = inlined_call_operand.vmem [shape: f32[12,16,16], index: 16, kind: output, shape index: {1}]  }
   0x1   :  { %12579 = sst [smem:[#allocation41_spill]] %s12496_s0  ;;  %v22_v0 = vstv %s12502_s6 }
   0x2   :  { %12580 = sst [smem:[#allocation42_spill]] %s12498_s2  ;;  %23 = vst [vmem:[#allocation4] sm:$0x1] %v22_v0 }
   0x3   :  { %12581 = sst [smem:[#allocation43_spill]] %s12504_s8 }
   0x4   :  { %12582 = sst [smem:[#allocation44_spill]] %s12506_s10 }
   0x5   :  { %12583 = sst [smem:[#allocation45_spill]] %s12511_s15 }
   0x6   :  { %12584 = sst [smem:[#allocation46_spill]] %s12512_s16 }
   0x7   :  { %s9668_s23 = smov 0   ;;  %s9670_s24 = smov 0  }
   0x8   :  { %s9672_s25 = smov 0   ;;  %s9674_s26 = smov 0  }
   0x9   :  { %s9676_s27 = smov 0   ;;  %s9678_s28 = smov 0  }
   0xa   :  { %s9680_s29 = smov 0  }
   0xb LB: > { %12585 = sst [smem:[#allocation8_spill]] %s9564_s27  ;;  %s38_s6 = sadd.s32 1, %s9564_s27  ;;  %s9572_s29 = sphi %s9680_s29, %s29_s29   ;;  %s9568_s28 = sphi %s9678_s28, %s12692_s28   ;;  %s9564_s27 = sphi %s9676_s27, %s12691_s27   ;;  %s9560_s26 = sphi %s9674_s26, %s12690_s26   ;;  %s9556_s25 = sphi %s9672_s25, %s12689_s25   ;;  %s9552_s24 = sphi %s9670_s24, %s12694_s24   ;;  %s9548_s23 = sphi %s9668_s23, %s12693_s23  }
   0xc   : > { %12586 = sst [smem:[#allocation9_spill]] %s9568_s28  ;;  %p39_p0 = scmp.ge.s32.totalorder %s38_s6, 3 }
   0xd   : > { %s41_s30 = sadd.s32 1, %s9568_s28  ;;  %s7946_s0 = sadd.s32 4294967295, %s9572_s29  }
   0xe   : > { %p109_p1 = scmp.ne.s32.totalorder %s9552_s24, %s9548_s23  ;;  %s12696_s6 = smov (%p39_p0, %s38_s6), 0 }
   0xf   : > { %12587 = sst [smem:[#allocation10_spill]] %s12696_s6  ;;  %s12698_s30 = smov (!%p39_p0, %s41_s30), %s9568_s28 }
  0x10   : > { %p110_p2 = scmp.eq.s32.totalorder %s9572_s29, 0  ;;  %p43_p3 = scmp.ge.s32.totalorder %s12698_s30, 2 }
  0x11   : > { %p393_p4 = scmp.eq.s32.totalorder %s7946_s0, 5  ;;  %s97_s17 = ssub.s32 %s9564_s27, %s12696_s6 }
  0x12   : > { %p111_p5 = por %p110_p2, %p109_p1  ;;  %s12700_s30 = smov (%p43_p3, %s12698_s30), 0 }
  0x13   : > { %12588 = sst [smem:[#allocation11_spill]] %s12700_s30  ;;  %p9716_p6 = por %p393_p4, %p109_p1 }
  0x14   : > { %s98_s19 = ssub.s32 %s9568_s28, %s12700_s30  ;;  %s102_s21 = sadd.s32 1, %s9552_s24 }
  0x15   : > { %s12589_s18 = scalar_select %p9716_p6, 1, 0 }
  0x16   : > { %s99_s20 = sor.u32 %s98_s19, %s97_s17  ;;  %p7949_p8 = scmp.ge.s32.totalorder %s9572_s29, 6 }
  0x17   : > { %12590 = sst [smem:[#allocation12_spill]] %s12589_s18  ;;  %p100_p7 = scmp.eq.s32.totalorder %s99_s20, 0 }
  0x18   : > { %479 = sbr.rel (%p7949_p8) target bundleno = 47 (0x2f), region = 64 }
  0x19   : > { %s9724_s22 = scalar_select %p100_p7, %s9552_s24, %s102_s21  }
  0x1d   : > { %502 = sbr.rel (!%p111_p5) target bundleno = 47 (0x2f), region = 76  ;;  %s504_s0 = sand.u32 (%p111_p5), 1, %s9552_s24  }
  0x1e   : > { %s7952_s6 = sshll.u32 (%p111_p5), %s9568_s28, 2  ;;  %s7950_s16 = sshll.u32 (%p111_p5), %s504_s0, 7 }
  0x1f   : > { %s8358_s15 = sshll.u32 (%p111_p5), %s9564_s27, 5  ;;  %s12591_s2 = sld [smem:[#allocation42_spill]] (%p111_p5) }
  0x20   : > { %s510_s8 = sadd.s32 (%p111_p5), %s8358_s15, %s7952_s6  ;;  %s506_s19 = scalar_lea.vmem (%p111_p5), [#allocation5], %s7950_s16 }
  0x21   : > { %s7954_s10 = sshll.u32 (%p111_p5), %s510_s8, 3 }
  0x25   : > { %s9733_s17 = scalar_lea.vmem %s12591_s2, %s7954_s10 }
  0x26   : > { %v525_v1 = vld [vmem:[%s9733_s17] sm:$0xff]  ;;  %v527_v2 = vld [vmem:[%s9733_s17 + $0x8] sm:$0xff]  ;;  %v529_v3 = vld [vmem:[%s9733_s17 + $0x10] sm:$0xff] }
  0x27   : > { %526 = vst [vmem:[%s506_s19] sm:$0xff] %v525_v1  ;;  %528 = vst [vmem:[%s506_s19 + $0x8] sm:$0xff] %v527_v2  ;;  %v531_v4 = vld [vmem:[%s9733_s17 + $0x18] sm:$0xff]  ;;  %v533_v5 = vld [vmem:[%s9733_s17 + $0x40] sm:$0xff] }
  0x28   : > { %530 = vst [vmem:[%s506_s19 + $0x10] sm:$0xff] %v529_v3  ;;  %v535_v6 = vld [vmem:[%s9733_s17 + $0x48] sm:$0xff]  ;;  %532 = vst [vmem:[%s506_s19 + $0x18] sm:$0xff] %v531_v4  ;;  %v537_v7 = vld [vmem:[%s9733_s17 + $0x50] sm:$0xff] }
  0x29   : > { %534 = vst [vmem:[%s506_s19 + $0x20] sm:$0xff] %v533_v5  ;;  %536 = vst [vmem:[%s506_s19 + $0x28] sm:$0xff] %v535_v6  ;;  %v539_v8 = vld [vmem:[%s9733_s17 + $0x58] sm:$0xff]  ;;  %v541_v9 = vld [vmem:[%s9733_s17 + $0x80] sm:$0xff] }
  0x2a   : > { %538 = vst [vmem:[%s506_s19 + $0x30] sm:$0xff] %v537_v7  ;;  %540 = vst [vmem:[%s506_s19 + $0x38] sm:$0xff] %v539_v8  ;;  %v543_v10 = vld [vmem:[%s9733_s17 + $0x88] sm:$0xff]  ;;  %v545_v11 = vld [vmem:[%s9733_s17 + $0x90] sm:$0xff] }
  0x2b   : > { %542 = vst [vmem:[%s506_s19 + $0x40] sm:$0xff] %v541_v9  ;;  %v547_v12 = vld [vmem:[%s9733_s17 + $0x98] sm:$0xff]  ;;  %544 = vst [vmem:[%s506_s19 + $0x48] sm:$0xff] %v543_v10  ;;  %v549_v13 = vld [vmem:[%s9733_s17 + $0xc0] sm:$0xff] }
  0x2c   : > { %546 = vst [vmem:[%s506_s19 + $0x50] sm:$0xff] %v545_v11  ;;  %548 = vst [vmem:[%s506_s19 + $0x58] sm:$0xff] %v547_v12  ;;  %v551_v14 = vld [vmem:[%s9733_s17 + $0xc8] sm:$0xff]  ;;  %v553_v15 = vld [vmem:[%s9733_s17 + $0xd0] sm:$0xff] }
  0x2d   : > { %550 = vst [vmem:[%s506_s19 + $0x60] sm:$0xff] %v549_v13  ;;  %552 = vst [vmem:[%s506_s19 + $0x68] sm:$0xff] %v551_v14  ;;  %v555_v16 = vld [vmem:[%s9733_s17 + $0xd8] sm:$0xff] }
  0x2e   : > { %554 = vst [vmem:[%s506_s19 + $0x70] sm:$0xff] %v553_v15  ;;  %556 = vst [vmem:[%s506_s19 + $0x78] sm:$0xff] %v555_v16 }
  0x2f PF: > { %p7955_p9 = scmp.ge.s32.totalorder %s9572_s29, 1  ;;  %p561_p10 = scmp.lt.s32.totalorder %s9572_s29, 7 }
  0x31   : > { %p562_p11 = pnand %p7955_p9, %p561_p10 }
  0x33   : > { %565 = sbr.rel (%p562_p11) target bundleno = 5730 (0x1662), region = 99 }
  0x38   : > { %s568_s8 = sand.u32 1, %s9548_s23   ;;  %s7959_s10 = sshll.u32 %s9560_s26, 3 }
  0x39   : > { %s7956_s15 = sshll.u32 %s568_s8, 7  ;;  %s7957_s16 = sshll.u32 %s568_s8, 4 }
  0x3a   : > { %s7958_s6 = sshll.u32 %s568_s8, 5  ;;  %p633_p12 = scmp.lt.s32.totalorder %s7959_s10, 15 }
  0x3b   : > { %s12592_s21 = sld [smem:[#allocation41_spill]]  ;;  %s9765_s28 = scalar_lea.vmem [#allocation5], %s7956_s15 }
  0x3c   : > { %s12702_s10 = smov (!%p633_p12, %s7959_s10), 15  ;;  %s9767_s23 = scalar_lea.vmem [#allocation6], %s7957_s16 }
  0x3d   : > { %s8359_s30 = sshll.u32 %s12702_s10, 3  ;;  %s9769_s27 = scalar_lea.vmem [#allocation7], %s7958_s6 }
  0x3e   : > { %s9763_s2 = scalar_lea.vmem %s12497_s1, %s8359_s30  ;;  %p7965_p13 = scmp.ne.s32.totalorder %s9556_s25, 0 }
  0x40   : > { %653 = sbr.rel (%p7965_p13) target bundleno = 312 (0x138), region = 107 }
  0x41   : > { %s9758_s0 = scalar_lea.vmem %s12592_s21, %s8359_s30 }
  0x45   : > { %v8832_v17 = vld [vmem:[%s12507_s11 + $0x38] sm:$0xff]   ;;  %v9574_v18 = vmov 0.0   ;;  %v8834_v20 = vld [vmem:[%s12507_s11 + $0x30] sm:$0xff]   ;;  %vm9575_vm0 = vmmov 0   ;;  %v8836_v22 = vld [vmem:[%s12507_s11 + $0x28] sm:$0xff]   ;;  %vm797_vm1 = vcmask 1041409  }
  0x46   : > { %8570 = vmatprep.subr.bf16.mxu0 %v9574_v18  ;;  %8590 = vmatprep.subr.bf16.mxu1 %v9574_v18  ;;  %v8833_v19 = vld [vmem:[%s12509_s13 + $0x38] sm:$0xff]   ;;  %v8835_v21 = vld [vmem:[%s12509_s13 + $0x30] sm:$0xff]   ;;  %v8837_v23 = vld [vmem:[%s12509_s13 + $0x28] sm:$0xff]   ;;  %vm799_vm2 = vcmask 1042434   ;;  %vm801_vm3 = vcmask 1043459   ;;  %vm803_vm4 = vcmask 1044484  }
  0x47   : > { %8571 = vmatpush3.bf16.msra.mxu0 %v8832_v17  ;;  %8586 = vmatprep.mubr.msk.bf16.mxu0 %vm9575_vm0, %v9574_v18  ;;  %v8838_v24 = vld [vmem:[%s12507_s11 + $0x20] sm:$0xff]   ;;  %v8840_v26 = vld [vmem:[%s12507_s11 + $0x18] sm:$0xff]   ;;  %v8459_v29 = vld [vmem:[%s9758_s0 + $0x8] sm:$0xff]   ;;  %vm805_vm5 = vcmask 1045509   ;;  %vm807_vm6 = vcmask 1046534   ;;  %vm809_vm7 = vcmask 1047559  }
  0x48   : > { %8591 = vmatpush3.bf16.msra.mxu1 %v8833_v19  ;;  %8572 = vmatprep.subr.bf16.mxu0 %v9574_v18  ;;  %v8839_v25 = vld [vmem:[%s12509_s13 + $0x20] sm:$0xff]   ;;  %v8841_v27 = vld [vmem:[%s12509_s13 + $0x18] sm:$0xff]   ;;  %v8460_v30 = vld [vmem:[%s9758_s0 + $0x10] sm:$0xff]   ;;  %v8369_v33 = vunpack.c.l.bf16 %v8459_v29  ;;  %v8370_v34 = vunpack.c.h.bf16 %v8459_v29 }
  0x49   : > { %8592 = vmatprep.subr.bf16.mxu1 %v9574_v18  ;;  %8606 = vmatprep.mubr.msk.bf16.mxu1 %vm9575_vm0, %v9574_v18  ;;  %v8364_v28 = vld [vmem:[%s9758_s0] sm:$0xff]   ;;  %v8461_v35 = vld [vmem:[%s9758_s0 + $0x18] sm:$0xff]   ;;  %v8463_v37 = vld [vmem:[%s9758_s0 + $0x28] sm:$0xff]   ;;  %v8373_v39 = vunpack.c.l.bf16 %v8460_v30  ;;  %v8374_v40 = vunpack.c.h.bf16 %v8460_v30 }
  0x4a   : > { %v8365_v31 = vunpack.c.l.bf16 %v8364_v28  ;;  %v8366_v32 = vunpack.c.h.bf16 %v8364_v28  ;;  %v8462_v36 = vld [vmem:[%s9758_s0 + $0x20] sm:$0xff]   ;;  %v8842_v38 = vld [vmem:[%s12507_s11 + $0x10] sm:$0xff]   ;;  %v8377_v41 = vunpack.c.l.bf16 %v8461_v35  ;;  %v8378_v42 = vunpack.c.h.bf16 %v8461_v35  ;;  %v8465_v44 = vld [vmem:[%s9758_s0 + $0x38] sm:$0xff]  }
  0x4b   : > { %8573 = vmatpush3.bf16.msra.mxu0 %v8834_v20  ;;  %v8464_v43 = vld [vmem:[%s9758_s0 + $0x30] sm:$0xff]   ;;  %v8381_v46 = vunpack.c.l.bf16 %v8462_v36  ;;  %v8382_v47 = vunpack.c.h.bf16 %v8462_v36  ;;  %v8385_v48 = vunpack.c.l.bf16 %v8463_v37  ;;  %v8386_v49 = vunpack.c.h.bf16 %v8463_v37  ;;  %v8844_v58 = vld [vmem:[%s12507_s11 + $0x8] sm:$0xff]   ;;  %v8846_v12 = vld [vmem:[%s12507_s11] sm:$0xff]  }
  0x4c   : > { %8593 = vmatpush3.bf16.msra.mxu1 %v8835_v21  ;;  %8574 = vmatprep.subr.bf16.mxu0 %v9574_v18  ;;  %v8843_v45 = vld [vmem:[%s12509_s13 + $0x10] sm:$0xff]   ;;  %v8389_v50 = vunpack.c.l.bf16 %v8464_v43  ;;  %v8390_v51 = vunpack.c.h.bf16 %v8464_v43  ;;  %v8393_v52 = vunpack.c.l.bf16 %v8465_v44  ;;  %v8394_v53 = vunpack.c.h.bf16 %v8465_v44  ;;  %v8845_v63 = vld [vmem:[%s12509_s13 + $0x8] sm:$0xff]   ;;  %v8847_v17 = vld [vmem:[%s12509_s13] sm:$0xff]  }
  0x4d   : > { %8594 = vmatprep.subr.bf16.mxu1 %v9574_v18  ;;  %v686_v54 = vadd.f32 %v8366_v32, %v8365_v31  ;;  %v693_v55 = vadd.f32 %v8370_v34, %v8369_v33  ;;  %v700_v56 = vadd.f32 %v8374_v40, %v8373_v39  ;;  %v707_v57 = vadd.f32 %v8378_v42, %v8377_v41 }
  0x4e   : > { %v714_v59 = vadd.f32 %v8382_v47, %v8381_v46  ;;  %v721_v60 = vadd.f32 %v8386_v49, %v8385_v48  ;;  %v728_v61 = vadd.f32 %v8390_v51, %v8389_v50  ;;  %v735_v62 = vadd.f32 %v8394_v53, %v8393_v52 }
  0x4f   : > { %8575 = vmatpush3.bf16.msra.mxu0 %v8836_v22  ;;  %v687_v0 = vrot.slane %v686_v54, 4  ;;  %v694_v1 = vrot.slane %v693_v55, 4  ;;  %v701_v2 = vrot.slane %v700_v56, 4  ;;  %v708_v3 = vrot.slane %v707_v57, 4 }
  0x50   : > { %8595 = vmatpush3.bf16.msra.mxu1 %v8837_v23  ;;  %8576 = vmatprep.subr.bf16.mxu0 %v9574_v18  ;;  %v715_v4 = vrot.slane %v714_v59, 4  ;;  %v722_v5 = vrot.slane %v721_v60, 4  ;;  %v729_v6 = vrot.slane %v728_v61, 4  ;;  %v736_v7 = vrot.slane %v735_v62, 4 }
  0x51   : > { %8596 = vmatprep.subr.bf16.mxu1 %v9574_v18  ;;  %v688_v8 = vadd.f32 %v687_v0, %v686_v54  ;;  %v695_v9 = vadd.f32 %v694_v1, %v693_v55  ;;  %v702_v10 = vadd.f32 %v701_v2, %v700_v56  ;;  %v709_v11 = vadd.f32 %v708_v3, %v707_v57 }
  0x52   : > { %v716_v13 = vadd.f32 %v715_v4, %v714_v59  ;;  %v723_v14 = vadd.f32 %v722_v5, %v721_v60  ;;  %v730_v15 = vadd.f32 %v729_v6, %v728_v61  ;;  %v737_v16 = vadd.f32 %v736_v7, %v735_v62 }
  0x53   : > { %8577 = vmatpush3.bf16.msra.mxu0 %v8838_v24  ;;  %v689_v19 = vrot.slane %v688_v8, 2  ;;  %v696_v20 = vrot.slane %v695_v9, 2  ;;  %v703_v21 = vrot.slane %v702_v10, 2  ;;  %v710_v22 = vrot.slane %v709_v11, 2 }
  0x54   : > { %8597 = vmatpush3.bf16.msra.mxu1 %v8839_v25  ;;  %8578 = vmatprep.subr.bf16.mxu0 %v9574_v18  ;;  %v717_v23 = vrot.slane %v716_v13, 2  ;;  %v724_v24 = vrot.slane %v723_v14, 2  ;;  %v731_v25 = vrot.slane %v730_v15, 2 }
  0x55   : > { %8598 = vmatprep.subr.bf16.mxu1 %v9574_v18  ;;  %v697_v28 = vadd.f32 %v696_v20, %v695_v9  ;;  %v704_v29 = vadd.f32 %v703_v21, %v702_v10  ;;  %v711_v30 = vadd.f32 %v710_v22, %v709_v11  ;;  %v7975_v20 = vld [vmem:[%s12510_s14] ss:$0 sm:$0xff] }
  0x56   : > { %v718_v31 = vadd.f32 %v717_v23, %v716_v13  ;;  %v725_v32 = vadd.f32 %v724_v24, %v723_v14  ;;  %v732_v33 = vadd.f32 %v731_v25, %v730_v15 }
  0x57   : > { %8579 = vmatpush3.bf16.msra.mxu0 %v8840_v26  ;;  %v738_v26 = vrot.slane %v737_v16, 2  ;;  %v698_v36 = vrot.slane %v697_v28, 1  ;;  %v705_v37 = vrot.slane %v704_v29, 1 }
  0x58   : > { %8599 = vmatpush3.bf16.msra.mxu1 %v8841_v27  ;;  %8580 = vmatprep.subr.bf16.mxu0 %v9574_v18  ;;  %v690_v27 = vadd.f32 %v689_v19, %v688_v8  ;;  %v726_v39 = vrot.slane %v725_v32, 1  ;;  %v733_v40 = vrot.slane %v732_v33, 1  ;;  %v7966_v19 = vld [vmem:[%s12508_s12] ss:$0 sm:$0xff] }
  0x59   : > { %8600 = vmatprep.subr.bf16.mxu1 %v9574_v18  ;;  %v739_v34 = vadd.f32 %v738_v26, %v737_v16  ;;  %v699_v43 = vadd.f32 %v698_v36, %v697_v28  ;;  %v706_v44 = vadd.f32 %v705_v37, %v704_v29 }
  0x5a   : > { %v691_v35 = vrot.slane %v690_v27, 1  ;;  %v727_v47 = vadd.f32 %v726_v39, %v725_v32  ;;  %v734_v48 = vadd.f32 %v733_v40, %v732_v33 }
  0x5b   : > { %8581 = vmatpush3.bf16.msra.mxu0 %v8842_v38  ;;  %v712_v38 = vrot.slane %v711_v30, 1  ;;  %v740_v41 = vrot.slane %v739_v34, 1  ;;  %v743_v51 = vmul.f32 0.0625, %v699_v43  ;;  %v744_v52 = vmul.f32 0.0625, %v706_v44 }
  0x5c   : > { %8601 = vmatpush3.bf16.msra.mxu1 %v8843_v45  ;;  %8582 = vmatprep.subr.bf16.mxu0 %v9574_v18  ;;  %v692_v42 = vadd.f32 %v691_v35, %v690_v27  ;;  %v747_v55 = vmul.f32 0.0625, %v727_v47  ;;  %v748_v56 = vmul.f32 0.0625, %v734_v48 }
  0x5d   : > { %8602 = vmatprep.subr.bf16.mxu1 %v9574_v18  ;;  %v713_v45 = vadd.f32 %v712_v38, %v711_v30  ;;  %v741_v49 = vadd.f32 %v740_v41, %v739_v34  ;;  %v751_v59 = vpack.c.bf16 %v743_v51, %v743_v51  ;;  %v752_v60 = vpack.c.bf16 %v744_v52, %v744_v52 }
  0x5e   : > { %v742_v50 = vmul.f32 0.0625, %v692_v42  ;;  %v756_v0 = vpack.c.bf16 %v748_v56, %v748_v56 }
  0x5f   : > { %8583 = vmatpush3.bf16.msra.mxu0 %v8844_v58  ;;  %v745_v53 = vmul.f32 0.0625, %v713_v45  ;;  %v749_v57 = vmul.f32 0.0625, %v741_v49  ;;  %v790_v3 = vunpack.c.l.b16 %v751_v59  ;;  %v791_v4 = vunpack.c.l.b16 %v752_v60 }
  0x60   : > { %8603 = vmatpush3.bf16.msra.mxu1 %v8845_v63  ;;  %8584 = vmatprep.subr.bf16.mxu0 %v9574_v18  ;;  %v750_v58 = vpack.c.bf16 %v742_v50, %v742_v50  ;;  %v755_v63 = vpack.c.bf16 %v747_v55, %v747_v55  ;;  %v795_v9 = vunpack.c.l.b16 %v756_v0 }
  0x61   : > { %8604 = vmatprep.subr.bf16.mxu1 %v9574_v18  ;;  %v719_v18 = vrot.slane %v718_v31, 1  ;;  %v753_v61 = vpack.c.bf16 %v745_v53, %v745_v53  ;;  %v757_v1 = vpack.c.bf16 %v749_v57, %v749_v57 }
  0x62   : > { %v789_v2 = vunpack.c.l.b16 %v750_v58  ;;  %v794_v7 = vunpack.c.l.b16 %v755_v63 }
  0x63   : > { %8585 = vmatpush3.bf16.msra.mxu0 %v8846_v12  ;;  %v720_v46 = vadd.f32 %v719_v18, %v718_v31  ;;  %v792_v5 = vunpack.c.l.b16 %v753_v61  ;;  %v796_v11 = vunpack.c.l.b16 %v757_v1 }
  0x64   : > { %8605 = vmatpush3.bf16.msra.mxu1 %v8847_v17  ;;  %v798_v8 = vsel %vm797_vm1, %v790_v3, %v789_v2 }
  0x65   : > { %v746_v54 = vmul.f32 0.0625, %v720_v46  ;;  %v800_v10 = vsel %vm799_vm2, %v791_v4, %v798_v8 }
  0x66   : > { %v802_v12 = vsel %vm801_vm3, %v792_v5, %v800_v10 }
  0x67   : > { %v754_v62 = vpack.c.bf16 %v746_v54, %v746_v54 }
  0x69   : > { %v793_v6 = vunpack.c.l.b16 %v754_v62 }
  0x6b   : > { %v804_v13 = vsel %vm803_vm4, %v793_v6, %v802_v12 }
  0x6c   : > { %v806_v14 = vsel %vm805_vm5, %v794_v7, %v804_v13 }
  0x6d   : > { %v808_v15 = vsel %vm807_vm6, %v795_v9, %v806_v14 }
  0x6e   : > { %v810_v16 = vsel %vm809_vm7, %v796_v11, %v808_v15 }
  0x6f   : > { %v811_v17 = vpack.c.b16 %v810_v16, %v810_v16 }
  0x71   : > { %8587 = vmatmul.mubr.bf16.vlgmr.msra.gmra.mxu0 %v811_v17  ;;  %8607 = vmatmul.mubr.bf16.vlgmr.msra.gmra.mxu1 %v811_v17 }
 0x131   : > { %v895_v21 = vpop.f32.mrf.mxu0  ;;  %v1007_v22 = vpop.f32.mrf.mxu1 }
 0x132   : > { %v896_v23 = vadd.f32 %v7966_v19, %v895_v21  ;;  %v1008_v24 = vadd.f32 %v7975_v20, %v1007_v22 }
 0x133   : > { %v8588_v25 = vpop.f32.mrf.mxu0  ;;  %v8608_v26 = vpop.f32.mrf.mxu1 }
 0x134   : > { %901 = vst [vmem:[#allocation2] sm:$0xff] %v896_v23  ;;  %1013 = vst [vmem:[#allocation3] sm:$0xff] %v1008_v24 }
 0x135   : > { %v898_v27 = vpop.f32.mrf.mxu0  ;;  %v1010_v28 = vpop.f32.mrf.mxu1 }
 0x137   : > { %v8589_v29 = vpop.f32.mrf.mxu0  ;;  %v8609_v30 = vpop.f32.mrf.mxu1 }
 0x138 PF: > { %v8850_v31 = vld [vmem:[%s12499_s3 + $0x38] sm:$0xff]   ;;  %v12520_v32 = vmov 0.0   ;;  %v8851_v33 = vld [vmem:[%s12499_s3 + $0x30] sm:$0xff]   ;;  %vm9577_vm8 = vmmov 0   ;;  %v8852_v34 = vld [vmem:[%s12499_s3 + $0x28] sm:$0xff]   ;;  %v12522_v41 = vmov 0   ;;  %v1167_v44 = vlaneseq }
 0x139   : > { %8610 = vmatprep.subr.bf16.mxu0 %v12520_v32  ;;  %8630 = vmatprep.subr.bf16.mxu1 %v12520_v32  ;;  %v8853_v35 = vld [vmem:[%s12499_s3 + $0x20] sm:$0xff]   ;;  %v8854_v36 = vld [vmem:[%s12499_s3 + $0x18] sm:$0xff]   ;;  %v8855_v37 = vld [vmem:[%s12499_s3 + $0x10] sm:$0xff]   ;;  %v9579_v42 = vmov 1966171168   ;;  %vm1406_vm9 = vcmask 130112  }
 0x13a   : > { %8611 = vmatpush3.bf16.msra.mxu0 %v8850_v31  ;;  %8626 = vmatprep.mubr.msk.bf16.mxu0 %vm9577_vm8, %v12520_v32  ;;  %v8856_v38 = vld [vmem:[%s12499_s3 + $0x8] sm:$0xff]   ;;  %v8857_v18 = vld [vmem:[%s12499_s3] sm:$0xff]   ;;  %v1165_v43 = vunpack.c.l.s4 %v9579_v42  ;;  %v9898_v46 = vshrl.u32 %v1167_v44, 7  ;;  %v8474_v0 = vld [vmem:[%s9763_s2 + $0x10] sm:$0xff]   ;;  %vm1471_vm10 = vcmask 1041409   ;;  %vm1473_vm11 = vcmask 1042434  }
 0x13b   : > { %8612 = vmatprep.subr.bf16.mxu0 %v12520_v32  ;;  %8646 = vmatprep.mubr.msk.bf16.mxu1 %vm9577_vm8, %v12520_v32  ;;  %v1014_v39 = vld [vmem:[#allocation2] sm:$0xff]  ;;  %v8473_v61 = vld [vmem:[%s9763_s2 + $0x8] sm:$0xff]   ;;  %v9929_v10 = vunpack.c.l.bf16 %v8474_v0  ;;  %v9938_v15 = vunpack.c.h.bf16 %v8474_v0  ;;  %v8475_v22 = vld [vmem:[%s9763_s2 + $0x18] sm:$0xff]   ;;  %vm1475_vm12 = vcmask 1043459   ;;  %vm1477_vm13 = vcmask 1044484   ;;  %s12609_s19 = sld [smem:[#allocation44_spill]] }
 0x13c   : > { %v9891_v40 = vpack.c.bf16 %v1014_v39, %v1014_v39  ;;  %8848 = vset.pattern.permute.xlu0 %v12522_v41  ;;  %8849 = vset.pattern.permute.xlu1 %v12522_v41  ;;  %v1166_v45 = vunpack.c.0.s8 %v1165_v43  ;;  %v7984_v47 = vld [vmem:[%s12500_s4] ss:$0 sm:$0xff]  ;;  %v9909_v55 = vsub.s32 0, %v9898_v46  ;;  %v9921_v4 = vunpack.c.l.bf16 %v8473_v61  ;;  %s12610_s18 = sld [smem:[#allocation43_spill]] }
 0x13d   : > { %v8428_v51 = vld [vmem:[%s9763_s2] sm:$0xff]   ;;  %v9924_v6 = vunpack.c.h.bf16 %v8473_v61  ;;  %12596 = vst [vmem:[#allocation16_spill] sm:$0xff] %v9929_v10  ;;  %12597 = vst [vmem:[#allocation17_spill] sm:$0xff] %v9938_v15  ;;  %v9950_v29 = vunpack.c.l.bf16 %v8475_v22  ;;  %v9959_v39 = vunpack.c.h.bf16 %v8475_v22  ;;  %vm1479_vm14 = vcmask 1045509   ;;  %s12686_s16 = sld [smem:[#allocation45_spill]] (%p9716_p6) }
 0x13e   : > { %8613 = vmatpush3.bf16.msra.mxu0 %v8851_v33  ;;  %v9904_v48 = vsub.s32 %v1166_v45, %v9898_v46  ;;  %v9911_v57 = vunpack.c.l.bf16 %v8428_v51  ;;  %v9916_v62 = vunpack.c.h.bf16 %v8428_v51  ;;  %12594 = vst [vmem:[#allocation14_spill] sm:$0xff] %v9921_v4  ;;  %v8476_v7 = vld [vmem:[%s9763_s2 + $0x20] sm:$0xff]   ;;  %vm1481_vm15 = vcmask 1046534  }
 0x13f   : > { %8614 = vmatprep.subr.bf16.mxu0 %v12520_v32  ;;  %12595 = vst [vmem:[#allocation15_spill] sm:$0xff] %v9924_v6  ;;  %v9935_v12 = vld [vmem:[%s12501_s5] ss:$0 sm:$0xff]  ;;  %v9940_v16 = vunpack.c.l.bf16 %v8476_v7  ;;  %v9948_v28 = vunpack.c.h.bf16 %v8476_v7  ;;  %12600 = vst [vmem:[#allocation20_spill] sm:$0xff] %v9950_v29  ;;  %vm1483_vm0 = vcmask 1047559   ;;  %vm1486_vm1 = vcmask 130048  }
 0x140   : > { %12593 = vst [vmem:[#allocation13_spill] sm:$0xff] %v9911_v57  ;;  %12601 = vst [vmem:[#allocation21_spill] sm:$0xff] %v9959_v39 }
 0x141   : > { %12598 = vst [vmem:[#allocation18_spill] sm:$0xff] %v9940_v16  ;;  %12599 = vst [vmem:[#allocation19_spill] sm:$0xff] %v9948_v28 }
 0x142   : > { %8615 = vmatpush3.bf16.msra.mxu0 %v8852_v34 }
 0x143   : > { %8616 = vmatprep.subr.bf16.mxu0 %v12520_v32 }
 0x146   : > { %8617 = vmatpush3.bf16.msra.mxu0 %v8853_v35  ;;  %v8477_v35 = vld [vmem:[%s9763_s2 + $0x28] sm:$0xff]  }
 0x147   : > { %8618 = vmatprep.subr.bf16.mxu0 %v12520_v32  ;;  %v9961_v42 = vunpack.c.l.bf16 %v8477_v35 }
 0x149   : > { %12602 = vst [vmem:[#allocation22_spill] sm:$0xff] %v9961_v42 }
 0x14a   : > { %8619 = vmatpush3.bf16.msra.mxu0 %v8854_v36 }
 0x14b   : > { %8620 = vmatprep.subr.bf16.mxu0 %v12520_v32 }
 0x14e   : > { %8621 = vmatpush3.bf16.msra.mxu0 %v8855_v37 }
 0x14f   : > { %8622 = vmatprep.subr.bf16.mxu0 %v12520_v32 }
 0x152   : > { %8623 = vmatpush3.bf16.msra.mxu0 %v8856_v38 }
 0x153   : > { %8624 = vmatprep.subr.bf16.mxu0 %v12520_v32 }
 0x156   : > { %8625 = vmatpush3.bf16.msra.mxu0 %v8857_v18 }
 0x159   : > { %8627 = vmatmul.mubr.bf16.vlgmr.msra.gmra.mxu0 %v9891_v40 }
 0x15a   : > { %2315 = vmatprep.mubr.bf16.mxu0 %v12522_v41 }
 0x219   : > { %v1156_v49 = vpop.f32.mrf.mxu0 }
 0x21a   : > { %v1157_v50 = vadd.f32 %v7984_v47, %v1156_v49 }
 0x21b   : > { %v8628_v52 = vpop.f32.mrf.mxu0 }
 0x21c   : > { %v1163_v53 = vcombine.high %v1157_v50, %v1157_v50  ;;  %v1170_v54 = vrot.slane %v1157_v50, %v9904_v48  ;;  %v8478_v50 = vld [vmem:[%s9763_s2 + $0x30] sm:$0xff]  }
 0x21d   : > { %v1159_v56 = vpop.f32.mrf.mxu0  ;;  %v9979_v7 = vunpack.c.h.bf16 %v8478_v50 }
 0x21e   : > { %v1177_v58 = vrot.slane %v1163_v53, %v9904_v48  ;;  %v1178_v59 = vcombine.high %v1170_v54, %v1170_v54  ;;  %v1186_v60 = vrot.slane %v1170_v54, %v9904_v48  ;;  %v9969_v56 = vunpack.c.h.bf16 %v8477_v35 }
 0x21f   : > { %v8629_v63 = vpop.f32.mrf.mxu0  ;;  %12605 = vst [vmem:[#allocation25_spill] sm:$0xff] %v9979_v7 }
 0x220   : > { %v1208_v1 = vcombine.high %v1186_v60, %v1186_v60  ;;  %v1231_v2 = vrot.slane %v1186_v60, %v9909_v55  ;;  %v1193_v3 = vrot.slane %v1177_v58, %v9904_v48  ;;  %v1200_v5 = vrot.slane %v1178_v59, %v9904_v48  ;;  %12603 = vst [vmem:[#allocation23_spill] sm:$0xff] %v9969_v56 }
 0x221   : > { %v1179_v17 = vcombine.high %v1177_v58, %v1177_v58  ;;  %v9971_v58 = vunpack.c.l.bf16 %v8478_v50 }
 0x222   : > { %v1268_v8 = vadd.f32 %v9911_v57, %v1231_v2  ;;  %v1269_v9 = vadd.f32 %v9916_v62, %v1231_v2  ;;  %v1239_v11 = vrot.slane %v1208_v1, %v9909_v55  ;;  %v1235_v13 = vrot.slane %v1200_v5, %v9909_v55 }
 0x223   : > { %v1247_v21 = vrot.slane %v1193_v3, %v9909_v55  ;;  %v1210_v26 = vcombine.high %v1200_v5, %v1200_v5  ;;  %v1207_v18 = vrot.slane %v1179_v17, %v9904_v48  ;;  %v1209_v54 = vcombine.high %v1193_v3, %v1193_v3  ;;  %12604 = vst [vmem:[#allocation24_spill] sm:$0xff] %v9971_v58  ;;  %v8479_v5 = vld [vmem:[%s9763_s2 + $0x38] sm:$0xff]   ;;  %s8361_s2 = sshll.u32 (%p9716_p6), %s9556_s25, 3 }
 0x224   : > { %v1284_v14 = vmax.f32 %v1268_v8, 0.0  ;;  %v1270_v19 = vadd.f32 %v9921_v4, %v1235_v13  ;;  %v1271_v20 = vadd.f32 %v9924_v6, %v1235_v13  ;;  %v1285_v24 = vmax.f32 %v1269_v9, 0.0  ;;  %s7710_s10 = sadd.s32 (%p9716_p6), %s9560_s26, %s8361_s2 }
 0x225   : > { %v1272_v25 = vadd.f32 %v9929_v10, %v1239_v11  ;;  %v1273_v33 = vadd.f32 %v9938_v15, %v1239_v11  ;;  %v1276_v34 = vadd.f32 %v9940_v16, %v1247_v21  ;;  %v1243_v38 = vrot.slane %v1210_v26, %v9909_v55  ;;  %s8352_s30 = sshll.u32 (%p9716_p6), %s7710_s10, 2 }
 0x226   : > { %v1306_v23 = vmul.f32 %v9935_v12, %v1284_v14  ;;  %v1286_v27 = vmax.f32 %v1270_v19, 0.0  ;;  %v1287_v31 = vmax.f32 %v1271_v20, 0.0  ;;  %v1307_v36 = vmul.f32 %v9935_v12, %v1285_v24  ;;  %s7712_s6 = scalar_lea.vmem (%p9716_p6), %s12686_s16, %s8352_s30 }
 0x227   : > { %v1288_v37 = vmax.f32 %v1272_v25, 0.0  ;;  %v1289_v45 = vmax.f32 %v1273_v33, 0.0  ;;  %v1292_v47 = vmax.f32 %v1276_v34, 0.0  ;;  %v1277_v49 = vadd.f32 %v9948_v28, %v1247_v21 }
 0x228   : > { %1322 = vadd.xlane.f32.xlu0 %v1306_v23  ;;  %v1308_v30 = vmul.f32 %v9935_v12, %v1286_v27  ;;  %v1309_v43 = vmul.f32 %v9935_v12, %v1287_v31  ;;  %v1274_v52 = vadd.f32 %v9950_v29, %v1243_v38  ;;  %v1251_v53 = vrot.slane %v1207_v18, %v9909_v55 }
 0x229   : > { %v1310_v51 = vmul.f32 %v9935_v12, %v1288_v37  ;;  %v1311_v59 = vmul.f32 %v9935_v12, %v1289_v45  ;;  %v1314_v60 = vmul.f32 %v9935_v12, %v1292_v47  ;;  %v1293_v61 = vmax.f32 %v1277_v49, 0.0 }
 0x22a   : > { %1326 = vadd.xlane.f32.xlu1 %v1308_v30  ;;  %v1275_v63 = vadd.f32 %v9959_v39, %v1243_v38  ;;  %v1290_v0 = vmax.f32 %v1274_v52, 0.0  ;;  %v1278_v1 = vadd.f32 %v9961_v42, %v1251_v53  ;;  %v1255_v2 = vrot.slane %v1209_v54, %v9909_v55 }
 0x22b   : > { %v1211_v3 = vcombine.high %v1207_v18, %v1207_v18  ;;  %v1315_v8 = vmul.f32 %v9935_v12, %v1293_v61  ;;  %v1279_v11 = vadd.f32 %v9969_v56, %v1251_v53  ;;  %v9983_v13 = vunpack.c.l.bf16 %v8479_v5 }
 0x22c   : > { %1324 = vadd.xlane.f32.xlu0 %v1307_v36  ;;  %v1291_v9 = vmax.f32 %v1275_v63, 0.0  ;;  %v1312_v14 = vmul.f32 %v9935_v12, %v1290_v0  ;;  %v1294_v17 = vmax.f32 %v1278_v1, 0.0  ;;  %v1280_v19 = vadd.f32 %v9971_v58, %v1255_v2 }
 0x22d   : > { %12606 = vst [vmem:[#allocation26_spill] sm:$0xff] %v9983_v13  ;;  %v1259_v20 = vrot.slane %v1211_v3, %v9909_v55  ;;  %v1295_v22 = vmax.f32 %v1279_v11, 0.0  ;;  %v1281_v23 = vadd.f32 %v9979_v7, %v1255_v2  ;;  %v9990_v24 = vunpack.c.h.bf16 %v8479_v5 }
 0x22e   : > { %1328 = vadd.xlane.f32.xlu1 %v1309_v43  ;;  %v1313_v21 = vmul.f32 %v9935_v12, %v1291_v9  ;;  %v1316_v25 = vmul.f32 %v9935_v12, %v1294_v17  ;;  %v1296_v26 = vmax.f32 %v1280_v19, 0.0  ;;  %v7994_v43 = vld [vmem:[#allocation4] ss:$0 sm:$0xff]  ;;  %v1396_v0 = vand.u32 127, %v1167_v44 }
 0x22f   : > { %12607 = vst [vmem:[#allocation27_spill] sm:$0xff] %v9990_v24  ;;  %v1282_v27 = vadd.f32 %v9983_v13, %v1259_v20  ;;  %v1317_v30 = vmul.f32 %v9935_v12, %v1295_v22  ;;  %v1297_v31 = vmax.f32 %v1281_v23, 0.0  ;;  %v1283_v33 = vadd.f32 %v9990_v24, %v1259_v20 }
 0x230   : > { %1330 = vadd.xlane.f32.xlu0 %v1310_v51  ;;  %v1318_v34 = vmul.f32 %v9935_v12, %v1296_v26  ;;  %v1401_v2 = vadd.s32 4294967288, %v1396_v0  ;;  %v10002_v3 = vsub.s32 %v1396_v0, %v9898_v46 }
 0x231   : > { %v1298_v35 = vmax.f32 %v1282_v27, 0.0  ;;  %v1319_v36 = vmul.f32 %v9935_v12, %v1297_v31  ;;  %v1299_v37 = vmax.f32 %v1283_v33, 0.0 }
 0x232   : > { %1332 = vadd.xlane.f32.xlu1 %v1311_v59 }
 0x233   : > { %v1320_v38 = vmul.f32 %v9935_v12, %v1298_v35  ;;  %v1321_v18 = vmul.f32 %v9935_v12, %v1299_v37 }
 0x234   : > { %1338 = vadd.xlane.f32.xlu0 %v1314_v60 }
 0x236   : > { %1340 = vadd.xlane.f32.xlu1 %v1315_v8  ;;  %v10005_v8 = vsub.s32 %v1401_v2, %v9898_v46 }
 0x238   : > { %1334 = vadd.xlane.f32.xlu0 %v1312_v14 }
 0x23a   : > { %1336 = vadd.xlane.f32.xlu1 %v1313_v21 }
 0x23c   : > { %1342 = vadd.xlane.f32.xlu0 %v1316_v25 }
 0x23e   : > { %1344 = vadd.xlane.f32.xlu1 %v1317_v30 }
 0x240   : > { %1346 = vadd.xlane.f32.xlu0 %v1318_v34 }
 0x242   : > { %1348 = vadd.xlane.f32.xlu1 %v1319_v36 }
 0x244   : > { %1350 = vadd.xlane.f32.xlu0 %v1320_v38 }
 0x246   : > { %1352 = vadd.xlane.f32.xlu1 %v1321_v18 }
 0x25a   : > { %1360 = vperm.xlu0 %8848, %v7994_v43  }
 0x2b1   : > { %v1323_v45 = vpop.xlane.xlu0 %1322 }
 0x2b3   : > { %v1327_v47 = vpop.xlane.xlu1 %1326 }
 0x2b5   : > { %v1325_v49 = vpop.xlane.xlu0 %1324 }
 0x2b7   : > { %v1329_v50 = vpop.xlane.xlu1 %1328 }
 0x2b9   : > { %v1331_v51 = vpop.xlane.xlu0 %1330 }
 0x2bb   : > { %v1333_v52 = vpop.xlane.xlu1 %1332 }
 0x2bd   : > { %v1339_v53 = vpop.xlane.xlu0 %1338 }
 0x2bf   : > { %v1341_v59 = vpop.xlane.xlu1 %1340 }
 0x2c1   : > { %v1335_v54 = vpop.xlane.xlu0 %1334 }
 0x2c3   : > { %v1337_v61 = vpop.xlane.xlu1 %1336 }
 0x2c5   : > { %v1343_v60 = vpop.xlane.xlu0 %1342 }
 0x2c7   : > { %v1345_v1 = vpop.xlane.xlu1 %1344 }
 0x2c9   : > { %v1347_v63 = vpop.xlane.xlu0 %1346 }
 0x2cb   : > { %v1349_v5 = vpop.xlane.xlu1 %1348 }
 0x2cd   : > { %v1351_v12 = vpop.xlane.xlu0 %1350 }
 0x2cf   : > { %v1353_v33 = vpop.xlane.xlu1 %1352 }
 0x2d5   : > { %v10007_v9 = vpop.permute.xlu0 %1360 }
 0x2d6   : > { %12608 = vst [vmem:[#allocation28_spill] sm:$0xff] %v10007_v9  ;;  %v10010_v11 = vadd.f32 %v10007_v9, %v1323_v45  ;;  %v10013_v14 = vadd.f32 %v10007_v9, %v1325_v49  ;;  %v10016_v44 = vadd.f32 %v10007_v9, %v1327_v47  ;;  %v10019_v17 = vadd.f32 %v10007_v9, %v1329_v50 }
 0x2d7   : > { %v10022_v19 = vadd.f32 %v10007_v9, %v1331_v51  ;;  %v10025_v20 = vadd.f32 %v10007_v9, %v1333_v52  ;;  %v10028_v21 = vadd.f32 %v10007_v9, %v1335_v54  ;;  %v10031_v22 = vadd.f32 %v10007_v9, %v1337_v61 }
 0x2d8   : > { %v10034_v23 = vadd.f32 %v10007_v9, %v1339_v53  ;;  %v10037_v25 = vadd.f32 %v10007_v9, %v1341_v59  ;;  %v10040_v26 = vadd.f32 %v10007_v9, %v1343_v60  ;;  %v10043_v27 = vadd.f32 %v10007_v9, %v1345_v1 }
 0x2d9   : > { %v10046_v30 = vadd.f32 %v10007_v9, %v1347_v63  ;;  %v10049_v31 = vadd.f32 %v10007_v9, %v1349_v5  ;;  %v1400_v34 = vrot.slane %v10010_v11, %v10002_v3  ;;  %v1405_v35 = vrot.slane %v10013_v14, %v10005_v8 }
 0x2da   : > { %v1411_v36 = vrot.slane %v10016_v44, %v10002_v3  ;;  %v1415_v37 = vrot.slane %v10019_v17, %v10005_v8  ;;  %v10060_v38 = vadd.f32 %v10007_v9, %v1351_v12  ;;  %v10063_v18 = vadd.f32 %v10007_v9, %v1353_v33 }
 0x2db   : > { %v1420_v43 = vrot.slane %v10022_v19, %v10002_v3  ;;  %v1424_v45 = vrot.slane %v10025_v20, %v10005_v8  ;;  %v1407_v47 = vsel %vm1406_vm9, %v1405_v35, %v1400_v34  ;;  %v1429_v50 = vrot.slane %v10028_v21, %v10002_v3 }
 0x2dc   : > { %v1416_v49 = vsel %vm1406_vm9, %v1415_v37, %v1411_v36  ;;  %v1433_v51 = vrot.slane %v10031_v22, %v10005_v8  ;;  %v1438_v53 = vrot.slane %v10034_v23, %v10002_v3  ;;  %v1442_v54 = vrot.slane %v10037_v25, %v10005_v8 }
 0x2dd   : > { %v1425_v52 = vsel %vm1406_vm9, %v1424_v45, %v1420_v43  ;;  %v1447_v59 = vrot.slane %v10040_v26, %v10002_v3  ;;  %v1451_v60 = vrot.slane %v10043_v27, %v10005_v8  ;;  %v1456_v61 = vrot.slane %v10046_v30, %v10002_v3 }
 0x2de   : > { %v1460_v63 = vrot.slane %v10049_v31, %v10005_v8  ;;  %v1472_v0 = vsel %vm1471_vm10, %v1416_v49, %v1407_v47  ;;  %v1434_v1 = vsel %vm1406_vm9, %v1433_v51, %v1429_v50  ;;  %v1465_v2 = vrot.slane %v10060_v38, %v10002_v3 }
 0x2df   : > { %v1469_v12 = vrot.slane %v10063_v18, %v10005_v8  ;;  %v1474_v5 = vsel %vm1473_vm11, %v1425_v52, %v1472_v0  ;;  %v1443_v33 = vsel %vm1406_vm9, %v1442_v54, %v1438_v53  ;;  %v1452_v35 = vsel %vm1406_vm9, %v1451_v60, %v1447_v59 }
 0x2e0   : > { %v1476_v34 = vsel %vm1475_vm12, %v1434_v1, %v1474_v5  ;;  %v1461_v37 = vsel %vm1406_vm9, %v1460_v63, %v1456_v61  ;;  %v10106_v51 = vsub.s32 3, %v9898_v46  ;;  %v10109_v53 = vsub.s32 1, %v9898_v46 }
 0x2e1   : > { %v1478_v36 = vsel %vm1477_vm13, %v1443_v33, %v1476_v34  ;;  %v1470_v45 = vsel %vm1406_vm9, %v1469_v12, %v1465_v2  ;;  %v10114_v60 = vsub.s32 4, %v9898_v46  ;;  %v10120_v2 = vsub.s32 5, %v9898_v46 }
 0x2e2   : > { %v1480_v43 = vsel %vm1479_vm14, %v1452_v35, %v1478_v36  ;;  %v10125_v33 = vsub.s32 2, %v9898_v46  ;;  %v10129_v35 = vsub.s32 6, %v9898_v46 }
 0x2e3   : > { %v1482_v47 = vsel %vm1481_vm15, %v1461_v37, %v1480_v43 }
 0x2e4   : > { %v1484_v49 = vsel %vm1483_vm0, %v1470_v45, %v1482_v47  ;;  %v10136_v47 = vsub.s32 7, %v9898_v46 }
 0x2e5   : > { %v1487_v50 = vsel %vm1486_vm1, %v1484_v49, -inf }
 0x2e6   : > { %1488 = vmax.xlane.f32.xlu1 %v1487_v50 }
 0x36f   : > { %v1489_v52 = vpop.xlane.xlu1 %1488 }
 0x370   : > { %v1494_v54 = vrot.slane %v1489_v52, %v9909_v55  ;;  %v1506_v61 = vrot.slane %v1489_v52, %v10106_v51  ;;  %v1498_v63 = vrot.slane %v1489_v52, %v10109_v53  ;;  %v1510_v12 = vrot.slane %v1489_v52, %v10114_v60 }
 0x371   : > { %v1502_v43 = vrot.slane %v1489_v52, %v10125_v33 }
 0x372   : > { %v1531_v59 = vsub.f32 %v10010_v11, %v1494_v54  ;;  %v1532_v0 = vsub.f32 %v10013_v14, %v1494_v54  ;;  %v1538_v5 = vsub.f32 %v10031_v22, %v1506_v61  ;;  %v1533_v11 = vsub.f32 %v10016_v44, %v1498_v63 }
 0x373   : > { %v1514_v14 = vrot.slane %v1489_v52, %v10120_v2  ;;  %v1540_v36 = vsub.f32 %v10037_v25, %v1510_v12  ;;  %v1534_v45 = vsub.f32 %v10019_v17, %v1498_v63  ;;  %v1518_v44 = vrot.slane %v1489_v52, %v10129_v35 }
 0x374   : > { %v1547_v1 = vmul.f32 1.442695, %v1531_v59  ;;  %v1549_v34 = vmul.f32 1.442695, %v1532_v0  ;;  %v1561_v37 = vmul.f32 1.442695, %v1538_v5  ;;  %v1535_v54 = vsub.f32 %v10022_v19, %v1502_v43 }
 0x375   : > { %v1551_v22 = vmul.f32 1.442695, %v1533_v11  ;;  %v1542_v49 = vsub.f32 %v10043_v27, %v1514_v14  ;;  %v1565_v50 = vmul.f32 1.442695, %v1540_v36  ;;  %v1553_v25 = vmul.f32 1.442695, %v1534_v45 }
 0x376   : > { %9298 = vpow2.f32 %v1547_v1  ;;  %v1522_v59 = vrot.slane %v1489_v52, %v10136_v47  ;;  %v1544_v0 = vsub.f32 %v10049_v31, %v1518_v44  ;;  %v1536_v63 = vsub.f32 %v10025_v20, %v1502_v43 }
 0x377   : > { %9300 = vpow2.f32 %v1549_v34  ;;  %v1569_v17 = vmul.f32 1.442695, %v1542_v49  ;;  %v1555_v46 = vmul.f32 1.442695, %v1535_v54  ;;  %v1537_v5 = vsub.f32 %v10028_v21, %v1506_v61 }
 0x378   : > { %9302 = vpow2.f32 %v1561_v37  ;;  %v1546_v27 = vsub.f32 %v10063_v18, %v1522_v59  ;;  %v1573_v19 = vmul.f32 1.442695, %v1544_v0  ;;  %v1557_v52 = vmul.f32 1.442695, %v1536_v63  ;;  %v8859_v63 = vld [vmem:[%s12503_s7 + $0x30] sm:$0xff]  }
 0x379   : > { %9304 = vpow2.f32 %v1551_v22  ;;  %v1539_v34 = vsub.f32 %v10034_v23, %v1510_v12  ;;  %v1559_v36 = vmul.f32 1.442695, %v1537_v5  ;;  %v1541_v18 = vsub.f32 %v10040_v26, %v1514_v14  ;;  %v8863_v5 = vld [vmem:[%s12503_s7 + $0x10] sm:$0xff]  }
 0x37a   : > { %9306 = vpow2.f32 %v1565_v50  ;;  %v1577_v20 = vmul.f32 1.442695, %v1546_v27  ;;  %v1543_v12 = vsub.f32 %v10046_v30, %v1518_v44  ;;  %v1545_v14 = vsub.f32 %v10060_v38, %v1522_v59  ;;  %v8861_v27 = vld [vmem:[%s12503_s7 + $0x20] sm:$0xff]  }
 0x37b   : > { %9308 = vpow2.f32 %v1553_v25  ;;  %v1563_v61 = vmul.f32 1.442695, %v1539_v34  ;;  %v1567_v45 = vmul.f32 1.442695, %v1541_v18 }
 0x37c   : > { %9310 = vpow2.f32 %v1569_v17  ;;  %v1571_v49 = vmul.f32 1.442695, %v1543_v12  ;;  %v1575_v44 = vmul.f32 1.442695, %v1545_v14  ;;  %v8858_v17 = vld [vmem:[%s12503_s7 + $0x38] sm:$0xff]  }
 0x37d   : > { %9312 = vpow2.f32 %v1555_v46  ;;  %8631 = vmatpush3.bf16.msra.mxu1 %v8858_v17  ;;  %v8860_v46 = vld [vmem:[%s12503_s7 + $0x28] sm:$0xff]  }
 0x37e   : > { %9314 = vpow2.f32 %v1573_v19  ;;  %8632 = vmatprep.subr.bf16.mxu1 %v12520_v32  ;;  %v8862_v19 = vld [vmem:[%s12503_s7 + $0x18] sm:$0xff]  }
 0x37f   : > { %9316 = vpow2.f32 %v1557_v52  ;;  %v8864_v52 = vld [vmem:[%s12503_s7 + $0x8] sm:$0xff]  }
 0x380   : > { %9318 = vpow2.f32 %v1577_v20  ;;  %v8865_v20 = vld [vmem:[%s12503_s7] sm:$0xff]  }
 0x381   : > { %9320 = vpow2.f32 %v1559_v36  ;;  %8633 = vmatpush3.bf16.msra.mxu1 %v8859_v63 }
 0x382   : > { %9322 = vpow2.f32 %v1563_v61  ;;  %8634 = vmatprep.subr.bf16.mxu1 %v12520_v32 }
 0x383   : > { %v10144_v1 = vpop.eup %9298  ;;  %9324 = vpow2.f32 %v1567_v45 }
 0x384   : > { %1596 = vperm.xlu1 %8849, %v10144_v1   ;;  %v10149_v11 = vpop.eup %9300  ;;  %9326 = vpow2.f32 %v1571_v49 }
 0x385   : > { %v10152_v31 = vpop.eup %9302  ;;  %9328 = vpow2.f32 %v1575_v44  ;;  %8635 = vmatpush3.bf16.msra.mxu1 %v8860_v46 }
 0x386   : > { %v10155_v37 = vpop.eup %9304  ;;  %1617 = vperm.xlu0 %8848, %v10152_v31   ;;  %8636 = vmatprep.subr.bf16.mxu1 %v12520_v32 }
 0x387   : > { %v10159_v21 = vpop.eup %9306 }
 0x388   : > { %1599 = vperm.xlu1 %8849, %v10149_v11   ;;  %v10162_v43 = vpop.eup %9308 }
 0x389   : > { %v10166_v23 = vpop.eup %9310  ;;  %8637 = vmatpush3.bf16.msra.mxu1 %v8861_v27 }
 0x38a   : > { %1623 = vperm.xlu0 %8848, %v10159_v21   ;;  %v10169_v22 = vpop.eup %9312  ;;  %8638 = vmatprep.subr.bf16.mxu1 %v12520_v32 }
 0x38b   : > { %v10173_v26 = vpop.eup %9314 }
 0x38c   : > { %1602 = vperm.xlu1 %8849, %v10155_v37   ;;  %v10176_v50 = vpop.eup %9316 }
 0x38d   : > { %v10180_v30 = vpop.eup %9318  ;;  %8639 = vmatpush3.bf16.msra.mxu1 %v8862_v19 }
 0x38e   : > { %1629 = vperm.xlu0 %8848, %v10166_v23   ;;  %v10182_v54 = vpop.eup %9320  ;;  %8640 = vmatprep.subr.bf16.mxu1 %v12520_v32 }
 0x38f   : > { %v10186_v38 = vpop.eup %9322 }
 0x390   : > { %1605 = vperm.xlu1 %8849, %v10162_v43   ;;  %v10189_v25 = vpop.eup %9324 }
 0x391   : > { %v10192_v59 = vpop.eup %9326  ;;  %8641 = vmatpush3.bf16.msra.mxu1 %v8863_v5 }
 0x392   : > { %1635 = vperm.xlu0 %8848, %v10173_v26   ;;  %v10195_v0 = vpop.eup %9328  ;;  %8642 = vmatprep.subr.bf16.mxu1 %v12520_v32 }
 0x394   : > { %1608 = vperm.xlu1 %8849, %v10169_v22  }
 0x395   : > { %8643 = vmatpush3.bf16.msra.mxu1 %v8864_v52 }
 0x396   : > { %1641 = vperm.xlu0 %8848, %v10180_v30   ;;  %8644 = vmatprep.subr.bf16.mxu1 %v12520_v32 }
 0x398   : > { %1611 = vperm.xlu1 %8849, %v10176_v50  }
 0x399   : > { %8645 = vmatpush3.bf16.msra.mxu1 %v8865_v20 }
 0x39c   : > { %1614 = vperm.xlu1 %8849, %v10182_v54   ;;  %8647 = vmatmul.mubr.bf16.vlgmr.msra.gmra.mxu1 %v9891_v40 }
 0x39d   : > { %2356 = vmatprep.mubr.bf16.mxu1 %v12522_v41 }
 0x3a0   : > { %1620 = vperm.xlu1 %8849, %v10186_v38  }
 0x3a4   : > { %1626 = vperm.xlu1 %8849, %v10189_v25  }
 0x3a8   : > { %1632 = vperm.xlu1 %8849, %v10192_v59  }
 0x3ac   : > { %1638 = vperm.xlu1 %8849, %v10195_v0  }
 0x3ff   : > { %v1597_v34 = vpop.permute.xlu1 %1596 }
 0x400   : > { %v1646_v24 = vrot.slane %v1597_v34, %v10002_v3 }
 0x401   : > { %v1618_v12 = vpop.permute.xlu0 %1617 }
 0x402   : > { %v1677_v13 = vrot.slane %v1618_v12, %v10005_v8 }
 0x403   : > { %v1600_v36 = vpop.permute.xlu1 %1599 }
 0x404   : > { %v1650_v52 = vrot.slane %v1600_v36, %v10005_v8 }
 0x405   : > { %v1624_v14 = vpop.permute.xlu0 %1623 }
 0x407   : > { %v1603_v18 = vpop.permute.xlu1 %1602 }
 0x408   : > { %v1655_v20 = vrot.slane %v1603_v18, %v10002_v3  ;;  %v1651_v18 = vsel %vm1406_vm9, %v1650_v52, %v1646_v24 }
 0x409   : > { %v1630_v17 = vpop.permute.xlu0 %1629 }
 0x40b   : > { %v1606_v61 = vpop.permute.xlu1 %1605 }
 0x40c   : > { %v1659_v46 = vrot.slane %v1606_v61, %v10005_v8 }
 0x40d   : > { %v1636_v27 = vpop.permute.xlu0 %1635 }
 0x40e   : > { %v1660_v61 = vsel %vm1406_vm9, %v1659_v46, %v1655_v20  ;;  %v1704_v12 = vrot.slane %v1636_v27, %v10005_v8 }
 0x40f   : > { %v1609_v45 = vpop.permute.xlu1 %1608  ;;  %v1715_v34 = vsel %vm1471_vm10, %v1660_v61, %v1651_v18 }
 0x410   : > { %v1664_v41 = vrot.slane %v1609_v45, %v10002_v3 }
 0x411   : > { %v1642_v46 = vpop.permute.xlu0 %1641 }
 0x413   : > { %v1612_v49 = vpop.permute.xlu1 %1611 }
 0x414   : > { %v1668_v19 = vrot.slane %v1612_v49, %v10005_v8  ;;  %v1686_v49 = vrot.slane %v1624_v14, %v10005_v8 }
 0x416   : > { %v1669_v36 = vsel %vm1406_vm9, %v1668_v19, %v1664_v41 }
 0x417   : > { %v1615_v44 = vpop.permute.xlu1 %1614  ;;  %v1716_v14 = vsel %vm1473_vm11, %v1669_v36, %v1715_v34 }
 0x418   : > { %v1673_v32 = vrot.slane %v1615_v44, %v10002_v3  ;;  %v1695_v44 = vrot.slane %v1630_v17, %v10005_v8 }
 0x41a   : > { %v1678_v45 = vsel %vm1406_vm9, %v1677_v13, %v1673_v32  ;;  %v1713_v32 = vrot.slane %v1642_v46, %v10005_v8 }
 0x41b   : > { %v1621_v63 = vpop.permute.xlu1 %1620  ;;  %v1717_v19 = vsel %vm1475_vm12, %v1678_v45, %v1716_v14 }
 0x41c   : > { %v1682_v9 = vrot.slane %v1621_v63, %v10002_v3 }
 0x41f   : > { %v1627_v5 = vpop.permute.xlu1 %1626 }
 0x420   : > { %v1691_v58 = vrot.slane %v1627_v5, %v10002_v3  ;;  %v1687_v5 = vsel %vm1406_vm9, %v1686_v49, %v1682_v9 }
 0x421   : > { %v1718_v13 = vsel %vm1477_vm13, %v1687_v5, %v1717_v19 }
 0x422   : > { %v1696_v41 = vsel %vm1406_vm9, %v1695_v44, %v1691_v58 }
 0x423   : > { %v1633_v7 = vpop.permute.xlu1 %1632  ;;  %v1719_v27 = vsel %vm1479_vm14, %v1696_v41, %v1718_v13 }
 0x424   : > { %v1700_v63 = vrot.slane %v1633_v7, %v10002_v3 }
 0x426   : > { %v1705_v17 = vsel %vm1406_vm9, %v1704_v12, %v1700_v63 }
 0x427   : > { %v1639_v24 = vpop.permute.xlu1 %1638  ;;  %v1720_v9 = vsel %vm1481_vm15, %v1705_v17, %v1719_v27  ;;  %v8869_v27 = vld [vmem:[%s12505_s9 + $0xe8] ss:$16 sps:$4 sm:$0xff]  }
 0x428   : > { %v1709_v7 = vrot.slane %v1639_v24, %v10002_v3 }
 0x42a   : > { %v1714_v52 = vsel %vm1406_vm9, %v1713_v32, %v1709_v7 }
 0x42b   : > { %v1721_v20 = vsel %vm1483_vm0, %v1714_v52, %v1720_v9  ;;  %v8877_v52 = vld [vmem:[%s12505_s9 + $0xcc] ss:$16 sps:$4 sm:$0xff]   ;;  %v8875_v9 = vld [vmem:[%s12505_s9 + $0xc8] ss:$16 sps:$4 sm:$0xff]  }
 0x42c   : > { %v1723_v58 = vsel %vm1486_vm1, %v1721_v20, 0.0  ;;  %v8880_v20 = vld [vmem:[%s12505_s9 + $0xa4] ss:$16 sps:$4 sm:$0xff]  }
 0x42d   : > { %1724 = vadd.xlane.f32.xlu1 %v1723_v58  ;;  %v8883_v58 = vld [vmem:[%s12505_s9 + $0xac] ss:$16 sps:$4 sm:$0xff]  }
 0x45c   : > { %v10284_v17 = vpop.f32.mrf.mxu1 }
 0x4b6   : > { %v1725_v61 = vpop.xlane.xlu1 %1724 }
 0x4b7   : > { %9330 = vrcp.f32 %v1725_v61  ;;  %v8878_v61 = vld [vmem:[%s12505_s9 + $0xa0] ss:$16 sps:$4 sm:$0xff]  }
 0x4c4   : > { %v9331_v49 = vpop.eup %9330 }
 0x4c5   : > { %v1747_v36 = vrot.slane %v9331_v49, %v10114_v60  ;;  %v1731_v18 = vrot.slane %v9331_v49, %v9909_v55  ;;  %v1759_v63 = vrot.slane %v9331_v49, %v10136_v47  ;;  %v1735_v46 = vrot.slane %v9331_v49, %v10109_v53 }
 0x4c7   : > { %v1777_v44 = vmul.f32 %v10159_v21, %v1747_v36  ;;  %v1768_v45 = vmul.f32 %v10144_v1, %v1731_v18  ;;  %v1782_v12 = vmul.f32 %v10195_v0, %v1759_v63  ;;  %v1769_v34 = vmul.f32 %v10149_v11, %v1731_v18  ;;  %v8889_v18 = vld [vmem:[%s12505_s9 + $0x8c] ss:$16 sps:$4 sm:$0xff]  }
 0x4c8   : > { %v1770_v5 = vmul.f32 %v10155_v37, %v1735_v46  ;;  %v1771_v14 = vmul.f32 %v10162_v43, %v1735_v46  ;;  %v1739_v21 = vrot.slane %v9331_v49, %v10125_v33  ;;  %v1743_v0 = vrot.slane %v9331_v49, %v10106_v51  ;;  %v8893_v46 = vld [vmem:[%s12505_s9 + $0x68] ss:$16 sps:$4 sm:$0xff]  }
 0x4c9   : > { %1847 = vperm.xlu1 %8849, %v1777_v44   ;;  %1802 = vperm.xlu0 %8848, %v1768_v45   ;;  %v1776_v37 = vmul.f32 %v10186_v38, %v1747_v36  ;;  %v1751_v43 = vrot.slane %v9331_v49, %v10120_v2  ;;  %v1783_v13 = vmul.f32 %v10180_v30, %v1759_v63  ;;  %v8872_v30 = vld [vmem:[%s12505_s9 + $0xc0] ss:$16 sps:$4 sm:$0xff]   ;;  %v8886_v36 = vld [vmem:[%s12505_s9 + $0x84] ss:$16 sps:$4 sm:$0xff]   ;;  %v8887_v45 = vld [vmem:[%s12505_s9 + $0x88] ss:$16 sps:$4 sm:$0xff]  }
 0x4ca   : > { %v1772_v1 = vmul.f32 %v10169_v22, %v1739_v21  ;;  %v1773_v41 = vmul.f32 %v10176_v50, %v1739_v21  ;;  %v1774_v11 = vmul.f32 %v10182_v54, %v1743_v0  ;;  %v1775_v19 = vmul.f32 %v10152_v31, %v1743_v0  ;;  %v8648_v54 = vpop.f32.mrf.mxu1  ;;  %v8884_v44 = vld [vmem:[%s12505_s9 + $0x80] ss:$16 sps:$4 sm:$0xff]   ;;  %v8892_v63 = vld [vmem:[%s12505_s9 + $0x64] ss:$16 sps:$4 sm:$0xff]   ;;  %v8907_v0 = vld [vmem:[%s12505_s9 + $0x2c] ss:$16 sps:$4 sm:$0xff]  }
 0x4cb   : > { %v1778_v24 = vmul.f32 %v10189_v25, %v1751_v43  ;;  %v1779_v22 = vmul.f32 %v10166_v23, %v1751_v43  ;;  %v1755_v50 = vrot.slane %v9331_v49, %v10129_v35  ;;  %v8868_v25 = vld [vmem:[%s12505_s9 + $0xe4] ss:$16 sps:$4 sm:$0xff]   ;;  %v8871_v23 = vld [vmem:[%s12505_s9 + $0xec] ss:$16 sps:$4 sm:$0xff]   ;;  %v8881_v49 = vld [vmem:[%s12505_s9 + $0xa8] ss:$16 sps:$4 sm:$0xff]  }
 0x4cc   : > { %v2060_v31 = vpop.f32.mrf.mxu1  ;;  %2283 = vmatprep.subr.bf16.mxu0 %v8868_v25  ;;  %2324 = vmatprep.subr.bf16.mxu1 %v8871_v23  ;;  %v8896_v21 = vld [vmem:[%s12505_s9 + $0x40] ss:$16 sps:$4 sm:$0xff]   ;;  %v8913_v43 = vld [vmem:[%s12505_s9 + $0xc] ss:$16 sps:$4 sm:$0xff]  }
 0x4cd   : > { %1872 = vperm.xlu1 %8849, %v1782_v12   ;;  %1807 = vperm.xlu0 %8848, %v1769_v34   ;;  %v1780_v32 = vmul.f32 %v10192_v59, %v1755_v50  ;;  %v1781_v38 = vmul.f32 %v10173_v26, %v1755_v50  ;;  %v8866_v59 = vld [vmem:[%s12505_s9 + $0xe0] ss:$16 sps:$4 sm:$0xff]   ;;  %v8874_v26 = vld [vmem:[%s12505_s9 + $0xc4] ss:$16 sps:$4 sm:$0xff]   ;;  %v8895_v12 = vld [vmem:[%s12505_s9 + $0x6c] ss:$16 sps:$4 sm:$0xff]  }
 0x4ce   : > { %v8649_v7 = vpop.f32.mrf.mxu1  ;;  %2284 = vmatpush1.bf16.msra.mxu0 %v8866_v59  ;;  %2325 = vmatpush1.bf16.msra.mxu1 %v8869_v27  ;;  %v8890_v34 = vld [vmem:[%s12505_s9 + $0x60] ss:$16 sps:$4 sm:$0xff]   ;;  %v8916_v50 = vld [vmem:[%s12609_s19 + $0xe4] ss:$16 sps:$4 sm:$0xff]   ;;  %v8919_v54 = vld [vmem:[%s12609_s19 + $0xec] ss:$16 sps:$4 sm:$0xff]  }
 0x4cf   : > { %2285 = vmatprep.subr.bf16.mxu0 %v8874_v26  ;;  %2326 = vmatprep.subr.bf16.mxu1 %v8877_v52  ;;  %v8466_v26 = vld [vmem:[%s9758_s0 + $0x8] sm:$0xff]  }
 0x4d1   : > { %1812 = vperm.xlu0 %8848, %v1770_v5   ;;  %v8898_v5 = vld [vmem:[%s12505_s9 + $0x44] ss:$16 sps:$4 sm:$0xff]  }
 0x4d2   : > { %2286 = vmatpush1.bf16.msra.mxu0 %v8872_v30  ;;  %2327 = vmatpush1.bf16.msra.mxu1 %v8875_v9  ;;  %v10408_v30 = vunpack.c.h.bf16 %v8466_v26  ;;  %v8396_v9 = vld [vmem:[%s9758_s0] sm:$0xff]  }
 0x4d3   : > { %2287 = vmatprep.subr.bf16.mxu0 %v8880_v20  ;;  %2328 = vmatprep.subr.bf16.mxu1 %v8883_v58  ;;  %v10413_v20 = vunpack.c.l.bf16 %v8466_v26  ;;  %v10415_v58 = vunpack.c.h.bf16 %v8396_v9 }
 0x4d5   : > { %1817 = vperm.xlu0 %8848, %v1771_v14   ;;  %v8901_v14 = vld [vmem:[%s12505_s9 + $0x4c] ss:$16 sps:$4 sm:$0xff]   ;;  %12611 = vst [vmem:[#allocation29_spill] sm:$0xff] %v10413_v20  ;;  %12612 = vst [vmem:[#allocation30_spill] sm:$0xff] %v10415_v58 }
 0x4d6   : > { %2288 = vmatpush1.bf16.msra.mxu0 %v8878_v61  ;;  %2329 = vmatpush1.bf16.msra.mxu1 %v8881_v49  ;;  %v8467_v61 = vld [vmem:[%s9758_s0 + $0x10] sm:$0xff]   ;;  %v8468_v49 = vld [vmem:[%s9758_s0 + $0x18] sm:$0xff]  }
 0x4d7   : > { %2289 = vmatprep.subr.bf16.mxu0 %v8886_v36  ;;  %2330 = vmatprep.subr.bf16.mxu1 %v8889_v18  ;;  %v10421_v36 = vunpack.c.l.bf16 %v8396_v9  ;;  %v10423_v18 = vunpack.c.h.bf16 %v8467_v61 }
 0x4d9   : > { %1822 = vperm.xlu0 %8848, %v1772_v1   ;;  %v8899_v1 = vld [vmem:[%s12505_s9 + $0x48] ss:$16 sps:$4 sm:$0xff]   ;;  %12613 = vst [vmem:[#allocation31_spill] sm:$0xff] %v10421_v36  ;;  %12614 = vst [vmem:[#allocation32_spill] sm:$0xff] %v10423_v18 }
 0x4da   : > { %2290 = vmatpush1.bf16.msra.mxu0 %v8884_v44  ;;  %2331 = vmatpush1.bf16.msra.mxu1 %v8887_v45  ;;  %v10425_v44 = vunpack.c.h.bf16 %v8468_v49 }
 0x4db   : > { %2291 = vmatprep.subr.bf16.mxu0 %v8892_v63  ;;  %2332 = vmatprep.subr.bf16.mxu1 %v8895_v12  ;;  %v8469_v63 = vld [vmem:[%s9758_s0 + $0x20] sm:$0xff]  }
 0x4dc   : > { %12615 = vst [vmem:[#allocation33_spill] sm:$0xff] %v10425_v44 }
 0x4dd   : > { %1827 = vperm.xlu0 %8848, %v1773_v41   ;;  %v8904_v41 = vld [vmem:[%s12505_s9 + $0x24] ss:$16 sps:$4 sm:$0xff]  }
 0x4de   : > { %2292 = vmatpush1.bf16.msra.mxu0 %v8890_v34  ;;  %2333 = vmatpush1.bf16.msra.mxu1 %v8893_v46  ;;  %v10434_v46 = vunpack.c.l.bf16 %v8467_v61 }
 0x4df   : > { %2293 = vmatprep.subr.bf16.mxu0 %v8898_v5  ;;  %2334 = vmatprep.subr.bf16.mxu1 %v8901_v14  ;;  %v10436_v5 = vunpack.c.l.bf16 %v8468_v49  ;;  %v10438_v14 = vunpack.c.l.bf16 %v8469_v63 }
 0x4e0   : > { %12616 = vst [vmem:[#allocation34_spill] sm:$0xff] %v10434_v46 }
 0x4e1   : > { %1832 = vperm.xlu0 %8848, %v1774_v11   ;;  %v8902_v11 = vld [vmem:[%s12505_s9 + $0x20] ss:$16 sps:$4 sm:$0xff]   ;;  %12617 = vst [vmem:[#allocation35_spill] sm:$0xff] %v10436_v5  ;;  %12618 = vst [vmem:[#allocation36_spill] sm:$0xff] %v10438_v14 }
 0x4e2   : > { %2294 = vmatpush1.bf16.msra.mxu0 %v8896_v21  ;;  %2335 = vmatpush1.bf16.msra.mxu1 %v8899_v1  ;;  %v10440_v1 = vunpack.c.h.bf16 %v8469_v63  ;;  %v8471_v63 = vld [vmem:[%s9758_s0 + $0x30] sm:$0xff]  }
 0x4e3   : > { %2295 = vmatprep.subr.bf16.mxu0 %v8904_v41  ;;  %2336 = vmatprep.subr.bf16.mxu1 %v8907_v0 }
 0x4e4   : > { %12619 = vst [vmem:[#allocation37_spill] sm:$0xff] %v10440_v1 }
 0x4e5   : > { %1837 = vperm.xlu0 %8848, %v1775_v19   ;;  %v8905_v19 = vld [vmem:[%s12505_s9 + $0x28] ss:$16 sps:$4 sm:$0xff]  }
 0x4e6   : > { %2296 = vmatpush1.bf16.msra.mxu0 %v8902_v11  ;;  %2337 = vmatpush1.bf16.msra.mxu1 %v8905_v19 }
 0x4e7   : > { %2338 = vmatprep.subr.bf16.mxu1 %v8913_v43 }
 0x4e9   : > { %1842 = vperm.xlu0 %8848, %v1776_v37   ;;  %v8910_v37 = vld [vmem:[%s12505_s9 + $0x4] ss:$16 sps:$4 sm:$0xff]  }
 0x4ea   : > { %2297 = vmatprep.subr.bf16.mxu0 %v8910_v37 }
 0x4ed   : > { %1852 = vperm.xlu0 %8848, %v1778_v24   ;;  %v8908_v24 = vld [vmem:[%s12505_s9] ss:$16 sps:$4 sm:$0xff]  }
 0x4ee   : > { %2298 = vmatpush1.bf16.msra.mxu0 %v8908_v24 }
 0x4ef   : > { %2561 = vmatprep.subr.bf16.mxu0 %v8916_v50 }
 0x4f1   : > { %1857 = vperm.xlu0 %8848, %v1779_v22   ;;  %v8911_v22 = vld [vmem:[%s12505_s9 + $0x8] ss:$16 sps:$4 sm:$0xff]  }
 0x4f2   : > { %2339 = vmatpush1.bf16.msra.mxu1 %v8911_v22 }
 0x4f3   : > { %2602 = vmatprep.subr.bf16.mxu1 %v8919_v54 }
 0x4f5   : > { %1862 = vperm.xlu0 %8848, %v1780_v32  }
 0x4f9   : > { %1867 = vperm.xlu0 %8848, %v1781_v38   ;;  %v7995_v38 = vld [vmem:[%s12610_s18] ss:$0 sm:$0xff] }
 0x4fa   : > { %v2058_v23 = vadd.f32 %v7995_v38, %v10284_v17  ;;  %v8470_v38 = vld [vmem:[%s9758_s0 + $0x28] sm:$0xff]  }
 0x4fc   : > { %v8004_v59 = vmul.f32 -1.442695, %v2058_v23  ;;  %v8472_v23 = vld [vmem:[%s9758_s0 + $0x38] sm:$0xff]  }
 0x4fd   : > { %1877 = vperm.xlu0 %8848, %v1783_v13  }
 0x4fe   : > { %9332 = vpow2.f32 %v8004_v59 }
 0x50b   : > { %v9333_v37 = vpop.eup %9332 }
 0x50c   : > { %v2066_v61 = vadd.f32 1.0, %v9333_v37 }
 0x50e   : > { %9334 = vrcp.f32 %v2066_v61 }
 0x544   : > { %v10391_v32 = vpop.permute.xlu0 %1802  ;;  %v10450_v43 = vpop.permute.xlu1 %1847 }
 0x545   : > { %v1880_v41 = vmul.f32 %v10421_v36, %v10391_v32  ;;  %v1889_v26 = vmul.f32 %v10440_v1, %v10450_v43 }
 0x548   : > { %v10393_v31 = vpop.permute.xlu0 %1807  ;;  %v1873_v61 = vpop.permute.xlu1 %1872 }
 0x549   : > { %v1881_v34 = vmul.f32 %v10415_v58, %v10393_v31 }
 0x54b   : > { %v1896_v24 = vadd.f32 %v1881_v34, %v1880_v41  ;;  %v10467_v34 = vunpack.c.h.bf16 %v8470_v38  ;;  %v10469_v41 = vunpack.c.l.bf16 %v8472_v23 }
 0x54c   : > { %v10395_v7 = vpop.permute.xlu0 %1812 }
 0x54d   : > { %v1882_v12 = vmul.f32 %v10413_v20, %v10395_v7  ;;  %12621 = vst [vmem:[#allocation39_spill] sm:$0xff] %v10467_v34 }
 0x550   : > { %v10400_v25 = vpop.permute.xlu0 %1817 }
 0x551   : > { %v1883_v17 = vmul.f32 %v10408_v30, %v10400_v25 }
 0x553   : > { %v1903_v21 = vadd.f32 %v1883_v17, %v1882_v12  ;;  %v10465_v12 = vunpack.c.l.bf16 %v8470_v38  ;;  %v2680_v38 = vrot.slane %v10393_v31, %v10005_v8 }
 0x554   : > { %v10403_v13 = vpop.permute.xlu0 %1822 }
 0x555   : > { %v1884_v22 = vmul.f32 %v10434_v46, %v10403_v13  ;;  %v1904_v59 = vrot.slane %v1903_v21, 4  ;;  %12620 = vst [vmem:[#allocation38_spill] sm:$0xff] %v10465_v12 }
 0x557   : > { %v1905_v46 = vadd.f32 %v1904_v59, %v1903_v21  ;;  %v2716_v59 = vrot.slane %v10450_v43, %v10005_v8 }
 0x558   : > { %v10405_v27 = vpop.permute.xlu0 %1827 }
 0x559   : > { %v1885_v0 = vmul.f32 %v10423_v18, %v10405_v27  ;;  %v10473_v18 = vunpack.c.l.bf16 %v8471_v63  ;;  %v1906_v1 = vrot.slane %v1905_v46, 2 }
 0x55b   : > { %v1910_v9 = vadd.f32 %v1885_v0, %v1884_v22  ;;  %v10475_v0 = vunpack.c.h.bf16 %v8471_v63 }
 0x55c   : > { %v10410_v52 = vpop.permute.xlu0 %1832 }
 0x55d   : > { %v1886_v50 = vmul.f32 %v10436_v5, %v10410_v52  ;;  %v1897_v5 = vrot.slane %v1896_v24, 4  ;;  %12622 = vst [vmem:[#allocation40_spill] sm:$0xff] %v10475_v0 }
 0x560   : > { %v10427_v45 = vpop.permute.xlu0 %1837 }
 0x561   : > { %v1887_v11 = vmul.f32 %v10425_v44, %v10427_v45  ;;  %v2689_v44 = vrot.slane %v10400_v25, %v10005_v8 }
 0x563   : > { %v1917_v17 = vadd.f32 %v1887_v11, %v1886_v50  ;;  %v1911_v11 = vrot.slane %v1910_v9, 4  ;;  %v10477_v50 = vunpack.c.h.bf16 %v8472_v23  ;;  %v1898_v23 = vadd.f32 %v1897_v5, %v1896_v24 }
 0x564   : > { %v10448_v19 = vpop.permute.xlu0 %1842 }
 0x565   : > { %v1888_v54 = vmul.f32 %v10438_v14, %v10448_v19  ;;  %v1918_v37 = vrot.slane %v1917_v17, 4  ;;  %v1912_v58 = vadd.f32 %v1911_v11, %v1910_v9  ;;  %v2712_v43 = vrot.slane %v10448_v19, %v10002_v3 }
 0x566   : > { %v2703_v9 = vrot.slane %v10410_v52, %v10002_v3 }
 0x567   : > { %v1924_v14 = vadd.f32 %v1889_v26, %v1888_v54  ;;  %v2685_v54 = vrot.slane %v10395_v7, %v10002_v3  ;;  %v2676_v26 = vrot.slane %v10391_v32, %v10002_v3  ;;  %v2698_v7 = vrot.slane %v10405_v27, %v10005_v8 }
 0x568   : > { %v10462_v49 = vpop.permute.xlu0 %1852  ;;  %v1894_v32 = vmul.f32 %v10469_v41, %v1873_v61 }
 0x569   : > { %v1890_v21 = vmul.f32 %v10465_v12, %v10462_v49  ;;  %v1925_v63 = vrot.slane %v1924_v14, 4  ;;  %v2690_v31 = vsel %vm1406_vm9, %v2689_v44, %v2685_v54  ;;  %v1919_v12 = vadd.f32 %v1918_v37, %v1917_v17 }
 0x56a   : > { %v2681_v5 = vsel %vm1406_vm9, %v2680_v38, %v2676_v26  ;;  %v2694_v44 = vrot.slane %v10403_v13, %v10002_v3  ;;  %v1899_v54 = vrot.slane %v1898_v23, 2  ;;  %v2717_v13 = vsel %vm1406_vm9, %v2716_v59, %v2712_v43 }
 0x56b   : > { %v2745_v27 = vsel %vm1471_vm10, %v2690_v31, %v2681_v5  ;;  %v1926_v17 = vadd.f32 %v1925_v63, %v1924_v14  ;;  %v2721_v31 = vrot.slane %v10462_v49, %v10002_v3 }
 0x56c   : > { %v1858_v22 = vpop.permute.xlu0 %1857  ;;  %v2699_v11 = vsel %vm1406_vm9, %v2698_v7, %v2694_v44  ;;  %v1900_v49 = vadd.f32 %v1899_v54, %v1898_v23 }
 0x56d   : > { %v1891_v25 = vmul.f32 %v10467_v34, %v1858_v22  ;;  %v2707_v34 = vrot.slane %v10427_v45, %v10005_v8  ;;  %v1907_v45 = vadd.f32 %v1906_v1, %v1905_v46  ;;  %v2725_v37 = vrot.slane %v1858_v22, %v10005_v8 }
 0x56e   : > { %v1927_v14 = vrot.slane %v1926_v17, 2 }
 0x56f   : > { %v1931_v36 = vadd.f32 %v1891_v25, %v1890_v21  ;;  %v1913_v21 = vrot.slane %v1912_v58, 2  ;;  %v1920_v25 = vrot.slane %v1919_v12, 2  ;;  %v2708_v38 = vsel %vm1406_vm9, %v2707_v34, %v2703_v9 }
 0x570   : > { %v1863_v20 = vpop.permute.xlu0 %1862  ;;  %v2739_v34 = vrot.slane %v1873_v61, %v10002_v3  ;;  %v2726_v63 = vsel %vm1406_vm9, %v2725_v37, %v2721_v31  ;;  %v1908_v61 = vrot.slane %v1907_v45, 1 }
 0x571   : > { %v1932_v24 = vrot.slane %v1931_v36, 4  ;;  %v1892_v5 = vmul.f32 %v10473_v18, %v1863_v20  ;;  %v2730_v22 = vrot.slane %v1863_v20, %v10002_v3  ;;  %v1914_v43 = vadd.f32 %v1913_v21, %v1912_v58 }
 0x573   : > { %v1933_v19 = vadd.f32 %v1932_v24, %v1931_v36  ;;  %v2746_v36 = vsel %vm1473_vm11, %v2699_v11, %v2745_v27  ;;  %v1921_v27 = vadd.f32 %v1920_v25, %v1919_v12  ;;  %v1901_v25 = vrot.slane %v1900_v49, 1 }
 0x574   : > { %v1868_v26 = vpop.permute.xlu0 %1867  ;;  %v2747_v59 = vsel %vm1475_vm12, %v2708_v38, %v2746_v36  ;;  %v1928_v38 = vadd.f32 %v1927_v14, %v1926_v17  ;;  %v1909_v17 = vadd.f32 %v1908_v61, %v1907_v45 }
 0x575   : > { %v1893_v52 = vmul.f32 %v10475_v0, %v1868_v26  ;;  %v2734_v46 = vrot.slane %v1868_v26, %v10005_v8  ;;  %v1934_v1 = vrot.slane %v1933_v19, 2  ;;  %v2748_v44 = vsel %vm1477_vm13, %v2717_v13, %v2747_v59  ;;  %v9335_v26 = vpop.eup %9334 }
 0x576   : > { %v2749_v37 = vsel %vm1479_vm14, %v2726_v63, %v2748_v44  ;;  %v1915_v13 = vrot.slane %v1914_v43, 1  ;;  %v1922_v31 = vrot.slane %v1921_v27, 1  ;;  %v1902_v59 = vadd.f32 %v1901_v25, %v1900_v49  ;;  %v8931_v25 = vld [vmem:[%s12609_s19 + $0xac] ss:$16 sps:$4 sm:$0xff]  }
 0x577   : > { %v1938_v7 = vadd.f32 %v1893_v52, %v1892_v5  ;;  %v2735_v24 = vsel %vm1406_vm9, %v2734_v46, %v2730_v22  ;;  %v1935_v36 = vadd.f32 %v1934_v1, %v1933_v19  ;;  %v1929_v46 = vrot.slane %v1928_v38, 1 }
 0x578   : > { %v1878_v9 = vpop.permute.xlu0 %1877  ;;  %v2750_v58 = vsel %vm1481_vm15, %v2735_v24, %v2749_v37  ;;  %v1916_v22 = vadd.f32 %v1915_v13, %v1914_v43  ;;  %v1923_v63 = vadd.f32 %v1922_v31, %v1921_v27  ;;  %v8923_v13 = vld [vmem:[%s12609_s19 + $0xc8] ss:$16 sps:$4 sm:$0xff]   ;;  %v12623_v31 = vmov 0  }
 0x579   : > { %v1939_v11 = vrot.slane %v1938_v7, 4  ;;  %v1895_v0 = vmul.f32 %v10477_v50, %v1878_v9  ;;  %v2743_v20 = vrot.slane %v1878_v9, %v10005_v8  ;;  %v1936_v19 = vrot.slane %v1935_v36, 1 }
 0x57b   : > { %v1940_v23 = vadd.f32 %v1939_v11, %v1938_v7  ;;  %v1945_v54 = vadd.f32 %v1895_v0, %v1894_v32  ;;  %v2744_v21 = vsel %vm1406_vm9, %v2743_v20, %v2739_v34  ;;  %v1930_v34 = vadd.f32 %v1929_v46, %v1928_v38  ;;  %v8934_v46 = vld [vmem:[%s12609_s19 + $0x84] ss:$16 sps:$4 sm:$0xff]  }
 0x57c   : > { %v2751_v12 = vsel %vm1483_vm0, %v2744_v21, %v2750_v58  ;;  %v2077_v7 = vsel %vm1471_vm10, %v1909_v17, %v1902_v59  ;;  %v1937_v44 = vadd.f32 %v1936_v19, %v1935_v36  ;;  %v8914_v36 = vld [vmem:[%s12609_s19 + $0xe0] ss:$16 sps:$4 sm:$0xff]   ;;  %v8925_v21 = vld [vmem:[%s12609_s19 + $0xcc] ss:$16 sps:$4 sm:$0xff]  }
 0x57d   : > { %v1941_v5 = vrot.slane %v1940_v23, 2  ;;  %v1946_v52 = vrot.slane %v1945_v54, 4  ;;  %2753 = vst.msk [vmem:[%s9769_s27] sm:$0xff] %vm1486_vm1, %v2751_v12  ;;  %v2078_v9 = vsel %vm1473_vm11, %v1916_v22, %v2077_v7  ;;  %v8928_v12 = vld [vmem:[%s12609_s19 + $0xa4] ss:$16 sps:$4 sm:$0xff]  }
 0x57e   : > { %v2079_v20 = vsel %vm1475_vm12, %v1923_v63, %v2078_v9  ;;  %v8937_v17 = vld [vmem:[%s12609_s19 + $0x8c] ss:$16 sps:$4 sm:$0xff]   ;;  %v8932_v19 = vld [vmem:[%s12609_s19 + $0x80] ss:$16 sps:$4 sm:$0xff]   ;;  %v8941_v63 = vld [vmem:[%s12609_s19 + $0x68] ss:$16 sps:$4 sm:$0xff]  }
 0x57f   : > { %v1942_v14 = vadd.f32 %v1941_v5, %v1940_v23  ;;  %v1947_v1 = vadd.f32 %v1946_v52, %v1945_v54  ;;  %v2080_v45 = vsel %vm1477_vm13, %v1930_v34, %v2079_v20  ;;  %v8917_v23 = vld [vmem:[%s12609_s19 + $0xe8] ss:$16 sps:$4 sm:$0xff]   ;;  %v8922_v54 = vld [vmem:[%s12609_s19 + $0xc4] ss:$16 sps:$4 sm:$0xff]   ;;  %v8926_v5 = vld [vmem:[%s12609_s19 + $0xa0] ss:$16 sps:$4 sm:$0xff]  }
 0x580   : > { %v2081_v43 = vsel %vm1479_vm14, %v1937_v44, %v2080_v45  ;;  %v8929_v52 = vld [vmem:[%s12609_s19 + $0xa8] ss:$16 sps:$4 sm:$0xff]   ;;  %v8943_v22 = vld [vmem:[%s12609_s19 + $0x6c] ss:$16 sps:$4 sm:$0xff]   ;;  %v8938_v59 = vld [vmem:[%s12609_s19 + $0x60] ss:$16 sps:$4 sm:$0xff]  }
 0x581   : > { %v1943_v0 = vrot.slane %v1942_v14, 1  ;;  %v1948_v32 = vrot.slane %v1947_v1, 2  ;;  %v8944_v34 = vld [vmem:[%s12609_s19 + $0x40] ss:$16 sps:$4 sm:$0xff]   ;;  %v8947_v7 = vld [vmem:[%s12609_s19 + $0x48] ss:$16 sps:$4 sm:$0xff]  }
 0x582   : > { %v8952_v44 = vld [vmem:[%s12609_s19 + $0x24] ss:$16 sps:$4 sm:$0xff]   ;;  %v8950_v9 = vld [vmem:[%s12609_s19 + $0x20] ss:$16 sps:$4 sm:$0xff]  }
 0x583   : > { %v1949_v24 = vadd.f32 %v1948_v32, %v1947_v1  ;;  %v1944_v11 = vadd.f32 %v1943_v0, %v1942_v14  ;;  %v8935_v14 = vld [vmem:[%s12609_s19 + $0x88] ss:$16 sps:$4 sm:$0xff]   ;;  %v8940_v1 = vld [vmem:[%s12609_s19 + $0x64] ss:$16 sps:$4 sm:$0xff]   ;;  %v8949_v32 = vld [vmem:[%s12609_s19 + $0x4c] ss:$16 sps:$4 sm:$0xff]  }
 0x584   : > { %v8946_v0 = vld [vmem:[%s12609_s19 + $0x44] ss:$16 sps:$4 sm:$0xff]   ;;  %v8956_v45 = vld [vmem:[%s12609_s19] ss:$16 sps:$4 sm:$0xff]  }
 0x585   : > { %v1950_v37 = vrot.slane %v1949_v24, 1  ;;  %v2082_v49 = vsel %vm1481_vm15, %v1944_v11, %v2081_v43  ;;  %v8953_v11 = vld [vmem:[%s12609_s19 + $0x28] ss:$16 sps:$4 sm:$0xff]   ;;  %v8958_v20 = vld [vmem:[%s12609_s19 + $0x4] ss:$16 sps:$4 sm:$0xff]   ;;  %v12624_v43 = vmov 0.0  }
 0x587   : > { %v1951_v61 = vadd.f32 %v1950_v37, %v1949_v24  ;;  %v8955_v24 = vld [vmem:[%s12609_s19 + $0x2c] ss:$16 sps:$4 sm:$0xff]  }
 0x588   : > { %v8961_v37 = vld [vmem:[%s12609_s19 + $0xc] ss:$16 sps:$4 sm:$0xff]  }
 0x589   : > { %v2083_v27 = vsel %vm1483_vm0, %v1951_v61, %v2082_v49  ;;  %v8959_v61 = vld [vmem:[%s12609_s19 + $0x8] ss:$16 sps:$4 sm:$0xff]  }
 0x58a   : > { %v2085_v38 = vmul.f32 %v9335_v26, %v2083_v27  ;;  %v8920_v26 = vld [vmem:[%s12609_s19 + $0xc0] ss:$16 sps:$4 sm:$0xff]   ;;  %v8962_v49 = vld [vmem:[%s12499_s3 + $0x38] sm:$0xff]  }
 0x58b   : > { %v8963_v27 = vld [vmem:[%s12503_s7 + $0x38] sm:$0xff]  }
 0x58c   : > { %v2090_v58 = vpack.c.bf16 %v2085_v38, %v2085_v38  ;;  %v8965_v38 = vld [vmem:[%s12503_s7 + $0x30] sm:$0xff]  }
 0x58e   : > { %2316 = vmatmul.mubr.bf16.vlgmr.msra.gmra.mxu0 %v2090_v58  ;;  %2357 = vmatmul.mubr.bf16.vlgmr.msra.gmra.mxu1 %v2090_v58  ;;  %v8968_v58 = vld [vmem:[%s12499_s3 + $0x20] sm:$0xff]  }
 0x58f   : > { %2562 = vmatpush1.bf16.msra.mxu0 %v8914_v36  ;;  %2603 = vmatpush1.bf16.msra.mxu1 %v8917_v23  ;;  %v8966_v36 = vld [vmem:[%s12499_s3 + $0x28] sm:$0xff]  }
 0x590   : > { %2563 = vmatprep.subr.bf16.mxu0 %v8922_v54  ;;  %2604 = vmatprep.subr.bf16.mxu1 %v8925_v21  ;;  %v8967_v23 = vld [vmem:[%s12503_s7 + $0x28] sm:$0xff]   ;;  %v8969_v54 = vld [vmem:[%s12503_s7 + $0x20] sm:$0xff]   ;;  %v8970_v21 = vld [vmem:[%s12499_s3 + $0x18] sm:$0xff]  }
 0x591   : > { %2593 = vmatprep.mubr.bf16.mxu0 %v12623_v31  ;;  %2634 = vmatprep.mubr.bf16.mxu1 %v12623_v31 }
 0x593   : > { %2564 = vmatpush1.bf16.msra.mxu0 %v8920_v26  ;;  %2605 = vmatpush1.bf16.msra.mxu1 %v8923_v13  ;;  %v8971_v26 = vld [vmem:[%s12503_s7 + $0x18] sm:$0xff]   ;;  %v8972_v13 = vld [vmem:[%s12499_s3 + $0x10] sm:$0xff]  }
 0x594   : > { %2565 = vmatprep.subr.bf16.mxu0 %v8928_v12  ;;  %2606 = vmatprep.subr.bf16.mxu1 %v8931_v25  ;;  %v8973_v12 = vld [vmem:[%s12503_s7 + $0x10] sm:$0xff]   ;;  %v8974_v25 = vld [vmem:[%s12499_s3 + $0x8] sm:$0xff]  }
 0x597   : > { %2566 = vmatpush1.bf16.msra.mxu0 %v8926_v5  ;;  %2607 = vmatpush1.bf16.msra.mxu1 %v8929_v52  ;;  %v8975_v5 = vld [vmem:[%s12503_s7 + $0x8] sm:$0xff]   ;;  %v8976_v52 = vld [vmem:[%s12499_s3] sm:$0xff]  }
 0x598   : > { %2567 = vmatprep.subr.bf16.mxu0 %v8934_v46  ;;  %2608 = vmatprep.subr.bf16.mxu1 %v8937_v17  ;;  %v8977_v46 = vld [vmem:[%s12503_s7] sm:$0xff]  }
 0x59b   : > { %2568 = vmatpush1.bf16.msra.mxu0 %v8932_v19  ;;  %2609 = vmatpush1.bf16.msra.mxu1 %v8935_v14 }
 0x59c   : > { %2569 = vmatprep.subr.bf16.mxu0 %v8940_v1  ;;  %2610 = vmatprep.subr.bf16.mxu1 %v8943_v22 }
 0x59f   : > { %2570 = vmatpush1.bf16.msra.mxu0 %v8938_v59  ;;  %2611 = vmatpush1.bf16.msra.mxu1 %v8941_v63 }
 0x5a0   : > { %2571 = vmatprep.subr.bf16.mxu0 %v8946_v0  ;;  %2612 = vmatprep.subr.bf16.mxu1 %v8949_v32  ;;  %v2086_v32 = vld [vmem:[%s9765_s28] sm:$0xff] }
 0x5a3   : > { %2572 = vmatpush1.bf16.msra.mxu0 %v8944_v34  ;;  %2613 = vmatpush1.bf16.msra.mxu1 %v8947_v7  ;;  %v2087_v34 = vld [vmem:[%s9765_s28 + $0x8] sm:$0xff] }
 0x5a4   : > { %2573 = vmatprep.subr.bf16.mxu0 %v8952_v44  ;;  %2614 = vmatprep.subr.bf16.mxu1 %v8955_v24 }
 0x5a7   : > { %2574 = vmatpush1.bf16.msra.mxu0 %v8950_v9  ;;  %2615 = vmatpush1.bf16.msra.mxu1 %v8953_v11 }
 0x5a8   : > { %2575 = vmatprep.subr.bf16.mxu0 %v8958_v20  ;;  %2616 = vmatprep.subr.bf16.mxu1 %v8961_v37 }
 0x5ab   : > { %2576 = vmatpush1.bf16.msra.mxu0 %v8956_v45  ;;  %2617 = vmatpush1.bf16.msra.mxu1 %v8959_v61 }
 0x5ac   : > { %8650 = vmatprep.subr.bf16.mxu0 %v12624_v43  ;;  %8670 = vmatprep.subr.bf16.mxu1 %v12624_v43 }
 0x5ae   : > { %2594 = vmatmul.mubr.bf16.vlgmr.msra.gmra.mxu0 %v9891_v40  ;;  %2635 = vmatmul.mubr.bf16.vlgmr.msra.gmra.mxu1 %v9891_v40  ;;  %v8964_v40 = vld [vmem:[%s12499_s3 + $0x30] sm:$0xff]  }
 0x5af   : > { %8666 = vmatprep.mubr.msk.bf16.mxu0 %vm9577_vm8, %v12624_v43  ;;  %8686 = vmatprep.mubr.msk.bf16.mxu1 %vm9577_vm8, %v12624_v43 }
 0x5b0   : > { %8651 = vmatpush3.bf16.msra.mxu0 %v8962_v49  ;;  %8671 = vmatpush3.bf16.msra.mxu1 %v8963_v27 }
 0x5b1   : > { %8652 = vmatprep.subr.bf16.mxu0 %v12624_v43  ;;  %8672 = vmatprep.subr.bf16.mxu1 %v12624_v43 }
 0x5b4   : > { %8653 = vmatpush3.bf16.msra.mxu0 %v8964_v40  ;;  %8673 = vmatpush3.bf16.msra.mxu1 %v8965_v38 }
 0x5b5   : > { %8654 = vmatprep.subr.bf16.mxu0 %v12624_v43  ;;  %8674 = vmatprep.subr.bf16.mxu1 %v12624_v43 }
 0x5b8   : > { %8655 = vmatpush3.bf16.msra.mxu0 %v8966_v36  ;;  %8675 = vmatpush3.bf16.msra.mxu1 %v8967_v23  ;;  %v2089_v23 = vld [vmem:[%s9765_s28 + $0x18] sm:$0xff] }
 0x5b9   : > { %8656 = vmatprep.subr.bf16.mxu0 %v12624_v43  ;;  %8676 = vmatprep.subr.bf16.mxu1 %v12624_v43 }
 0x5bc   : > { %8657 = vmatpush3.bf16.msra.mxu0 %v8968_v58  ;;  %8677 = vmatpush3.bf16.msra.mxu1 %v8969_v54 }
 0x5bd   : > { %8658 = vmatprep.subr.bf16.mxu0 %v12624_v43  ;;  %8678 = vmatprep.subr.bf16.mxu1 %v12624_v43 }
 0x5c0   : > { %8659 = vmatpush3.bf16.msra.mxu0 %v8970_v21  ;;  %8679 = vmatpush3.bf16.msra.mxu1 %v8971_v26  ;;  %v2088_v21 = vld [vmem:[%s9765_s28 + $0x10] sm:$0xff] }
 0x5c1   : > { %8660 = vmatprep.subr.bf16.mxu0 %v12624_v43  ;;  %8680 = vmatprep.subr.bf16.mxu1 %v12624_v43 }
 0x5c4   : > { %8661 = vmatpush3.bf16.msra.mxu0 %v8972_v13  ;;  %8681 = vmatpush3.bf16.msra.mxu1 %v8973_v12 }
 0x5c5   : > { %8662 = vmatprep.subr.bf16.mxu0 %v12624_v43  ;;  %8682 = vmatprep.subr.bf16.mxu1 %v12624_v43 }
 0x5c8   : > { %8663 = vmatpush3.bf16.msra.mxu0 %v8974_v25  ;;  %8683 = vmatpush3.bf16.msra.mxu1 %v8975_v5 }
 0x5c9   : > { %8664 = vmatprep.subr.bf16.mxu0 %v12624_v43  ;;  %8684 = vmatprep.subr.bf16.mxu1 %v12624_v43 }
 0x5cc   : > { %8665 = vmatpush3.bf16.msra.mxu0 %v8976_v52  ;;  %8685 = vmatpush3.bf16.msra.mxu1 %v8977_v46 }
 0x64e   : > { %v2317_v17 = vpop.f32.mrf.mxu0  ;;  %v2358_v19 = vpop.f32.mrf.mxu1 }
 0x64f   : > { %v2365_v7 = vadd.f32 %v2317_v17, %v2086_v32  ;;  %v2367_v26 = vadd.f32 %v2358_v19, %v2088_v21 }
 0x650   : > { %v2319_v14 = vpop.f32.mrf.mxu0  ;;  %v2360_v1 = vpop.f32.mrf.mxu1 }
 0x651   : > { %v2366_v9 = vadd.f32 %v2319_v14, %v2087_v34  ;;  %v2368_v58 = vadd.f32 %v2360_v1, %v2089_v23 }
 0x652   : > { %v2321_v22 = vpop.f32.mrf.mxu0  ;;  %v2362_v59 = vpop.f32.mrf.mxu1 }
 0x653   : > { %v1015_v22 = vld [vmem:[#allocation3] sm:$0xff] }
 0x654   : > { %v2322_v63 = vpop.f32.mrf.mxu0  ;;  %v2363_v0 = vpop.f32.mrf.mxu1 }
 0x66e   : > { %v2595_v44 = vpop.f32.mrf.mxu0  ;;  %v2636_v24 = vpop.f32.mrf.mxu1 }
 0x66f   : > { %v2643_v11 = vadd.f32 %v2595_v44, %v2365_v7  ;;  %v2645_v25 = vadd.f32 %v2636_v24, %v2367_v26 }
 0x670   : > { %v2597_v20 = vpop.f32.mrf.mxu0  ;;  %v2638_v37 = vpop.f32.mrf.mxu1 }
 0x671   : > { %v8069_v45 = vmul.f32 -1.442695, %v2643_v11  ;;  %v2644_v61 = vadd.f32 %v2597_v20, %v2366_v9  ;;  %v2646_v54 = vadd.f32 %v2638_v37, %v2368_v58  ;;  %v8072_v9 = vld [vmem:[%s12500_s4] ss:$0 sm:$0xff] }
 0x672   : > { %v2599_v49 = vpop.f32.mrf.mxu0  ;;  %v2640_v27 = vpop.f32.mrf.mxu1 }
 0x673   : > { %9336 = vpow2.f32 %v8069_v45  ;;  %v8070_v40 = vmul.f32 -1.442695, %v2644_v61  ;;  %v8071_v13 = vmul.f32 -1.442695, %v2646_v54 }
 0x674   : > { %v2600_v38 = vpop.f32.mrf.mxu0  ;;  %v2641_v36 = vpop.f32.mrf.mxu1 }
 0x675   : > { %9338 = vpow2.f32 %v8070_v40 }
 0x676   : > { %9340 = vpow2.f32 %v8071_v13 }
 0x680   : > { %v9337_v12 = vpop.eup %9336 }
 0x681   : > { %v2650_v5 = vadd.f32 1.0, %v9337_v12 }
 0x682   : > { %v9339_v52 = vpop.eup %9338 }
 0x683   : > { %9342 = vrcp.f32 %v2650_v5  ;;  %v2656_v46 = vadd.f32 1.0, %v9339_v52  ;;  %v9341_v17 = vpop.eup %9340 }
 0x684   : > { %9344 = vtanh.f32 %v2645_v25  ;;  %v2663_v1 = vadd.f32 1.0, %v9341_v17 }
 0x685   : > { %9346 = vrcp.f32 %v2656_v46 }
 0x686   : > { %9348 = vrcp.f32 %v2663_v1 }
 0x690   : > { %v9343_v14 = vpop.eup %9342 }
 0x691   : > { %v9345_v59 = vpop.eup %9344 }
 0x692   : > { %v9347_v63 = vpop.eup %9346  ;;  %v2667_v0 = vmul.f32 %v9345_v59, %v9343_v14 }
 0x693   : > { %v2666_v32 = vmul.f32 %v9347_v63, %v1015_v22  ;;  %v9349_v34 = vpop.eup %9348 }
 0x695   : > { %v10701_v19 = vadd.f32 %v2667_v0, %v2666_v32 }
 0x697   : > { %9350 = vtanh.f32 %v10701_v19 }
 0x6a4   : > { %v9351_v7 = vpop.eup %9350 }
 0x6a5   : > { %v2670_v44 = vmul.f32 %v9351_v7, %v9349_v34 }
 0x6a7   : > { %v10704_v24 = vpack.c.bf16 %v2670_v44, %v2670_v44  ;;  %v9514_v44 = vld [vmem:[%s12501_s5] ss:$0 sm:$0xff] }
 0x6a9   : > { %2672 = vst [vmem:[%s9767_s23] sm:$0xf] %v10704_v24  ;;  %8667 = vmatmul.mubr.bf16.vlgmr.msra.gmra.mxu0 %v10704_v24  ;;  %8687 = vmatmul.mubr.bf16.vlgmr.msra.gmra.mxu1 %v10704_v24 }
 0x6aa   : > { %3960 = vmatprep.mubr.bf16.mxu0 %v12623_v31  ;;  %4001 = vmatprep.mubr.bf16.mxu1 %v12623_v31 }
 0x769   : > { %v2859_v11 = vpop.f32.mrf.mxu0  ;;  %v10715_v20 = vpop.f32.mrf.mxu1 }
 0x76a   : > { %v2860_v37 = vadd.f32 %v8072_v9, %v2859_v11 }
 0x76b   : > { %v8668_v45 = vpop.f32.mrf.mxu0  ;;  %v8688_v61 = vpop.f32.mrf.mxu1 }
 0x76c   : > { %v2866_v49 = vcombine.high %v2860_v37, %v2860_v37  ;;  %v2873_v27 = vrot.slane %v2860_v37, %v9904_v48 }
 0x76d   : > { %v2862_v40 = vpop.f32.mrf.mxu0  ;;  %v3704_v38 = vpop.f32.mrf.mxu1 }
 0x76e   : > { %v2880_v36 = vrot.slane %v2866_v49, %v9904_v48  ;;  %v2881_v23 = vcombine.high %v2873_v27, %v2873_v27  ;;  %v2889_v58 = vrot.slane %v2873_v27, %v9904_v48 }
 0x76f   : > { %v8669_v54 = vpop.f32.mrf.mxu0  ;;  %v8689_v21 = vpop.f32.mrf.mxu1 }
 0x770   : > { %v2903_v26 = vrot.slane %v2881_v23, %v9904_v48  ;;  %v2911_v13 = vcombine.high %v2889_v58, %v2889_v58  ;;  %v2918_v12 = vrot.slane %v2889_v58, %v9909_v55  ;;  %v2896_v25 = vrot.slane %v2880_v36, %v9904_v48 }
 0x771   : > { %v2882_v59 = vcombine.high %v2880_v36, %v2880_v36 }
 0x772   : > { %v2922_v5 = vrot.slane %v2903_v26, %v9909_v55  ;;  %v2926_v52 = vrot.slane %v2911_v13, %v9909_v55  ;;  %v2956_v46 = vadd.f32 %v9916_v62, %v2918_v12  ;;  %v2955_v17 = vadd.f32 %v9911_v57, %v2918_v12 }
 0x773   : > { %v2934_v34 = vrot.slane %v2896_v25, %v9909_v55  ;;  %v2913_v7 = vcombine.high %v2903_v26, %v2903_v26  ;;  %v2910_v40 = vrot.slane %v2882_v59, %v9904_v48  ;;  %v2912_v13 = vcombine.high %v2896_v25, %v2896_v25 }
 0x774   : > { %v2958_v14 = vadd.f32 %v9924_v6, %v2922_v5  ;;  %v2957_v22 = vadd.f32 %v9921_v4, %v2922_v5  ;;  %v2972_v63 = vmax.f32 %v2956_v46, 0.0  ;;  %v2971_v1 = vmax.f32 %v2955_v17, 0.0 }
 0x775   : > { %v2960_v0 = vadd.f32 %v9938_v15, %v2926_v52  ;;  %v2959_v32 = vadd.f32 %v9929_v10, %v2926_v52  ;;  %v2964_v49 = vadd.f32 %v9948_v28, %v2934_v34  ;;  %v2963_v27 = vadd.f32 %v9940_v16, %v2934_v34 }
 0x776   : > { %v2988_v9 = vmul.f32 %v9514_v44, %v2972_v63  ;;  %v2987_v11 = vmul.f32 %v9514_v44, %v2971_v1  ;;  %v2974_v37 = vmax.f32 %v2958_v14, 0.0  ;;  %v2973_v45 = vmax.f32 %v2957_v22, 0.0 }
 0x777   : > { %v2976_v61 = vmax.f32 %v2960_v0, 0.0  ;;  %v2975_v23 = vmax.f32 %v2959_v32, 0.0  ;;  %v2930_v58 = vrot.slane %v2913_v7, %v9909_v55  ;;  %v2980_v21 = vmax.f32 %v2964_v49, 0.0  ;;  %v12625_v32 = vld [vmem:[#allocation25_spill] sm:$0xff]  ;;  %v12626_v7 = vld [vmem:[#allocation24_spill] sm:$0xff] }
 0x778   : > { %3005 = vadd.xlane.f32.xlu0 %v2988_v9  ;;  %3003 = vadd.xlane.f32.xlu1 %v2987_v11  ;;  %v2990_v38 = vmul.f32 %v9514_v44, %v2974_v37  ;;  %v2989_v36 = vmul.f32 %v9514_v44, %v2973_v45  ;;  %v2979_v26 = vmax.f32 %v2963_v27, 0.0  ;;  %v2938_v46 = vrot.slane %v2910_v40, %v9909_v55 }
 0x779   : > { %v2992_v54 = vmul.f32 %v9514_v44, %v2976_v61  ;;  %v2991_v12 = vmul.f32 %v9514_v44, %v2975_v23  ;;  %v2962_v5 = vadd.f32 %v9959_v39, %v2930_v58  ;;  %v2961_v52 = vadd.f32 %v9950_v29, %v2930_v58  ;;  %v12627_v23 = vld [vmem:[#allocation27_spill] sm:$0xff] }
 0x77a   : > { %v2996_v17 = vmul.f32 %v9514_v44, %v2980_v21  ;;  %v2995_v14 = vmul.f32 %v9514_v44, %v2979_v26  ;;  %v2942_v22 = vrot.slane %v2912_v13, %v9909_v55  ;;  %v2914_v59 = vcombine.high %v2910_v40, %v2910_v40 }
 0x77b   : > { %v2978_v63 = vmax.f32 %v2962_v5, 0.0  ;;  %v2977_v1 = vmax.f32 %v2961_v52, 0.0  ;;  %v2966_v0 = vadd.f32 %v9969_v56, %v2938_v46  ;;  %v2965_v25 = vadd.f32 %v9961_v42, %v2938_v46 }
 0x77c   : > { %3009 = vadd.xlane.f32.xlu1 %v2990_v38  ;;  %3007 = vadd.xlane.f32.xlu0 %v2989_v36  ;;  %v2968_v34 = vadd.f32 %v12625_v32, %v2942_v22  ;;  %v2967_v9 = vadd.f32 %v12626_v7, %v2942_v22  ;;  %v2946_v11 = vrot.slane %v2914_v59, %v9909_v55 }
 0x77d   : > { %v2994_v37 = vmul.f32 %v9514_v44, %v2978_v63  ;;  %v2993_v45 = vmul.f32 %v9514_v44, %v2977_v1  ;;  %v2982_v61 = vmax.f32 %v2966_v0, 0.0  ;;  %v2981_v49 = vmax.f32 %v2965_v25, 0.0 }
 0x77e   : > { %v2984_v27 = vmax.f32 %v2968_v34, 0.0  ;;  %v2983_v40 = vmax.f32 %v2967_v9, 0.0  ;;  %v2970_v58 = vadd.f32 %v12627_v23, %v2946_v11  ;;  %v12629_v34 = vld [vmem:[#allocation28_spill] sm:$0xff] }
 0x77f   : > { %v2998_v38 = vmul.f32 %v9514_v44, %v2982_v61  ;;  %v2997_v36 = vmul.f32 %v9514_v44, %v2981_v49 }
 0x780   : > { %3013 = vadd.xlane.f32.xlu1 %v2992_v54  ;;  %3011 = vadd.xlane.f32.xlu0 %v2991_v12  ;;  %v12628_v54 = vld [vmem:[#allocation26_spill] sm:$0xff]  ;;  %v3000_v26 = vmul.f32 %v9514_v44, %v2984_v27  ;;  %v2999_v13 = vmul.f32 %v9514_v44, %v2983_v40  ;;  %v2986_v12 = vmax.f32 %v2970_v58, 0.0 }
 0x781   : > { %v2969_v21 = vadd.f32 %v12628_v54, %v2946_v11 }
 0x782   : > { %v3002_v52 = vmul.f32 %v9514_v44, %v2986_v12 }
 0x783   : > { %v2985_v5 = vmax.f32 %v2969_v21, 0.0 }
 0x784   : > { %3021 = vadd.xlane.f32.xlu1 %v2996_v17  ;;  %3019 = vadd.xlane.f32.xlu0 %v2995_v14 }
 0x785   : > { %v3001_v46 = vmul.f32 %v9514_v44, %v2985_v5 }
 0x788   : > { %3017 = vadd.xlane.f32.xlu1 %v2994_v37  ;;  %3015 = vadd.xlane.f32.xlu0 %v2993_v45 }
 0x78c   : > { %3025 = vadd.xlane.f32.xlu1 %v2998_v38  ;;  %3023 = vadd.xlane.f32.xlu0 %v2997_v36 }
 0x790   : > { %3029 = vadd.xlane.f32.xlu1 %v3000_v26  ;;  %3027 = vadd.xlane.f32.xlu0 %v2999_v13 }
 0x794   : > { %3033 = vadd.xlane.f32.xlu1 %v3002_v52  ;;  %3031 = vadd.xlane.f32.xlu0 %v3001_v46 }
 0x801   : > { %v3006_v17 = vpop.xlane.xlu0 %3005  ;;  %v3004_v14 = vpop.xlane.xlu1 %3003 }
 0x802   : > { %v10751_v9 = vadd.f32 %v3006_v17, %v12629_v34  ;;  %v10754_v11 = vadd.f32 %v3004_v14, %v12629_v34 }
 0x804   : > { %v3074_v36 = vrot.slane %v10751_v9, %v10005_v8  ;;  %v3070_v58 = vrot.slane %v10754_v11, %v10002_v3 }
 0x805   : > { %v3010_v22 = vpop.xlane.xlu1 %3009  ;;  %v3008_v59 = vpop.xlane.xlu0 %3007 }
 0x806   : > { %v10757_v37 = vadd.f32 %v3010_v22, %v12629_v34  ;;  %v10760_v44 = vadd.f32 %v3008_v59, %v12629_v34 }
 0x808   : > { %v3083_v21 = vrot.slane %v10757_v37, %v10005_v8  ;;  %v3079_v26 = vrot.slane %v10760_v44, %v10002_v3 }
 0x809   : > { %v3014_v63 = vpop.xlane.xlu1 %3013  ;;  %v3012_v1 = vpop.xlane.xlu0 %3011 }
 0x80a   : > { %v10763_v45 = vadd.f32 %v3014_v63, %v12629_v34  ;;  %v10766_v61 = vadd.f32 %v3012_v1, %v12629_v34  ;;  %v3084_v1 = vsel %vm1406_vm9, %v3083_v21, %v3079_v26 }
 0x80c   : > { %v3092_v13 = vrot.slane %v10763_v45, %v10005_v8  ;;  %v3088_v12 = vrot.slane %v10766_v61, %v10002_v3 }
 0x80d   : > { %v3022_v0 = vpop.xlane.xlu1 %3021  ;;  %v3020_v25 = vpop.xlane.xlu0 %3019 }
 0x80e   : > { %v10797_v59 = vadd.f32 %v3022_v0, %v12629_v34  ;;  %v10800_v63 = vadd.f32 %v3020_v25, %v12629_v34 }
 0x810   : > { %v3106_v21 = vrot.slane %v10800_v63, %v10002_v3 }
 0x811   : > { %v3018_v49 = vpop.xlane.xlu1 %3017  ;;  %v3016_v27 = vpop.xlane.xlu0 %3015 }
 0x812   : > { %v10769_v40 = vadd.f32 %v3018_v49, %v12629_v34  ;;  %v10772_v38 = vadd.f32 %v3016_v27, %v12629_v34  ;;  %v3075_v49 = vsel %vm1406_vm9, %v3074_v36, %v3070_v58  ;;  %v3093_v27 = vsel %vm1406_vm9, %v3092_v13, %v3088_v12 }
 0x813   : > { %v3139_v36 = vsel %vm1471_vm10, %v3084_v1, %v3075_v49  ;;  %v3110_v58 = vrot.slane %v10797_v59, %v10005_v8 }
 0x814   : > { %v3101_v5 = vrot.slane %v10769_v40, %v10005_v8  ;;  %v3097_v52 = vrot.slane %v10772_v38, %v10002_v3  ;;  %v3140_v26 = vsel %vm1473_vm11, %v3093_v27, %v3139_v36 }
 0x815   : > { %v3026_v46 = vpop.xlane.xlu1 %3025  ;;  %v3024_v17 = vpop.xlane.xlu0 %3023  ;;  %v3111_v27 = vsel %vm1406_vm9, %v3110_v58, %v3106_v21 }
 0x816   : > { %v10791_v14 = vadd.f32 %v3026_v46, %v12629_v34  ;;  %v10794_v22 = vadd.f32 %v3024_v17, %v12629_v34  ;;  %v3102_v23 = vsel %vm1406_vm9, %v3101_v5, %v3097_v52 }
 0x817   : > { %v3141_v52 = vsel %vm1475_vm12, %v3102_v23, %v3140_v26 }
 0x818   : > { %v3119_v17 = vrot.slane %v10791_v14, %v10005_v8  ;;  %v3115_v0 = vrot.slane %v10794_v22, %v10002_v3  ;;  %v3142_v23 = vsel %vm1477_vm13, %v3111_v27, %v3141_v52 }
 0x819   : > { %v3030_v32 = vpop.xlane.xlu1 %3029  ;;  %v3028_v46 = vpop.xlane.xlu0 %3027 }
 0x81a   : > { %v10811_v54 = vadd.f32 %v3030_v32, %v12629_v34  ;;  %v10814_v25 = vadd.f32 %v3028_v46, %v12629_v34  ;;  %v3120_v46 = vsel %vm1406_vm9, %v3119_v17, %v3115_v0 }
 0x81b   : > { %v3143_v26 = vsel %vm1479_vm14, %v3120_v46, %v3142_v23 }
 0x81c   : > { %v3128_v13 = vrot.slane %v10811_v54, %v10005_v8  ;;  %v3124_v32 = vrot.slane %v10814_v25, %v10002_v3 }
 0x81d   : > { %v3034_v12 = vpop.xlane.xlu1 %3033  ;;  %v3032_v5 = vpop.xlane.xlu0 %3031 }
 0x81e   : > { %v10828_v1 = vadd.f32 %v3034_v12, %v12629_v34  ;;  %v10831_v49 = vadd.f32 %v3032_v5, %v12629_v34  ;;  %v3129_v36 = vsel %vm1406_vm9, %v3128_v13, %v3124_v32 }
 0x81f   : > { %v3144_v5 = vsel %vm1481_vm15, %v3129_v36, %v3143_v26 }
 0x820   : > { %v3137_v56 = vrot.slane %v10828_v1, %v10005_v8  ;;  %v3133_v7 = vrot.slane %v10831_v49, %v10002_v3 }
 0x822   : > { %v3138_v12 = vsel %vm1406_vm9, %v3137_v56, %v3133_v7 }
 0x823   : > { %v3145_v17 = vsel %vm1483_vm0, %v3138_v12, %v3144_v5 }
 0x824   : > { %v3147_v0 = vsel %vm1486_vm1, %v3145_v17, -inf }
 0x825   : > { %3148 = vmax.xlane.f32.xlu0 %v3147_v0 }
 0x8ae   : > { %v3149_v58 = vpop.xlane.xlu0 %3148 }
 0x8af   : > { %v3154_v21 = vrot.slane %v3149_v58, %v9909_v55  ;;  %v3158_v13 = vrot.slane %v3149_v58, %v10109_v53  ;;  %v3162_v32 = vrot.slane %v3149_v58, %v10125_v33  ;;  %v3166_v7 = vrot.slane %v3149_v58, %v10106_v51 }
 0x8b0   : > { %v3170_v5 = vrot.slane %v3149_v58, %v10114_v60  ;;  %v3174_v0 = vrot.slane %v3149_v58, %v10120_v2 }
 0x8b1   : > { %v3191_v52 = vsub.f32 %v10754_v11, %v3154_v21  ;;  %v3192_v46 = vsub.f32 %v10751_v9, %v3154_v21  ;;  %v3193_v56 = vsub.f32 %v10760_v44, %v3158_v13  ;;  %v3195_v27 = vsub.f32 %v10766_v61, %v3162_v32 }
 0x8b2   : > { %v3194_v26 = vsub.f32 %v10757_v37, %v3158_v13  ;;  %v3197_v17 = vsub.f32 %v10772_v38, %v3166_v7  ;;  %v3196_v9 = vsub.f32 %v10763_v45, %v3162_v32  ;;  %v3199_v61 = vsub.f32 %v10800_v63, %v3170_v5 }
 0x8b3   : > { %v3207_v36 = vmul.f32 1.442695, %v3191_v52  ;;  %v3209_v23 = vmul.f32 1.442695, %v3192_v46  ;;  %v3211_v12 = vmul.f32 1.442695, %v3193_v56  ;;  %v3198_v37 = vsub.f32 %v10769_v40, %v3166_v7 }
 0x8b4   : > { %v3215_v11 = vmul.f32 1.442695, %v3195_v27  ;;  %v3213_v44 = vmul.f32 1.442695, %v3194_v26  ;;  %v3219_v21 = vmul.f32 1.442695, %v3197_v17  ;;  %v3178_v52 = vrot.slane %v3149_v58, %v10129_v35 }
 0x8b5   : > { %9352 = vpow2.f32 %v3207_v36  ;;  %v3217_v13 = vmul.f32 1.442695, %v3196_v9  ;;  %v3201_v38 = vsub.f32 %v10794_v22, %v3174_v0  ;;  %v3223_v46 = vmul.f32 1.442695, %v3199_v61 }
 0x8b6   : > { %9354 = vpow2.f32 %v3209_v23  ;;  %v3200_v45 = vsub.f32 %v10797_v59, %v3170_v5  ;;  %v3221_v32 = vmul.f32 1.442695, %v3198_v37  ;;  %v3182_v63 = vrot.slane %v3149_v58, %v10136_v47 }
 0x8b7   : > { %9356 = vpow2.f32 %v3211_v12  ;;  %v3203_v27 = vsub.f32 %v10814_v25, %v3178_v52  ;;  %v3227_v40 = vmul.f32 1.442695, %v3201_v38  ;;  %v3202_v22 = vsub.f32 %v10791_v14, %v3174_v0 }
 0x8b8   : > { %9358 = vpow2.f32 %v3215_v11  ;;  %v3225_v59 = vmul.f32 1.442695, %v3200_v45  ;;  %v3205_v23 = vsub.f32 %v10831_v49, %v3182_v63  ;;  %v3204_v25 = vsub.f32 %v10811_v54, %v3178_v52 }
 0x8b9   : > { %9360 = vpow2.f32 %v3213_v44  ;;  %v3231_v58 = vmul.f32 1.442695, %v3203_v27  ;;  %v3229_v12 = vmul.f32 1.442695, %v3202_v22  ;;  %v3206_v49 = vsub.f32 %v10828_v1, %v3182_v63 }
 0x8ba   : > { %9362 = vpow2.f32 %v3219_v21  ;;  %v3235_v14 = vmul.f32 1.442695, %v3205_v23  ;;  %v3233_v11 = vmul.f32 1.442695, %v3204_v25 }
 0x8bb   : > { %9364 = vpow2.f32 %v3217_v13  ;;  %v3237_v44 = vmul.f32 1.442695, %v3206_v49 }
 0x8bc   : > { %9366 = vpow2.f32 %v3223_v46 }
 0x8bd   : > { %9368 = vpow2.f32 %v3221_v32 }
 0x8be   : > { %9370 = vpow2.f32 %v3227_v40 }
 0x8bf   : > { %9372 = vpow2.f32 %v3225_v59 }
 0x8c0   : > { %9374 = vpow2.f32 %v3231_v58 }
 0x8c1   : > { %9376 = vpow2.f32 %v3229_v12 }
 0x8c2   : > { %v10864_v56 = vpop.eup %9352  ;;  %9378 = vpow2.f32 %v3235_v14 }
 0x8c3   : > { %v10868_v7 = vpop.eup %9354  ;;  %3256 = vperm.xlu1 %8849, %v10864_v56   ;;  %9380 = vpow2.f32 %v3233_v11 }
 0x8c4   : > { %3259 = vperm.xlu0 %8848, %v10868_v7   ;;  %v10873_v36 = vpop.eup %9356  ;;  %9382 = vpow2.f32 %v3237_v44 }
 0x8c5   : > { %v10876_v26 = vpop.eup %9358 }
 0x8c6   : > { %v10881_v5 = vpop.eup %9360 }
 0x8c7   : > { %3262 = vperm.xlu1 %8849, %v10873_v36   ;;  %v10883_v17 = vpop.eup %9362 }
 0x8c8   : > { %3268 = vperm.xlu0 %8848, %v10876_v26   ;;  %v10888_v9 = vpop.eup %9364 }
 0x8c9   : > { %v10890_v54 = vpop.eup %9366 }
 0x8ca   : > { %v10894_v0 = vpop.eup %9368 }
 0x8cb   : > { %3265 = vperm.xlu1 %8849, %v10881_v5   ;;  %v10896_v61 = vpop.eup %9370 }
 0x8cc   : > { %3274 = vperm.xlu0 %8848, %v10883_v17   ;;  %v10900_v1 = vpop.eup %9372 }
 0x8cd   : > { %v10902_v21 = vpop.eup %9374 }
 0x8ce   : > { %v10906_v37 = vpop.eup %9376 }
 0x8cf   : > { %3271 = vperm.xlu1 %8849, %v10888_v9   ;;  %v10908_v13 = vpop.eup %9378 }
 0x8d0   : > { %3280 = vperm.xlu0 %8848, %v10890_v54   ;;  %v10912_v52 = vpop.eup %9380 }
 0x8d1   : > { %v10915_v38 = vpop.eup %9382 }
 0x8d3   : > { %3277 = vperm.xlu1 %8849, %v10894_v0  }
 0x8d4   : > { %3286 = vperm.xlu0 %8848, %v10896_v61  }
 0x8d7   : > { %3283 = vperm.xlu1 %8849, %v10900_v1  }
 0x8d8   : > { %3292 = vperm.xlu0 %8848, %v10902_v21  }
 0x8db   : > { %3289 = vperm.xlu1 %8849, %v10906_v37  }
 0x8dc   : > { %3298 = vperm.xlu0 %8848, %v10908_v13  }
 0x8df   : > { %3295 = vperm.xlu1 %8849, %v10912_v52  }
 0x8e3   : > { %3301 = vperm.xlu1 %8849, %v10915_v38  }
 0x93e   : > { %v3257_v46 = vpop.permute.xlu1 %3256 }
 0x93f   : > { %v3260_v45 = vpop.permute.xlu0 %3259  ;;  %v3306_v34 = vrot.slane %v3257_v46, %v10002_v3 }
 0x940   : > { %v3310_v44 = vrot.slane %v3260_v45, %v10005_v8 }
 0x942   : > { %v3263_v32 = vpop.permute.xlu1 %3262  ;;  %v3311_v46 = vsel %vm1406_vm9, %v3310_v44, %v3306_v34 }
 0x943   : > { %v3269_v63 = vpop.permute.xlu0 %3268  ;;  %v3315_v39 = vrot.slane %v3263_v32, %v10002_v3 }
 0x944   : > { %v3324_v28 = vrot.slane %v3269_v63, %v10002_v3 }
 0x946   : > { %v3266_v27 = vpop.permute.xlu1 %3265 }
 0x947   : > { %v3275_v40 = vpop.permute.xlu0 %3274  ;;  %v3319_v12 = vrot.slane %v3266_v27, %v10005_v8 }
 0x948   : > { %v3333_v15 = vrot.slane %v3275_v40, %v10002_v3 }
 0x949   : > { %v3320_v27 = vsel %vm1406_vm9, %v3319_v12, %v3315_v39 }
 0x94a   : > { %v3272_v22 = vpop.permute.xlu1 %3271 }
 0x94b   : > { %v3281_v59 = vpop.permute.xlu0 %3280  ;;  %v3328_v14 = vrot.slane %v3272_v22, %v10005_v8 }
 0x94c   : > { %v3342_v16 = vrot.slane %v3281_v59, %v10002_v3 }
 0x94d   : > { %v3329_v45 = vsel %vm1406_vm9, %v3328_v14, %v3324_v28 }
 0x94e   : > { %v3278_v23 = vpop.permute.xlu1 %3277 }
 0x94f   : > { %v3287_v58 = vpop.permute.xlu0 %3286  ;;  %v3337_v42 = vrot.slane %v3278_v23, %v10005_v8 }
 0x950   : > { %v3351_v32 = vrot.slane %v3287_v58, %v10002_v3 }
 0x951   : > { %v3338_v23 = vsel %vm1406_vm9, %v3337_v42, %v3333_v15 }
 0x952   : > { %v3284_v25 = vpop.permute.xlu1 %3283 }
 0x953   : > { %v3293_v49 = vpop.permute.xlu0 %3292  ;;  %v3346_v29 = vrot.slane %v3284_v25, %v10005_v8  ;;  %v3375_v25 = vsel %vm1471_vm10, %v3320_v27, %v3311_v46 }
 0x954   : > { %v3360_v40 = vrot.slane %v3293_v49, %v10002_v3  ;;  %v3376_v59 = vsel %vm1473_vm11, %v3329_v45, %v3375_v25 }
 0x955   : > { %v3347_v39 = vsel %vm1406_vm9, %v3346_v29, %v3342_v16  ;;  %v3377_v14 = vsel %vm1475_vm12, %v3338_v23, %v3376_v59 }
 0x956   : > { %v3290_v11 = vpop.permute.xlu1 %3289  ;;  %v3378_v42 = vsel %vm1477_vm13, %v3347_v39, %v3377_v14 }
 0x957   : > { %v3355_v22 = vrot.slane %v3290_v11, %v10005_v8  ;;  %v3299_v12 = vpop.permute.xlu0 %3298 }
 0x958   : > { %v3369_v15 = vrot.slane %v3299_v12, %v10002_v3 }
 0x959   : > { %v3356_v28 = vsel %vm1406_vm9, %v3355_v22, %v3351_v32 }
 0x95a   : > { %v3296_v6 = vpop.permute.xlu1 %3295  ;;  %v3379_v49 = vsel %vm1479_vm14, %v3356_v28, %v3378_v42  ;;  %v8992_v42 = vld [vmem:[%s12505_s9 + $0xa4] ss:$16 sps:$4 sm:$0xff]  }
 0x95b   : > { %v3364_v63 = vrot.slane %v3296_v6, %v10005_v8 }
 0x95d   : > { %v3365_v58 = vsel %vm1406_vm9, %v3364_v63, %v3360_v40 }
 0x95e   : > { %v3302_v34 = vpop.permute.xlu1 %3301  ;;  %v3380_v29 = vsel %vm1481_vm15, %v3365_v58, %v3379_v49  ;;  %v8995_v49 = vld [vmem:[%s12505_s9 + $0xac] ss:$16 sps:$4 sm:$0xff]  }
 0x95f   : > { %v3373_v6 = vrot.slane %v3302_v34, %v10005_v8 }
 0x961   : > { %v3374_v16 = vsel %vm1406_vm9, %v3373_v6, %v3369_v15  ;;  %v8989_v15 = vld [vmem:[%s12505_s9 + $0xcc] ss:$16 sps:$4 sm:$0xff]   ;;  %v8987_v6 = vld [vmem:[%s12505_s9 + $0xc8] ss:$16 sps:$4 sm:$0xff]  }
 0x962   : > { %v3381_v11 = vsel %vm1483_vm0, %v3374_v16, %v3380_v29  ;;  %v8990_v16 = vld [vmem:[%s12505_s9 + $0xa0] ss:$16 sps:$4 sm:$0xff]   ;;  %v8993_v29 = vld [vmem:[%s12505_s9 + $0xa8] ss:$16 sps:$4 sm:$0xff]  }
 0x963   : > { %v3383_v44 = vsel %vm1486_vm1, %v3381_v11, 0.0  ;;  %v8998_v11 = vld [vmem:[%s12505_s9 + $0x84] ss:$16 sps:$4 sm:$0xff]  }
 0x964   : > { %3384 = vadd.xlane.f32.xlu0 %v3383_v44  ;;  %v9001_v44 = vld [vmem:[%s12505_s9 + $0x8c] ss:$16 sps:$4 sm:$0xff]  }
 0x9ed   : > { %v3385_v27 = vpop.xlane.xlu0 %3384 }
 0x9ee   : > { %9384 = vrcp.f32 %v3385_v27  ;;  %v8996_v27 = vld [vmem:[%s12505_s9 + $0x80] ss:$16 sps:$4 sm:$0xff]  }
 0x9fb   : > { %v9385_v22 = vpop.eup %9384 }
 0x9fc   : > { %v3407_v45 = vrot.slane %v9385_v22, %v10114_v60  ;;  %v3391_v46 = vrot.slane %v9385_v22, %v9909_v55  ;;  %v3419_v63 = vrot.slane %v9385_v22, %v10136_v47  ;;  %v3395_v39 = vrot.slane %v9385_v22, %v10109_v53 }
 0x9fe   : > { %v3436_v32 = vmul.f32 %v10890_v54, %v3407_v45  ;;  %v3428_v23 = vmul.f32 %v10864_v56, %v3391_v46  ;;  %v3442_v25 = vmul.f32 %v10908_v13, %v3419_v63  ;;  %v3429_v40 = vmul.f32 %v10868_v7, %v3391_v46  ;;  %v9007_v46 = vld [vmem:[%s12505_s9 + $0x6c] ss:$16 sps:$4 sm:$0xff]  }
 0x9ff   : > { %v3430_v12 = vmul.f32 %v10873_v36, %v3395_v39  ;;  %v3431_v59 = vmul.f32 %v10881_v5, %v3395_v39  ;;  %v3399_v54 = vrot.slane %v9385_v22, %v10125_v33  ;;  %v3403_v13 = vrot.slane %v9385_v22, %v10106_v51  ;;  %v9011_v39 = vld [vmem:[%s12505_s9 + $0x48] ss:$16 sps:$4 sm:$0xff]  }
 0xa00   : > { %3486 = vperm.xlu0 %8848, %v3436_v32   ;;  %3446 = vperm.xlu1 %8849, %v3428_v23   ;;  %v3437_v36 = vmul.f32 %v10900_v1, %v3407_v45  ;;  %v3411_v5 = vrot.slane %v9385_v22, %v10120_v2  ;;  %v3443_v1 = vmul.f32 %v10915_v38, %v3419_v63  ;;  %v8984_v38 = vld [vmem:[%s12505_s9 + $0xc0] ss:$16 sps:$4 sm:$0xff]   ;;  %v9004_v45 = vld [vmem:[%s12505_s9 + $0x64] ss:$16 sps:$4 sm:$0xff]   ;;  %v9005_v23 = vld [vmem:[%s12505_s9 + $0x68] ss:$16 sps:$4 sm:$0xff]  }
 0xa01   : > { %v3432_v56 = vmul.f32 %v10876_v26, %v3399_v54  ;;  %v3433_v28 = vmul.f32 %v10888_v9, %v3399_v54  ;;  %v3434_v7 = vmul.f32 %v10883_v17, %v3403_v13  ;;  %v3435_v14 = vmul.f32 %v10894_v0, %v3403_v13  ;;  %v8980_v0 = vld [vmem:[%s12505_s9 + $0xe4] ss:$16 sps:$4 sm:$0xff]   ;;  %v9002_v32 = vld [vmem:[%s12505_s9 + $0x60] ss:$16 sps:$4 sm:$0xff]   ;;  %v9025_v13 = vld [vmem:[%s12505_s9 + $0xc] ss:$16 sps:$4 sm:$0xff]  }
 0xa02   : > { %v3438_v34 = vmul.f32 %v10896_v61, %v3411_v5  ;;  %v3439_v26 = vmul.f32 %v10906_v37, %v3411_v5  ;;  %v3415_v9 = vrot.slane %v9385_v22, %v10129_v35  ;;  %v8983_v61 = vld [vmem:[%s12505_s9 + $0xec] ss:$16 sps:$4 sm:$0xff]   ;;  %v8978_v37 = vld [vmem:[%s12505_s9 + $0xe0] ss:$16 sps:$4 sm:$0xff]   ;;  %3928 = vmatprep.subr.bf16.mxu0 %v8980_v0  ;;  %v8999_v22 = vld [vmem:[%s12505_s9 + $0x88] ss:$16 sps:$4 sm:$0xff]  }
 0xa03   : > { %3969 = vmatprep.subr.bf16.mxu1 %v8983_v61  ;;  %3929 = vmatpush1.bf16.msra.mxu0 %v8978_v37  ;;  %v9010_v63 = vld [vmem:[%s12505_s9 + $0x44] ss:$16 sps:$4 sm:$0xff]   ;;  %v9014_v54 = vld [vmem:[%s12505_s9 + $0x20] ss:$16 sps:$4 sm:$0xff]   ;;  %v9031_v5 = vld [vmem:[%s12609_s19 + $0xec] ss:$16 sps:$4 sm:$0xff]  }
 0xa04   : > { %3516 = vperm.xlu0 %8848, %v3442_v25   ;;  %3451 = vperm.xlu1 %8849, %v3429_v40   ;;  %v3440_v58 = vmul.f32 %v10902_v21, %v3415_v9  ;;  %v3441_v17 = vmul.f32 %v10912_v52, %v3415_v9  ;;  %v8981_v21 = vld [vmem:[%s12505_s9 + $0xe8] ss:$16 sps:$4 sm:$0xff]   ;;  %v8986_v52 = vld [vmem:[%s12505_s9 + $0xc4] ss:$16 sps:$4 sm:$0xff]   ;;  %v9013_v25 = vld [vmem:[%s12505_s9 + $0x4c] ss:$16 sps:$4 sm:$0xff]  }
 0xa05   : > { %3970 = vmatpush1.bf16.msra.mxu1 %v8981_v21  ;;  %3930 = vmatprep.subr.bf16.mxu0 %v8986_v52  ;;  %v9008_v40 = vld [vmem:[%s12505_s9 + $0x40] ss:$16 sps:$4 sm:$0xff]  }
 0xa06   : > { %3971 = vmatprep.subr.bf16.mxu1 %v8989_v15 }
 0xa07   : > { %3931 = vmatpush1.bf16.msra.mxu0 %v8984_v38  ;;  %v12630_v38 = vld [vmem:[#allocation29_spill] sm:$0xff] }
 0xa08   : > { %3456 = vperm.xlu1 %8849, %v3430_v12   ;;  %3932 = vmatprep.subr.bf16.mxu0 %v8992_v42  ;;  %v9016_v12 = vld [vmem:[%s12505_s9 + $0x24] ss:$16 sps:$4 sm:$0xff]   ;;  %v12631_v42 = vld [vmem:[#allocation30_spill] sm:$0xff] }
 0xa09   : > { %3972 = vmatpush1.bf16.msra.mxu1 %v8987_v6 }
 0xa0a   : > { %3973 = vmatprep.subr.bf16.mxu1 %v8995_v49 }
 0xa0b   : > { %3933 = vmatpush1.bf16.msra.mxu0 %v8990_v16 }
 0xa0c   : > { %3461 = vperm.xlu1 %8849, %v3431_v59   ;;  %3934 = vmatprep.subr.bf16.mxu0 %v8998_v11  ;;  %v9019_v59 = vld [vmem:[%s12505_s9 + $0x2c] ss:$16 sps:$4 sm:$0xff]  }
 0xa0d   : > { %3974 = vmatpush1.bf16.msra.mxu1 %v8993_v29  ;;  %v12632_v29 = vld [vmem:[#allocation31_spill] sm:$0xff] }
 0xa0e   : > { %3975 = vmatprep.subr.bf16.mxu1 %v9001_v44  ;;  %v12633_v44 = vld [vmem:[#allocation32_spill] sm:$0xff] }
 0xa0f   : > { %3935 = vmatpush1.bf16.msra.mxu0 %v8996_v27 }
 0xa10   : > { %3466 = vperm.xlu1 %8849, %v3432_v56   ;;  %3936 = vmatprep.subr.bf16.mxu0 %v9004_v45  ;;  %v9017_v56 = vld [vmem:[%s12505_s9 + $0x28] ss:$16 sps:$4 sm:$0xff]  }
 0xa11   : > { %3976 = vmatpush1.bf16.msra.mxu1 %v8999_v22  ;;  %v12634_v22 = vld [vmem:[#allocation33_spill] sm:$0xff] }
 0xa12   : > { %3977 = vmatprep.subr.bf16.mxu1 %v9007_v46 }
 0xa13   : > { %3937 = vmatpush1.bf16.msra.mxu0 %v9002_v32 }
 0xa14   : > { %3471 = vperm.xlu1 %8849, %v3433_v28   ;;  %3938 = vmatprep.subr.bf16.mxu0 %v9010_v63  ;;  %v9022_v28 = vld [vmem:[%s12505_s9 + $0x4] ss:$16 sps:$4 sm:$0xff]  }
 0xa15   : > { %3978 = vmatpush1.bf16.msra.mxu1 %v9005_v23  ;;  %v12635_v23 = vld [vmem:[#allocation34_spill] sm:$0xff] }
 0xa16   : > { %3979 = vmatprep.subr.bf16.mxu1 %v9013_v25  ;;  %v12636_v25 = vld [vmem:[#allocation35_spill] sm:$0xff] }
 0xa17   : > { %3939 = vmatpush1.bf16.msra.mxu0 %v9008_v40 }
 0xa18   : > { %3476 = vperm.xlu1 %8849, %v3434_v7   ;;  %3940 = vmatprep.subr.bf16.mxu0 %v9016_v12  ;;  %v9020_v7 = vld [vmem:[%s12505_s9] ss:$16 sps:$4 sm:$0xff]  }
 0xa19   : > { %3980 = vmatpush1.bf16.msra.mxu1 %v9011_v39  ;;  %v12637_v39 = vld [vmem:[#allocation37_spill] sm:$0xff] }
 0xa1a   : > { %3981 = vmatprep.subr.bf16.mxu1 %v9019_v59 }
 0xa1b   : > { %3941 = vmatpush1.bf16.msra.mxu0 %v9014_v54  ;;  %v12638_v54 = vld [vmem:[#allocation36_spill] sm:$0xff] }
 0xa1c   : > { %3481 = vperm.xlu1 %8849, %v3435_v14   ;;  %3942 = vmatprep.subr.bf16.mxu0 %v9022_v28  ;;  %v9023_v14 = vld [vmem:[%s12505_s9 + $0x8] ss:$16 sps:$4 sm:$0xff]  }
 0xa1d   : > { %3982 = vmatpush1.bf16.msra.mxu1 %v9017_v56 }
 0xa1e   : > { %3983 = vmatprep.subr.bf16.mxu1 %v9025_v13 }
 0xa1f   : > { %3943 = vmatpush1.bf16.msra.mxu0 %v9020_v7 }
 0xa20   : > { %3491 = vperm.xlu1 %8849, %v3437_v36   ;;  %v9028_v36 = vld [vmem:[%s12609_s19 + $0xe4] ss:$16 sps:$4 sm:$0xff]  }
 0xa21   : > { %3984 = vmatpush1.bf16.msra.mxu1 %v9023_v14  ;;  %4206 = vmatprep.subr.bf16.mxu0 %v9028_v36 }
 0xa22   : > { %4247 = vmatprep.subr.bf16.mxu1 %v9031_v5 }
 0xa24   : > { %3496 = vperm.xlu1 %8849, %v3438_v34  }
 0xa28   : > { %3501 = vperm.xlu1 %8849, %v3439_v26  }
 0xa2c   : > { %3506 = vperm.xlu1 %8849, %v3440_v58  }
 0xa30   : > { %3511 = vperm.xlu1 %8849, %v3441_v17   ;;  %v9515_v17 = vld [vmem:[%s12610_s18] ss:$0 sm:$0xff] }
 0xa31   : > { %v3702_v0 = vadd.f32 %v9515_v17, %v10715_v20 }
 0xa34   : > { %3521 = vperm.xlu1 %8849, %v3443_v1   ;;  %v8090_v1 = vmul.f32 -1.442695, %v3702_v0 }
 0xa36   : > { %9386 = vpow2.f32 %v8090_v1 }
 0xa43   : > { %v9387_v14 = vpop.eup %9386 }
 0xa44   : > { %v11094_v1 = vadd.f32 1.0, %v9387_v14 }
 0xa46   : > { %9388 = vrcp.f32 %v11094_v1 }
 0xa7b   : > { %v3447_v34 = vpop.permute.xlu1 %3446  ;;  %v3487_v46 = vpop.permute.xlu0 %3486 }
 0xa7c   : > { %v3524_v11 = vmul.f32 %v12632_v29, %v3447_v34  ;;  %v3532_v56 = vmul.f32 %v12638_v54, %v3487_v46 }
 0xa7f   : > { %v3452_v26 = vpop.permute.xlu1 %3451 }
 0xa80   : > { %v3525_v49 = vmul.f32 %v12631_v42, %v3452_v26 }
 0xa82   : > { %v3540_v32 = vadd.f32 %v3525_v49, %v3524_v11  ;;  %v4326_v11 = vrot.slane %v3452_v26, %v10005_v8 }
 0xa83   : > { %v3457_v9 = vpop.permute.xlu1 %3456 }
 0xa84   : > { %v3526_v6 = vmul.f32 %v12630_v38, %v3457_v9  ;;  %v3541_v36 = vrot.slane %v3540_v32, 4 }
 0xa87   : > { %v3462_v58 = vpop.permute.xlu1 %3461 }
 0xa88   : > { %v3527_v52 = vmul.f32 %v10408_v30, %v3462_v58  ;;  %v4335_v0 = vrot.slane %v3462_v58, %v10005_v8 }
 0xa8a   : > { %v3547_v16 = vadd.f32 %v3527_v52, %v3526_v6 }
 0xa8b   : > { %v3467_v61 = vpop.permute.xlu1 %3466 }
 0xa8c   : > { %v3528_v63 = vmul.f32 %v12635_v23, %v3467_v61  ;;  %v3548_v59 = vrot.slane %v3547_v16, 4 }
 0xa8e   : > { %v3549_v17 = vadd.f32 %v3548_v59, %v3547_v16  ;;  %v3517_v16 = vpop.permute.xlu0 %3516 }
 0xa8f   : > { %v3472_v37 = vpop.permute.xlu1 %3471 }
 0xa90   : > { %v3529_v27 = vmul.f32 %v12633_v44, %v3472_v37  ;;  %v3550_v59 = vrot.slane %v3549_v17, 2  ;;  %v4344_v14 = vrot.slane %v3472_v37, %v10005_v8 }
 0xa92   : > { %v3554_v28 = vadd.f32 %v3529_v27, %v3528_v63  ;;  %v12640_v27 = vld [vmem:[#allocation39_spill] sm:$0xff]  ;;  %v4358_v63 = vrot.slane %v3487_v46, %v10002_v3  ;;  %v3538_v46 = vmul.f32 %v10469_v41, %v3517_v16 }
 0xa93   : > { %v11080_v21 = vpop.permute.xlu1 %3476 }
 0xa94   : > { %v3530_v40 = vmul.f32 %v12636_v25, %v11080_v21  ;;  %v3555_v52 = vrot.slane %v3554_v28, 4  ;;  %v12639_v25 = vld [vmem:[#allocation38_spill] sm:$0xff]  ;;  %v4349_v37 = vrot.slane %v11080_v21, %v10002_v3 }
 0xa96   : > { %v3556_v26 = vadd.f32 %v3555_v52, %v3554_v28  ;;  %v3551_v28 = vadd.f32 %v3550_v59, %v3549_v17  ;;  %v4385_v59 = vrot.slane %v3517_v16, %v10002_v3 }
 0xa97   : > { %v3482_v15 = vpop.permute.xlu1 %3481 }
 0xa98   : > { %v3531_v20 = vmul.f32 %v12634_v22, %v3482_v15  ;;  %v3552_v16 = vrot.slane %v3551_v28, 1 }
 0xa9a   : > { %v3561_v13 = vadd.f32 %v3531_v20, %v3530_v40  ;;  %v4322_v40 = vrot.slane %v3447_v34, %v10002_v3 }
 0xa9b   : > { %v3492_v45 = vpop.permute.xlu1 %3491 }
 0xa9c   : > { %v3533_v12 = vmul.f32 %v12637_v39, %v3492_v45  ;;  %v3562_v6 = vrot.slane %v3561_v13, 4  ;;  %v4331_v39 = vrot.slane %v3457_v9, %v10002_v3  ;;  %v4353_v9 = vrot.slane %v3482_v15, %v10005_v8 }
 0xa9d   : > { %v4327_v34 = vsel %vm1406_vm9, %v4326_v11, %v4322_v40 }
 0xa9e   : > { %v3568_v5 = vadd.f32 %v3533_v12, %v3532_v56  ;;  %v3542_v12 = vadd.f32 %v3541_v36, %v3540_v32  ;;  %v4336_v56 = vsel %vm1406_vm9, %v4335_v0, %v4331_v39  ;;  %v3563_v22 = vadd.f32 %v3562_v6, %v3561_v13 }
 0xa9f   : > { %v3497_v7 = vpop.permute.xlu1 %3496  ;;  %v4340_v32 = vrot.slane %v3467_v61, %v10002_v3  ;;  %v4391_v39 = vsel %vm1471_vm10, %v4336_v56, %v4327_v34  ;;  %v3557_v0 = vrot.slane %v3556_v26, 2  ;;  %v4354_v6 = vsel %vm1406_vm9, %v4353_v9, %v4349_v37  ;;  %v12641_v56 = vld [vmem:[#allocation40_spill] sm:$0xff] }
 0xaa0   : > { %v3534_v54 = vmul.f32 %v12639_v25, %v3497_v7  ;;  %v3569_v58 = vrot.slane %v3568_v5, 4  ;;  %v4362_v25 = vrot.slane %v3492_v45, %v10005_v8  ;;  %v3543_v44 = vrot.slane %v3542_v12, 2 }
 0xaa1   : > { %v4345_v15 = vsel %vm1406_vm9, %v4344_v14, %v4340_v32  ;;  %v3564_v52 = vrot.slane %v3563_v22, 2  ;;  %v3558_v9 = vadd.f32 %v3557_v0, %v3556_v26 }
 0xaa2   : > { %v4363_v61 = vsel %vm1406_vm9, %v4362_v25, %v4358_v63  ;;  %v4392_v17 = vsel %vm1473_vm11, %v4345_v15, %v4391_v39 }
 0xaa3   : > { %v3502_v49 = vpop.permute.xlu1 %3501  ;;  %v4393_v14 = vsel %vm1475_vm12, %v4354_v6, %v4392_v17  ;;  %v3565_v37 = vadd.f32 %v3564_v52, %v3563_v22  ;;  %v3559_v22 = vrot.slane %v3558_v9, 1 }
 0xaa4   : > { %v3535_v20 = vmul.f32 %v12640_v27, %v3502_v49  ;;  %v4371_v45 = vrot.slane %v3502_v49, %v10005_v8  ;;  %v4394_v34 = vsel %vm1477_vm13, %v4363_v61, %v4393_v14 }
 0xaa5   : > { %v3566_v61 = vrot.slane %v3565_v37, 1 }
 0xaa6   : > { %v3575_v23 = vadd.f32 %v3535_v20, %v3534_v54  ;;  %v3570_v54 = vadd.f32 %v3569_v58, %v3568_v5  ;;  %v4367_v20 = vrot.slane %v3497_v7, %v10002_v3  ;;  %v3544_v7 = vadd.f32 %v3543_v44, %v3542_v12 }
 0xaa7   : > { %v3507_v27 = vpop.permute.xlu1 %3506 }
 0xaa8   : > { %v3576_v36 = vrot.slane %v3575_v23, 4  ;;  %v3536_v40 = vmul.f32 %v10473_v18, %v3507_v27  ;;  %v4376_v49 = vrot.slane %v3507_v27, %v10002_v3  ;;  %v4372_v25 = vsel %vm1406_vm9, %v4371_v45, %v4367_v20 }
 0xaa9   : > { %v4395_v45 = vsel %vm1479_vm14, %v4372_v25, %v4394_v34  ;;  %v3545_v52 = vrot.slane %v3544_v7, 1 }
 0xaaa   : > { %v3577_v13 = vadd.f32 %v3576_v36, %v3575_v23  ;;  %v3571_v23 = vrot.slane %v3570_v54, 2 }
 0xaab   : > { %v3512_v11 = vpop.permute.xlu1 %3511 }
 0xaac   : > { %v3537_v21 = vmul.f32 %v12641_v56, %v3512_v11  ;;  %v4380_v5 = vrot.slane %v3512_v11, %v10005_v8  ;;  %v3578_v58 = vrot.slane %v3577_v13, 2  ;;  %v3572_v11 = vadd.f32 %v3571_v23, %v3570_v54 }
 0xaae   : > { %v3582_v63 = vadd.f32 %v3537_v21, %v3536_v40  ;;  %v4381_v32 = vsel %vm1406_vm9, %v4380_v5, %v4376_v49  ;;  %v3579_v6 = vadd.f32 %v3578_v58, %v3577_v13  ;;  %v3573_v54 = vrot.slane %v3572_v11, 1 }
 0xaaf   : > { %v3522_v36 = vpop.permute.xlu1 %3521  ;;  %v4396_v44 = vsel %vm1481_vm15, %v4381_v32, %v4395_v45  ;;  %v3553_v13 = vadd.f32 %v3552_v16, %v3551_v28  ;;  %v3560_v58 = vadd.f32 %v3559_v22, %v3558_v9  ;;  %v3567_v49 = vadd.f32 %v3566_v61, %v3565_v37  ;;  %v9389_v37 = vpop.eup %9388  ;;  %v9029_v45 = vld [vmem:[%s12609_s19 + $0xe8] ss:$16 sps:$4 sm:$0xff]   ;;  %v9038_v61 = vld [vmem:[%s12609_s19 + $0xa0] ss:$16 sps:$4 sm:$0xff]  }
 0xab0   : > { %v3583_v39 = vrot.slane %v3582_v63, 4  ;;  %v3539_v15 = vmul.f32 %v10477_v50, %v3522_v36  ;;  %v4389_v27 = vrot.slane %v3522_v36, %v10005_v8  ;;  %v3580_v5 = vrot.slane %v3579_v6, 1  ;;  %v9035_v22 = vld [vmem:[%s12609_s19 + $0xc8] ss:$16 sps:$4 sm:$0xff]  }
 0xab1   : > { %v3574_v1 = vadd.f32 %v3573_v54, %v3572_v11  ;;  %v9049_v54 = vld [vmem:[%s12609_s19 + $0x8c] ss:$16 sps:$4 sm:$0xff]  }
 0xab2   : > { %v3584_v20 = vadd.f32 %v3583_v39, %v3582_v63  ;;  %v3589_v12 = vadd.f32 %v3539_v15, %v3538_v46  ;;  %v4390_v26 = vsel %vm1406_vm9, %v4389_v27, %v4385_v59  ;;  %v3546_v46 = vadd.f32 %v3545_v52, %v3544_v7  ;;  %v9043_v52 = vld [vmem:[%s12609_s19 + $0xac] ss:$16 sps:$4 sm:$0xff]  }
 0xab3   : > { %v4397_v0 = vsel %vm1483_vm0, %v4390_v26, %v4396_v44  ;;  %v3581_v63 = vadd.f32 %v3580_v5, %v3579_v6  ;;  %v9026_v6 = vld [vmem:[%s12609_s19 + $0xe0] ss:$16 sps:$4 sm:$0xff]   ;;  %v9034_v44 = vld [vmem:[%s12609_s19 + $0xc4] ss:$16 sps:$4 sm:$0xff]   ;;  %v9047_v5 = vld [vmem:[%s12609_s19 + $0x88] ss:$16 sps:$4 sm:$0xff]  }
 0xab4   : > { %v3585_v40 = vrot.slane %v3584_v20, 2  ;;  %v3590_v21 = vrot.slane %v3589_v12, 4  ;;  %8163 = vst.msk [vmem:[%s9769_s27 + $0x8] sm:$0xff] %vm1486_vm1, %v4397_v0  ;;  %v3721_v25 = vsel %vm1471_vm10, %v3553_v13, %v3546_v46  ;;  %v9032_v26 = vld [vmem:[%s12609_s19 + $0xc0] ss:$16 sps:$4 sm:$0xff]  }
 0xab5   : > { %v3722_v32 = vsel %vm1473_vm11, %v3560_v58, %v3721_v25  ;;  %v9040_v0 = vld [vmem:[%s12609_s19 + $0xa4] ss:$16 sps:$4 sm:$0xff]   ;;  %v9044_v13 = vld [vmem:[%s12609_s19 + $0x80] ss:$16 sps:$4 sm:$0xff]   ;;  %v9053_v46 = vld [vmem:[%s12609_s19 + $0x68] ss:$16 sps:$4 sm:$0xff]  }
 0xab6   : > { %v3586_v17 = vadd.f32 %v3585_v40, %v3584_v20  ;;  %v3591_v23 = vadd.f32 %v3590_v21, %v3589_v12  ;;  %v3723_v39 = vsel %vm1475_vm12, %v3567_v49, %v3722_v32  ;;  %v9037_v12 = vld [vmem:[%s12609_s19 + $0xcc] ss:$16 sps:$4 sm:$0xff]   ;;  %v9041_v40 = vld [vmem:[%s12609_s19 + $0xa8] ss:$16 sps:$4 sm:$0xff]   ;;  %v9046_v21 = vld [vmem:[%s12609_s19 + $0x84] ss:$16 sps:$4 sm:$0xff]  }
 0xab7   : > { %v3724_v28 = vsel %vm1477_vm13, %v3574_v1, %v3723_v39  ;;  %v9050_v58 = vld [vmem:[%s12609_s19 + $0x60] ss:$16 sps:$4 sm:$0xff]   ;;  %v9058_v49 = vld [vmem:[%s12609_s19 + $0x44] ss:$16 sps:$4 sm:$0xff]   ;;  %v9059_v1 = vld [vmem:[%s12609_s19 + $0x48] ss:$16 sps:$4 sm:$0xff]  }
 0xab8   : > { %v3587_v59 = vrot.slane %v3586_v17, 1  ;;  %v3592_v14 = vrot.slane %v3591_v23, 2  ;;  %v3725_v9 = vsel %vm1479_vm14, %v3581_v63, %v3724_v28  ;;  %v9064_v25 = vld [vmem:[%s12609_s19 + $0x24] ss:$16 sps:$4 sm:$0xff]   ;;  %v9067_v63 = vld [vmem:[%s12609_s19 + $0x2c] ss:$16 sps:$4 sm:$0xff]  }
 0xab9   : > { %v9065_v32 = vld [vmem:[%s12609_s19 + $0x28] ss:$16 sps:$4 sm:$0xff]   ;;  %v9073_v39 = vld [vmem:[%s12609_s19 + $0xc] ss:$16 sps:$4 sm:$0xff]  }
 0xaba   : > { %v3593_v34 = vadd.f32 %v3592_v14, %v3591_v23  ;;  %v3588_v36 = vadd.f32 %v3587_v59, %v3586_v17  ;;  %v9052_v17 = vld [vmem:[%s12609_s19 + $0x64] ss:$16 sps:$4 sm:$0xff]   ;;  %v9055_v23 = vld [vmem:[%s12609_s19 + $0x6c] ss:$16 sps:$4 sm:$0xff]   ;;  %v9056_v14 = vld [vmem:[%s12609_s19 + $0x40] ss:$16 sps:$4 sm:$0xff]  }
 0xabb   : > { %v9061_v59 = vld [vmem:[%s12609_s19 + $0x4c] ss:$16 sps:$4 sm:$0xff]   ;;  %v9071_v28 = vld [vmem:[%s12609_s19 + $0x8] ss:$16 sps:$4 sm:$0xff]  }
 0xabc   : > { %v3594_v15 = vrot.slane %v3593_v34, 1  ;;  %v3726_v7 = vsel %vm1481_vm15, %v3588_v36, %v3725_v9  ;;  %v9070_v36 = vld [vmem:[%s12609_s19 + $0x4] ss:$16 sps:$4 sm:$0xff]   ;;  %v9075_v9 = vld [vmem:[%s12503_s7 + $0x38] sm:$0xff]  }
 0xabe   : > { %v3595_v27 = vadd.f32 %v3594_v15, %v3593_v34  ;;  %v9062_v34 = vld [vmem:[%s12609_s19 + $0x20] ss:$16 sps:$4 sm:$0xff]  }
 0xabf   : > { %v9068_v15 = vld [vmem:[%s12609_s19] ss:$16 sps:$4 sm:$0xff]  }
 0xac0   : > { %v3727_v16 = vsel %vm1483_vm0, %v3595_v27, %v3726_v7  ;;  %v9074_v27 = vld [vmem:[%s12499_s3 + $0x38] sm:$0xff]   ;;  %v9077_v7 = vld [vmem:[%s12503_s7 + $0x30] sm:$0xff]  }
 0xac1   : > { %v3729_v11 = vmul.f32 %v9389_v37, %v3727_v16  ;;  %v9078_v37 = vld [vmem:[%s12499_s3 + $0x28] sm:$0xff]  }
 0xac2   : > { %v9079_v16 = vld [vmem:[%s12503_s7 + $0x28] sm:$0xff]  }
 0xac3   : > { %v3735_v20 = vpack.c.bf16 %v3729_v11, %v3729_v11  ;;  %v9080_v11 = vld [vmem:[%s12499_s3 + $0x20] sm:$0xff]  }
 0xac5   : > { %3961 = vmatmul.mubr.bf16.vlgmr.msra.gmra.mxu0 %v3735_v20  ;;  %4002 = vmatmul.mubr.bf16.vlgmr.msra.gmra.mxu1 %v3735_v20  ;;  %v9083_v20 = vld [vmem:[%s12503_s7 + $0x18] sm:$0xff]  }
 0xac6   : > { %4207 = vmatpush1.bf16.msra.mxu0 %v9026_v6  ;;  %4248 = vmatpush1.bf16.msra.mxu1 %v9029_v45  ;;  %v9081_v6 = vld [vmem:[%s12503_s7 + $0x20] sm:$0xff]   ;;  %v9082_v45 = vld [vmem:[%s12499_s3 + $0x18] sm:$0xff]  }
 0xac7   : > { %4208 = vmatprep.subr.bf16.mxu0 %v9034_v44  ;;  %4249 = vmatprep.subr.bf16.mxu1 %v9037_v12  ;;  %v9084_v44 = vld [vmem:[%s12499_s3 + $0x10] sm:$0xff]  }
 0xac8   : > { %4238 = vmatprep.mubr.bf16.mxu0 %v12623_v31  ;;  %4279 = vmatprep.mubr.bf16.mxu1 %v12623_v31  ;;  %v9085_v12 = vld [vmem:[%s12503_s7 + $0x10] sm:$0xff]  }
 0xaca   : > { %4209 = vmatpush1.bf16.msra.mxu0 %v9032_v26  ;;  %4250 = vmatpush1.bf16.msra.mxu1 %v9035_v22  ;;  %v9086_v26 = vld [vmem:[%s12499_s3 + $0x8] sm:$0xff]  }
 0xacb   : > { %4210 = vmatprep.subr.bf16.mxu0 %v9040_v0  ;;  %4251 = vmatprep.subr.bf16.mxu1 %v9043_v52  ;;  %v9087_v22 = vld [vmem:[%s12503_s7 + $0x8] sm:$0xff]   ;;  %v9088_v0 = vld [vmem:[%s12499_s3] sm:$0xff]  }
 0xacc   : > { %v9089_v52 = vld [vmem:[%s12503_s7] sm:$0xff]  }
 0xace   : > { %4211 = vmatpush1.bf16.msra.mxu0 %v9038_v61  ;;  %4252 = vmatpush1.bf16.msra.mxu1 %v9041_v40 }
 0xacf   : > { %4212 = vmatprep.subr.bf16.mxu0 %v9046_v21  ;;  %4253 = vmatprep.subr.bf16.mxu1 %v9049_v54 }
 0xad2   : > { %4213 = vmatpush1.bf16.msra.mxu0 %v9044_v13  ;;  %4254 = vmatpush1.bf16.msra.mxu1 %v9047_v5 }
 0xad3   : > { %4214 = vmatprep.subr.bf16.mxu0 %v9052_v17  ;;  %4255 = vmatprep.subr.bf16.mxu1 %v9055_v23 }
 0xad6   : > { %4215 = vmatpush1.bf16.msra.mxu0 %v9050_v58  ;;  %4256 = vmatpush1.bf16.msra.mxu1 %v9053_v46  ;;  %v8091_v58 = vld [vmem:[%s9765_s28 + $0x20] sm:$0xff]  ;;  %v8092_v46 = vld [vmem:[%s9765_s28 + $0x28] sm:$0xff] }
 0xad7   : > { %4216 = vmatprep.subr.bf16.mxu0 %v9058_v49  ;;  %4257 = vmatprep.subr.bf16.mxu1 %v9061_v59 }
 0xada   : > { %4217 = vmatpush1.bf16.msra.mxu0 %v9056_v14  ;;  %4258 = vmatpush1.bf16.msra.mxu1 %v9059_v1 }
 0xadb   : > { %4218 = vmatprep.subr.bf16.mxu0 %v9064_v25  ;;  %4259 = vmatprep.subr.bf16.mxu1 %v9067_v63 }
 0xade   : > { %4219 = vmatpush1.bf16.msra.mxu0 %v9062_v34  ;;  %4260 = vmatpush1.bf16.msra.mxu1 %v9065_v32 }
 0xadf   : > { %4220 = vmatprep.subr.bf16.mxu0 %v9070_v36  ;;  %4261 = vmatprep.subr.bf16.mxu1 %v9073_v39 }
 0xae2   : > { %4221 = vmatpush1.bf16.msra.mxu0 %v9068_v15  ;;  %4262 = vmatpush1.bf16.msra.mxu1 %v9071_v28 }
 0xae3   : > { %8690 = vmatprep.subr.bf16.mxu0 %v12624_v43  ;;  %8710 = vmatprep.subr.bf16.mxu1 %v12624_v43 }
 0xae5   : > { %4239 = vmatmul.mubr.bf16.vlgmr.msra.gmra.mxu0 %v10704_v24  ;;  %4280 = vmatmul.mubr.bf16.vlgmr.msra.gmra.mxu1 %v10704_v24  ;;  %v9076_v24 = vld [vmem:[%s12499_s3 + $0x30] sm:$0xff]  }
 0xae6   : > { %8706 = vmatprep.mubr.msk.bf16.mxu0 %vm9577_vm8, %v12624_v43  ;;  %8726 = vmatprep.mubr.msk.bf16.mxu1 %vm9577_vm8, %v12624_v43 }
 0xae7   : > { %8691 = vmatpush3.bf16.msra.mxu0 %v9074_v27  ;;  %8711 = vmatpush3.bf16.msra.mxu1 %v9075_v9 }
 0xae8   : > { %8692 = vmatprep.subr.bf16.mxu0 %v12624_v43  ;;  %8712 = vmatprep.subr.bf16.mxu1 %v12624_v43 }
 0xaeb   : > { %8693 = vmatpush3.bf16.msra.mxu0 %v9076_v24  ;;  %8713 = vmatpush3.bf16.msra.mxu1 %v9077_v7  ;;  %v8094_v24 = vld [vmem:[%s9765_s28 + $0x38] sm:$0xff] }
 0xaec   : > { %8694 = vmatprep.subr.bf16.mxu0 %v12624_v43  ;;  %8714 = vmatprep.subr.bf16.mxu1 %v12624_v43 }
 0xaef   : > { %8695 = vmatpush3.bf16.msra.mxu0 %v9078_v37  ;;  %8715 = vmatpush3.bf16.msra.mxu1 %v9079_v16  ;;  %v8093_v16 = vld [vmem:[%s9765_s28 + $0x30] sm:$0xff] }
 0xaf0   : > { %8696 = vmatprep.subr.bf16.mxu0 %v12624_v43  ;;  %8716 = vmatprep.subr.bf16.mxu1 %v12624_v43 }
 0xaf3   : > { %8697 = vmatpush3.bf16.msra.mxu0 %v9080_v11  ;;  %8717 = vmatpush3.bf16.msra.mxu1 %v9081_v6 }
 0xaf4   : > { %8698 = vmatprep.subr.bf16.mxu0 %v12624_v43  ;;  %8718 = vmatprep.subr.bf16.mxu1 %v12624_v43 }
 0xaf7   : > { %8699 = vmatpush3.bf16.msra.mxu0 %v9082_v45  ;;  %8719 = vmatpush3.bf16.msra.mxu1 %v9083_v20 }
 0xaf8   : > { %8700 = vmatprep.subr.bf16.mxu0 %v12624_v43  ;;  %8720 = vmatprep.subr.bf16.mxu1 %v12624_v43 }
 0xafb   : > { %8701 = vmatpush3.bf16.msra.mxu0 %v9084_v44  ;;  %8721 = vmatpush3.bf16.msra.mxu1 %v9085_v12 }
 0xafc   : > { %8702 = vmatprep.subr.bf16.mxu0 %v12624_v43  ;;  %8722 = vmatprep.subr.bf16.mxu1 %v12624_v43 }
 0xaff   : > { %8703 = vmatpush3.bf16.msra.mxu0 %v9086_v26  ;;  %8723 = vmatpush3.bf16.msra.mxu1 %v9087_v22 }
 0xb00   : > { %8704 = vmatprep.subr.bf16.mxu0 %v12624_v43  ;;  %8724 = vmatprep.subr.bf16.mxu1 %v12624_v43 }
 0xb03   : > { %8705 = vmatpush3.bf16.msra.mxu0 %v9088_v0  ;;  %8725 = vmatpush3.bf16.msra.mxu1 %v9089_v52 }
 0xb85   : > { %v3962_v61 = vpop.f32.mrf.mxu0  ;;  %v4003_v40 = vpop.f32.mrf.mxu1 }
 0xb86   : > { %v4010_v49 = vadd.f32 %v8091_v58, %v3962_v61  ;;  %v4012_v11 = vadd.f32 %v8093_v16, %v4003_v40 }
 0xb87   : > { %v3964_v21 = vpop.f32.mrf.mxu0  ;;  %v4005_v54 = vpop.f32.mrf.mxu1 }
 0xb88   : > { %v4011_v1 = vadd.f32 %v8092_v46, %v3964_v21  ;;  %v4013_v7 = vadd.f32 %v8094_v24, %v4005_v54 }
 0xb89   : > { %v3966_v13 = vpop.f32.mrf.mxu0  ;;  %v4007_v5 = vpop.f32.mrf.mxu1 }
 0xb8b   : > { %v3967_v17 = vpop.f32.mrf.mxu0  ;;  %v4008_v23 = vpop.f32.mrf.mxu1 }
 0xba5   : > { %v4240_v59 = vpop.f32.mrf.mxu0  ;;  %v4281_v14 = vpop.f32.mrf.mxu1 }
 0xba6   : > { %v4288_v25 = vadd.f32 %v4240_v59, %v4010_v49  ;;  %v4290_v20 = vadd.f32 %v4281_v14, %v4012_v11 }
 0xba7   : > { %v4242_v63 = vpop.f32.mrf.mxu0  ;;  %v4283_v34 = vpop.f32.mrf.mxu1 }
 0xba8   : > { %v8159_v32 = vmul.f32 -1.442695, %v4288_v25  ;;  %v4289_v36 = vadd.f32 %v4242_v63, %v4011_v1  ;;  %v4291_v37 = vadd.f32 %v4283_v34, %v4013_v7 }
 0xba9   : > { %v4244_v39 = vpop.f32.mrf.mxu0  ;;  %v4285_v15 = vpop.f32.mrf.mxu1 }
 0xbaa   : > { %9390 = vpow2.f32 %v8159_v32  ;;  %v8160_v28 = vmul.f32 -1.442695, %v4289_v36  ;;  %v8161_v6 = vmul.f32 -1.442695, %v4291_v37 }
 0xbab   : > { %v4245_v27 = vpop.f32.mrf.mxu0  ;;  %v4286_v9 = vpop.f32.mrf.mxu1 }
 0xbac   : > { %9392 = vpow2.f32 %v8160_v28 }
 0xbad   : > { %9394 = vpow2.f32 %v8161_v6 }
 0xbb7   : > { %v9391_v45 = vpop.eup %9390 }
 0xbb8   : > { %v4295_v44 = vadd.f32 1.0, %v9391_v45 }
 0xbb9   : > { %v9393_v12 = vpop.eup %9392 }
 0xbba   : > { %9396 = vrcp.f32 %v4295_v44  ;;  %v4301_v26 = vadd.f32 1.0, %v9393_v12  ;;  %v9395_v22 = vpop.eup %9394 }
 0xbbb   : > { %9398 = vtanh.f32 %v4290_v20  ;;  %v4308_v21 = vadd.f32 1.0, %v9395_v22 }
 0xbbc   : > { %9400 = vrcp.f32 %v4301_v26 }
 0xbbd   : > { %9402 = vrcp.f32 %v4308_v21 }
 0xbc7   : > { %v9397_v0 = vpop.eup %9396 }
 0xbc8   : > { %v9399_v52 = vpop.eup %9398 }
 0xbc9   : > { %v9401_v61 = vpop.eup %9400  ;;  %v4312_v54 = vmul.f32 %v9399_v52, %v9397_v0 }
 0xbca   : > { %v4311_v13 = vmul.f32 %v9401_v61, %v10701_v19  ;;  %v9403_v5 = vpop.eup %9402  ;;  %v8164_v19 = vld [vmem:[%s12500_s4] ss:$0 sm:$0xff] }
 0xbcc   : > { %v11310_v40 = vadd.f32 %v4312_v54, %v4311_v13  ;;  %v12642_v54 = vld [vmem:[#allocation15_spill] sm:$0xff] }
 0xbce   : > { %9404 = vtanh.f32 %v11310_v40 }
 0xbdb   : > { %v9405_v17 = vpop.eup %9404 }
 0xbdc   : > { %v4315_v23 = vmul.f32 %v9405_v17, %v9403_v5  ;;  %v9516_v17 = vld [vmem:[%s12501_s5] ss:$0 sm:$0xff] }
 0xbde   : > { %v11313_v58 = vpack.c.bf16 %v4315_v23, %v4315_v23 }
 0xbe0   : > { %8162 = vst [vmem:[%s9767_s23 + $0x4] sm:$0xf] %v11313_v58  ;;  %8707 = vmatmul.mubr.bf16.vlgmr.msra.gmra.mxu0 %v11313_v58  ;;  %8727 = vmatmul.mubr.bf16.vlgmr.msra.gmra.mxu1 %v11313_v58 }
 0xbe1   : > { %5607 = vmatprep.mubr.bf16.mxu0 %v12623_v31  ;;  %5648 = vmatprep.mubr.bf16.mxu1 %v12623_v31 }
 0xca0   : > { %v4506_v46 = vpop.f32.mrf.mxu0  ;;  %v11324_v49 = vpop.f32.mrf.mxu1 }
 0xca1   : > { %v4507_v59 = vadd.f32 %v8164_v19, %v4506_v46 }
 0xca2   : > { %v8708_v14 = vpop.f32.mrf.mxu0  ;;  %v8728_v1 = vpop.f32.mrf.mxu1 }
 0xca3   : > { %v4513_v25 = vcombine.high %v4507_v59, %v4507_v59  ;;  %v4520_v63 = vrot.slane %v4507_v59, %v9904_v48  ;;  %v12643_v59 = vld [vmem:[#allocation18_spill] sm:$0xff] }
 0xca4   : > { %v4509_v34 = vpop.f32.mrf.mxu0  ;;  %v5351_v32 = vpop.f32.mrf.mxu1 }
 0xca5   : > { %v4527_v36 = vrot.slane %v4513_v25, %v9904_v48  ;;  %v4528_v39 = vcombine.high %v4520_v63, %v4520_v63  ;;  %v4536_v15 = vrot.slane %v4520_v63, %v9904_v48  ;;  %v12644_v63 = vld [vmem:[#allocation17_spill] sm:$0xff]  ;;  %v12645_v32 = vld [vmem:[#allocation20_spill] sm:$0xff] }
 0xca6   : > { %v8709_v28 = vpop.f32.mrf.mxu0  ;;  %v8729_v27 = vpop.f32.mrf.mxu1 }
 0xca7   : > { %v4543_v9 = vrot.slane %v4527_v36, %v9904_v48  ;;  %v4550_v24 = vrot.slane %v4528_v39, %v9904_v48  ;;  %v4558_v7 = vcombine.high %v4536_v15, %v4536_v15  ;;  %v4565_v37 = vrot.slane %v4536_v15, %v9909_v55 }
 0xca8   : > { %v4529_v16 = vcombine.high %v4527_v36, %v4527_v36 }
 0xca9   : > { %v4560_v11 = vcombine.high %v4550_v24, %v4550_v24  ;;  %v4573_v6 = vrot.slane %v4558_v7, %v9909_v55  ;;  %v4603_v45 = vadd.f32 %v9916_v62, %v4565_v37  ;;  %v4602_v20 = vadd.f32 %v9911_v57, %v4565_v37 }
 0xcaa   : > { %v4569_v44 = vrot.slane %v4550_v24, %v9909_v55  ;;  %v4581_v12 = vrot.slane %v4543_v9, %v9909_v55  ;;  %v4557_v61 = vrot.slane %v4529_v16, %v9904_v48  ;;  %v4559_v1 = vcombine.high %v4543_v9, %v4543_v9  ;;  %v12646_v16 = vld [vmem:[#allocation19_spill] sm:$0xff] }
 0xcab   : > { %v4606_v26 = vadd.f32 %v9929_v10, %v4573_v6  ;;  %v4619_v22 = vmax.f32 %v4603_v45, 0.0  ;;  %v4618_v0 = vmax.f32 %v4602_v20, 0.0  ;;  %v4577_v5 = vrot.slane %v4560_v11, %v9909_v55  ;;  %v12647_v20 = vld [vmem:[#allocation22_spill] sm:$0xff] }
 0xcac   : > { %v4604_v52 = vadd.f32 %v9921_v4, %v4569_v44  ;;  %v4605_v13 = vadd.f32 %v12642_v54, %v4569_v44  ;;  %v4610_v14 = vadd.f32 %v12643_v59, %v4581_v12  ;;  %v4607_v34 = vadd.f32 %v12644_v63, %v4573_v6 }
 0xcad   : > { %v4622_v21 = vmax.f32 %v4606_v26, 0.0  ;;  %v4635_v23 = vmul.f32 %v9516_v17, %v4619_v22  ;;  %v4634_v19 = vmul.f32 %v9516_v17, %v4618_v0  ;;  %v4608_v36 = vadd.f32 %v12645_v32, %v4577_v5  ;;  %v12648_v0 = vld [vmem:[#allocation21_spill] sm:$0xff] }
 0xcae   : > { %v4620_v46 = vmax.f32 %v4604_v52, 0.0  ;;  %v4621_v25 = vmax.f32 %v4605_v13, 0.0  ;;  %v4626_v28 = vmax.f32 %v4610_v14, 0.0  ;;  %v4585_v27 = vrot.slane %v4557_v61, %v9909_v55  ;;  %v12650_v14 = vld [vmem:[#allocation23_spill] sm:$0xff] }
 0xcaf   : > { %4652 = vadd.xlane.f32.xlu1 %v4635_v23  ;;  %4650 = vadd.xlane.f32.xlu0 %v4634_v19  ;;  %v4638_v39 = vmul.f32 %v9516_v17, %v4622_v21  ;;  %v4623_v7 = vmax.f32 %v4607_v34, 0.0  ;;  %v4624_v37 = vmax.f32 %v4608_v36, 0.0  ;;  %v4611_v11 = vadd.f32 %v12646_v16, %v4581_v12  ;;  %v12649_v23 = vld [vmem:[#allocation24_spill] sm:$0xff]  ;;  %v12651_v36 = vld [vmem:[#allocation26_spill] sm:$0xff] }
 0xcb0   : > { %v4636_v15 = vmul.f32 %v9516_v17, %v4620_v46  ;;  %v4637_v24 = vmul.f32 %v9516_v17, %v4621_v25  ;;  %v4642_v45 = vmul.f32 %v9516_v17, %v4626_v28  ;;  %v4612_v9 = vadd.f32 %v12647_v20, %v4585_v27 }
 0xcb1   : > { %v4589_v44 = vrot.slane %v4559_v1, %v9909_v55  ;;  %v4561_v6 = vcombine.high %v4557_v61, %v4557_v61  ;;  %v4639_v26 = vmul.f32 %v9516_v17, %v4623_v7  ;;  %v4640_v22 = vmul.f32 %v9516_v17, %v4624_v37  ;;  %v12652_v7 = vld [vmem:[#allocation25_spill] sm:$0xff] }
 0xcb2   : > { %v4609_v52 = vadd.f32 %v12648_v0, %v4577_v5  ;;  %v4627_v21 = vmax.f32 %v4611_v11, 0.0  ;;  %v4628_v13 = vmax.f32 %v4612_v9, 0.0  ;;  %v4613_v25 = vadd.f32 %v12650_v14, %v4585_v27 }
 0xcb3   : > { %4658 = vadd.xlane.f32.xlu1 %v4638_v39  ;;  %4654 = vadd.xlane.f32.xlu0 %v4636_v15  ;;  %v4614_v19 = vadd.f32 %v12649_v23, %v4589_v44  ;;  %v4593_v46 = vrot.slane %v4561_v6, %v9909_v55  ;;  %v4615_v37 = vadd.f32 %v12652_v7, %v4589_v44  ;;  %v12653_v6 = vld [vmem:[#allocation27_spill] sm:$0xff] }
 0xcb4   : > { %v4625_v12 = vmax.f32 %v4609_v52, 0.0  ;;  %v4643_v34 = vmul.f32 %v9516_v17, %v4627_v21  ;;  %v4644_v1 = vmul.f32 %v9516_v17, %v4628_v13  ;;  %v4629_v15 = vmax.f32 %v4613_v25, 0.0 }
 0xcb5   : > { %v4630_v61 = vmax.f32 %v4614_v19, 0.0  ;;  %v4616_v39 = vadd.f32 %v12651_v36, %v4593_v46  ;;  %v4631_v9 = vmax.f32 %v4615_v37, 0.0  ;;  %v4617_v27 = vadd.f32 %v12653_v6, %v4593_v46 }
 0xcb6   : > { %v4641_v5 = vmul.f32 %v9516_v17, %v4625_v12  ;;  %v4645_v11 = vmul.f32 %v9516_v17, %v4629_v15  ;;  %v12654_v15 = vld [vmem:[#allocation28_spill] sm:$0xff] }
 0xcb7   : > { %4656 = vadd.xlane.f32.xlu0 %v4637_v24  ;;  %4666 = vadd.xlane.f32.xlu1 %v4642_v45  ;;  %v4646_v28 = vmul.f32 %v9516_v17, %v4630_v61  ;;  %v4632_v24 = vmax.f32 %v4616_v39, 0.0 }
 0xcb9   : > { %v4648_v45 = vmul.f32 %v9516_v17, %v4632_v24 }
 0xcbb   : > { %4660 = vadd.xlane.f32.xlu0 %v4639_v26  ;;  %4662 = vadd.xlane.f32.xlu1 %v4640_v22  ;;  %v4647_v26 = vmul.f32 %v9516_v17, %v4631_v9  ;;  %v4633_v22 = vmax.f32 %v4617_v27, 0.0 }
 0xcbd   : > { %v4649_v52 = vmul.f32 %v9516_v17, %v4633_v22 }
 0xcbf   : > { %4668 = vadd.xlane.f32.xlu0 %v4643_v34  ;;  %4670 = vadd.xlane.f32.xlu1 %v4644_v1 }
 0xcc3   : > { %4664 = vadd.xlane.f32.xlu0 %v4641_v5  ;;  %4674 = vadd.xlane.f32.xlu1 %v4646_v28 }
 0xcc7   : > { %4672 = vadd.xlane.f32.xlu0 %v4645_v11  ;;  %4678 = vadd.xlane.f32.xlu1 %v4648_v45 }
 0xccb   : > { %4676 = vadd.xlane.f32.xlu0 %v4647_v26 }
 0xccf   : > { %4680 = vadd.xlane.f32.xlu0 %v4649_v52 }
 0xd38   : > { %v4653_v21 = vpop.xlane.xlu1 %4652  ;;  %v4651_v13 = vpop.xlane.xlu0 %4650 }
 0xd39   : > { %v11363_v46 = vadd.f32 %v4653_v21, %v12654_v15  ;;  %v4682_v24 = vadd.f32 %v4651_v13, %v12654_v15 }
 0xd3b   : > { %v4721_v22 = vrot.slane %v11363_v46, %v10005_v8  ;;  %v4717_v13 = vrot.slane %v4682_v24, %v10002_v3 }
 0xd3c   : > { %v4659_v19 = vpop.xlane.xlu1 %4658  ;;  %v4655_v12 = vpop.xlane.xlu0 %4654 }
 0xd3d   : > { %v11370_v37 = vadd.f32 %v4655_v12, %v12654_v15  ;;  %v11376_v45 = vadd.f32 %v4659_v19, %v12654_v15 }
 0xd3f   : > { %v4726_v19 = vrot.slane %v11370_v37, %v10002_v3 }
 0xd40   : > { %v4657_v25 = vpop.xlane.xlu0 %4656  ;;  %v4667_v44 = vpop.xlane.xlu1 %4666 }
 0xd41   : > { %v11360_v5 = vadd.f32 %v4657_v25, %v12654_v15  ;;  %v11407_v23 = vadd.f32 %v4667_v44, %v12654_v15 }
 0xd43   : > { %v4730_v27 = vrot.slane %v11360_v5, %v10005_v8 }
 0xd44   : > { %v4661_v34 = vpop.xlane.xlu0 %4660  ;;  %v4663_v1 = vpop.xlane.xlu1 %4662 }
 0xd45   : > { %v11366_v28 = vadd.f32 %v4661_v34, %v12654_v15  ;;  %v11381_v26 = vadd.f32 %v4663_v1, %v12654_v15  ;;  %v4735_v34 = vrot.slane %v11376_v45, %v10002_v3 }
 0xd47   : > { %v4739_v52 = vrot.slane %v11366_v28, %v10005_v8  ;;  %v4744_v36 = vrot.slane %v11381_v26, %v10002_v3 }
 0xd48   : > { %v4669_v61 = vpop.xlane.xlu0 %4668  ;;  %v4671_v39 = vpop.xlane.xlu1 %4670 }
 0xd49   : > { %v11398_v1 = vadd.f32 %v4669_v61, %v12654_v15  ;;  %v11404_v6 = vadd.f32 %v4671_v39, %v12654_v15  ;;  %v4722_v61 = vsel %vm1406_vm9, %v4721_v22, %v4717_v13 }
 0xd4c   : > { %v4665_v17 = vpop.xlane.xlu0 %4664  ;;  %v4675_v9 = vpop.xlane.xlu1 %4674 }
 0xd4d   : > { %v11373_v11 = vadd.f32 %v4665_v17, %v12654_v15  ;;  %v4731_v17 = vsel %vm1406_vm9, %v4730_v27, %v4726_v19  ;;  %v11411_v7 = vadd.f32 %v4675_v9, %v12654_v15 }
 0xd4e   : > { %v4786_v44 = vsel %vm1471_vm10, %v4731_v17, %v4722_v61 }
 0xd4f   : > { %v4748_v12 = vrot.slane %v11373_v11, %v10005_v8 }
 0xd50   : > { %v4673_v21 = vpop.xlane.xlu0 %4672  ;;  %v4679_v20 = vpop.xlane.xlu1 %4678 }
 0xd51   : > { %v11393_v25 = vadd.f32 %v4673_v21, %v12654_v15  ;;  %v4740_v21 = vsel %vm1406_vm9, %v4739_v52, %v4735_v34  ;;  %v4749_v27 = vsel %vm1406_vm9, %v4748_v12, %v4744_v36  ;;  %v4757_v52 = vrot.slane %v11398_v1, %v10005_v8 }
 0xd52   : > { %v4787_v9 = vsel %vm1473_vm11, %v4740_v21, %v4786_v44  ;;  %v4762_v34 = vrot.slane %v11404_v6, %v10002_v3  ;;  %v11427_v22 = vadd.f32 %v4679_v20, %v12654_v15  ;;  %v4771_v12 = vrot.slane %v11411_v7, %v10002_v3 }
 0xd53   : > { %v4766_v19 = vrot.slane %v11393_v25, %v10005_v8  ;;  %v4788_v13 = vsel %vm1475_vm12, %v4749_v27, %v4787_v9 }
 0xd54   : > { %v4677_v14 = vpop.xlane.xlu0 %4676  ;;  %v4780_v32 = vrot.slane %v11427_v22, %v10002_v3 }
 0xd55   : > { %v11418_v39 = vadd.f32 %v4677_v14, %v12654_v15  ;;  %v4753_v14 = vrot.slane %v11407_v23, %v10002_v3  ;;  %v4767_v21 = vsel %vm1406_vm9, %v4766_v19, %v4762_v34 }
 0xd57   : > { %v4775_v36 = vrot.slane %v11418_v39, %v10005_v8  ;;  %v4758_v20 = vsel %vm1406_vm9, %v4757_v52, %v4753_v14 }
 0xd58   : > { %v4681_v17 = vpop.xlane.xlu0 %4680  ;;  %v4789_v27 = vsel %vm1477_vm13, %v4758_v20, %v4788_v13 }
 0xd59   : > { %v11438_v61 = vadd.f32 %v4681_v17, %v12654_v15  ;;  %v4776_v44 = vsel %vm1406_vm9, %v4775_v36, %v4771_v12  ;;  %v4790_v9 = vsel %vm1479_vm14, %v4767_v21, %v4789_v27 }
 0xd5a   : > { %v4791_v19 = vsel %vm1481_vm15, %v4776_v44, %v4790_v9 }
 0xd5b   : > { %v4784_v0 = vrot.slane %v11438_v61, %v10005_v8 }
 0xd5d   : > { %v4785_v59 = vsel %vm1406_vm9, %v4784_v0, %v4780_v32 }
 0xd5e   : > { %v4792_v34 = vsel %vm1483_vm0, %v4785_v59, %v4791_v19 }
 0xd5f   : > { %v4794_v52 = vsel %vm1486_vm1, %v4792_v34, -inf }
 0xd60   : > { %4795 = vmax.xlane.f32.xlu1 %v4794_v52 }
 0xde9   : > { %v4796_v36 = vpop.xlane.xlu1 %4795 }
 0xdea   : > { %v4801_v14 = vrot.slane %v4796_v36, %v9909_v55  ;;  %v4805_v12 = vrot.slane %v4796_v36, %v10109_v53  ;;  %v4809_v13 = vrot.slane %v4796_v36, %v10125_v33  ;;  %v4813_v59 = vrot.slane %v4796_v36, %v10106_v51 }
 0xdeb   : > { %v4821_v34 = vrot.slane %v4796_v36, %v10120_v2 }
 0xdec   : > { %v4838_v17 = vsub.f32 %v4682_v24, %v4801_v14  ;;  %v4839_v15 = vsub.f32 %v11363_v46, %v4801_v14  ;;  %v4841_v21 = vsub.f32 %v11360_v5, %v4805_v12  ;;  %v4840_v32 = vsub.f32 %v11370_v37, %v4805_v12 }
 0xded   : > { %v4843_v44 = vsub.f32 %v11366_v28, %v4809_v13  ;;  %v4842_v9 = vsub.f32 %v11376_v45, %v4809_v13  ;;  %v4817_v46 = vrot.slane %v4796_v36, %v10114_v60  ;;  %v4845_v19 = vsub.f32 %v11373_v11, %v4813_v59 }
 0xdee   : > { %v4854_v0 = vmul.f32 1.442695, %v4838_v17  ;;  %v4856_v20 = vmul.f32 1.442695, %v4839_v15  ;;  %v4860_v27 = vmul.f32 1.442695, %v4841_v21  ;;  %v4844_v37 = vsub.f32 %v11381_v26, %v4813_v59 }
 0xdef   : > { %v4858_v24 = vmul.f32 1.442695, %v4840_v32  ;;  %v4864_v5 = vmul.f32 1.442695, %v4843_v44  ;;  %v4862_v15 = vmul.f32 1.442695, %v4842_v9  ;;  %v4847_v28 = vsub.f32 %v11398_v1, %v4817_v46 }
 0xdf0   : > { %9406 = vpow2.f32 %v4854_v0  ;;  %v4868_v52 = vmul.f32 1.442695, %v4845_v19  ;;  %v4846_v45 = vsub.f32 %v11407_v23, %v4817_v46  ;;  %v4866_v14 = vmul.f32 1.442695, %v4844_v37 }
 0xdf1   : > { %9408 = vpow2.f32 %v4856_v20  ;;  %v4825_v12 = vrot.slane %v4796_v36, %v10129_v35  ;;  %v4849_v11 = vsub.f32 %v11393_v25, %v4821_v34  ;;  %v4872_v17 = vmul.f32 1.442695, %v4847_v28 }
 0xdf2   : > { %9410 = vpow2.f32 %v4860_v27  ;;  %v4848_v26 = vsub.f32 %v11404_v6, %v4821_v34  ;;  %v4870_v21 = vmul.f32 1.442695, %v4846_v45  ;;  %v4829_v23 = vrot.slane %v4796_v36, %v10136_v47 }
 0xdf3   : > { %9412 = vpow2.f32 %v4858_v24  ;;  %v4851_v1 = vsub.f32 %v11418_v39, %v4825_v12  ;;  %v4876_v25 = vmul.f32 1.442695, %v4849_v11  ;;  %v4850_v20 = vsub.f32 %v11411_v7, %v4825_v12 }
 0xdf4   : > { %9414 = vpow2.f32 %v4864_v5  ;;  %v4874_v6 = vmul.f32 1.442695, %v4848_v26  ;;  %v4853_v44 = vsub.f32 %v11438_v61, %v4829_v23  ;;  %v4852_v39 = vsub.f32 %v11427_v22, %v4829_v23 }
 0xdf5   : > { %9416 = vpow2.f32 %v4862_v15  ;;  %v4880_v36 = vmul.f32 1.442695, %v4851_v1  ;;  %v4878_v9 = vmul.f32 1.442695, %v4850_v20 }
 0xdf6   : > { %9418 = vpow2.f32 %v4868_v52  ;;  %v4884_v7 = vmul.f32 1.442695, %v4853_v44  ;;  %v4882_v61 = vmul.f32 1.442695, %v4852_v39 }
 0xdf7   : > { %9420 = vpow2.f32 %v4866_v14 }
 0xdf8   : > { %9422 = vpow2.f32 %v4872_v17 }
 0xdf9   : > { %9424 = vpow2.f32 %v4870_v21 }
 0xdfa   : > { %9426 = vpow2.f32 %v4876_v25 }
 0xdfb   : > { %9428 = vpow2.f32 %v4874_v6 }
 0xdfc   : > { %9430 = vpow2.f32 %v4880_v36 }
 0xdfd   : > { %v11469_v13 = vpop.eup %9406  ;;  %9432 = vpow2.f32 %v4878_v9 }
 0xdfe   : > { %v11472_v32 = vpop.eup %9408  ;;  %4903 = vperm.xlu0 %8848, %v11469_v13   ;;  %9434 = vpow2.f32 %v4884_v7 }
 0xdff   : > { %4906 = vperm.xlu1 %8849, %v11472_v32   ;;  %v11478_v0 = vpop.eup %9410  ;;  %9436 = vpow2.f32 %v4882_v61 }
 0xe00   : > { %v11481_v59 = vpop.eup %9412 }
 0xe01   : > { %v11486_v27 = vpop.eup %9414 }
 0xe02   : > { %4912 = vperm.xlu0 %8848, %v11478_v0   ;;  %v11489_v24 = vpop.eup %9416 }
 0xe03   : > { %4909 = vperm.xlu1 %8849, %v11481_v59   ;;  %v11493_v46 = vpop.eup %9418 }
 0xe04   : > { %v11495_v19 = vpop.eup %9420 }
 0xe05   : > { %v11499_v22 = vpop.eup %9422 }
 0xe06   : > { %4918 = vperm.xlu0 %8848, %v11486_v27   ;;  %v11501_v5 = vpop.eup %9424 }
 0xe07   : > { %4915 = vperm.xlu1 %8849, %v11489_v24   ;;  %v11505_v37 = vpop.eup %9426 }
 0xe08   : > { %v11507_v15 = vpop.eup %9428 }
 0xe09   : > { %v11511_v34 = vpop.eup %9430 }
 0xe0a   : > { %4924 = vperm.xlu0 %8848, %v11493_v46   ;;  %v11513_v28 = vpop.eup %9432 }
 0xe0b   : > { %4921 = vperm.xlu1 %8849, %v11495_v19   ;;  %v11517_v52 = vpop.eup %9434 }
 0xe0c   : > { %v9437_v45 = vpop.eup %9436 }
 0xe0e   : > { %4930 = vperm.xlu0 %8848, %v11499_v22  }
 0xe0f   : > { %4927 = vperm.xlu1 %8849, %v11501_v5  }
 0xe12   : > { %4936 = vperm.xlu0 %8848, %v11505_v37  }
 0xe13   : > { %4933 = vperm.xlu1 %8849, %v11507_v15  }
 0xe16   : > { %4942 = vperm.xlu0 %8848, %v11511_v34  }
 0xe17   : > { %4939 = vperm.xlu1 %8849, %v11513_v28  }
 0xe1a   : > { %4948 = vperm.xlu0 %8848, %v11517_v52  }
 0xe1b   : > { %4945 = vperm.xlu1 %8849, %v9437_v45  }
 0xe79   : > { %v4904_v14 = vpop.permute.xlu0 %4903 }
 0xe7a   : > { %v4907_v12 = vpop.permute.xlu1 %4906  ;;  %v4953_v16 = vrot.slane %v4904_v14, %v10002_v3 }
 0xe7b   : > { %v4957_v61 = vrot.slane %v4907_v12, %v10005_v8 }
 0xe7d   : > { %v4913_v11 = vpop.permute.xlu0 %4912 }
 0xe7e   : > { %v4910_v17 = vpop.permute.xlu1 %4909  ;;  %v4966_v44 = vrot.slane %v4913_v11, %v10005_v8 }
 0xe7f   : > { %v4962_v6 = vrot.slane %v4910_v17, %v10002_v3 }
 0xe81   : > { %v4919_v26 = vpop.permute.xlu0 %4918  ;;  %v4967_v11 = vsel %vm1406_vm9, %v4966_v44, %v4962_v6 }
 0xe82   : > { %v4916_v21 = vpop.permute.xlu1 %4915  ;;  %v4975_v9 = vrot.slane %v4919_v26, %v10005_v8 }
 0xe83   : > { %v4971_v39 = vrot.slane %v4916_v21, %v10002_v3 }
 0xe85   : > { %v4925_v23 = vpop.permute.xlu0 %4924  ;;  %v4976_v57 = vsel %vm1406_vm9, %v4975_v9, %v4971_v39 }
 0xe86   : > { %v4922_v1 = vpop.permute.xlu1 %4921  ;;  %v4984_v63 = vrot.slane %v4925_v23, %v10005_v8 }
 0xe87   : > { %v4980_v10 = vrot.slane %v4922_v1, %v10002_v3  ;;  %v4958_v1 = vsel %vm1406_vm9, %v4957_v61, %v4953_v16 }
 0xe89   : > { %v4931_v25 = vpop.permute.xlu0 %4930  ;;  %v4985_v23 = vsel %vm1406_vm9, %v4984_v63, %v4980_v10 }
 0xe8a   : > { %v4928_v20 = vpop.permute.xlu1 %4927  ;;  %v4993_v17 = vrot.slane %v4931_v25, %v10005_v8  ;;  %v5022_v25 = vsel %vm1471_vm10, %v4967_v11, %v4958_v1 }
 0xe8b   : > { %v4989_v4 = vrot.slane %v4928_v20, %v10002_v3  ;;  %v5023_v44 = vsel %vm1473_vm11, %v4976_v57, %v5022_v25 }
 0xe8c   : > { %v5024_v39 = vsel %vm1475_vm12, %v4985_v23, %v5023_v44 }
 0xe8d   : > { %v4937_v36 = vpop.permute.xlu0 %4936  ;;  %v4994_v6 = vsel %vm1406_vm9, %v4993_v17, %v4989_v4 }
 0xe8e   : > { %v4934_v7 = vpop.permute.xlu1 %4933  ;;  %v5002_v21 = vrot.slane %v4937_v36, %v10005_v8  ;;  %v5025_v10 = vsel %vm1477_vm13, %v4994_v6, %v5024_v39 }
 0xe8f   : > { %v4998_v54 = vrot.slane %v4934_v7, %v10002_v3 }
 0xe91   : > { %v4943_v26 = vpop.permute.xlu0 %4942  ;;  %v5003_v36 = vsel %vm1406_vm9, %v5002_v21, %v4998_v54 }
 0xe92   : > { %v4940_v12 = vpop.permute.xlu1 %4939  ;;  %v5011_v14 = vrot.slane %v4943_v26, %v10005_v8  ;;  %v5026_v61 = vsel %vm1479_vm14, %v5003_v36, %v5025_v10  ;;  %v9096_v10 = vld [vmem:[%s12505_s9 + $0xc0] ss:$16 sps:$4 sm:$0xff]  }
 0xe93   : > { %v5007_v20 = vrot.slane %v4940_v12, %v10002_v3 }
 0xe95   : > { %v4949_v7 = vpop.permute.xlu0 %4948  ;;  %v5012_v9 = vsel %vm1406_vm9, %v5011_v14, %v5007_v20 }
 0xe96   : > { %v4946_v26 = vpop.permute.xlu1 %4945  ;;  %v5020_v16 = vrot.slane %v4949_v7, %v10005_v8  ;;  %v5027_v57 = vsel %vm1481_vm15, %v5012_v9, %v5026_v61  ;;  %v9104_v61 = vld [vmem:[%s12505_s9 + $0xa4] ss:$16 sps:$4 sm:$0xff]  }
 0xe97   : > { %v5016_v63 = vrot.slane %v4946_v26, %v10002_v3 }
 0xe99   : > { %v5021_v4 = vsel %vm1406_vm9, %v5020_v16, %v5016_v63  ;;  %v9099_v63 = vld [vmem:[%s12505_s9 + $0xc8] ss:$16 sps:$4 sm:$0xff]  }
 0xe9a   : > { %v5028_v54 = vsel %vm1483_vm0, %v5021_v4, %v5027_v57  ;;  %v9107_v4 = vld [vmem:[%s12505_s9 + $0xac] ss:$16 sps:$4 sm:$0xff]   ;;  %v9102_v57 = vld [vmem:[%s12505_s9 + $0xa0] ss:$16 sps:$4 sm:$0xff]  }
 0xe9b   : > { %v5030_v17 = vsel %vm1486_vm1, %v5028_v54, 0.0  ;;  %v9105_v54 = vld [vmem:[%s12505_s9 + $0xa8] ss:$16 sps:$4 sm:$0xff]  }
 0xe9c   : > { %5031 = vadd.xlane.f32.xlu1 %v5030_v17  ;;  %v9110_v17 = vld [vmem:[%s12505_s9 + $0x84] ss:$16 sps:$4 sm:$0xff]  }
 0xf25   : > { %v5032_v11 = vpop.xlane.xlu1 %5031 }
 0xf26   : > { %9438 = vrcp.f32 %v5032_v11  ;;  %v9113_v11 = vld [vmem:[%s12505_s9 + $0x8c] ss:$16 sps:$4 sm:$0xff]  }
 0xf33   : > { %v9439_v21 = vpop.eup %9438 }
 0xf34   : > { %v5054_v12 = vrot.slane %v9439_v21, %v10114_v60  ;;  %v5038_v14 = vrot.slane %v9439_v21, %v9909_v55  ;;  %v5066_v20 = vrot.slane %v9439_v21, %v10136_v47  ;;  %v5042_v44 = vrot.slane %v9439_v21, %v10109_v53 }
 0xf36   : > { %v5084_v1 = vmul.f32 %v11499_v22, %v5054_v12  ;;  %v5075_v23 = vmul.f32 %v11469_v13, %v5038_v14  ;;  %v5089_v25 = vmul.f32 %v9437_v45, %v5066_v20  ;;  %v5076_v6 = vmul.f32 %v11472_v32, %v5038_v14  ;;  %v9116_v14 = vld [vmem:[%s12505_s9 + $0x64] ss:$16 sps:$4 sm:$0xff]  }
 0xf37   : > { %v5077_v36 = vmul.f32 %v11481_v59, %v5042_v44  ;;  %v5078_v7 = vmul.f32 %v11478_v0, %v5042_v44  ;;  %v5046_v22 = vrot.slane %v9439_v21, %v10125_v33  ;;  %v5050_v45 = vrot.slane %v9439_v21, %v10106_v51  ;;  %v9120_v44 = vld [vmem:[%s12505_s9 + $0x40] ss:$16 sps:$4 sm:$0xff]  }
 0xf38   : > { %5138 = vperm.xlu1 %8849, %v5084_v1   ;;  %5093 = vperm.xlu0 %8848, %v5075_v23   ;;  %v5083_v59 = vmul.f32 %v11501_v5, %v5054_v12  ;;  %v5058_v0 = vrot.slane %v9439_v21, %v10120_v2  ;;  %v9095_v5 = vld [vmem:[%s12505_s9 + $0xec] ss:$16 sps:$4 sm:$0xff]   ;;  %v9111_v12 = vld [vmem:[%s12505_s9 + $0x88] ss:$16 sps:$4 sm:$0xff]   ;;  %v9114_v1 = vld [vmem:[%s12505_s9 + $0x60] ss:$16 sps:$4 sm:$0xff]  }
 0xf39   : > { %v5079_v13 = vmul.f32 %v11489_v24, %v5046_v22  ;;  %v5080_v39 = vmul.f32 %v11486_v27, %v5046_v22  ;;  %v5081_v32 = vmul.f32 %v11495_v19, %v5050_v45  ;;  %v5082_v9 = vmul.f32 %v11493_v46, %v5050_v45  ;;  %v9092_v46 = vld [vmem:[%s12505_s9 + $0xe4] ss:$16 sps:$4 sm:$0xff]   ;;  %5616 = vmatprep.subr.bf16.mxu1 %v9095_v5  ;;  %v9117_v23 = vld [vmem:[%s12505_s9 + $0x68] ss:$16 sps:$4 sm:$0xff]   ;;  %v9131_v22 = vld [vmem:[%s12505_s9 + $0x2c] ss:$16 sps:$4 sm:$0xff]  }
 0xf3a   : > { %v5085_v26 = vmul.f32 %v11507_v15, %v5058_v0  ;;  %v5086_v24 = vmul.f32 %v11505_v37, %v5058_v0  ;;  %v5062_v27 = vrot.slane %v9439_v21, %v10129_v35  ;;  %v9090_v37 = vld [vmem:[%s12505_s9 + $0xe0] ss:$16 sps:$4 sm:$0xff]   ;;  %v9093_v15 = vld [vmem:[%s12505_s9 + $0xe8] ss:$16 sps:$4 sm:$0xff]   ;;  %5575 = vmatprep.subr.bf16.mxu0 %v9092_v46  ;;  %v9134_v45 = vld [vmem:[%s12505_s9 + $0x4] ss:$16 sps:$4 sm:$0xff]  }
 0xf3b   : > { %5576 = vmatpush1.bf16.msra.mxu0 %v9090_v37  ;;  %5617 = vmatpush1.bf16.msra.mxu1 %v9093_v15  ;;  %v9108_v21 = vld [vmem:[%s12505_s9 + $0x80] ss:$16 sps:$4 sm:$0xff]   ;;  %v9140_v0 = vld [vmem:[%s12609_s19 + $0xe4] ss:$16 sps:$4 sm:$0xff]  }
 0xf3c   : > { %5163 = vperm.xlu1 %8849, %v5089_v25   ;;  %5098 = vperm.xlu0 %8848, %v5076_v6   ;;  %v5087_v16 = vmul.f32 %v11513_v28, %v5062_v27  ;;  %v5088_v19 = vmul.f32 %v11511_v34, %v5062_v27  ;;  %v5090_v28 = vmul.f32 %v11517_v52, %v5066_v20  ;;  %v9098_v34 = vld [vmem:[%s12505_s9 + $0xc4] ss:$16 sps:$4 sm:$0xff]   ;;  %v9101_v52 = vld [vmem:[%s12505_s9 + $0xcc] ss:$16 sps:$4 sm:$0xff]   ;;  %v8173_v46 = vld [vmem:[%s12610_s18] ss:$0 sm:$0xff] }
 0xf3d   : > { %5577 = vmatprep.subr.bf16.mxu0 %v9098_v34  ;;  %5618 = vmatprep.subr.bf16.mxu1 %v9101_v52  ;;  %v9119_v20 = vld [vmem:[%s12505_s9 + $0x6c] ss:$16 sps:$4 sm:$0xff]   ;;  %v9122_v25 = vld [vmem:[%s12505_s9 + $0x44] ss:$16 sps:$4 sm:$0xff]   ;;  %v5349_v5 = vadd.f32 %v8173_v46, %v11324_v49 }
 0xf3e   : > { %v9125_v6 = vld [vmem:[%s12505_s9 + $0x4c] ss:$16 sps:$4 sm:$0xff]  }
 0xf3f   : > { %5578 = vmatpush1.bf16.msra.mxu0 %v9096_v10  ;;  %5619 = vmatpush1.bf16.msra.mxu1 %v9099_v63  ;;  %v8182_v15 = vmul.f32 -1.442695, %v5349_v5 }
 0xf40   : > { %5103 = vperm.xlu0 %8848, %v5077_v36   ;;  %5579 = vmatprep.subr.bf16.mxu0 %v9104_v61  ;;  %v9123_v36 = vld [vmem:[%s12505_s9 + $0x48] ss:$16 sps:$4 sm:$0xff]  }
 0xf41   : > { %5620 = vmatprep.subr.bf16.mxu1 %v9107_v4  ;;  %9440 = vpow2.f32 %v8182_v15 }
 0xf43   : > { %5580 = vmatpush1.bf16.msra.mxu0 %v9102_v57  ;;  %5621 = vmatpush1.bf16.msra.mxu1 %v9105_v54  ;;  %v12655_v54 = vld [vmem:[#allocation32_spill] sm:$0xff] }
 0xf44   : > { %5108 = vperm.xlu0 %8848, %v5078_v7   ;;  %5581 = vmatprep.subr.bf16.mxu0 %v9110_v17  ;;  %v9128_v7 = vld [vmem:[%s12505_s9 + $0x24] ss:$16 sps:$4 sm:$0xff]  }
 0xf45   : > { %5622 = vmatprep.subr.bf16.mxu1 %v9113_v11  ;;  %v12656_v11 = vld [vmem:[#allocation33_spill] sm:$0xff] }
 0xf47   : > { %5582 = vmatpush1.bf16.msra.mxu0 %v9108_v21  ;;  %5623 = vmatpush1.bf16.msra.mxu1 %v9111_v12 }
 0xf48   : > { %5113 = vperm.xlu0 %8848, %v5079_v13   ;;  %5583 = vmatprep.subr.bf16.mxu0 %v9116_v14  ;;  %v9126_v13 = vld [vmem:[%s12505_s9 + $0x20] ss:$16 sps:$4 sm:$0xff]  }
 0xf49   : > { %5624 = vmatprep.subr.bf16.mxu1 %v9119_v20  ;;  %v12658_v20 = vld [vmem:[#allocation35_spill] sm:$0xff] }
 0xf4b   : > { %5584 = vmatpush1.bf16.msra.mxu0 %v9114_v1  ;;  %5625 = vmatpush1.bf16.msra.mxu1 %v9117_v23  ;;  %v12657_v1 = vld [vmem:[#allocation34_spill] sm:$0xff] }
 0xf4c   : > { %5118 = vperm.xlu0 %8848, %v5080_v39   ;;  %5585 = vmatprep.subr.bf16.mxu0 %v9122_v25  ;;  %v9129_v39 = vld [vmem:[%s12505_s9 + $0x28] ss:$16 sps:$4 sm:$0xff]  }
 0xf4d   : > { %5626 = vmatprep.subr.bf16.mxu1 %v9125_v6  ;;  %v12659_v6 = vld [vmem:[#allocation36_spill] sm:$0xff] }
 0xf4f   : > { %5586 = vmatpush1.bf16.msra.mxu0 %v9120_v44  ;;  %5627 = vmatpush1.bf16.msra.mxu1 %v9123_v36 }
 0xf50   : > { %5123 = vperm.xlu0 %8848, %v5081_v32   ;;  %5587 = vmatprep.subr.bf16.mxu0 %v9128_v7  ;;  %v9137_v32 = vld [vmem:[%s12505_s9 + $0xc] ss:$16 sps:$4 sm:$0xff]   ;;  %v12660_v7 = vld [vmem:[#allocation37_spill] sm:$0xff] }
 0xf51   : > { %5628 = vmatprep.subr.bf16.mxu1 %v9131_v22 }
 0xf53   : > { %5588 = vmatpush1.bf16.msra.mxu0 %v9126_v13  ;;  %5629 = vmatpush1.bf16.msra.mxu1 %v9129_v39 }
 0xf54   : > { %5128 = vperm.xlu0 %8848, %v5082_v9   ;;  %v9132_v9 = vld [vmem:[%s12505_s9] ss:$16 sps:$4 sm:$0xff]   ;;  %5589 = vmatprep.subr.bf16.mxu0 %v9134_v45 }
 0xf55   : > { %5630 = vmatprep.subr.bf16.mxu1 %v9137_v32  ;;  %v9441_v32 = vpop.eup %9440 }
 0xf56   : > { %v11695_v46 = vadd.f32 1.0, %v9441_v32 }
 0xf57   : > { %5590 = vmatpush1.bf16.msra.mxu0 %v9132_v9 }
 0xf58   : > { %5133 = vperm.xlu0 %8848, %v5083_v59   ;;  %v9135_v59 = vld [vmem:[%s12505_s9 + $0x8] ss:$16 sps:$4 sm:$0xff]   ;;  %5853 = vmatprep.subr.bf16.mxu0 %v9140_v0  ;;  %9442 = vrcp.f32 %v11695_v46 }
 0xf59   : > { %5631 = vmatpush1.bf16.msra.mxu1 %v9135_v59 }
 0xf5c   : > { %5143 = vperm.xlu0 %8848, %v5085_v26   ;;  %v9143_v26 = vld [vmem:[%s12609_s19 + $0xec] ss:$16 sps:$4 sm:$0xff]  }
 0xf5d   : > { %5894 = vmatprep.subr.bf16.mxu1 %v9143_v26 }
 0xf60   : > { %5148 = vperm.xlu0 %8848, %v5086_v24  }
 0xf64   : > { %5153 = vperm.xlu0 %8848, %v5087_v16  }
 0xf68   : > { %5158 = vperm.xlu0 %8848, %v5088_v19  }
 0xf6c   : > { %5168 = vperm.xlu0 %8848, %v5090_v28  }
 0xfb3   : > { %v5094_v24 = vpop.permute.xlu0 %5093  ;;  %v5139_v12 = vpop.permute.xlu1 %5138 }
 0xfb4   : > { %v5171_v57 = vmul.f32 %v12632_v29, %v5094_v24  ;;  %v5180_v22 = vmul.f32 %v12660_v7, %v5139_v12 }
 0xfb7   : > { %v5099_v27 = vpop.permute.xlu0 %5098 }
 0xfb8   : > { %v5172_v61 = vmul.f32 %v12631_v42, %v5099_v27 }
 0xfba   : > { %v5187_v14 = vadd.f32 %v5172_v61, %v5171_v57  ;;  %v12661_v57 = vld [vmem:[#allocation38_spill] sm:$0xff] }
 0xfbb   : > { %v5104_v16 = vpop.permute.xlu0 %5103 }
 0xfbc   : > { %v5173_v52 = vmul.f32 %v12630_v38, %v5104_v16  ;;  %v5188_v9 = vrot.slane %v5187_v14, 4  ;;  %v5978_v61 = vrot.slane %v5104_v16, %v10002_v3 }
 0xfbf   : > { %v5109_v19 = vpop.permute.xlu0 %5108 }
 0xfc0   : > { %v5174_v10 = vmul.f32 %v10408_v30, %v5109_v19  ;;  %v5982_v26 = vrot.slane %v5109_v19, %v10005_v8 }
 0xfc2   : > { %v5194_v4 = vadd.f32 %v5174_v10, %v5173_v52  ;;  %v5973_v52 = vrot.slane %v5099_v27, %v10005_v8 }
 0xfc3   : > { %v5114_v37 = vpop.permute.xlu0 %5113 }
 0xfc4   : > { %v5175_v23 = vmul.f32 %v12657_v1, %v5114_v37  ;;  %v5195_v36 = vrot.slane %v5194_v4, 4 }
 0xfc6   : > { %v5196_v0 = vadd.f32 %v5195_v36, %v5194_v4  ;;  %v5164_v4 = vpop.permute.xlu1 %5163 }
 0xfc7   : > { %v5119_v28 = vpop.permute.xlu0 %5118 }
 0xfc8   : > { %v5176_v17 = vmul.f32 %v12655_v54, %v5119_v28  ;;  %v5197_v36 = vrot.slane %v5196_v0, 2  ;;  %v5991_v32 = vrot.slane %v5119_v28, %v10005_v8 }
 0xfca   : > { %v5201_v13 = vadd.f32 %v5176_v17, %v5175_v23  ;;  %v12662_v17 = vld [vmem:[#allocation39_spill] sm:$0xff]  ;;  %v6009_v23 = vrot.slane %v5139_v12, %v10005_v8  ;;  %v5185_v12 = vmul.f32 %v10469_v41, %v5164_v4 }
 0xfcb   : > { %v11681_v34 = vpop.permute.xlu0 %5123 }
 0xfcc   : > { %v5177_v25 = vmul.f32 %v12658_v20, %v11681_v34  ;;  %v5202_v5 = vrot.slane %v5201_v13, 4  ;;  %v5996_v28 = vrot.slane %v11681_v34, %v10002_v3 }
 0xfce   : > { %v5203_v27 = vadd.f32 %v5202_v5, %v5201_v13  ;;  %v5198_v13 = vadd.f32 %v5197_v36, %v5196_v0  ;;  %v6032_v36 = vrot.slane %v5164_v4, %v10002_v3 }
 0xfcf   : > { %v5129_v63 = vpop.permute.xlu0 %5128 }
 0xfd0   : > { %v5178_v49 = vmul.f32 %v12656_v11, %v5129_v63  ;;  %v6000_v16 = vrot.slane %v5129_v63, %v10005_v8  ;;  %v5204_v5 = vrot.slane %v5203_v27, 2  ;;  %v5199_v4 = vrot.slane %v5198_v13, 1 }
 0xfd2   : > { %v5208_v39 = vadd.f32 %v5178_v49, %v5177_v25  ;;  %v5969_v25 = vrot.slane %v5094_v24, %v10002_v3 }
 0xfd3   : > { %v5134_v21 = vpop.permute.xlu0 %5133 }
 0xfd4   : > { %v5179_v44 = vmul.f32 %v12659_v6, %v5134_v21  ;;  %v5209_v15 = vrot.slane %v5208_v39, 4  ;;  %v5974_v24 = vsel %vm1406_vm9, %v5973_v52, %v5969_v25  ;;  %v6001_v52 = vsel %vm1406_vm9, %v6000_v16, %v5996_v28 }
 0xfd6   : > { %v5215_v59 = vadd.f32 %v5180_v22, %v5179_v44  ;;  %v5189_v44 = vadd.f32 %v5188_v9, %v5187_v14  ;;  %v5983_v22 = vsel %vm1406_vm9, %v5982_v26, %v5978_v61  ;;  %v5210_v20 = vadd.f32 %v5209_v15, %v5208_v39 }
 0xfd7   : > { %v5144_v45 = vpop.permute.xlu0 %5143  ;;  %v5987_v14 = vrot.slane %v5114_v37, %v10002_v3  ;;  %v6038_v26 = vsel %vm1471_vm10, %v5983_v22, %v5974_v24 }
 0xfd8   : > { %v5181_v6 = vmul.f32 %v12661_v57, %v5144_v45  ;;  %v5216_v19 = vrot.slane %v5215_v59, 4  ;;  %v6005_v57 = vrot.slane %v5134_v21, %v10002_v3  ;;  %v5190_v1 = vrot.slane %v5189_v44, 2 }
 0xfd9   : > { %v5992_v63 = vsel %vm1406_vm9, %v5991_v32, %v5987_v14  ;;  %v5211_v15 = vrot.slane %v5210_v20, 2  ;;  %v5205_v32 = vadd.f32 %v5204_v5, %v5203_v27 }
 0xfda   : > { %v6010_v37 = vsel %vm1406_vm9, %v6009_v23, %v6005_v57  ;;  %v6039_v0 = vsel %vm1473_vm11, %v5992_v63, %v6038_v26 }
 0xfdb   : > { %v5149_v10 = vpop.permute.xlu0 %5148  ;;  %v6040_v22 = vsel %vm1475_vm12, %v6001_v52, %v6039_v0 }
 0xfdc   : > { %v5182_v49 = vmul.f32 %v12662_v17, %v5149_v10  ;;  %v6018_v21 = vrot.slane %v5149_v10, %v10005_v8  ;;  %v6041_v16 = vsel %vm1477_vm13, %v6010_v37, %v6040_v22 }
 0xfde   : > { %v5222_v7 = vadd.f32 %v5182_v49, %v5181_v6  ;;  %v5217_v6 = vadd.f32 %v5216_v19, %v5215_v59  ;;  %v6014_v49 = vrot.slane %v5144_v45, %v10002_v3  ;;  %v5191_v45 = vadd.f32 %v5190_v1, %v5189_v44 }
 0xfdf   : > { %v5154_v17 = vpop.permute.xlu0 %5153 }
 0xfe0   : > { %v5223_v9 = vrot.slane %v5222_v7, 4  ;;  %v5183_v25 = vmul.f32 %v10473_v18, %v5154_v17  ;;  %v6023_v10 = vrot.slane %v5154_v17, %v10002_v3  ;;  %v6019_v57 = vsel %vm1406_vm9, %v6018_v21, %v6014_v49 }
 0xfe1   : > { %v6042_v21 = vsel %vm1479_vm14, %v6019_v57, %v6041_v16 }
 0xfe2   : > { %v5224_v39 = vadd.f32 %v5223_v9, %v5222_v7  ;;  %v5218_v7 = vrot.slane %v5217_v6, 2  ;;  %v5212_v9 = vadd.f32 %v5211_v15, %v5210_v20  ;;  %v5206_v20 = vrot.slane %v5205_v32, 1 }
 0xfe3   : > { %v5159_v61 = vpop.permute.xlu0 %5158  ;;  %v5192_v15 = vrot.slane %v5191_v45, 1 }
 0xfe4   : > { %v5184_v34 = vmul.f32 %v12641_v56, %v5159_v61  ;;  %v6027_v59 = vrot.slane %v5159_v61, %v10005_v8  ;;  %v5225_v19 = vrot.slane %v5224_v39, 2  ;;  %v5219_v63 = vadd.f32 %v5218_v7, %v5217_v6 }
 0xfe5   : > { %v5213_v37 = vrot.slane %v5212_v9, 1  ;;  %v5207_v7 = vadd.f32 %v5206_v20, %v5205_v32  ;;  %v9152_v20 = vld [vmem:[%s12609_s19 + $0xa4] ss:$16 sps:$4 sm:$0xff]  }
 0xfe6   : > { %v5229_v23 = vadd.f32 %v5184_v34, %v5183_v25  ;;  %v6028_v24 = vsel %vm1406_vm9, %v6027_v59, %v6023_v10  ;;  %v5226_v52 = vadd.f32 %v5225_v19, %v5224_v39  ;;  %v5220_v6 = vrot.slane %v5219_v63, 1 }
 0xfe7   : > { %v5169_v14 = vpop.permute.xlu0 %5168  ;;  %v6043_v1 = vsel %vm1481_vm15, %v6028_v24, %v6042_v21  ;;  %v5200_v39 = vadd.f32 %v5199_v4, %v5198_v13  ;;  %v5214_v19 = vadd.f32 %v5213_v37, %v5212_v9  ;;  %v9443_v9 = vpop.eup %9442  ;;  %v9153_v37 = vld [vmem:[%s12609_s19 + $0xa8] ss:$16 sps:$4 sm:$0xff]  }
 0xfe8   : > { %v5230_v26 = vrot.slane %v5229_v23, 4  ;;  %v5186_v28 = vmul.f32 %v10477_v50, %v5169_v14  ;;  %v6036_v17 = vrot.slane %v5169_v14, %v10005_v8  ;;  %v5227_v34 = vrot.slane %v5226_v52, 1 }
 0xfe9   : > { %v5221_v46 = vadd.f32 %v5220_v6, %v5219_v63  ;;  %v9138_v63 = vld [vmem:[%s12609_s19 + $0xe0] ss:$16 sps:$4 sm:$0xff]  }
 0xfea   : > { %v5231_v61 = vadd.f32 %v5230_v26, %v5229_v23  ;;  %v5236_v44 = vadd.f32 %v5186_v28, %v5185_v12  ;;  %v6037_v27 = vsel %vm1406_vm9, %v6036_v17, %v6032_v36  ;;  %v5193_v12 = vadd.f32 %v5192_v15, %v5191_v45  ;;  %v9150_v15 = vld [vmem:[%s12609_s19 + $0xa0] ss:$16 sps:$4 sm:$0xff]  }
 0xfeb   : > { %v6044_v5 = vsel %vm1483_vm0, %v6037_v27, %v6043_v1  ;;  %v5228_v57 = vadd.f32 %v5227_v34, %v5226_v52  ;;  %v9141_v52 = vld [vmem:[%s12609_s19 + $0xe8] ss:$16 sps:$4 sm:$0xff]   ;;  %v9149_v1 = vld [vmem:[%s12609_s19 + $0xcc] ss:$16 sps:$4 sm:$0xff]   ;;  %v9156_v6 = vld [vmem:[%s12609_s19 + $0x80] ss:$16 sps:$4 sm:$0xff]  }
 0xfec   : > { %v5232_v49 = vrot.slane %v5231_v61, 2  ;;  %v5237_v25 = vrot.slane %v5236_v44, 4  ;;  %8255 = vst.msk [vmem:[%s9769_s27 + $0x10] sm:$0xff] %vm1486_vm1, %v6044_v5  ;;  %v5368_v22 = vsel %vm1471_vm10, %v5200_v39, %v5193_v12  ;;  %v9147_v27 = vld [vmem:[%s12609_s19 + $0xc8] ss:$16 sps:$4 sm:$0xff]  }
 0xfed   : > { %v5369_v16 = vsel %vm1473_vm11, %v5207_v7, %v5368_v22  ;;  %v9155_v5 = vld [vmem:[%s12609_s19 + $0xac] ss:$16 sps:$4 sm:$0xff]   ;;  %v9159_v39 = vld [vmem:[%s12609_s19 + $0x88] ss:$16 sps:$4 sm:$0xff]   ;;  %v9164_v34 = vld [vmem:[%s12609_s19 + $0x64] ss:$16 sps:$4 sm:$0xff]  }
 0xfee   : > { %v5233_v59 = vadd.f32 %v5232_v49, %v5231_v61  ;;  %v5238_v0 = vadd.f32 %v5237_v25, %v5236_v44  ;;  %v5370_v14 = vsel %vm1475_vm12, %v5214_v19, %v5369_v16  ;;  %v9146_v61 = vld [vmem:[%s12609_s19 + $0xc4] ss:$16 sps:$4 sm:$0xff]   ;;  %v9144_v44 = vld [vmem:[%s12609_s19 + $0xc0] ss:$16 sps:$4 sm:$0xff]   ;;  %v9161_v25 = vld [vmem:[%s12609_s19 + $0x8c] ss:$16 sps:$4 sm:$0xff]  }
 0xfef   : > { %v5371_v13 = vsel %vm1477_vm13, %v5221_v46, %v5370_v14  ;;  %v9158_v49 = vld [vmem:[%s12609_s19 + $0x84] ss:$16 sps:$4 sm:$0xff]   ;;  %v9165_v7 = vld [vmem:[%s12609_s19 + $0x68] ss:$16 sps:$4 sm:$0xff]   ;;  %v9173_v19 = vld [vmem:[%s12609_s19 + $0x4c] ss:$16 sps:$4 sm:$0xff]  }
 0xff0   : > { %v5234_v10 = vrot.slane %v5233_v59, 1  ;;  %v5239_v36 = vrot.slane %v5238_v0, 2  ;;  %v5372_v32 = vsel %vm1479_vm14, %v5228_v57, %v5371_v13  ;;  %v9170_v12 = vld [vmem:[%s12609_s19 + $0x44] ss:$16 sps:$4 sm:$0xff]   ;;  %v9179_v22 = vld [vmem:[%s12609_s19 + $0x2c] ss:$16 sps:$4 sm:$0xff]  }
 0xff1   : > { %v9176_v46 = vld [vmem:[%s12609_s19 + $0x24] ss:$16 sps:$4 sm:$0xff]   ;;  %v9174_v57 = vld [vmem:[%s12609_s19 + $0x20] ss:$16 sps:$4 sm:$0xff]   ;;  %v9186_v13 = vld [vmem:[%s12499_s3 + $0x38] sm:$0xff]  }
 0xff2   : > { %v5240_v23 = vadd.f32 %v5239_v36, %v5238_v0  ;;  %v5235_v24 = vadd.f32 %v5234_v10, %v5233_v59  ;;  %v9167_v59 = vld [vmem:[%s12609_s19 + $0x6c] ss:$16 sps:$4 sm:$0xff]   ;;  %v9162_v0 = vld [vmem:[%s12609_s19 + $0x60] ss:$16 sps:$4 sm:$0xff]   ;;  %v9171_v36 = vld [vmem:[%s12609_s19 + $0x48] ss:$16 sps:$4 sm:$0xff]  }
 0xff3   : > { %v9168_v10 = vld [vmem:[%s12609_s19 + $0x40] ss:$16 sps:$4 sm:$0xff]   ;;  %v9182_v16 = vld [vmem:[%s12609_s19 + $0x4] ss:$16 sps:$4 sm:$0xff]  }
 0xff4   : > { %v5241_v26 = vrot.slane %v5240_v23, 1  ;;  %v5373_v45 = vsel %vm1481_vm15, %v5235_v24, %v5372_v32  ;;  %v9185_v24 = vld [vmem:[%s12609_s19 + $0xc] ss:$16 sps:$4 sm:$0xff]   ;;  %v9180_v14 = vld [vmem:[%s12609_s19] ss:$16 sps:$4 sm:$0xff]  }
 0xff5   : > { %v9189_v32 = vld [vmem:[%s12503_s7 + $0x30] sm:$0xff]  }
 0xff6   : > { %v5242_v28 = vadd.f32 %v5241_v26, %v5240_v23  ;;  %v9177_v23 = vld [vmem:[%s12609_s19 + $0x28] ss:$16 sps:$4 sm:$0xff]  }
 0xff7   : > { %v9183_v26 = vld [vmem:[%s12609_s19 + $0x8] ss:$16 sps:$4 sm:$0xff]  }
 0xff8   : > { %v5374_v17 = vsel %vm1483_vm0, %v5242_v28, %v5373_v45  ;;  %v9187_v28 = vld [vmem:[%s12503_s7 + $0x38] sm:$0xff]   ;;  %v9190_v45 = vld [vmem:[%s12499_s3 + $0x28] sm:$0xff]  }
 0xff9   : > { %v5376_v4 = vmul.f32 %v9443_v9, %v5374_v17  ;;  %v9191_v9 = vld [vmem:[%s12503_s7 + $0x28] sm:$0xff]   ;;  %v9192_v17 = vld [vmem:[%s12499_s3 + $0x20] sm:$0xff]  }
 0xffb   : > { %v5382_v21 = vpack.c.bf16 %v5376_v4, %v5376_v4  ;;  %v9193_v4 = vld [vmem:[%s12503_s7 + $0x20] sm:$0xff]  }
 0xffd   : > { %5608 = vmatmul.mubr.bf16.vlgmr.msra.gmra.mxu0 %v5382_v21  ;;  %5649 = vmatmul.mubr.bf16.vlgmr.msra.gmra.mxu1 %v5382_v21  ;;  %v9196_v21 = vld [vmem:[%s12499_s3 + $0x10] sm:$0xff]  }
 0xffe   : > { %5854 = vmatpush1.bf16.msra.mxu0 %v9138_v63  ;;  %5895 = vmatpush1.bf16.msra.mxu1 %v9141_v52  ;;  %v9194_v63 = vld [vmem:[%s12499_s3 + $0x18] sm:$0xff]  }
 0xfff   : > { %5855 = vmatprep.subr.bf16.mxu0 %v9146_v61  ;;  %5896 = vmatprep.subr.bf16.mxu1 %v9149_v1  ;;  %v9195_v52 = vld [vmem:[%s12503_s7 + $0x18] sm:$0xff]   ;;  %v9197_v61 = vld [vmem:[%s12503_s7 + $0x10] sm:$0xff]   ;;  %v9198_v1 = vld [vmem:[%s12499_s3 + $0x8] sm:$0xff]  }
0x1000   : > { %5885 = vmatprep.mubr.bf16.mxu0 %v12623_v31  ;;  %5926 = vmatprep.mubr.bf16.mxu1 %v12623_v31 }
0x1002   : > { %5856 = vmatpush1.bf16.msra.mxu0 %v9144_v44  ;;  %5897 = vmatpush1.bf16.msra.mxu1 %v9147_v27  ;;  %v9199_v44 = vld [vmem:[%s12503_s7 + $0x8] sm:$0xff]   ;;  %v9200_v27 = vld [vmem:[%s12499_s3] sm:$0xff]  }
0x1003   : > { %5857 = vmatprep.subr.bf16.mxu0 %v9152_v20  ;;  %5898 = vmatprep.subr.bf16.mxu1 %v9155_v5  ;;  %v9201_v20 = vld [vmem:[%s12503_s7] sm:$0xff]  }
0x1006   : > { %5858 = vmatpush1.bf16.msra.mxu0 %v9150_v15  ;;  %5899 = vmatpush1.bf16.msra.mxu1 %v9153_v37 }
0x1007   : > { %5859 = vmatprep.subr.bf16.mxu0 %v9158_v49  ;;  %5900 = vmatprep.subr.bf16.mxu1 %v9161_v25 }
0x100a   : > { %5860 = vmatpush1.bf16.msra.mxu0 %v9156_v6  ;;  %5901 = vmatpush1.bf16.msra.mxu1 %v9159_v39 }
0x100b   : > { %5861 = vmatprep.subr.bf16.mxu0 %v9164_v34  ;;  %5902 = vmatprep.subr.bf16.mxu1 %v9167_v59  ;;  %v8183_v59 = vld [vmem:[%s9765_s28 + $0x40] sm:$0xff] }
0x100e   : > { %5862 = vmatpush1.bf16.msra.mxu0 %v9162_v0  ;;  %5903 = vmatpush1.bf16.msra.mxu1 %v9165_v7  ;;  %v8184_v0 = vld [vmem:[%s9765_s28 + $0x48] sm:$0xff] }
0x100f   : > { %5863 = vmatprep.subr.bf16.mxu0 %v9170_v12  ;;  %5904 = vmatprep.subr.bf16.mxu1 %v9173_v19 }
0x1012   : > { %5864 = vmatpush1.bf16.msra.mxu0 %v9168_v10  ;;  %5905 = vmatpush1.bf16.msra.mxu1 %v9171_v36 }
0x1013   : > { %5865 = vmatprep.subr.bf16.mxu0 %v9176_v46  ;;  %5906 = vmatprep.subr.bf16.mxu1 %v9179_v22 }
0x1016   : > { %5866 = vmatpush1.bf16.msra.mxu0 %v9174_v57  ;;  %5907 = vmatpush1.bf16.msra.mxu1 %v9177_v23 }
0x1017   : > { %5867 = vmatprep.subr.bf16.mxu0 %v9182_v16  ;;  %5908 = vmatprep.subr.bf16.mxu1 %v9185_v24 }
0x101a   : > { %5868 = vmatpush1.bf16.msra.mxu0 %v9180_v14  ;;  %5909 = vmatpush1.bf16.msra.mxu1 %v9183_v26 }
0x101b   : > { %8730 = vmatprep.subr.bf16.mxu0 %v12624_v43  ;;  %8750 = vmatprep.subr.bf16.mxu1 %v12624_v43 }
0x101d   : > { %5886 = vmatmul.mubr.bf16.vlgmr.msra.gmra.mxu0 %v11313_v58  ;;  %5927 = vmatmul.mubr.bf16.vlgmr.msra.gmra.mxu1 %v11313_v58  ;;  %v9188_v58 = vld [vmem:[%s12499_s3 + $0x30] sm:$0xff]  }
0x101e   : > { %8746 = vmatprep.mubr.msk.bf16.mxu0 %vm9577_vm8, %v12624_v43  ;;  %8766 = vmatprep.mubr.msk.bf16.mxu1 %vm9577_vm8, %v12624_v43 }
0x101f   : > { %8731 = vmatpush3.bf16.msra.mxu0 %v9186_v13  ;;  %8751 = vmatpush3.bf16.msra.mxu1 %v9187_v28  ;;  %v8186_v13 = vld [vmem:[%s9765_s28 + $0x58] sm:$0xff] }
0x1020   : > { %8732 = vmatprep.subr.bf16.mxu0 %v12624_v43  ;;  %8752 = vmatprep.subr.bf16.mxu1 %v12624_v43 }
0x1023   : > { %8733 = vmatpush3.bf16.msra.mxu0 %v9188_v58  ;;  %8753 = vmatpush3.bf16.msra.mxu1 %v9189_v32  ;;  %v8185_v32 = vld [vmem:[%s9765_s28 + $0x50] sm:$0xff] }
0x1024   : > { %8734 = vmatprep.subr.bf16.mxu0 %v12624_v43  ;;  %8754 = vmatprep.subr.bf16.mxu1 %v12624_v43 }
0x1027   : > { %8735 = vmatpush3.bf16.msra.mxu0 %v9190_v45  ;;  %8755 = vmatpush3.bf16.msra.mxu1 %v9191_v9 }
0x1028   : > { %8736 = vmatprep.subr.bf16.mxu0 %v12624_v43  ;;  %8756 = vmatprep.subr.bf16.mxu1 %v12624_v43 }
0x102b   : > { %8737 = vmatpush3.bf16.msra.mxu0 %v9192_v17  ;;  %8757 = vmatpush3.bf16.msra.mxu1 %v9193_v4 }
0x102c   : > { %8738 = vmatprep.subr.bf16.mxu0 %v12624_v43  ;;  %8758 = vmatprep.subr.bf16.mxu1 %v12624_v43 }
0x102f   : > { %8739 = vmatpush3.bf16.msra.mxu0 %v9194_v63  ;;  %8759 = vmatpush3.bf16.msra.mxu1 %v9195_v52 }
0x1030   : > { %8740 = vmatprep.subr.bf16.mxu0 %v12624_v43  ;;  %8760 = vmatprep.subr.bf16.mxu1 %v12624_v43 }
0x1033   : > { %8741 = vmatpush3.bf16.msra.mxu0 %v9196_v21  ;;  %8761 = vmatpush3.bf16.msra.mxu1 %v9197_v61 }
0x1034   : > { %8742 = vmatprep.subr.bf16.mxu0 %v12624_v43  ;;  %8762 = vmatprep.subr.bf16.mxu1 %v12624_v43 }
0x1037   : > { %8743 = vmatpush3.bf16.msra.mxu0 %v9198_v1  ;;  %8763 = vmatpush3.bf16.msra.mxu1 %v9199_v44 }
0x1038   : > { %8744 = vmatprep.subr.bf16.mxu0 %v12624_v43  ;;  %8764 = vmatprep.subr.bf16.mxu1 %v12624_v43 }
0x103b   : > { %8745 = vmatpush3.bf16.msra.mxu0 %v9200_v27  ;;  %8765 = vmatpush3.bf16.msra.mxu1 %v9201_v20 }
0x10bd   : > { %v5609_v5 = vpop.f32.mrf.mxu0  ;;  %v5650_v15 = vpop.f32.mrf.mxu1 }
0x10be   : > { %v5657_v7 = vadd.f32 %v8183_v59, %v5609_v5  ;;  %v5659_v45 = vadd.f32 %v8185_v32, %v5650_v15  ;;  %v12663_v32 = vld [vmem:[#allocation13_spill] sm:$0xff] }
0x10bf   : > { %v5611_v37 = vpop.f32.mrf.mxu0  ;;  %v5652_v49 = vpop.f32.mrf.mxu1 }
0x10c0   : > { %v5658_v10 = vadd.f32 %v8184_v0, %v5611_v37  ;;  %v5660_v28 = vadd.f32 %v8186_v13, %v5652_v49 }
0x10c1   : > { %v5613_v25 = vpop.f32.mrf.mxu0  ;;  %v5654_v6 = vpop.f32.mrf.mxu1 }
0x10c3   : > { %v5614_v39 = vpop.f32.mrf.mxu0  ;;  %v5655_v34 = vpop.f32.mrf.mxu1 }
0x10dd   : > { %v5887_v12 = vpop.f32.mrf.mxu0  ;;  %v5928_v19 = vpop.f32.mrf.mxu1 }
0x10de   : > { %v5935_v36 = vadd.f32 %v5887_v12, %v5657_v7  ;;  %v5937_v4 = vadd.f32 %v5928_v19, %v5659_v45 }
0x10df   : > { %v5889_v43 = vpop.f32.mrf.mxu0  ;;  %v5930_v46 = vpop.f32.mrf.mxu1 }
0x10e0   : > { %v8251_v22 = vmul.f32 -1.442695, %v5935_v36  ;;  %v5936_v57 = vadd.f32 %v5889_v43, %v5658_v10  ;;  %v5938_v58 = vadd.f32 %v5930_v46, %v5660_v28 }
0x10e1   : > { %v5891_v23 = vpop.f32.mrf.mxu0  ;;  %v5932_v16 = vpop.f32.mrf.mxu1 }
0x10e2   : > { %9444 = vpow2.f32 %v8251_v22  ;;  %v8252_v24 = vmul.f32 -1.442695, %v5936_v57  ;;  %v8253_v9 = vmul.f32 -1.442695, %v5938_v58 }
0x10e3   : > { %v5892_v14 = vpop.f32.mrf.mxu0  ;;  %v5933_v26 = vpop.f32.mrf.mxu1 }
0x10e4   : > { %9446 = vpow2.f32 %v8252_v24 }
0x10e5   : > { %9448 = vpow2.f32 %v8253_v9 }
0x10ef   : > { %v9445_v17 = vpop.eup %9444 }
0x10f0   : > { %v5942_v63 = vadd.f32 1.0, %v9445_v17  ;;  %v12664_v17 = vld [vmem:[#allocation15_spill] sm:$0xff] }
0x10f1   : > { %v9447_v52 = vpop.eup %9446 }
0x10f2   : > { %9450 = vrcp.f32 %v5942_v63  ;;  %v5948_v21 = vadd.f32 1.0, %v9447_v52  ;;  %v9449_v61 = vpop.eup %9448  ;;  %v12665_v63 = vld [vmem:[#allocation14_spill] sm:$0xff] }
0x10f3   : > { %9452 = vtanh.f32 %v5937_v4  ;;  %v5955_v20 = vadd.f32 1.0, %v9449_v61 }
0x10f4   : > { %9454 = vrcp.f32 %v5948_v21 }
0x10f5   : > { %9456 = vrcp.f32 %v5955_v20 }
0x10ff   : > { %v9451_v1 = vpop.eup %9450 }
0x1100   : > { %v9453_v44 = vpop.eup %9452 }
0x1101   : > { %v9455_v27 = vpop.eup %9454  ;;  %v5959_v5 = vmul.f32 %v9453_v44, %v9451_v1 }
0x1102   : > { %v5958_v37 = vmul.f32 %v9455_v27, %v11310_v40  ;;  %v9457_v49 = vpop.eup %9456  ;;  %v8256_v40 = vld [vmem:[%s12500_s4] ss:$0 sm:$0xff]  ;;  %v12666_v27 = vld [vmem:[#allocation17_spill] sm:$0xff] }
0x1104   : > { %v11911_v15 = vadd.f32 %v5959_v5, %v5958_v37  ;;  %v12667_v5 = vld [vmem:[#allocation16_spill] sm:$0xff] }
0x1106   : > { %9458 = vtanh.f32 %v11911_v15 }
0x1113   : > { %v9459_v25 = vpop.eup %9458 }
0x1114   : > { %v5962_v6 = vmul.f32 %v9459_v25, %v9457_v49 }
0x1116   : > { %v11914_v39 = vpack.c.bf16 %v5962_v6, %v5962_v6 }
0x1118   : > { %8254 = vst [vmem:[%s9767_s23 + $0x8] sm:$0xf] %v11914_v39  ;;  %8747 = vmatmul.mubr.bf16.vlgmr.msra.gmra.mxu0 %v11914_v39  ;;  %8767 = vmatmul.mubr.bf16.vlgmr.msra.gmra.mxu1 %v11914_v39 }
0x1119   : > { %7254 = vmatprep.mubr.bf16.mxu0 %v12623_v31  ;;  %7295 = vmatprep.mubr.bf16.mxu1 %v12623_v31 }
0x11d8   : > { %v6153_v34 = vpop.f32.mrf.mxu0  ;;  %v11925_v59 = vpop.f32.mrf.mxu1 }
0x11d9   : > { %v6154_v0 = vadd.f32 %v8256_v40, %v6153_v34 }
0x11da   : > { %v8748_v7 = vpop.f32.mrf.mxu0  ;;  %v8768_v12 = vpop.f32.mrf.mxu1 }
0x11db   : > { %v6160_v19 = vcombine.high %v6154_v0, %v6154_v0  ;;  %v6167_v10 = vrot.slane %v6154_v0, %v9904_v48  ;;  %v12668_v7 = vld [vmem:[#allocation19_spill] sm:$0xff] }
0x11dc   : > { %v6156_v36 = vpop.f32.mrf.mxu0  ;;  %v6998_v43 = vpop.f32.mrf.mxu1 }
0x11dd   : > { %v6174_v46 = vrot.slane %v6160_v19, %v9904_v48  ;;  %v6175_v22 = vcombine.high %v6167_v10, %v6167_v10  ;;  %v6183_v57 = vrot.slane %v6167_v10, %v9904_v48  ;;  %v12669_v19 = vld [vmem:[#allocation18_spill] sm:$0xff] }
0x11de   : > { %v8749_v23 = vpop.f32.mrf.mxu0  ;;  %v8769_v16 = vpop.f32.mrf.mxu1 }
0x11df   : > { %v6197_v24 = vrot.slane %v6175_v22, %v9904_v48  ;;  %v6205_v14 = vcombine.high %v6183_v57, %v6183_v57  ;;  %v6212_v26 = vrot.slane %v6183_v57, %v9909_v55  ;;  %v6190_v13 = vrot.slane %v6174_v46, %v9904_v48 }
0x11e0   : > { %v6176_v21 = vcombine.high %v6174_v46, %v6174_v46 }
0x11e1   : > { %v6216_v28 = vrot.slane %v6197_v24, %v9909_v55  ;;  %v6250_v58 = vadd.f32 %v9916_v62, %v6212_v26  ;;  %v6249_v45 = vadd.f32 %v12663_v32, %v6212_v26  ;;  %v6220_v9 = vrot.slane %v6205_v14, %v9909_v55  ;;  %v9517_v62 = vld [vmem:[%s12501_s5] ss:$0 sm:$0xff]  ;;  %v12671_v32 = vld [vmem:[#allocation20_spill] sm:$0xff] }
0x11e2   : > { %v6207_v44 = vcombine.high %v6197_v24, %v6197_v24  ;;  %v6228_v49 = vrot.slane %v6190_v13, %v9909_v55  ;;  %v6204_v0 = vrot.slane %v6176_v21, %v9904_v48  ;;  %v6206_v23 = vcombine.high %v6190_v13, %v6190_v13  ;;  %v12670_v24 = vld [vmem:[#allocation21_spill] sm:$0xff] }
0x11e3   : > { %v6252_v4 = vadd.f32 %v12664_v17, %v6216_v28  ;;  %v6251_v52 = vadd.f32 %v12665_v63, %v6216_v28  ;;  %v6266_v61 = vmax.f32 %v6250_v58, 0.0  ;;  %v6265_v1 = vmax.f32 %v6249_v45, 0.0 }
0x11e4   : > { %v6254_v20 = vadd.f32 %v12666_v27, %v6220_v9  ;;  %v6253_v37 = vadd.f32 %v12667_v5, %v6220_v9  ;;  %v6258_v12 = vadd.f32 %v12668_v7, %v6228_v49  ;;  %v6257_v10 = vadd.f32 %v12669_v19, %v6228_v49  ;;  %v12674_v49 = vld [vmem:[#allocation25_spill] sm:$0xff] }
0x11e5   : > { %v6282_v25 = vmul.f32 %v9517_v62, %v6266_v61  ;;  %v6281_v6 = vmul.f32 %v9517_v62, %v6265_v1  ;;  %v6268_v40 = vmax.f32 %v6252_v4, 0.0  ;;  %v6267_v34 = vmax.f32 %v6251_v52, 0.0  ;;  %v12672_v4 = vld [vmem:[#allocation23_spill] sm:$0xff]  ;;  %v12673_v52 = vld [vmem:[#allocation22_spill] sm:$0xff] }
0x11e6   : > { %v6224_v36 = vrot.slane %v6207_v44, %v9909_v55  ;;  %v6270_v22 = vmax.f32 %v6254_v20, 0.0  ;;  %v6269_v57 = vmax.f32 %v6253_v37, 0.0  ;;  %v6274_v16 = vmax.f32 %v6258_v12, 0.0 }
0x11e7   : > { %6299 = vadd.xlane.f32.xlu0 %v6282_v25  ;;  %6297 = vadd.xlane.f32.xlu1 %v6281_v6  ;;  %v6284_v43 = vmul.f32 %v9517_v62, %v6268_v40  ;;  %v6283_v46 = vmul.f32 %v9517_v62, %v6267_v34  ;;  %v6232_v26 = vrot.slane %v6204_v0, %v9909_v55  ;;  %v6273_v58 = vmax.f32 %v6257_v10, 0.0  ;;  %v12675_v6 = vld [vmem:[#allocation24_spill] sm:$0xff] }
0x11e8   : > { %v6256_v14 = vadd.f32 %v12670_v24, %v6224_v36  ;;  %v6286_v28 = vmul.f32 %v9517_v62, %v6270_v22  ;;  %v6285_v48 = vmul.f32 %v9517_v62, %v6269_v57  ;;  %v6255_v45 = vadd.f32 %v12671_v32, %v6224_v36  ;;  %v12676_v36 = vld [vmem:[#allocation27_spill] sm:$0xff] }
0x11e9   : > { %v6290_v9 = vmul.f32 %v9517_v62, %v6274_v16  ;;  %v6260_v63 = vadd.f32 %v12672_v4, %v6232_v26  ;;  %v6259_v21 = vadd.f32 %v12673_v52, %v6232_v26  ;;  %v6289_v61 = vmul.f32 %v9517_v62, %v6273_v58  ;;  %v12678_v4 = vld [vmem:[#allocation28_spill] sm:$0xff] }
0x11ea   : > { %v6272_v17 = vmax.f32 %v6256_v14, 0.0  ;;  %v6271_v13 = vmax.f32 %v6255_v45, 0.0  ;;  %v6236_v1 = vrot.slane %v6206_v23, %v9909_v55  ;;  %v6208_v44 = vcombine.high %v6204_v0, %v6204_v0 }
0x11eb   : > { %6303 = vadd.xlane.f32.xlu1 %v6284_v43  ;;  %6301 = vadd.xlane.f32.xlu0 %v6283_v46  ;;  %v6276_v20 = vmax.f32 %v6260_v63, 0.0  ;;  %v6275_v5 = vmax.f32 %v6259_v21, 0.0  ;;  %v12677_v43 = vld [vmem:[#allocation26_spill] sm:$0xff] }
0x11ec   : > { %v6288_v27 = vmul.f32 %v9517_v62, %v6272_v17  ;;  %v6287_v37 = vmul.f32 %v9517_v62, %v6271_v13  ;;  %v6262_v25 = vadd.f32 %v12674_v49, %v6236_v1  ;;  %v6261_v40 = vadd.f32 %v12675_v6, %v6236_v1 }
0x11ed   : > { %v6240_v34 = vrot.slane %v6208_v44, %v9909_v55  ;;  %v6292_v7 = vmul.f32 %v9517_v62, %v6276_v20  ;;  %v6291_v12 = vmul.f32 %v9517_v62, %v6275_v5 }
0x11ee   : > { %v6278_v19 = vmax.f32 %v6262_v25, 0.0  ;;  %v6277_v10 = vmax.f32 %v6261_v40, 0.0 }
0x11ef   : > { %6307 = vadd.xlane.f32.xlu1 %v6286_v28  ;;  %6305 = vadd.xlane.f32.xlu0 %v6285_v48  ;;  %v6264_v0 = vadd.f32 %v12676_v36, %v6240_v34  ;;  %v6263_v46 = vadd.f32 %v12677_v43, %v6240_v34 }
0x11f0   : > { %v6294_v22 = vmul.f32 %v9517_v62, %v6278_v19  ;;  %v6293_v57 = vmul.f32 %v9517_v62, %v6277_v10 }
0x11f1   : > { %v6280_v23 = vmax.f32 %v6264_v0, 0.0  ;;  %v6279_v16 = vmax.f32 %v6263_v46, 0.0 }
0x11f3   : > { %6315 = vadd.xlane.f32.xlu1 %v6290_v9  ;;  %6313 = vadd.xlane.f32.xlu0 %v6289_v61  ;;  %v6296_v24 = vmul.f32 %v9517_v62, %v6280_v23  ;;  %v6295_v14 = vmul.f32 %v9517_v62, %v6279_v16 }
0x11f7   : > { %6311 = vadd.xlane.f32.xlu1 %v6288_v27  ;;  %6309 = vadd.xlane.f32.xlu0 %v6287_v37 }
0x11fb   : > { %6319 = vadd.xlane.f32.xlu1 %v6292_v7  ;;  %6317 = vadd.xlane.f32.xlu0 %v6291_v12 }
0x11ff   : > { %6323 = vadd.xlane.f32.xlu1 %v6294_v22  ;;  %6321 = vadd.xlane.f32.xlu0 %v6293_v57 }
0x1203   : > { %6327 = vadd.xlane.f32.xlu1 %v6296_v24  ;;  %6325 = vadd.xlane.f32.xlu0 %v6295_v14 }
0x1270   : > { %v6300_v26 = vpop.xlane.xlu0 %6299  ;;  %v6298_v28 = vpop.xlane.xlu1 %6297 }
0x1271   : > { %v11961_v63 = vadd.f32 %v6300_v26, %v12678_v4  ;;  %v11964_v52 = vadd.f32 %v6298_v28, %v12678_v4 }
0x1273   : > { %v6368_v5 = vrot.slane %v11961_v63, %v10005_v8  ;;  %v6364_v37 = vrot.slane %v11964_v52, %v10002_v3 }
0x1274   : > { %v6304_v48 = vpop.xlane.xlu1 %6303  ;;  %v6302_v58 = vpop.xlane.xlu0 %6301 }
0x1275   : > { %v11967_v21 = vadd.f32 %v6304_v48, %v12678_v4  ;;  %v11970_v62 = vadd.f32 %v6302_v58, %v12678_v4  ;;  %v6369_v22 = vsel %vm1406_vm9, %v6368_v5, %v6364_v37 }
0x1277   : > { %v6377_v49 = vrot.slane %v11967_v21, %v10005_v8  ;;  %v6373_v25 = vrot.slane %v11970_v62, %v10002_v3 }
0x1278   : > { %v6308_v32 = vpop.xlane.xlu1 %6307  ;;  %v6306_v45 = vpop.xlane.xlu0 %6305 }
0x1279   : > { %v11973_v61 = vadd.f32 %v6308_v32, %v12678_v4  ;;  %v11976_v13 = vadd.f32 %v6306_v45, %v12678_v4  ;;  %v6378_v46 = vsel %vm1406_vm9, %v6377_v49, %v6373_v25 }
0x127a   : > { %v6433_v58 = vsel %vm1471_vm10, %v6378_v46, %v6369_v22 }
0x127b   : > { %v6386_v6 = vrot.slane %v11973_v61, %v10005_v8  ;;  %v6382_v40 = vrot.slane %v11976_v13, %v10002_v3 }
0x127c   : > { %v6316_v9 = vpop.xlane.xlu1 %6315  ;;  %v6314_v17 = vpop.xlane.xlu0 %6313 }
0x127d   : > { %v12007_v0 = vadd.f32 %v6316_v9, %v12678_v4  ;;  %v12010_v43 = vadd.f32 %v6314_v17, %v12678_v4  ;;  %v6387_v57 = vsel %vm1406_vm9, %v6386_v6, %v6382_v40 }
0x127e   : > { %v6434_v9 = vsel %vm1473_vm11, %v6387_v57, %v6433_v58 }
0x127f   : > { %v6404_v32 = vrot.slane %v12007_v0, %v10005_v8  ;;  %v6400_v45 = vrot.slane %v12010_v43, %v10002_v3 }
0x1280   : > { %v6312_v1 = vpop.xlane.xlu1 %6311  ;;  %v6310_v44 = vpop.xlane.xlu0 %6309 }
0x1281   : > { %v11979_v27 = vadd.f32 %v6312_v1, %v12678_v4  ;;  %v11982_v20 = vadd.f32 %v6310_v44, %v12678_v4  ;;  %v6405_v40 = vsel %vm1406_vm9, %v6404_v32, %v6400_v45 }
0x1283   : > { %v6395_v34 = vrot.slane %v11979_v27, %v10005_v8  ;;  %v6391_v7 = vrot.slane %v11982_v20, %v10002_v3 }
0x1284   : > { %v6320_v12 = vpop.xlane.xlu1 %6319  ;;  %v6318_v19 = vpop.xlane.xlu0 %6317 }
0x1285   : > { %v12001_v10 = vadd.f32 %v6320_v12, %v12678_v4  ;;  %v12004_v36 = vadd.f32 %v6318_v19, %v12678_v4  ;;  %v6396_v23 = vsel %vm1406_vm9, %v6395_v34, %v6391_v7 }
0x1286   : > { %v6435_v44 = vsel %vm1475_vm12, %v6396_v23, %v6434_v9 }
0x1287   : > { %v6413_v14 = vrot.slane %v12001_v10, %v10005_v8  ;;  %v6409_v26 = vrot.slane %v12004_v36, %v10002_v3  ;;  %v6436_v19 = vsel %vm1477_vm13, %v6405_v40, %v6435_v44 }
0x1288   : > { %v6324_v16 = vpop.xlane.xlu1 %6323  ;;  %v6322_v24 = vpop.xlane.xlu0 %6321 }
0x1289   : > { %v12021_v28 = vadd.f32 %v6324_v16, %v12678_v4  ;;  %v12024_v48 = vadd.f32 %v6322_v24, %v12678_v4  ;;  %v6414_v49 = vsel %vm1406_vm9, %v6413_v14, %v6409_v26 }
0x128a   : > { %v6437_v46 = vsel %vm1479_vm14, %v6414_v49, %v6436_v19 }
0x128b   : > { %v6422_v17 = vrot.slane %v12021_v28, %v10005_v8  ;;  %v6418_v1 = vrot.slane %v12024_v48, %v10002_v3 }
0x128c   : > { %v6328_v5 = vpop.xlane.xlu1 %6327  ;;  %v6326_v37 = vpop.xlane.xlu0 %6325 }
0x128d   : > { %v12039_v25 = vadd.f32 %v6328_v5, %v12678_v4  ;;  %v12042_v6 = vadd.f32 %v6326_v37, %v12678_v4  ;;  %v6423_v34 = vsel %vm1406_vm9, %v6422_v17, %v6418_v1 }
0x128e   : > { %v6438_v57 = vsel %vm1481_vm15, %v6423_v34, %v6437_v46 }
0x128f   : > { %v6431_v7 = vrot.slane %v12039_v25, %v10005_v8  ;;  %v6427_v12 = vrot.slane %v12042_v6, %v10002_v3 }
0x1291   : > { %v6432_v22 = vsel %vm1406_vm9, %v6431_v7, %v6427_v12 }
0x1292   : > { %v6439_v4 = vsel %vm1483_vm0, %v6432_v22, %v6438_v57 }
0x1293   : > { %v6441_v23 = vsel %vm1486_vm1, %v6439_v4, -inf }
0x1294   : > { %6442 = vmax.xlane.f32.xlu0 %v6441_v23 }
0x131d   : > { %v6443_v16 = vpop.xlane.xlu0 %6442 }
0x131e   : > { %v6448_v24 = vrot.slane %v6443_v16, %v9909_v55  ;;  %v6452_v14 = vrot.slane %v6443_v16, %v10109_v53  ;;  %v6456_v26 = vrot.slane %v6443_v16, %v10125_v33  ;;  %v6460_v9 = vrot.slane %v6443_v16, %v10106_v51 }
0x131f   : > { %v6464_v49 = vrot.slane %v6443_v16, %v10114_v60  ;;  %v6468_v34 = vrot.slane %v6443_v16, %v10120_v2  ;;  %v6472_v19 = vrot.slane %v6443_v16, %v10129_v35 }
0x1320   : > { %v6485_v58 = vsub.f32 %v11964_v52, %v6448_v24  ;;  %v6486_v32 = vsub.f32 %v11961_v63, %v6448_v24  ;;  %v6487_v45 = vsub.f32 %v11970_v62, %v6452_v14  ;;  %v6489_v17 = vsub.f32 %v11976_v13, %v6456_v26 }
0x1321   : > { %v6488_v5 = vsub.f32 %v11967_v21, %v6452_v14  ;;  %v6491_v40 = vsub.f32 %v11982_v20, %v6460_v9  ;;  %v6490_v63 = vsub.f32 %v11973_v61, %v6456_v26  ;;  %v6493_v13 = vsub.f32 %v12010_v43, %v6464_v49 }
0x1322   : > { %v6501_v1 = vmul.f32 1.442695, %v6485_v58  ;;  %v6503_v44 = vmul.f32 1.442695, %v6486_v32  ;;  %v6505_v37 = vmul.f32 1.442695, %v6487_v45  ;;  %v6492_v21 = vsub.f32 %v11979_v27, %v6460_v9 }
0x1323   : > { %v6509_v52 = vmul.f32 1.442695, %v6489_v17  ;;  %v6507_v62 = vmul.f32 1.442695, %v6488_v5  ;;  %v6513_v7 = vmul.f32 1.442695, %v6491_v40  ;;  %v6495_v20 = vsub.f32 %v12004_v36, %v6468_v34 }
0x1324   : > { %9460 = vpow2.f32 %v6501_v1  ;;  %v6511_v12 = vmul.f32 1.442695, %v6490_v63  ;;  %v6517_v46 = vmul.f32 1.442695, %v6493_v13  ;;  %v6494_v61 = vsub.f32 %v12007_v0, %v6464_v49 }
0x1325   : > { %9462 = vpow2.f32 %v6503_v44  ;;  %v6515_v22 = vmul.f32 1.442695, %v6492_v21  ;;  %v6476_v43 = vrot.slane %v6443_v16, %v10136_v47  ;;  %v6497_v4 = vsub.f32 %v12024_v48, %v6472_v19 }
0x1326   : > { %9464 = vpow2.f32 %v6505_v37  ;;  %v6521_v27 = vmul.f32 1.442695, %v6495_v20  ;;  %v6496_v36 = vsub.f32 %v12001_v10, %v6468_v34  ;;  %v6519_v0 = vmul.f32 1.442695, %v6494_v61 }
0x1327   : > { %9466 = vpow2.f32 %v6509_v52  ;;  %v6499_v14 = vsub.f32 %v12042_v6, %v6476_v43  ;;  %v6525_v16 = vmul.f32 1.442695, %v6497_v4  ;;  %v6498_v48 = vsub.f32 %v12021_v28, %v6472_v19 }
0x1328   : > { %9468 = vpow2.f32 %v6507_v62  ;;  %v6523_v58 = vmul.f32 1.442695, %v6496_v36  ;;  %v6500_v6 = vsub.f32 %v12039_v25, %v6476_v43 }
0x1329   : > { %9470 = vpow2.f32 %v6513_v7  ;;  %v6529_v10 = vmul.f32 1.442695, %v6499_v14  ;;  %v6527_v9 = vmul.f32 1.442695, %v6498_v48 }
0x132a   : > { %9472 = vpow2.f32 %v6511_v12  ;;  %v6531_v1 = vmul.f32 1.442695, %v6500_v6 }
0x132b   : > { %9474 = vpow2.f32 %v6517_v46 }
0x132c   : > { %9476 = vpow2.f32 %v6515_v22 }
0x132d   : > { %9478 = vpow2.f32 %v6521_v27 }
0x132e   : > { %9480 = vpow2.f32 %v6519_v0 }
0x132f   : > { %9482 = vpow2.f32 %v6525_v16 }
0x1330   : > { %9484 = vpow2.f32 %v6523_v58 }
0x1331   : > { %v12074_v57 = vpop.eup %9460  ;;  %9486 = vpow2.f32 %v6529_v10 }
0x1332   : > { %v12078_v23 = vpop.eup %9462  ;;  %6550 = vperm.xlu1 %8849, %v12074_v57   ;;  %9488 = vpow2.f32 %v6527_v9 }
0x1333   : > { %6553 = vperm.xlu0 %8848, %v12078_v23   ;;  %v12083_v24 = vpop.eup %9464  ;;  %9490 = vpow2.f32 %v6531_v1 }
0x1334   : > { %v12086_v26 = vpop.eup %9466 }
0x1335   : > { %v12091_v32 = vpop.eup %9468 }
0x1336   : > { %6556 = vperm.xlu1 %8849, %v12083_v24   ;;  %v12093_v45 = vpop.eup %9470 }
0x1337   : > { %6562 = vperm.xlu0 %8848, %v12086_v26   ;;  %v12098_v17 = vpop.eup %9472 }
0x1338   : > { %v12100_v28 = vpop.eup %9474 }
0x1339   : > { %v12104_v44 = vpop.eup %9476 }
0x133a   : > { %6559 = vperm.xlu1 %8849, %v12091_v32   ;;  %v12106_v5 = vpop.eup %9478 }
0x133b   : > { %6568 = vperm.xlu0 %8848, %v12093_v45   ;;  %v12110_v25 = vpop.eup %9480 }
0x133c   : > { %v12112_v37 = vpop.eup %9482 }
0x133d   : > { %v12116_v49 = vpop.eup %9484 }
0x133e   : > { %6565 = vperm.xlu1 %8849, %v12098_v17   ;;  %v12118_v40 = vpop.eup %9486 }
0x133f   : > { %6574 = vperm.xlu0 %8848, %v12100_v28   ;;  %v12122_v52 = vpop.eup %9488 }
0x1340   : > { %v12125_v63 = vpop.eup %9490 }
0x1342   : > { %6571 = vperm.xlu1 %8849, %v12104_v44  }
0x1343   : > { %6580 = vperm.xlu0 %8848, %v12106_v5  }
0x1346   : > { %6577 = vperm.xlu1 %8849, %v12110_v25  }
0x1347   : > { %6586 = vperm.xlu0 %8848, %v12112_v37  }
0x134a   : > { %6583 = vperm.xlu1 %8849, %v12116_v49  }
0x134b   : > { %6592 = vperm.xlu0 %8848, %v12118_v40  }
0x134e   : > { %6589 = vperm.xlu1 %8849, %v12122_v52  }
0x1352   : > { %6595 = vperm.xlu1 %8849, %v12125_v63  }
0x13ad   : > { %v6551_v62 = vpop.permute.xlu1 %6550 }
0x13ae   : > { %v6554_v34 = vpop.permute.xlu0 %6553  ;;  %v6600_v14 = vrot.slane %v6551_v62, %v10002_v3 }
0x13af   : > { %v6604_v0 = vrot.slane %v6554_v34, %v10005_v8 }
0x13b1   : > { %v6557_v13 = vpop.permute.xlu1 %6556  ;;  %v6605_v62 = vsel %vm1406_vm9, %v6604_v0, %v6600_v14 }
0x13b2   : > { %v6563_v7 = vpop.permute.xlu0 %6562  ;;  %v6609_v16 = vrot.slane %v6557_v13, %v10002_v3 }
0x13b3   : > { %v6618_v58 = vrot.slane %v6563_v7, %v10002_v3 }
0x13b5   : > { %v6560_v21 = vpop.permute.xlu1 %6559 }
0x13b6   : > { %v6569_v12 = vpop.permute.xlu0 %6568  ;;  %v6613_v43 = vrot.slane %v6560_v21, %v10005_v8 }
0x13b7   : > { %v6627_v6 = vrot.slane %v6569_v12, %v10002_v3 }
0x13b8   : > { %v6614_v9 = vsel %vm1406_vm9, %v6613_v43, %v6609_v16 }
0x13b9   : > { %v6566_v19 = vpop.permute.xlu1 %6565 }
0x13ba   : > { %v6575_v20 = vpop.permute.xlu0 %6574  ;;  %v6622_v4 = vrot.slane %v6566_v19, %v10005_v8 }
0x13bb   : > { %v6636_v21 = vrot.slane %v6575_v20, %v10002_v3 }
0x13bc   : > { %v6623_v34 = vsel %vm1406_vm9, %v6622_v4, %v6618_v58 }
0x13bd   : > { %v6572_v46 = vpop.permute.xlu1 %6571 }
0x13be   : > { %v6581_v61 = vpop.permute.xlu0 %6580  ;;  %v6631_v48 = vrot.slane %v6572_v46, %v10005_v8 }
0x13bf   : > { %v6645_v13 = vrot.slane %v6581_v61, %v10002_v3 }
0x13c0   : > { %v6632_v46 = vsel %vm1406_vm9, %v6631_v48, %v6627_v6 }
0x13c1   : > { %v6578_v22 = vpop.permute.xlu1 %6577 }
0x13c2   : > { %v6587_v27 = vpop.permute.xlu0 %6586  ;;  %v6640_v10 = vrot.slane %v6578_v22, %v10005_v8  ;;  %v6669_v22 = vsel %vm1471_vm10, %v6614_v9, %v6605_v62 }
0x13c3   : > { %v6654_v12 = vrot.slane %v6587_v27, %v10002_v3  ;;  %v6670_v20 = vsel %vm1473_vm11, %v6623_v34, %v6669_v22 }
0x13c4   : > { %v6641_v43 = vsel %vm1406_vm9, %v6640_v10, %v6636_v21  ;;  %v6671_v16 = vsel %vm1475_vm12, %v6632_v46, %v6670_v20  ;;  %v9219_v20 = vld [vmem:[%s12505_s9 + $0xac] ss:$16 sps:$4 sm:$0xff]  }
0x13c5   : > { %v6584_v36 = vpop.permute.xlu1 %6583  ;;  %v6672_v14 = vsel %vm1477_vm13, %v6641_v43, %v6671_v16  ;;  %v9217_v16 = vld [vmem:[%s12505_s9 + $0xa8] ss:$16 sps:$4 sm:$0xff]  }
0x13c6   : > { %v6649_v1 = vrot.slane %v6584_v36, %v10005_v8  ;;  %v6593_v36 = vpop.permute.xlu0 %6592 }
0x13c7   : > { %v6663_v48 = vrot.slane %v6593_v36, %v10002_v3  ;;  %v9216_v36 = vld [vmem:[%s12505_s9 + $0xa4] ss:$16 sps:$4 sm:$0xff]  }
0x13c8   : > { %v6650_v4 = vsel %vm1406_vm9, %v6649_v1, %v6645_v13 }
0x13c9   : > { %v6590_v19 = vpop.permute.xlu1 %6589  ;;  %v6673_v27 = vsel %vm1479_vm14, %v6650_v4, %v6672_v14  ;;  %v9214_v4 = vld [vmem:[%s12505_s9 + $0xa0] ss:$16 sps:$4 sm:$0xff]  }
0x13ca   : > { %v6658_v7 = vrot.slane %v6590_v19, %v10005_v8  ;;  %v9220_v14 = vld [vmem:[%s12505_s9 + $0x80] ss:$16 sps:$4 sm:$0xff]  }
0x13cc   : > { %v6659_v0 = vsel %vm1406_vm9, %v6658_v7, %v6654_v12 }
0x13cd   : > { %v6596_v61 = vpop.permute.xlu1 %6595  ;;  %v6674_v6 = vsel %vm1481_vm15, %v6659_v0, %v6673_v27  ;;  %v9222_v0 = vld [vmem:[%s12505_s9 + $0x84] ss:$16 sps:$4 sm:$0xff]   ;;  %v9231_v27 = vld [vmem:[%s12505_s9 + $0x6c] ss:$16 sps:$4 sm:$0xff]  }
0x13ce   : > { %v6667_v58 = vrot.slane %v6596_v61, %v10005_v8  ;;  %v9225_v61 = vld [vmem:[%s12505_s9 + $0x8c] ss:$16 sps:$4 sm:$0xff]  }
0x13d0   : > { %v6668_v10 = vsel %vm1406_vm9, %v6667_v58, %v6663_v48  ;;  %v9223_v48 = vld [vmem:[%s12505_s9 + $0x88] ss:$16 sps:$4 sm:$0xff]   ;;  %v9228_v58 = vld [vmem:[%s12505_s9 + $0x64] ss:$16 sps:$4 sm:$0xff]  }
0x13d1   : > { %v6675_v9 = vsel %vm1483_vm0, %v6668_v10, %v6674_v6  ;;  %v9226_v10 = vld [vmem:[%s12505_s9 + $0x60] ss:$16 sps:$4 sm:$0xff]   ;;  %v9229_v6 = vld [vmem:[%s12505_s9 + $0x68] ss:$16 sps:$4 sm:$0xff]  }
0x13d2   : > { %v6677_v1 = vsel %vm1486_vm1, %v6675_v9, 0.0  ;;  %v9234_v9 = vld [vmem:[%s12505_s9 + $0x44] ss:$16 sps:$4 sm:$0xff]  }
0x13d3   : > { %6678 = vadd.xlane.f32.xlu0 %v6677_v1  ;;  %v9237_v1 = vld [vmem:[%s12505_s9 + $0x4c] ss:$16 sps:$4 sm:$0xff]  }
0x145c   : > { %v6679_v21 = vpop.xlane.xlu0 %6678 }
0x145d   : > { %9492 = vrcp.f32 %v6679_v21  ;;  %v9232_v21 = vld [vmem:[%s12505_s9 + $0x40] ss:$16 sps:$4 sm:$0xff]  }
0x146a   : > { %v9493_v34 = vpop.eup %9492 }
0x146b   : > { %v6701_v19 = vrot.slane %v9493_v34, %v10114_v60  ;;  %v6685_v62 = vrot.slane %v9493_v34, %v9909_v55  ;;  %v6713_v7 = vrot.slane %v9493_v34, %v10136_v47  ;;  %v6689_v43 = vrot.slane %v9493_v34, %v10109_v53 }
0x146d   : > { %v6730_v13 = vmul.f32 %v12100_v28, %v6701_v19  ;;  %v6722_v46 = vmul.f32 %v12074_v57, %v6685_v62  ;;  %v6736_v22 = vmul.f32 %v12118_v40, %v6713_v7  ;;  %v6723_v12 = vmul.f32 %v12078_v23, %v6685_v62  ;;  %v9243_v62 = vld [vmem:[%s12505_s9 + $0x2c] ss:$16 sps:$4 sm:$0xff]  }
0x146e   : > { %v6724_v60 = vmul.f32 %v12083_v24, %v6689_v43  ;;  %v6725_v55 = vmul.f32 %v12091_v32, %v6689_v43  ;;  %v6693_v28 = vrot.slane %v9493_v34, %v10125_v33  ;;  %v6697_v40 = vrot.slane %v9493_v34, %v10106_v51  ;;  %v9247_v43 = vld [vmem:[%s12505_s9 + $0x8] ss:$16 sps:$4 sm:$0xff]  }
0x146f   : > { %6780 = vperm.xlu0 %8848, %v6730_v13   ;;  %6740 = vperm.xlu1 %8849, %v6722_v46   ;;  %v6731_v24 = vmul.f32 %v12110_v25, %v6701_v19  ;;  %v6705_v32 = vrot.slane %v9493_v34, %v10120_v2  ;;  %v9207_v2 = vld [vmem:[%s12505_s9 + $0xec] ss:$16 sps:$4 sm:$0xff]   ;;  %v9205_v25 = vld [vmem:[%s12505_s9 + $0xe8] ss:$16 sps:$4 sm:$0xff]   ;;  %v9240_v19 = vld [vmem:[%s12505_s9 + $0x24] ss:$16 sps:$4 sm:$0xff]  }
0x1470   : > { %v6726_v47 = vmul.f32 %v12086_v26, %v6693_v28  ;;  %v6727_v57 = vmul.f32 %v12098_v17, %v6693_v28  ;;  %v6728_v53 = vmul.f32 %v12093_v45, %v6697_v40  ;;  %v6729_v23 = vmul.f32 %v12104_v44, %v6697_v40  ;;  %v9204_v44 = vld [vmem:[%s12505_s9 + $0xe4] ss:$16 sps:$4 sm:$0xff]   ;;  %7263 = vmatprep.subr.bf16.mxu1 %v9207_v2  ;;  %v9238_v13 = vld [vmem:[%s12505_s9 + $0x20] ss:$16 sps:$4 sm:$0xff]   ;;  %v9241_v46 = vld [vmem:[%s12505_s9 + $0x28] ss:$16 sps:$4 sm:$0xff]  }
0x1471   : > { %v6732_v33 = vmul.f32 %v12106_v5, %v6705_v32  ;;  %v6733_v26 = vmul.f32 %v12116_v49, %v6705_v32  ;;  %v6709_v17 = vrot.slane %v9493_v34, %v10129_v35  ;;  %v6737_v5 = vmul.f32 %v12125_v63, %v6713_v7  ;;  %v9202_v35 = vld [vmem:[%s12505_s9 + $0xe0] ss:$16 sps:$4 sm:$0xff]   ;;  %7222 = vmatprep.subr.bf16.mxu0 %v9204_v44  ;;  %v9213_v49 = vld [vmem:[%s12505_s9 + $0xcc] ss:$16 sps:$4 sm:$0xff]   ;;  %v9211_v63 = vld [vmem:[%s12505_s9 + $0xc8] ss:$16 sps:$4 sm:$0xff]  }
0x1472   : > { %7223 = vmatpush1.bf16.msra.mxu0 %v9202_v35  ;;  %7264 = vmatpush1.bf16.msra.mxu1 %v9205_v25  ;;  %v9235_v34 = vld [vmem:[%s12505_s9 + $0x48] ss:$16 sps:$4 sm:$0xff]   ;;  %v9246_v7 = vld [vmem:[%s12505_s9 + $0x4] ss:$16 sps:$4 sm:$0xff]  }
0x1473   : > { %6810 = vperm.xlu0 %8848, %v6736_v22   ;;  %6745 = vperm.xlu1 %8849, %v6723_v12   ;;  %v6734_v51 = vmul.f32 %v12112_v37, %v6709_v17  ;;  %v6735_v45 = vmul.f32 %v12122_v52, %v6709_v17  ;;  %v9210_v37 = vld [vmem:[%s12505_s9 + $0xc4] ss:$16 sps:$4 sm:$0xff]   ;;  %v9208_v52 = vld [vmem:[%s12505_s9 + $0xc0] ss:$16 sps:$4 sm:$0xff]   ;;  %v9249_v22 = vld [vmem:[%s12505_s9 + $0xc] ss:$16 sps:$4 sm:$0xff]  }
0x1474   : > { %7224 = vmatprep.subr.bf16.mxu0 %v9210_v37  ;;  %7265 = vmatprep.subr.bf16.mxu1 %v9213_v49  ;;  %v9244_v12 = vld [vmem:[%s12505_s9] ss:$16 sps:$4 sm:$0xff]  }
0x1476   : > { %7225 = vmatpush1.bf16.msra.mxu0 %v9208_v52  ;;  %7266 = vmatpush1.bf16.msra.mxu1 %v9211_v63  ;;  %v12679_v52 = vld [vmem:[#allocation34_spill] sm:$0xff] }
0x1477   : > { %6750 = vperm.xlu1 %8849, %v6724_v60   ;;  %7226 = vmatprep.subr.bf16.mxu0 %v9216_v36  ;;  %v9252_v60 = vld [vmem:[%s12609_s19 + $0xe4] ss:$16 sps:$4 sm:$0xff]  }
0x1478   : > { %7267 = vmatprep.subr.bf16.mxu1 %v9219_v20  ;;  %v12680_v36 = vld [vmem:[#allocation35_spill] sm:$0xff]  ;;  %v12681_v20 = vld [vmem:[#allocation37_spill] sm:$0xff] }
0x147a   : > { %7227 = vmatpush1.bf16.msra.mxu0 %v9214_v4  ;;  %7268 = vmatpush1.bf16.msra.mxu1 %v9217_v16  ;;  %v12682_v16 = vld [vmem:[#allocation36_spill] sm:$0xff] }
0x147b   : > { %6755 = vperm.xlu1 %8849, %v6725_v55   ;;  %7228 = vmatprep.subr.bf16.mxu0 %v9222_v0  ;;  %v9255_v55 = vld [vmem:[%s12609_s19 + $0xec] ss:$16 sps:$4 sm:$0xff]  }
0x147c   : > { %7269 = vmatprep.subr.bf16.mxu1 %v9225_v61 }
0x147e   : > { %7229 = vmatpush1.bf16.msra.mxu0 %v9220_v14  ;;  %7270 = vmatpush1.bf16.msra.mxu1 %v9223_v48 }
0x147f   : > { %6760 = vperm.xlu1 %8849, %v6726_v47   ;;  %7230 = vmatprep.subr.bf16.mxu0 %v9228_v58 }
0x1480   : > { %7271 = vmatprep.subr.bf16.mxu1 %v9231_v27 }
0x1482   : > { %7231 = vmatpush1.bf16.msra.mxu0 %v9226_v10  ;;  %7272 = vmatpush1.bf16.msra.mxu1 %v9229_v6 }
0x1483   : > { %6765 = vperm.xlu1 %8849, %v6727_v57   ;;  %7232 = vmatprep.subr.bf16.mxu0 %v9234_v9 }
0x1484   : > { %7273 = vmatprep.subr.bf16.mxu1 %v9237_v1 }
0x1486   : > { %7233 = vmatpush1.bf16.msra.mxu0 %v9232_v21  ;;  %7274 = vmatpush1.bf16.msra.mxu1 %v9235_v34  ;;  %v12683_v34 = vld [vmem:[#allocation38_spill] sm:$0xff] }
0x1487   : > { %6770 = vperm.xlu1 %8849, %v6728_v53   ;;  %7234 = vmatprep.subr.bf16.mxu0 %v9240_v19  ;;  %v8265_v53 = vld [vmem:[%s12610_s18] ss:$0 sm:$0xff] }
0x1488   : > { %7275 = vmatprep.subr.bf16.mxu1 %v9243_v62  ;;  %v12684_v62 = vld [vmem:[#allocation39_spill] sm:$0xff] }
0x148a   : > { %7235 = vmatpush1.bf16.msra.mxu0 %v9238_v13  ;;  %7276 = vmatpush1.bf16.msra.mxu1 %v9241_v46 }
0x148b   : > { %6775 = vperm.xlu1 %8849, %v6729_v23   ;;  %7236 = vmatprep.subr.bf16.mxu0 %v9246_v7  ;;  %v6996_v23 = vadd.f32 %v8265_v53, %v11925_v59 }
0x148c   : > { %7277 = vmatprep.subr.bf16.mxu1 %v9249_v22 }
0x148d   : > { %v8274_v32 = vmul.f32 -1.442695, %v6996_v23 }
0x148e   : > { %7237 = vmatpush1.bf16.msra.mxu0 %v9244_v12  ;;  %7278 = vmatpush1.bf16.msra.mxu1 %v9247_v43 }
0x148f   : > { %6785 = vperm.xlu1 %8849, %v6731_v24   ;;  %7500 = vmatprep.subr.bf16.mxu0 %v9252_v60  ;;  %9494 = vpow2.f32 %v8274_v32 }
0x1490   : > { %7541 = vmatprep.subr.bf16.mxu1 %v9255_v55 }
0x1493   : > { %6790 = vperm.xlu1 %8849, %v6732_v33  }
0x1497   : > { %6795 = vperm.xlu1 %8849, %v6733_v26  }
0x149b   : > { %6800 = vperm.xlu1 %8849, %v6734_v51  }
0x149c   : > { %v9495_v14 = vpop.eup %9494 }
0x149d   : > { %v12304_v27 = vadd.f32 1.0, %v9495_v14 }
0x149f   : > { %6805 = vperm.xlu1 %8849, %v6735_v45   ;;  %9496 = vrcp.f32 %v12304_v27 }
0x14a3   : > { %6815 = vperm.xlu1 %8849, %v6737_v5  }
0x14ea   : > { %v6741_v28 = vpop.permute.xlu1 %6740  ;;  %v6781_v37 = vpop.permute.xlu0 %6780 }
0x14eb   : > { %v6818_v5 = vmul.f32 %v12632_v29, %v6741_v28  ;;  %v7652_v46 = vrot.slane %v6781_v37, %v10002_v3  ;;  %v7616_v7 = vrot.slane %v6741_v28, %v10002_v3 }
0x14ee   : > { %v6746_v47 = vpop.permute.xlu1 %6745  ;;  %v6811_v22 = vpop.permute.xlu0 %6810 }
0x14ef   : > { %v6819_v44 = vmul.f32 %v12631_v42, %v6746_v47  ;;  %v6826_v42 = vmul.f32 %v12682_v16, %v6781_v37  ;;  %v7620_v1 = vrot.slane %v6746_v47, %v10005_v8 }
0x14f1   : > { %v6834_v49 = vadd.f32 %v6819_v44, %v6818_v5  ;;  %v7621_v28 = vsel %vm1406_vm9, %v7620_v1, %v7616_v7 }
0x14f2   : > { %v6751_v57 = vpop.permute.xlu1 %6750 }
0x14f3   : > { %v6820_v45 = vmul.f32 %v12630_v38, %v6751_v57  ;;  %v7625_v21 = vrot.slane %v6751_v57, %v10002_v3 }
0x14f6   : > { %v6756_v40 = vpop.permute.xlu1 %6755 }
0x14f7   : > { %v6821_v17 = vmul.f32 %v10408_v30, %v6756_v40  ;;  %v7629_v58 = vrot.slane %v6756_v40, %v10005_v8 }
0x14f9   : > { %v6841_v2 = vadd.f32 %v6821_v17, %v6820_v45  ;;  %v7630_v55 = vsel %vm1406_vm9, %v7629_v58, %v7625_v21  ;;  %v6832_v45 = vmul.f32 %v10469_v41, %v6811_v22 }
0x14fa   : > { %v6761_v24 = vpop.permute.xlu1 %6760 }
0x14fb   : > { %v6822_v63 = vmul.f32 %v12679_v52, %v6761_v24  ;;  %v6842_v38 = vrot.slane %v6841_v2, 4  ;;  %v7634_v44 = vrot.slane %v6761_v24, %v10002_v3 }
0x14fe   : > { %v6766_v33 = vpop.permute.xlu1 %6765 }
0x14ff   : > { %v6823_v35 = vmul.f32 %v12655_v54, %v6766_v33  ;;  %v6835_v54 = vrot.slane %v6834_v49, 4  ;;  %v7638_v40 = vrot.slane %v6766_v33, %v10005_v8 }
0x1501   : > { %v6848_v0 = vadd.f32 %v6823_v35, %v6822_v63  ;;  %v6836_v12 = vadd.f32 %v6835_v54, %v6834_v49  ;;  %v7685_v35 = vsel %vm1471_vm10, %v7630_v55, %v7621_v28 }
0x1502   : > { %v12290_v26 = vpop.permute.xlu1 %6770 }
0x1503   : > { %v6824_v30 = vmul.f32 %v12680_v36, %v12290_v26  ;;  %v6849_v10 = vrot.slane %v6848_v0, 4  ;;  %v6837_v5 = vrot.slane %v6836_v12, 2  ;;  %v7643_v33 = vrot.slane %v12290_v26, %v10002_v3 }
0x1505   : > { %v6850_v47 = vadd.f32 %v6849_v10, %v6848_v0 }
0x1506   : > { %v6776_v51 = vpop.permute.xlu1 %6775 }
0x1507   : > { %v6825_v59 = vmul.f32 %v12656_v11, %v6776_v51  ;;  %v6843_v11 = vadd.f32 %v6842_v38, %v6841_v2  ;;  %v7647_v57 = vrot.slane %v6776_v51, %v10005_v8  ;;  %v7639_v51 = vsel %vm1406_vm9, %v7638_v40, %v7634_v44 }
0x1508   : > { %v6851_v52 = vrot.slane %v6850_v47, 2  ;;  %v7686_v38 = vsel %vm1473_vm11, %v7639_v51, %v7685_v35 }
0x1509   : > { %v6855_v61 = vadd.f32 %v6825_v59, %v6824_v30  ;;  %v6844_v60 = vrot.slane %v6843_v11, 2  ;;  %v7648_v63 = vsel %vm1406_vm9, %v7647_v57, %v7643_v33 }
0x150a   : > { %v6786_v25 = vpop.permute.xlu1 %6785  ;;  %v7687_v14 = vsel %vm1475_vm12, %v7648_v63, %v7686_v38  ;;  %v9256_v38 = vld [vmem:[%s12609_s19 + $0xc0] ss:$16 sps:$4 sm:$0xff]  }
0x150b   : > { %v6827_v4 = vmul.f32 %v12681_v20, %v6786_v25  ;;  %v6856_v6 = vrot.slane %v6855_v61, 4  ;;  %v7656_v32 = vrot.slane %v6786_v25, %v10005_v8  ;;  %v6845_v37 = vadd.f32 %v6844_v60, %v6843_v11 }
0x150c   : > { %v6852_v11 = vadd.f32 %v6851_v52, %v6850_v47 }
0x150d   : > { %v6862_v48 = vadd.f32 %v6827_v4, %v6826_v42  ;;  %v6857_v23 = vadd.f32 %v6856_v6, %v6855_v61  ;;  %v7657_v24 = vsel %vm1406_vm9, %v7656_v32, %v7652_v46  ;;  %v7679_v61 = vrot.slane %v6811_v22, %v10002_v3 }
0x150e   : > { %v6791_v29 = vpop.permute.xlu1 %6790  ;;  %v6853_v22 = vrot.slane %v6852_v11, 1 }
0x150f   : > { %v6828_v19 = vmul.f32 %v12683_v34, %v6791_v29  ;;  %v6863_v43 = vrot.slane %v6862_v48, 4  ;;  %v6858_v41 = vrot.slane %v6857_v23, 2  ;;  %v7661_v30 = vrot.slane %v6791_v29, %v10002_v3 }
0x1510   : > { %v6838_v29 = vadd.f32 %v6837_v5, %v6836_v12  ;;  %v6854_v57 = vadd.f32 %v6853_v22, %v6852_v11  ;;  %v9276_v11 = vld [vmem:[%s12609_s19 + $0x64] ss:$16 sps:$4 sm:$0xff]  }
0x1511   : > { %v6864_v59 = vadd.f32 %v6863_v43, %v6862_v48  ;;  %v6859_v10 = vadd.f32 %v6858_v41, %v6857_v23  ;;  %v9497_v41 = vpop.eup %9496 }
0x1512   : > { %v6796_v9 = vpop.permute.xlu1 %6795 }
0x1513   : > { %v6829_v13 = vmul.f32 %v12684_v62, %v6796_v9  ;;  %v7665_v25 = vrot.slane %v6796_v9, %v10005_v8  ;;  %v6865_v16 = vrot.slane %v6864_v59, 2  ;;  %v6860_v43 = vrot.slane %v6859_v10, 1 }
0x1515   : > { %v6869_v53 = vadd.f32 %v6829_v13, %v6828_v19  ;;  %v7666_v54 = vsel %vm1406_vm9, %v7665_v25, %v7661_v30  ;;  %v6866_v21 = vadd.f32 %v6865_v16, %v6864_v59  ;;  %v9253_v30 = vld [vmem:[%s12609_s19 + $0xe8] ss:$16 sps:$4 sm:$0xff]  }
0x1516   : > { %v6801_v17 = vpop.permute.xlu1 %6800  ;;  %v9259_v16 = vld [vmem:[%s12609_s19 + $0xc8] ss:$16 sps:$4 sm:$0xff]  }
0x1517   : > { %v6870_v2 = vrot.slane %v6869_v53, 4  ;;  %v6830_v20 = vmul.f32 %v10473_v18, %v6801_v17  ;;  %v7670_v0 = vrot.slane %v6801_v17, %v10002_v3  ;;  %v7688_v18 = vsel %vm1477_vm13, %v7657_v24, %v7687_v14  ;;  %v9265_v14 = vld [vmem:[%s12609_s19 + $0xa8] ss:$16 sps:$4 sm:$0xff]  }
0x1518   : > { %v6846_v3 = vrot.slane %v6845_v37, 1  ;;  %v7689_v19 = vsel %vm1479_vm14, %v7666_v54, %v7688_v18  ;;  %v6867_v55 = vrot.slane %v6866_v21, 1  ;;  %v6861_v17 = vadd.f32 %v6860_v43, %v6859_v10  ;;  %v9270_v54 = vld [vmem:[%s12609_s19 + $0x84] ss:$16 sps:$4 sm:$0xff]   ;;  %v9279_v18 = vld [vmem:[%s12609_s19 + $0x6c] ss:$16 sps:$4 sm:$0xff]  }
0x1519   : > { %v6871_v49 = vadd.f32 %v6870_v2, %v6869_v53  ;;  %v9282_v10 = vld [vmem:[%s12609_s19 + $0x44] ss:$16 sps:$4 sm:$0xff]  }
0x151a   : > { %v6806_v36 = vpop.permute.xlu1 %6805  ;;  %v6847_v40 = vadd.f32 %v6846_v3, %v6845_v37  ;;  %v6868_v27 = vadd.f32 %v6867_v55, %v6866_v21  ;;  %v9288_v3 = vld [vmem:[%s12609_s19 + $0x24] ss:$16 sps:$4 sm:$0xff]   ;;  %v9291_v21 = vld [vmem:[%s12609_s19 + $0x2c] ss:$16 sps:$4 sm:$0xff]  }
0x151b   : > { %v6831_v26 = vmul.f32 %v12641_v56, %v6806_v36  ;;  %v7674_v4 = vrot.slane %v6806_v36, %v10005_v8  ;;  %v6872_v42 = vrot.slane %v6871_v49, 2  ;;  %v9250_v36 = vld [vmem:[%s12609_s19 + $0xe0] ss:$16 sps:$4 sm:$0xff]  }
0x151d   : > { %v6876_v48 = vadd.f32 %v6831_v26, %v6830_v20  ;;  %v7675_v56 = vsel %vm1406_vm9, %v7674_v4, %v7670_v0  ;;  %v6873_v34 = vadd.f32 %v6872_v42, %v6871_v49  ;;  %v9258_v26 = vld [vmem:[%s12609_s19 + $0xc4] ss:$16 sps:$4 sm:$0xff]   ;;  %v9261_v4 = vld [vmem:[%s12609_s19 + $0xcc] ss:$16 sps:$4 sm:$0xff]  }
0x151e   : > { %v6816_v58 = vpop.permute.xlu1 %6815  ;;  %v7690_v13 = vsel %vm1481_vm15, %v7675_v56, %v7689_v19  ;;  %v9264_v42 = vld [vmem:[%s12609_s19 + $0xa4] ss:$16 sps:$4 sm:$0xff]   ;;  %v9267_v0 = vld [vmem:[%s12609_s19 + $0xac] ss:$16 sps:$4 sm:$0xff]   ;;  %v9274_v56 = vld [vmem:[%s12609_s19 + $0x60] ss:$16 sps:$4 sm:$0xff]  }
0x151f   : > { %v6877_v6 = vrot.slane %v6876_v48, 4  ;;  %v6833_v9 = vmul.f32 %v10477_v50, %v6816_v58  ;;  %v7683_v1 = vrot.slane %v6816_v58, %v10005_v8  ;;  %v6839_v50 = vrot.slane %v6838_v29, 1  ;;  %v9277_v58 = vld [vmem:[%s12609_s19 + $0x68] ss:$16 sps:$4 sm:$0xff]  }
0x1520   : > { %v6874_v53 = vrot.slane %v6873_v34, 1  ;;  %v9289_v19 = vld [vmem:[%s12609_s19 + $0x28] ss:$16 sps:$4 sm:$0xff]  }
0x1521   : > { %v6878_v62 = vadd.f32 %v6877_v6, %v6876_v48  ;;  %v6883_v46 = vadd.f32 %v6833_v9, %v6832_v45  ;;  %v7684_v7 = vsel %vm1406_vm9, %v7683_v1, %v7679_v61  ;;  %v6840_v32 = vadd.f32 %v6839_v50, %v6838_v29  ;;  %v9262_v61 = vld [vmem:[%s12609_s19 + $0xa0] ss:$16 sps:$4 sm:$0xff]   ;;  %v9271_v29 = vld [vmem:[%s12609_s19 + $0x88] ss:$16 sps:$4 sm:$0xff]   ;;  %v9285_v6 = vld [vmem:[%s12609_s19 + $0x4c] ss:$16 sps:$4 sm:$0xff]  }
0x1522   : > { %v7691_v12 = vsel %vm1483_vm0, %v7684_v7, %v7690_v13  ;;  %v6875_v2 = vadd.f32 %v6874_v53, %v6873_v34  ;;  %v9268_v48 = vld [vmem:[%s12609_s19 + $0x80] ss:$16 sps:$4 sm:$0xff]   ;;  %v9283_v1 = vld [vmem:[%s12609_s19 + $0x48] ss:$16 sps:$4 sm:$0xff]   ;;  %v9297_v13 = vld [vmem:[%s12609_s19 + $0xc] ss:$16 sps:$4 sm:$0xff]  }
0x1523   : > { %v6879_v8 = vrot.slane %v6878_v62, 2  ;;  %v6884_v60 = vrot.slane %v6883_v46, 4  ;;  %8347 = vst.msk [vmem:[%s9769_s27 + $0x18] sm:$0xff] %vm1486_vm1, %v7691_v12  ;;  %v7015_v44 = vsel %vm1471_vm10, %v6847_v40, %v6840_v32  ;;  %v9280_v9 = vld [vmem:[%s12609_s19 + $0x40] ss:$16 sps:$4 sm:$0xff]  }
0x1524   : > { %v7016_v35 = vsel %vm1473_vm11, %v6854_v57, %v7015_v44  ;;  %v9286_v34 = vld [vmem:[%s12609_s19 + $0x20] ss:$16 sps:$4 sm:$0xff]   ;;  %v9295_v7 = vld [vmem:[%s12609_s19 + $0x8] ss:$16 sps:$4 sm:$0xff]  }
0x1525   : > { %v6880_v47 = vadd.f32 %v6879_v8, %v6878_v62  ;;  %v6885_v23 = vadd.f32 %v6884_v60, %v6883_v46  ;;  %v7017_v59 = vsel %vm1475_vm12, %v6861_v17, %v7016_v35  ;;  %v9294_v62 = vld [vmem:[%s12609_s19 + $0x4] ss:$16 sps:$4 sm:$0xff]   ;;  %v9292_v46 = vld [vmem:[%s12609_s19] ss:$16 sps:$4 sm:$0xff]  }
0x1526   : > { %v7018_v37 = vsel %vm1477_vm13, %v6868_v27, %v7017_v59  ;;  %v8275_v53 = vld [vmem:[%s9765_s28 + $0x60] sm:$0xff] }
0x1527   : > { %v6881_v45 = vrot.slane %v6880_v47, 1  ;;  %v6886_v28 = vrot.slane %v6885_v23, 2  ;;  %v7019_v25 = vsel %vm1479_vm14, %v6875_v2, %v7018_v37 }
0x1529   : > { %v6887_v5 = vadd.f32 %v6886_v28, %v6885_v23  ;;  %v6882_v33 = vadd.f32 %v6881_v45, %v6880_v47  ;;  %v8276_v47 = vld [vmem:[%s9765_s28 + $0x68] sm:$0xff] }
0x152b   : > { %v6888_v51 = vrot.slane %v6887_v5, 1  ;;  %v7020_v52 = vsel %vm1481_vm15, %v6882_v33, %v7019_v25  ;;  %v8277_v25 = vld [vmem:[%s9765_s28 + $0x70] sm:$0xff] }
0x152d   : > { %v6889_v49 = vadd.f32 %v6888_v51, %v6887_v5  ;;  %v8278_v51 = vld [vmem:[%s9765_s28 + $0x78] sm:$0xff] }
0x152f   : > { %v7021_v63 = vsel %vm1483_vm0, %v6889_v49, %v7020_v52 }
0x1530   : > { %v7023_v24 = vmul.f32 %v9497_v41, %v7021_v63 }
0x1532   : > { %v7029_v20 = vpack.c.bf16 %v7023_v24, %v7023_v24 }
0x1534   : > { %7255 = vmatmul.mubr.bf16.vlgmr.msra.gmra.mxu0 %v7029_v20  ;;  %7296 = vmatmul.mubr.bf16.vlgmr.msra.gmra.mxu1 %v7029_v20 }
0x1535   : > { %7501 = vmatpush1.bf16.msra.mxu0 %v9250_v36  ;;  %7542 = vmatpush1.bf16.msra.mxu1 %v9253_v30 }
0x1536   : > { %7502 = vmatprep.subr.bf16.mxu0 %v9258_v26  ;;  %7543 = vmatprep.subr.bf16.mxu1 %v9261_v4 }
0x1537   : > { %7532 = vmatprep.mubr.bf16.mxu0 %v12623_v31  ;;  %7573 = vmatprep.mubr.bf16.mxu1 %v12623_v31  ;;  %v9273_v31 = vld [vmem:[%s12609_s19 + $0x8c] ss:$16 sps:$4 sm:$0xff]  }
0x1539   : > { %7503 = vmatpush1.bf16.msra.mxu0 %v9256_v38  ;;  %7544 = vmatpush1.bf16.msra.mxu1 %v9259_v16 }
0x153a   : > { %7504 = vmatprep.subr.bf16.mxu0 %v9264_v42  ;;  %7545 = vmatprep.subr.bf16.mxu1 %v9267_v0 }
0x153d   : > { %7505 = vmatpush1.bf16.msra.mxu0 %v9262_v61  ;;  %7546 = vmatpush1.bf16.msra.mxu1 %v9265_v14 }
0x153e   : > { %7506 = vmatprep.subr.bf16.mxu0 %v9270_v54  ;;  %7547 = vmatprep.subr.bf16.mxu1 %v9273_v31 }
0x1541   : > { %7507 = vmatpush1.bf16.msra.mxu0 %v9268_v48  ;;  %7548 = vmatpush1.bf16.msra.mxu1 %v9271_v29 }
0x1542   : > { %7508 = vmatprep.subr.bf16.mxu0 %v9276_v11  ;;  %7549 = vmatprep.subr.bf16.mxu1 %v9279_v18  ;;  %v7731_v11 = vld [vmem:[%s9767_s23 + $0x4] sm:$0xf] (%p9716_p6)  ;;  %v7733_v18 = vld [vmem:[%s9767_s23 + $0x8] sm:$0xf] (%p9716_p6) }
0x1543   : > { %7732 = vst [vmem:[%s7712_s6 + $0x8] sm:$0xf] (%p9716_p6), %v7731_v11  ;;  %7734 = vst [vmem:[%s7712_s6 + $0x10] sm:$0xf] (%p9716_p6), %v7733_v18 }
0x1545   : > { %7509 = vmatpush1.bf16.msra.mxu0 %v9274_v56  ;;  %7550 = vmatpush1.bf16.msra.mxu1 %v9277_v58 }
0x1546   : > { %7510 = vmatprep.subr.bf16.mxu0 %v9282_v10  ;;  %7551 = vmatprep.subr.bf16.mxu1 %v9285_v6 }
0x1549   : > { %7511 = vmatpush1.bf16.msra.mxu0 %v9280_v9  ;;  %7552 = vmatpush1.bf16.msra.mxu1 %v9283_v1 }
0x154a   : > { %7512 = vmatprep.subr.bf16.mxu0 %v9288_v3  ;;  %7553 = vmatprep.subr.bf16.mxu1 %v9291_v21 }
0x154d   : > { %7513 = vmatpush1.bf16.msra.mxu0 %v9286_v34  ;;  %7554 = vmatpush1.bf16.msra.mxu1 %v9289_v19 }
0x154e   : > { %7514 = vmatprep.subr.bf16.mxu0 %v9294_v62  ;;  %7555 = vmatprep.subr.bf16.mxu1 %v9297_v13 }
0x1551   : > { %7515 = vmatpush1.bf16.msra.mxu0 %v9292_v46  ;;  %7556 = vmatpush1.bf16.msra.mxu1 %v9295_v7 }
0x1554   : > { %7533 = vmatmul.mubr.bf16.vlgmr.msra.gmra.mxu0 %v11914_v39  ;;  %7574 = vmatmul.mubr.bf16.vlgmr.msra.gmra.mxu1 %v11914_v39 }
0x15f4   : > { %v7256_v22 = vpop.f32.mrf.mxu0  ;;  %v7297_v12 = vpop.f32.mrf.mxu1 }
0x15f5   : > { %v7304_v23 = vadd.f32 %v8275_v53, %v7256_v22  ;;  %v7306_v52 = vadd.f32 %v8277_v25, %v7297_v12 }
0x15f6   : > { %v7258_v50 = vpop.f32.mrf.mxu0  ;;  %v7299_v43 = vpop.f32.mrf.mxu1 }
0x15f7   : > { %v7305_v17 = vadd.f32 %v8276_v47, %v7258_v50  ;;  %v7307_v37 = vadd.f32 %v8278_v51, %v7299_v43 }
0x15f8   : > { %v7260_v8 = vpop.f32.mrf.mxu0  ;;  %v7301_v60 = vpop.f32.mrf.mxu1 }
0x15fa   : > { %v7261_v55 = vpop.f32.mrf.mxu0  ;;  %v7302_v40 = vpop.f32.mrf.mxu1 }
0x1614   : > { %v7534_v57 = vpop.f32.mrf.mxu0  ;;  %v7575_v32 = vpop.f32.mrf.mxu1 }
0x1615   : > { %v7582_v45 = vadd.f32 %v7534_v57, %v7304_v23  ;;  %v7584_v24 = vadd.f32 %v7575_v32, %v7306_v52 }
0x1616   : > { %v7536_v28 = vpop.f32.mrf.mxu0  ;;  %v7577_v27 = vpop.f32.mrf.mxu1 }
0x1617   : > { %v8343_v39 = vmul.f32 -1.442695, %v7582_v45  ;;  %v7583_v44 = vadd.f32 %v7536_v28, %v7305_v17  ;;  %v7585_v49 = vadd.f32 %v7577_v27, %v7307_v37 }
0x1618   : > { %v7538_v2 = vpop.f32.mrf.mxu0  ;;  %v7579_v5 = vpop.f32.mrf.mxu1 }
0x1619   : > { %9498 = vpow2.f32 %v8343_v39  ;;  %v8344_v35 = vmul.f32 -1.442695, %v7583_v44  ;;  %v8345_v41 = vmul.f32 -1.442695, %v7585_v49 }
0x161a   : > { %v7539_v33 = vpop.f32.mrf.mxu0  ;;  %v7580_v59 = vpop.f32.mrf.mxu1 }
0x161b   : > { %9500 = vpow2.f32 %v8344_v35 }
0x161c   : > { %9502 = vpow2.f32 %v8345_v41 }
0x1626   : > { %v9499_v63 = vpop.eup %9498 }
0x1627   : > { %v7589_v36 = vadd.f32 1.0, %v9499_v63 }
0x1628   : > { %v9501_v30 = vpop.eup %9500 }
0x1629   : > { %9504 = vrcp.f32 %v7589_v36  ;;  %v7595_v20 = vadd.f32 1.0, %v9501_v30  ;;  %v9503_v26 = vpop.eup %9502 }
0x162a   : > { %9506 = vtanh.f32 %v7584_v24  ;;  %v7602_v42 = vadd.f32 1.0, %v9503_v26 }
0x162b   : > { %9508 = vrcp.f32 %v7595_v20 }
0x162c   : > { %9510 = vrcp.f32 %v7602_v42 }
0x1636   : > { %v9505_v4 = vpop.eup %9504 }
0x1637   : > { %v9507_v38 = vpop.eup %9506 }
0x1638   : > { %v9509_v16 = vpop.eup %9508  ;;  %v7606_v0 = vmul.f32 %v9507_v38, %v9505_v4 }
0x1639   : > { %v7605_v61 = vmul.f32 %v9509_v16, %v11911_v15  ;;  %v9511_v54 = vpop.eup %9510  ;;  %v7729_v15 = vld [vmem:[%s9767_s23] sm:$0xf] (%p9716_p6) }
0x163a   : > { %7730 = vst [vmem:[%s7712_s6] sm:$0xf] (%p9716_p6), %v7729_v15 }
0x163b   : > { %v7607_v14 = vadd.f32 %v7606_v0, %v7605_v61 }
0x163d   : > { %9512 = vtanh.f32 %v7607_v14  ;;  %7696 = vst [vmem:[#allocation3] sm:$0xff] %v7607_v14 }
0x164a   : > { %v9513_v31 = vpop.eup %9512 }
0x164b   : > { %v7609_v48 = vmul.f32 %v9513_v31, %v9511_v54  ;;  %7707 = sbr.rel (!%p9716_p6) target bundleno = 5720 (0x1658), region = 111 }
0x164d   : > { %v7610_v29 = vpack.c.bf16 %v7609_v48, %v7609_v48  ;;  %7695 = vst [vmem:[#allocation2] sm:$0xff] %v7609_v48 }
0x164f   : > { %8346 = vst [vmem:[%s9767_s23 + $0xc] sm:$0xf] %v7610_v29 }
0x1656   : > { %v7735_v56 = vld [vmem:[%s9767_s23 + $0xc] sm:$0xf] }
0x1657   : > { %7736 = vst [vmem:[%s7712_s6 + $0x18] sm:$0xf] %v7735_v56 }
0x1658 PF: > { %7768 = sbr.rel (!%p9716_p6) target bundleno = 5730 (0x1662), region = 152  ;;  %s8362_s23 = sshll.u32 (%p9716_p6), %s9556_s25, 3  ;;  %v7808_v58 = vld [vmem:[%s9769_s27] sm:$0xff] (%p9716_p6)  ;;  %v7810_v10 = vld [vmem:[%s9769_s27 + $0x8] sm:$0xff] (%p9716_p6)  ;;  %v7812_v6 = vld [vmem:[%s9769_s27 + $0x10] sm:$0xff] (%p9716_p6) }
0x1659   : > { %s7771_s21 = sadd.s32 (%p9716_p6), %s9560_s26, %s8362_s23  ;;  %v7814_v9 = vld [vmem:[%s9769_s27 + $0x18] sm:$0xff] (%p9716_p6)  ;;  %s12688_s2 = sld [smem:[#allocation46_spill]] (%p9716_p6) }
0x165a   : > { %s8355_s17 = sshll.u32 (%p9716_p6), %s7771_s21, 3 }
0x165f   : > { %s7773_s10 = scalar_lea.vmem %s12688_s2, %s8355_s17 }
0x1660   : > { %7809 = vst [vmem:[%s7773_s10] sm:$0xff] %v7808_v58  ;;  %7811 = vst [vmem:[%s7773_s10 + $0x10] sm:$0xff] %v7810_v10 }
0x1661   : > { %7813 = vst [vmem:[%s7773_s10 + $0x20] sm:$0xff] %v7812_v6  ;;  %7815 = vst [vmem:[%s7773_s10 + $0x30] sm:$0xff] %v7814_v9 }
0x1662 PF: > { %s29_s29 = sadd.s32 1, %s9572_s29   ;;  %s12689_s25 = sld [smem:[#allocation8_spill]] }
0x1663   : > { %p26_p0 = scmp.ge.s32.totalorder %s29_s29, 8   ;;  %s12690_s26 = sld [smem:[#allocation9_spill]] }
0x1664   : > { %s12691_s27 = sld [smem:[#allocation10_spill]]  ;;  %s12693_s23 = smov %s9552_s24 }
0x1665   : > { %s12692_s28 = sld [smem:[#allocation11_spill]]  ;;  %s12694_s24 = smov %s9724_s22 }
0x1666   :  { %28 = sbr.rel (!%p26_p0) target bundleno = 11 (0xb), region = 248 }

</bundles_post_ra>
